<compile_context>
chip_gen: v5e
topology: v5e:2x2
jax: 0.10.0
libtpu: 0.0.40
codegen_flags: <defaults>
</compile_context>

<pallas_src>
import functools

import jax
import jax.numpy as jnp
from jax import lax
from jax.experimental import pallas as pl
from jax.experimental.pallas import tpu as pltpu

_XW_CHUNK_TARGET_ROWS = 256  # ~ rows (time*batch) per Phase-1 chunk matmul


def lstm_kernel(x_ref, h0_ref, c0_ref, wx_ref, wh_ref, b_ref, wy_ref, by_ref,
                out_ref, h_out_ref, c_out_ref, xw_ref, hseq_ref,
                *, seq_len, batch, hidden_size, steps_per_chunk):
    """Single invocation: chunked input projection, recurrence, bulk output projection.

    x_ref    : (S*B, E)     bf16, time-major flattened embedded inputs
    xw_ref   : (n_buf*CR,4H) f32 VMEM scratch, CR = steps_per_chunk*B (double buffer)
    hseq_ref : (S*B, H)     bf16 VMEM scratch (per-step hidden states)
    out_ref  : (S*B, O_pad) f32 (lane-dense, padded output)
    """
    H = hidden_size
    chunk_rows = steps_per_chunk * batch
    n_chunks = seq_len // steps_per_chunk

    def input_proj(row0):
        # One MXU matmul for a whole time-chunk (M = chunk_rows), bias folded in.
        return (jnp.dot(x_ref[pl.ds(row0, chunk_rows), :], wx_ref[...],
                        preferred_element_type=jnp.float32)
                + b_ref[...])

    # ---- Phase 1 (prime): first chunk's gate inputs into buffer slot 0 ----
    xw_ref[pl.ds(0, chunk_rows), :] = input_proj(0)

    # ---- Phase 2: chunk loop (rolled) + per-step recurrence (unrolled) ----
    def chunk_body(ci, carry):
        h, c = carry
        slot = ci % 2
        nslot = 1 - slot

        # Compute the NEXT chunk's XW into the other buffer half while this
        # chunk's recurrence runs on the VPU/EUP.
        @pl.when(ci + 1 < n_chunks)
        def _():
            row0 = pl.multiple_of((ci + 1) * chunk_rows, batch)
            dst = pl.multiple_of(nslot * chunk_rows, batch)
            xw_ref[pl.ds(dst, chunk_rows), :] = input_proj(row0)

        def step(t, hc):
            h, c = hc
            src = pl.multiple_of(slot * chunk_rows + t * batch, batch)
            gates = xw_ref[pl.ds(src, batch), :] + jnp.dot(
                h.astype(jnp.bfloat16), wh_ref[...],
                preferred_element_type=jnp.float32)
            # Packed transcendentals: sigmoid over the contiguous [i, f, o]
            # slab, tanh over the cell-candidate slab -> full-vreg EUP work.
            sig = jax.nn.sigmoid(gates[:, 0:3 * H])
            i_g = sig[:, 0 * H:1 * H]
            f_g = sig[:, 1 * H:2 * H]
            o_g = sig[:, 2 * H:3 * H]
            g_g = jnp.tanh(gates[:, 3 * H:4 * H])
            c_new = f_g * c + i_g * g_g
            h_new = o_g * jnp.tanh(c_new)
            grow = pl.multiple_of((ci * steps_per_chunk + t) * batch, batch)
            hseq_ref[pl.ds(grow, batch), :] = h_new.astype(hseq_ref.dtype)
            return (h_new, c_new)

        unroll = steps_per_chunk if steps_per_chunk <= 16 else 8
        return lax.fori_loop(0, steps_per_chunk, step, (h, c), unroll=unroll)

    h_fin, c_fin = lax.fori_loop(0, n_chunks, chunk_body,
                                 (h0_ref[...], c0_ref[...]))

    # ---- Phase 3: hoisted output projection, one big MXU matmul + lane-dense store ----
    out_ref[...] = (jnp.dot(hseq_ref[...], wy_ref[...],
                            preferred_element_type=jnp.float32)
                    + by_ref[...]).astype(out_ref.dtype)
    h_out_ref[...] = h_fin
    c_out_ref[...] = c_fin


def _choose_chunk_steps(seq_len, batch_pad, target_rows=_XW_CHUNK_TARGET_ROWS):
    """Largest divisor of seq_len whose chunk (steps*batch) stays near target_rows."""
    steps = max(1, min(seq_len, max(1, target_rows // batch_pad)))
    while seq_len % steps:
        steps -= 1
    return steps


def _pick_vmem_limit(required_bytes):
    """Scoped VMEM limit from actual footprint + chip capacity (v7x = 64 MiB)."""
    try:
        info = pltpu.get_tpu_info()
        cap = int(getattr(info, "vmem_capacity_bytes", 0)) or (64 << 20)
    except Exception:  # pragma: no cover - conservative fallback
        cap = 64 << 20
    want = max(required_bytes * 5 // 4 + (4 << 20), 32 << 20)
    return int(min(want, cap * 3 // 4))


@jax.jit
def lstm_pallas(x_tokens, hidden_state, cell_state, params):
    """Mirrors LSTM.forward(x, hidden_state, cell_state).

    x_tokens: (batch, seq) int32 token ids
    hidden_state, cell_state: (batch, hidden) float32
    returns (outputs (batch, seq, output), new_hidden, new_cell)
    """
    emb, wx, wh, b, wy, by = (params["emb"], params["wx"], params["wh"],
                              params["b"], params["wy"], params["by"])
    B, S = x_tokens.shape
    E = emb.shape[1]
    H = hidden_state.shape[1]
    O = wy.shape[1]

    # bf16 hseq stores want full 16-row sublane tiles -> pad batch to 16
    # (minimum multiple needed; pad rows are sliced off after the call).
    B_pad = ((B + 15) // 16) * 16
    pad = B_pad - B
    tok_p = jnp.pad(x_tokens, ((0, pad), (0, 0)))
    h0_p = jnp.pad(hidden_state, ((0, pad), (0, 0)))
    c0_p = jnp.pad(cell_state, ((0, pad), (0, 0)))

    # Lane-dense output projection: pad O up to a multiple of 128 so Phase 3
    # issues unmasked full-lane stores; slice back to O afterwards.
    O_pad = ((O + 127) // 128) * 128
    wy_p = jnp.pad(wy, ((0, 0), (0, O_pad - O))).astype(jnp.bfloat16)
    by_p = jnp.pad(by, ((0, 0), (0, O_pad - O)))

    # Embedding lookup done time-major directly in bf16 (no f32 intermediate slab).
    # TODO(synk): the gather itself stays in XLA glue; an in-kernel gather would
    # need PrefetchScalarGridSpec + a pl.Element row-gather BlockSpec on token ids.
    x_flat = jnp.take(emb.astype(jnp.bfloat16), tok_p.T, axis=0).reshape(S * B_pad, E)

    # bf16 matmul operands (MXU-native); accumulation + gate math stay f32.
    wx_bf = wx.astype(jnp.bfloat16)
    wh_bf = wh.astype(jnp.bfloat16)

    steps_per_chunk = _choose_chunk_steps(S, B_pad)
    chunk_rows = steps_per_chunk * B_pad
    n_chunks = S // steps_per_chunk
    n_buf = 2 if n_chunks > 1 else 1

    kernel = functools.partial(lstm_kernel, seq_len=S, batch=B_pad,
                               hidden_size=H, steps_per_chunk=steps_per_chunk)

    required_bytes = (
        S * B_pad * E * 2                      # x_flat (bf16)
        + E * 4 * H * 2 + H * 4 * H * 2        # Wx, Wh (bf16)
        + H * O_pad * 2                        # Wy (bf16)
        + 4 * H * 4 + O_pad * 4                # biases (f32)
        + 2 * B_pad * H * 4                    # h0, c0
        + S * B_pad * O_pad * 4                # padded output
        + 2 * B_pad * H * 4                    # h_out, c_out
        + n_buf * chunk_rows * 4 * H * 4       # XW chunk double buffer (f32)
        + S * B_pad * H * 2                    # hseq (bf16)
    )

    out_flat, h_new_p, c_new_p = pl.pallas_call(
        kernel,
        out_shape=(
            jax.ShapeDtypeStruct((S * B_pad, O_pad), jnp.float32),
            jax.ShapeDtypeStruct((B_pad, H), jnp.float32),
            jax.ShapeDtypeStruct((B_pad, H), jnp.float32),
        ),
        scratch_shapes=[
            pltpu.VMEM((n_buf * chunk_rows, 4 * H), jnp.float32),  # XW chunk buffer
            pltpu.VMEM((S * B_pad, H), jnp.bfloat16),              # per-step hidden states
        ],
        compiler_params=pltpu.CompilerParams(
            vmem_limit_bytes=_pick_vmem_limit(required_bytes),
        ),
    )(x_flat, h0_p, c0_p, wx_bf, wh_bf, b, wy_p, by_p)

    # (S, B_pad, O_pad) -> (B, S, O); tiny slice/transpose on the final output only.
    outputs = out_flat.reshape(S, B_pad, O_pad)[:, :B, :O].transpose(1, 0, 2)
    return outputs, h_new_p[:B], c_new_p[:B]


def lstm_reference(x_tokens, hidden_state, cell_state, params):
    """Plain-JAX f32 reference matching the PyTorch forward semantics."""
    emb, wx, wh, b, wy, by = (params["emb"], params["wx"], params["wh"],
                              params["b"], params["wy"], params["by"])
    H = hidden_state.shape[1]
    x_emb = jnp.take(emb, x_tokens, axis=0).astype(jnp.float32)
    h, c = hidden_state, cell_state
    outs = []
    for t in range(x_tokens.shape[1]):
        x_t = x_emb[:, t, :]
        gates = x_t @ wx + h @ wh + b
        i = jax.nn.sigmoid(gates[:, 0 * H:1 * H])
        f = jax.nn.sigmoid(gates[:, 1 * H:2 * H])
        o = jax.nn.sigmoid(gates[:, 2 * H:3 * H])
        g = jnp.tanh(gates[:, 3 * H:4 * H])
        c = f * c + i * g
        h = o * jnp.tanh(c)
        outs.append(h @ wy + by)
    return jnp.stack(outs, axis=1), h, c


def make_params(key, vocab_size, embedding_dim, hidden_size, output_size):
    """Deterministic synthetic parameters (shapes match the nn.Module __init__).

    nn.Linear(in, out) computes x @ W.T + b; we pass the transposed weights
    (in, out) so the kernel does x @ W directly, packing the four gates along
    the output axis in order [i, f, o, c]."""
    ks = jax.random.split(key, 12)
    s = 0.05
    emb = jax.random.normal(ks[0], (vocab_size, embedding_dim), jnp.float32) * s
    wxi = jax.random.normal(ks[1], (embedding_dim, hidden_size), jnp.float32) * s
    wxf = jax.random.normal(ks[2], (embedding_dim, hidden_size), jnp.float32) * s
    wxo = jax.random.normal(ks[3], (embedding_dim, hidden_size), jnp.float32) * s
    wxc = jax.random.normal(ks[4], (embedding_dim, hidden_size), jnp.float32) * s
    whi = jax.random.normal(ks[5], (hidden_size, hidden_size), jnp.float32) * s
    whf = jax.random.normal(ks[6], (hidden_size, hidden_size), jnp.float32) * s
    who = jax.random.normal(ks[7], (hidden_size, hidden_size), jnp.float32) * s
    whc = jax.random.normal(ks[8], (hidden_size, hidden_size), jnp.float32) * s
    bi = jax.random.normal(ks[9], (4, hidden_size), jnp.float32) * s  # biases of Wxi/Wxf/Wxo/Wxc
    wy = jax.random.normal(ks[10], (hidden_size, output_size), jnp.float32) * s
    by = jax.random.normal(ks[11], (1, output_size), jnp.float32) * s
    wx = jnp.concatenate([wxi, wxf, wxo, wxc], axis=1)                 # (E, 4H)
    wh = jnp.concatenate([whi, whf, who, whc], axis=1)                 # (H, 4H)
    b = bi.reshape(1, 4 * hidden_size)                                 # (1, 4H)
    return {"emb": emb, "wx": wx, "wh": wh, "b": b, "wy": wy, "by": by}


if __name__ == "__main__":
    # SEQ chosen so the time-chunked double-buffer path is exercised
    # (B_pad=16, steps_per_chunk=16 -> 3 chunks).
    VOCAB, EMB, HID, OUT = 100, 128, 128, 64
    BATCH, SEQ = 4, 48

    key = jax.random.PRNGKey(0)
    k_tok, k_par = jax.random.split(key)

    x_tokens = jax.random.randint(k_tok, (BATCH, SEQ), 0, VOCAB, dtype=jnp.int32)
    hidden0 = jnp.zeros((BATCH, HID), jnp.float32)   # init_hidden_cell
    cell0 = jnp.zeros((BATCH, HID), jnp.float32)
    params = make_params(k_par, VOCAB, EMB, HID, OUT)

    outputs, h_new, c_new = lstm_pallas(x_tokens, hidden0, cell0, params)
    jax.block_until_ready((outputs, h_new, c_new))

    ref_out, ref_h, ref_c = lstm_reference(x_tokens, hidden0, cell0, params)
    assert outputs.shape == (BATCH, SEQ, OUT)
    assert h_new.shape == (BATCH, HID) and c_new.shape == (BATCH, HID)
    assert jnp.allclose(outputs, ref_out, atol=2e-2, rtol=2e-2)
    assert jnp.allclose(h_new, ref_h, atol=2e-2, rtol=2e-2)
    assert jnp.allclose(c_new, ref_c, atol=2e-2, rtol=2e-2)

    print("KERNEL_OK")
</pallas_src>

<mosaic_0001>
module attributes {stable_mosaic.version = 11 : i64} {
  func.func @lstm_kernel(%arg0: memref<768x128xbf16, #tpu.memory_space<vmem>>, %arg1: memref<16x128xf32, #tpu.memory_space<vmem>>, %arg2: memref<16x128xf32, #tpu.memory_space<vmem>>, %arg3: memref<128x512xbf16, #tpu.memory_space<vmem>>, %arg4: memref<128x512xbf16, #tpu.memory_space<vmem>>, %arg5: memref<1x512xf32, #tpu.memory_space<vmem>>, %arg6: memref<128x128xbf16, #tpu.memory_space<vmem>>, %arg7: memref<1x128xf32, #tpu.memory_space<vmem>>, %arg8: memref<768x128xf32, #tpu.memory_space<vmem>>, %arg9: memref<16x128xf32, #tpu.memory_space<vmem>>, %arg10: memref<16x128xf32, #tpu.memory_space<vmem>>, %arg11: memref<512x512xf32, #tpu.memory_space<vmem>>, %arg12: memref<768x128xbf16, #tpu.memory_space<vmem>>) attributes {dimension_semantics = [], scalar_prefetch = 0 : i64, scratch_operands = 2 : i64, tpu.core_type = #tpu.core_type<tc>} {
    %c0 = arith.constant 0 : index
    %c0_0 = arith.constant 0 : index
    %0 = vector.load %arg0[%c0, %c0_0] : memref<768x128xbf16, #tpu.memory_space<vmem>>, vector<256x128xbf16>
    %c0_1 = arith.constant 0 : index
    %c0_2 = arith.constant 0 : index
    %1 = vector.load %arg3[%c0_1, %c0_2] : memref<128x512xbf16, #tpu.memory_space<vmem>>, vector<128x512xbf16>
    %cst = arith.constant dense<0.000000e+00> : vector<256x512xf32>
    %2 = tpu.matmul %0, %1, %cst {dimension_numbers = #tpu.dot_dimension_numbers<[1], [0], [0], [1], [0, 0, 1, 1], [], []>} : vector<256x128xbf16>, vector<128x512xbf16>, vector<256x512xf32> -> vector<256x512xf32>
    %c0_3 = arith.constant 0 : index
    %c0_4 = arith.constant 0 : index
    %3 = vector.load %arg5[%c0_3, %c0_4] : memref<1x512xf32, #tpu.memory_space<vmem>>, vector<1x512xf32>
    %4 = vector.broadcast %3 : vector<1x512xf32> to vector<256x512xf32>
    %5 = arith.addf %2, %4 : vector<256x512xf32>
    %c0_5 = arith.constant 0 : index
    %c0_6 = arith.constant 0 : index
    %6 = vector.load %arg11[%c0_5, %c0_6] : memref<512x512xf32, #tpu.memory_space<vmem>>, vector<256x512xf32>
    tpu.vector_store %arg11[%c0_5, %c0_6], %5 {strides = array<i32>} : memref<512x512xf32, #tpu.memory_space<vmem>>, vector<256x512xf32>,
    %c0_7 = arith.constant 0 : index
    %c0_8 = arith.constant 0 : index
    %7 = vector.load %arg1[%c0_7, %c0_8] : memref<16x128xf32, #tpu.memory_space<vmem>>, vector<16x128xf32>
    %c0_9 = arith.constant 0 : index
    %c0_10 = arith.constant 0 : index
    %8 = vector.load %arg2[%c0_9, %c0_10] : memref<16x128xf32, #tpu.memory_space<vmem>>, vector<16x128xf32>
    %c0_i32 = arith.constant 0 : i32
    %c3_i32 = arith.constant 3 : i32
    %9 = arith.addi %c0_i32, %c3_i32 : i32
    %c1_i32 = arith.constant 1 : i32
    %10:2 = scf.for %arg13 = %c0_i32 to %9 step %c1_i32 iter_args(%arg14 = %7, %arg15 = %8) -> (vector<16x128xf32>, vector<16x128xf32>)  : i32 {
      %c2_i32 = arith.constant 2 : i32
      %c0_i32_25 = arith.constant 0 : i32
      %20 = arith.cmpi eq, %c2_i32, %c0_i32_25 : i32
      %c1_i32_26 = arith.constant 1 : i32
      %21 = arith.select %20, %c1_i32_26, %c2_i32 : i32
      %22 = arith.remsi %arg13, %21 : i32
      %c0_i32_27 = arith.constant 0 : i32
      %23 = arith.cmpi ne, %22, %c0_i32_27 : i32
      %c0_i32_28 = arith.constant 0 : i32
      %24 = arith.cmpi slt, %22, %c0_i32_28 : i32
      %c0_i32_29 = arith.constant 0 : i32
      %25 = arith.cmpi slt, %21, %c0_i32_29 : i32
      %26 = arith.xori %24, %25 : i1
      %27 = arith.andi %26, %23 : i1
      %28 = arith.addi %22, %21 : i32
      %29 = arith.select %27, %28, %22 : i32
      %c1_i32_30 = arith.constant 1 : i32
      %30 = arith.subi %c1_i32_30, %29 : i32
      %c1_i32_31 = arith.constant 1 : i32
      %31 = arith.addi %arg13, %c1_i32_31 : i32
      %c3_i32_32 = arith.constant 3 : i32
      %32 = arith.cmpi slt, %31, %c3_i32_32 : i32
      %33 = arith.extui %32 : i1 to i32
      %c0_i32_33 = arith.constant 0 : i32
      %34 = arith.cmpi ne, %33, %c0_i32_33 : i32
      scf.if %34 {
        %c1_i32_197 = arith.constant 1 : i32
        %563 = arith.addi %arg13, %c1_i32_197 : i32
        %c256_i32_198 = arith.constant 256 : i32
        %564 = arith.muli %563, %c256_i32_198 : i32
        %565 = tpu.assume_multiple %564, 16 : i32
        %c256_i32_199 = arith.constant 256 : i32
        %566 = arith.muli %30, %c256_i32_199 : i32
        %567 = tpu.assume_multiple %566, 16 : i32
        %568 = arith.index_cast %565 : i32 to index
        %c0_200 = arith.constant 0 : index
        %569 = vector.load %arg0[%568, %c0_200] : memref<768x128xbf16, #tpu.memory_space<vmem>>, vector<256x128xbf16>
        %c0_201 = arith.constant 0 : index
        %c0_202 = arith.constant 0 : index
        %570 = vector.load %arg3[%c0_201, %c0_202] : memref<128x512xbf16, #tpu.memory_space<vmem>>, vector<128x512xbf16>
        %cst_203 = arith.constant dense<0.000000e+00> : vector<256x512xf32>
        %571 = tpu.matmul %569, %570, %cst_203 {dimension_numbers = #tpu.dot_dimension_numbers<[1], [0], [0], [1], [0, 0, 1, 1], [], []>} : vector<256x128xbf16>, vector<128x512xbf16>, vector<256x512xf32> -> vector<256x512xf32>
        %c0_204 = arith.constant 0 : index
        %c0_205 = arith.constant 0 : index
        %572 = vector.load %arg5[%c0_204, %c0_205] : memref<1x512xf32, #tpu.memory_space<vmem>>, vector<1x512xf32>
        %573 = vector.broadcast %572 : vector<1x512xf32> to vector<256x512xf32>
        %574 = arith.addf %571, %573 : vector<256x512xf32>
        %575 = arith.index_cast %567 : i32 to index
        %c0_206 = arith.constant 0 : index
        %576 = vector.load %arg11[%575, %c0_206] : memref<512x512xf32, #tpu.memory_space<vmem>>, vector<256x512xf32>
        tpu.vector_store %arg11[%575, %c0_206], %574 {strides = array<i32>} : memref<512x512xf32, #tpu.memory_space<vmem>>, vector<256x512xf32>,
      } else {
      }
      %c0_i32_34 = arith.constant 0 : i32
      %c256_i32 = arith.constant 256 : i32
      %35 = arith.muli %29, %c256_i32 : i32
      %c16_i32 = arith.constant 16 : i32
      %36 = arith.muli %c0_i32_34, %c16_i32 : i32
      %37 = arith.addi %35, %36 : i32
      %38 = tpu.assume_multiple %37, 16 : i32
      %39 = arith.index_cast %38 : i32 to index
      %c0_35 = arith.constant 0 : index
      %40 = vector.load %arg11[%39, %c0_35] : memref<512x512xf32, #tpu.memory_space<vmem>>, vector<16x512xf32>
      %41 = arith.truncf %arg14 : vector<16x128xf32> to vector<16x128xbf16>
      %c0_36 = arith.constant 0 : index
      %c0_37 = arith.constant 0 : index
      %42 = vector.load %arg4[%c0_36, %c0_37] : memref<128x512xbf16, #tpu.memory_space<vmem>>, vector<128x512xbf16>
      %cst_38 = arith.constant dense<0.000000e+00> : vector<16x512xf32>
      %43 = tpu.matmul %41, %42, %cst_38 {dimension_numbers = #tpu.dot_dimension_numbers<[1], [0], [0], [1], [0, 0, 1, 1], [], []>} : vector<16x128xbf16>, vector<128x512xbf16>, vector<16x512xf32> -> vector<16x512xf32>
      %44 = arith.addf %40, %43 : vector<16x512xf32>
      %45 = vector.extract_strided_slice %44 {offsets = [0, 0], sizes = [16, 384], strides = [1, 1]} : vector<16x512xf32> to vector<16x384xf32>
      %46 = arith.negf %45 : vector<16x384xf32>
      %47 = math.exp %46 : vector<16x384xf32>
      %cst_39 = arith.constant 1.000000e+00 : f32
      %48 = vector.broadcast %cst_39 : f32 to vector<16x384xf32>
      %49 = arith.addf %48, %47 : vector<16x384xf32>
      %50 = arith.divf %48, %49 : vector<16x384xf32>
      %51 = vector.extract_strided_slice %50 {offsets = [0, 0], sizes = [16, 128], strides = [1, 1]} : vector<16x384xf32> to vector<16x128xf32>
      %52 = vector.extract_strided_slice %50 {offsets = [0, 128], sizes = [16, 128], strides = [1, 1]} : vector<16x384xf32> to vector<16x128xf32>
      %53 = vector.extract_strided_slice %50 {offsets = [0, 256], sizes = [16, 128], strides = [1, 1]} : vector<16x384xf32> to vector<16x128xf32>
      %54 = vector.extract_strided_slice %44 {offsets = [0, 384], sizes = [16, 128], strides = [1, 1]} : vector<16x512xf32> to vector<16x128xf32>
      %55 = math.tanh %54 : vector<16x128xf32>
      %56 = arith.mulf %52, %arg15 : vector<16x128xf32>
      %57 = arith.mulf %51, %55 : vector<16x128xf32>
      %58 = arith.addf %56, %57 : vector<16x128xf32>
      %59 = math.tanh %58 : vector<16x128xf32>
      %60 = arith.mulf %53, %59 : vector<16x128xf32>
      %c16_i32_40 = arith.constant 16 : i32
      %61 = arith.muli %arg13, %c16_i32_40 : i32
      %62 = arith.addi %61, %c0_i32_34 : i32
      %c16_i32_41 = arith.constant 16 : i32
      %63 = arith.muli %62, %c16_i32_41 : i32
      %64 = tpu.assume_multiple %63, 16 : i32
      %65 = arith.truncf %60 : vector<16x128xf32> to vector<16x128xbf16>
      %66 = arith.index_cast %64 : i32 to index
      %c0_42 = arith.constant 0 : index
      %67 = vector.load %arg12[%66, %c0_42] : memref<768x128xbf16, #tpu.memory_space<vmem>>, vector<16x128xbf16>
      tpu.vector_store %arg12[%66, %c0_42], %65 {strides = array<i32>} : memref<768x128xbf16, #tpu.memory_space<vmem>>, vector<16x128xbf16>,
      %c1_i32_43 = arith.constant 1 : i32
      %c256_i32_44 = arith.constant 256 : i32
      %68 = arith.muli %29, %c256_i32_44 : i32
      %c16_i32_45 = arith.constant 16 : i32
      %69 = arith.muli %c1_i32_43, %c16_i32_45 : i32
      %70 = arith.addi %68, %69 : i32
      %71 = tpu.assume_multiple %70, 16 : i32
      %72 = arith.index_cast %71 : i32 to index
      %c0_46 = arith.constant 0 : index
      %73 = vector.load %arg11[%72, %c0_46] : memref<512x512xf32, #tpu.memory_space<vmem>>, vector<16x512xf32>
      %74 = arith.truncf %60 : vector<16x128xf32> to vector<16x128xbf16>
      %c0_47 = arith.constant 0 : index
      %c0_48 = arith.constant 0 : index
      %75 = vector.load %arg4[%c0_47, %c0_48] : memref<128x512xbf16, #tpu.memory_space<vmem>>, vector<128x512xbf16>
      %cst_49 = arith.constant dense<0.000000e+00> : vector<16x512xf32>
      %76 = tpu.matmul %74, %75, %cst_49 {dimension_numbers = #tpu.dot_dimension_numbers<[1], [0], [0], [1], [0, 0, 1, 1], [], []>} : vector<16x128xbf16>, vector<128x512xbf16>, vector<16x512xf32> -> vector<16x512xf32>
      %77 = arith.addf %73, %76 : vector<16x512xf32>
      %78 = vector.extract_strided_slice %77 {offsets = [0, 0], sizes = [16, 384], strides = [1, 1]} : vector<16x512xf32> to vector<16x384xf32>
      %79 = arith.negf %78 : vector<16x384xf32>
      %80 = math.exp %79 : vector<16x384xf32>
      %cst_50 = arith.constant 1.000000e+00 : f32
      %81 = vector.broadcast %cst_50 : f32 to vector<16x384xf32>
      %82 = arith.addf %81, %80 : vector<16x384xf32>
      %83 = arith.divf %81, %82 : vector<16x384xf32>
      %84 = vector.extract_strided_slice %83 {offsets = [0, 0], sizes = [16, 128], strides = [1, 1]} : vector<16x384xf32> to vector<16x128xf32>
      %85 = vector.extract_strided_slice %83 {offsets = [0, 128], sizes = [16, 128], strides = [1, 1]} : vector<16x384xf32> to vector<16x128xf32>
      %86 = vector.extract_strided_slice %83 {offsets = [0, 256], sizes = [16, 128], strides = [1, 1]} : vector<16x384xf32> to vector<16x128xf32>
      %87 = vector.extract_strided_slice %77 {offsets = [0, 384], sizes = [16, 128], strides = [1, 1]} : vector<16x512xf32> to vector<16x128xf32>
      %88 = math.tanh %87 : vector<16x128xf32>
      %89 = arith.mulf %85, %58 : vector<16x128xf32>
      %90 = arith.mulf %84, %88 : vector<16x128xf32>
      %91 = arith.addf %89, %90 : vector<16x128xf32>
      %92 = math.tanh %91 : vector<16x128xf32>
      %93 = arith.mulf %86, %92 : vector<16x128xf32>
      %c16_i32_51 = arith.constant 16 : i32
      %94 = arith.muli %arg13, %c16_i32_51 : i32
      %95 = arith.addi %94, %c1_i32_43 : i32
      %c16_i32_52 = arith.constant 16 : i32
      %96 = arith.muli %95, %c16_i32_52 : i32
      %97 = tpu.assume_multiple %96, 16 : i32
      %98 = arith.truncf %93 : vector<16x128xf32> to vector<16x128xbf16>
      %99 = arith.index_cast %97 : i32 to index
      %c0_53 = arith.constant 0 : index
      %100 = vector.load %arg12[%99, %c0_53] : memref<768x128xbf16, #tpu.memory_space<vmem>>, vector<16x128xbf16>
      tpu.vector_store %arg12[%99, %c0_53], %98 {strides = array<i32>} : memref<768x128xbf16, #tpu.memory_space<vmem>>, vector<16x128xbf16>,
      %c2_i32_54 = arith.constant 2 : i32
      %c256_i32_55 = arith.constant 256 : i32
      %101 = arith.muli %29, %c256_i32_55 : i32
      %c16_i32_56 = arith.constant 16 : i32
      %102 = arith.muli %c2_i32_54, %c16_i32_56 : i32
      %103 = arith.addi %101, %102 : i32
      %104 = tpu.assume_multiple %103, 16 : i32
      %105 = arith.index_cast %104 : i32 to index
      %c0_57 = arith.constant 0 : index
      %106 = vector.load %arg11[%105, %c0_57] : memref<512x512xf32, #tpu.memory_space<vmem>>, vector<16x512xf32>
      %107 = arith.truncf %93 : vector<16x128xf32> to vector<16x128xbf16>
      %c0_58 = arith.constant 0 : index
      %c0_59 = arith.constant 0 : index
      %108 = vector.load %arg4[%c0_58, %c0_59] : memref<128x512xbf16, #tpu.memory_space<vmem>>, vector<128x512xbf16>
      %cst_60 = arith.constant dense<0.000000e+00> : vector<16x512xf32>
      %109 = tpu.matmul %107, %108, %cst_60 {dimension_numbers = #tpu.dot_dimension_numbers<[1], [0], [0], [1], [0, 0, 1, 1], [], []>} : vector<16x128xbf16>, vector<128x512xbf16>, vector<16x512xf32> -> vector<16x512xf32>
      %110 = arith.addf %106, %109 : vector<16x512xf32>
      %111 = vector.extract_strided_slice %110 {offsets = [0, 0], sizes = [16, 384], strides = [1, 1]} : vector<16x512xf32> to vector<16x384xf32>
      %112 = arith.negf %111 : vector<16x384xf32>
      %113 = math.exp %112 : vector<16x384xf32>
      %cst_61 = arith.constant 1.000000e+00 : f32
      %114 = vector.broadcast %cst_61 : f32 to vector<16x384xf32>
      %115 = arith.addf %114, %113 : vector<16x384xf32>
      %116 = arith.divf %114, %115 : vector<16x384xf32>
      %117 = vector.extract_strided_slice %116 {offsets = [0, 0], sizes = [16, 128], strides = [1, 1]} : vector<16x384xf32> to vector<16x128xf32>
      %118 = vector.extract_strided_slice %116 {offsets = [0, 128], sizes = [16, 128], strides = [1, 1]} : vector<16x384xf32> to vector<16x128xf32>
      %119 = vector.extract_strided_slice %116 {offsets = [0, 256], sizes = [16, 128], strides = [1, 1]} : vector<16x384xf32> to vector<16x128xf32>
      %120 = vector.extract_strided_slice %110 {offsets = [0, 384], sizes = [16, 128], strides = [1, 1]} : vector<16x512xf32> to vector<16x128xf32>
      %121 = math.tanh %120 : vector<16x128xf32>
      %122 = arith.mulf %118, %91 : vector<16x128xf32>
      %123 = arith.mulf %117, %121 : vector<16x128xf32>
      %124 = arith.addf %122, %123 : vector<16x128xf32>
      %125 = math.tanh %124 : vector<16x128xf32>
      %126 = arith.mulf %119, %125 : vector<16x128xf32>
      %c16_i32_62 = arith.constant 16 : i32
      %127 = arith.muli %arg13, %c16_i32_62 : i32
      %128 = arith.addi %127, %c2_i32_54 : i32
      %c16_i32_63 = arith.constant 16 : i32
      %129 = arith.muli %128, %c16_i32_63 : i32
      %130 = tpu.assume_multiple %129, 16 : i32
      %131 = arith.truncf %126 : vector<16x128xf32> to vector<16x128xbf16>
      %132 = arith.index_cast %130 : i32 to index
      %c0_64 = arith.constant 0 : index
      %133 = vector.load %arg12[%132, %c0_64] : memref<768x128xbf16, #tpu.memory_space<vmem>>, vector<16x128xbf16>
      tpu.vector_store %arg12[%132, %c0_64], %131 {strides = array<i32>} : memref<768x128xbf16, #tpu.memory_space<vmem>>, vector<16x128xbf16>,
      %c3_i32_65 = arith.constant 3 : i32
      %c256_i32_66 = arith.constant 256 : i32
      %134 = arith.muli %29, %c256_i32_66 : i32
      %c16_i32_67 = arith.constant 16 : i32
      %135 = arith.muli %c3_i32_65, %c16_i32_67 : i32
      %136 = arith.addi %134, %135 : i32
      %137 = tpu.assume_multiple %136, 16 : i32
      %138 = arith.index_cast %137 : i32 to index
      %c0_68 = arith.constant 0 : index
      %139 = vector.load %arg11[%138, %c0_68] : memref<512x512xf32, #tpu.memory_space<vmem>>, vector<16x512xf32>
      %140 = arith.truncf %126 : vector<16x128xf32> to vector<16x128xbf16>
      %c0_69 = arith.constant 0 : index
      %c0_70 = arith.constant 0 : index
      %141 = vector.load %arg4[%c0_69, %c0_70] : memref<128x512xbf16, #tpu.memory_space<vmem>>, vector<128x512xbf16>
      %cst_71 = arith.constant dense<0.000000e+00> : vector<16x512xf32>
      %142 = tpu.matmul %140, %141, %cst_71 {dimension_numbers = #tpu.dot_dimension_numbers<[1], [0], [0], [1], [0, 0, 1, 1], [], []>} : vector<16x128xbf16>, vector<128x512xbf16>, vector<16x512xf32> -> vector<16x512xf32>
      %143 = arith.addf %139, %142 : vector<16x512xf32>
      %144 = vector.extract_strided_slice %143 {offsets = [0, 0], sizes = [16, 384], strides = [1, 1]} : vector<16x512xf32> to vector<16x384xf32>
      %145 = arith.negf %144 : vector<16x384xf32>
      %146 = math.exp %145 : vector<16x384xf32>
      %cst_72 = arith.constant 1.000000e+00 : f32
      %147 = vector.broadcast %cst_72 : f32 to vector<16x384xf32>
      %148 = arith.addf %147, %146 : vector<16x384xf32>
      %149 = arith.divf %147, %148 : vector<16x384xf32>
      %150 = vector.extract_strided_slice %149 {offsets = [0, 0], sizes = [16, 128], strides = [1, 1]} : vector<16x384xf32> to vector<16x128xf32>
      %151 = vector.extract_strided_slice %149 {offsets = [0, 128], sizes = [16, 128], strides = [1, 1]} : vector<16x384xf32> to vector<16x128xf32>
      %152 = vector.extract_strided_slice %149 {offsets = [0, 256], sizes = [16, 128], strides = [1, 1]} : vector<16x384xf32> to vector<16x128xf32>
      %153 = vector.extract_strided_slice %143 {offsets = [0, 384], sizes = [16, 128], strides = [1, 1]} : vector<16x512xf32> to vector<16x128xf32>
      %154 = math.tanh %153 : vector<16x128xf32>
      %155 = arith.mulf %151, %124 : vector<16x128xf32>
      %156 = arith.mulf %150, %154 : vector<16x128xf32>
      %157 = arith.addf %155, %156 : vector<16x128xf32>
      %158 = math.tanh %157 : vector<16x128xf32>
      %159 = arith.mulf %152, %158 : vector<16x128xf32>
      %c16_i32_73 = arith.constant 16 : i32
      %160 = arith.muli %arg13, %c16_i32_73 : i32
      %161 = arith.addi %160, %c3_i32_65 : i32
      %c16_i32_74 = arith.constant 16 : i32
      %162 = arith.muli %161, %c16_i32_74 : i32
      %163 = tpu.assume_multiple %162, 16 : i32
      %164 = arith.truncf %159 : vector<16x128xf32> to vector<16x128xbf16>
      %165 = arith.index_cast %163 : i32 to index
      %c0_75 = arith.constant 0 : index
      %166 = vector.load %arg12[%165, %c0_75] : memref<768x128xbf16, #tpu.memory_space<vmem>>, vector<16x128xbf16>
      tpu.vector_store %arg12[%165, %c0_75], %164 {strides = array<i32>} : memref<768x128xbf16, #tpu.memory_space<vmem>>, vector<16x128xbf16>,
      %c4_i32 = arith.constant 4 : i32
      %c256_i32_76 = arith.constant 256 : i32
      %167 = arith.muli %29, %c256_i32_76 : i32
      %c16_i32_77 = arith.constant 16 : i32
      %168 = arith.muli %c4_i32, %c16_i32_77 : i32
      %169 = arith.addi %167, %168 : i32
      %170 = tpu.assume_multiple %169, 16 : i32
      %171 = arith.index_cast %170 : i32 to index
      %c0_78 = arith.constant 0 : index
      %172 = vector.load %arg11[%171, %c0_78] : memref<512x512xf32, #tpu.memory_space<vmem>>, vector<16x512xf32>
      %173 = arith.truncf %159 : vector<16x128xf32> to vector<16x128xbf16>
      %c0_79 = arith.constant 0 : index
      %c0_80 = arith.constant 0 : index
      %174 = vector.load %arg4[%c0_79, %c0_80] : memref<128x512xbf16, #tpu.memory_space<vmem>>, vector<128x512xbf16>
      %cst_81 = arith.constant dense<0.000000e+00> : vector<16x512xf32>
      %175 = tpu.matmul %173, %174, %cst_81 {dimension_numbers = #tpu.dot_dimension_numbers<[1], [0], [0], [1], [0, 0, 1, 1], [], []>} : vector<16x128xbf16>, vector<128x512xbf16>, vector<16x512xf32> -> vector<16x512xf32>
      %176 = arith.addf %172, %175 : vector<16x512xf32>
      %177 = vector.extract_strided_slice %176 {offsets = [0, 0], sizes = [16, 384], strides = [1, 1]} : vector<16x512xf32> to vector<16x384xf32>
      %178 = arith.negf %177 : vector<16x384xf32>
      %179 = math.exp %178 : vector<16x384xf32>
      %cst_82 = arith.constant 1.000000e+00 : f32
      %180 = vector.broadcast %cst_82 : f32 to vector<16x384xf32>
      %181 = arith.addf %180, %179 : vector<16x384xf32>
      %182 = arith.divf %180, %181 : vector<16x384xf32>
      %183 = vector.extract_strided_slice %182 {offsets = [0, 0], sizes = [16, 128], strides = [1, 1]} : vector<16x384xf32> to vector<16x128xf32>
      %184 = vector.extract_strided_slice %182 {offsets = [0, 128], sizes = [16, 128], strides = [1, 1]} : vector<16x384xf32> to vector<16x128xf32>
      %185 = vector.extract_strided_slice %182 {offsets = [0, 256], sizes = [16, 128], strides = [1, 1]} : vector<16x384xf32> to vector<16x128xf32>
      %186 = vector.extract_strided_slice %176 {offsets = [0, 384], sizes = [16, 128], strides = [1, 1]} : vector<16x512xf32> to vector<16x128xf32>
      %187 = math.tanh %186 : vector<16x128xf32>
      %188 = arith.mulf %184, %157 : vector<16x128xf32>
      %189 = arith.mulf %183, %187 : vector<16x128xf32>
      %190 = arith.addf %188, %189 : vector<16x128xf32>
      %191 = math.tanh %190 : vector<16x128xf32>
      %192 = arith.mulf %185, %191 : vector<16x128xf32>
      %c16_i32_83 = arith.constant 16 : i32
      %193 = arith.muli %arg13, %c16_i32_83 : i32
      %194 = arith.addi %193, %c4_i32 : i32
      %c16_i32_84 = arith.constant 16 : i32
      %195 = arith.muli %194, %c16_i32_84 : i32
      %196 = tpu.assume_multiple %195, 16 : i32
      %197 = arith.truncf %192 : vector<16x128xf32> to vector<16x128xbf16>
      %198 = arith.index_cast %196 : i32 to index
      %c0_85 = arith.constant 0 : index
      %199 = vector.load %arg12[%198, %c0_85] : memref<768x128xbf16, #tpu.memory_space<vmem>>, vector<16x128xbf16>
      tpu.vector_store %arg12[%198, %c0_85], %197 {strides = array<i32>} : memref<768x128xbf16, #tpu.memory_space<vmem>>, vector<16x128xbf16>,
      %c5_i32 = arith.constant 5 : i32
      %c256_i32_86 = arith.constant 256 : i32
      %200 = arith.muli %29, %c256_i32_86 : i32
      %c16_i32_87 = arith.constant 16 : i32
      %201 = arith.muli %c5_i32, %c16_i32_87 : i32
      %202 = arith.addi %200, %201 : i32
      %203 = tpu.assume_multiple %202, 16 : i32
      %204 = arith.index_cast %203 : i32 to index
      %c0_88 = arith.constant 0 : index
      %205 = vector.load %arg11[%204, %c0_88] : memref<512x512xf32, #tpu.memory_space<vmem>>, vector<16x512xf32>
      %206 = arith.truncf %192 : vector<16x128xf32> to vector<16x128xbf16>
      %c0_89 = arith.constant 0 : index
      %c0_90 = arith.constant 0 : index
      %207 = vector.load %arg4[%c0_89, %c0_90] : memref<128x512xbf16, #tpu.memory_space<vmem>>, vector<128x512xbf16>
      %cst_91 = arith.constant dense<0.000000e+00> : vector<16x512xf32>
      %208 = tpu.matmul %206, %207, %cst_91 {dimension_numbers = #tpu.dot_dimension_numbers<[1], [0], [0], [1], [0, 0, 1, 1], [], []>} : vector<16x128xbf16>, vector<128x512xbf16>, vector<16x512xf32> -> vector<16x512xf32>
      %209 = arith.addf %205, %208 : vector<16x512xf32>
      %210 = vector.extract_strided_slice %209 {offsets = [0, 0], sizes = [16, 384], strides = [1, 1]} : vector<16x512xf32> to vector<16x384xf32>
      %211 = arith.negf %210 : vector<16x384xf32>
      %212 = math.exp %211 : vector<16x384xf32>
      %cst_92 = arith.constant 1.000000e+00 : f32
      %213 = vector.broadcast %cst_92 : f32 to vector<16x384xf32>
      %214 = arith.addf %213, %212 : vector<16x384xf32>
      %215 = arith.divf %213, %214 : vector<16x384xf32>
      %216 = vector.extract_strided_slice %215 {offsets = [0, 0], sizes = [16, 128], strides = [1, 1]} : vector<16x384xf32> to vector<16x128xf32>
      %217 = vector.extract_strided_slice %215 {offsets = [0, 128], sizes = [16, 128], strides = [1, 1]} : vector<16x384xf32> to vector<16x128xf32>
      %218 = vector.extract_strided_slice %215 {offsets = [0, 256], sizes = [16, 128], strides = [1, 1]} : vector<16x384xf32> to vector<16x128xf32>
      %219 = vector.extract_strided_slice %209 {offsets = [0, 384], sizes = [16, 128], strides = [1, 1]} : vector<16x512xf32> to vector<16x128xf32>
      %220 = math.tanh %219 : vector<16x128xf32>
      %221 = arith.mulf %217, %190 : vector<16x128xf32>
      %222 = arith.mulf %216, %220 : vector<16x128xf32>
      %223 = arith.addf %221, %222 : vector<16x128xf32>
      %224 = math.tanh %223 : vector<16x128xf32>
      %225 = arith.mulf %218, %224 : vector<16x128xf32>
      %c16_i32_93 = arith.constant 16 : i32
      %226 = arith.muli %arg13, %c16_i32_93 : i32
      %227 = arith.addi %226, %c5_i32 : i32
      %c16_i32_94 = arith.constant 16 : i32
      %228 = arith.muli %227, %c16_i32_94 : i32
      %229 = tpu.assume_multiple %228, 16 : i32
      %230 = arith.truncf %225 : vector<16x128xf32> to vector<16x128xbf16>
      %231 = arith.index_cast %229 : i32 to index
      %c0_95 = arith.constant 0 : index
      %232 = vector.load %arg12[%231, %c0_95] : memref<768x128xbf16, #tpu.memory_space<vmem>>, vector<16x128xbf16>
      tpu.vector_store %arg12[%231, %c0_95], %230 {strides = array<i32>} : memref<768x128xbf16, #tpu.memory_space<vmem>>, vector<16x128xbf16>,
      %c6_i32 = arith.constant 6 : i32
      %c256_i32_96 = arith.constant 256 : i32
      %233 = arith.muli %29, %c256_i32_96 : i32
      %c16_i32_97 = arith.constant 16 : i32
      %234 = arith.muli %c6_i32, %c16_i32_97 : i32
      %235 = arith.addi %233, %234 : i32
      %236 = tpu.assume_multiple %235, 16 : i32
      %237 = arith.index_cast %236 : i32 to index
      %c0_98 = arith.constant 0 : index
      %238 = vector.load %arg11[%237, %c0_98] : memref<512x512xf32, #tpu.memory_space<vmem>>, vector<16x512xf32>
      %239 = arith.truncf %225 : vector<16x128xf32> to vector<16x128xbf16>
      %c0_99 = arith.constant 0 : index
      %c0_100 = arith.constant 0 : index
      %240 = vector.load %arg4[%c0_99, %c0_100] : memref<128x512xbf16, #tpu.memory_space<vmem>>, vector<128x512xbf16>
      %cst_101 = arith.constant dense<0.000000e+00> : vector<16x512xf32>
      %241 = tpu.matmul %239, %240, %cst_101 {dimension_numbers = #tpu.dot_dimension_numbers<[1], [0], [0], [1], [0, 0, 1, 1], [], []>} : vector<16x128xbf16>, vector<128x512xbf16>, vector<16x512xf32> -> vector<16x512xf32>
      %242 = arith.addf %238, %241 : vector<16x512xf32>
      %243 = vector.extract_strided_slice %242 {offsets = [0, 0], sizes = [16, 384], strides = [1, 1]} : vector<16x512xf32> to vector<16x384xf32>
      %244 = arith.negf %243 : vector<16x384xf32>
      %245 = math.exp %244 : vector<16x384xf32>
      %cst_102 = arith.constant 1.000000e+00 : f32
      %246 = vector.broadcast %cst_102 : f32 to vector<16x384xf32>
      %247 = arith.addf %246, %245 : vector<16x384xf32>
      %248 = arith.divf %246, %247 : vector<16x384xf32>
      %249 = vector.extract_strided_slice %248 {offsets = [0, 0], sizes = [16, 128], strides = [1, 1]} : vector<16x384xf32> to vector<16x128xf32>
      %250 = vector.extract_strided_slice %248 {offsets = [0, 128], sizes = [16, 128], strides = [1, 1]} : vector<16x384xf32> to vector<16x128xf32>
      %251 = vector.extract_strided_slice %248 {offsets = [0, 256], sizes = [16, 128], strides = [1, 1]} : vector<16x384xf32> to vector<16x128xf32>
      %252 = vector.extract_strided_slice %242 {offsets = [0, 384], sizes = [16, 128], strides = [1, 1]} : vector<16x512xf32> to vector<16x128xf32>
      %253 = math.tanh %252 : vector<16x128xf32>
      %254 = arith.mulf %250, %223 : vector<16x128xf32>
      %255 = arith.mulf %249, %253 : vector<16x128xf32>
      %256 = arith.addf %254, %255 : vector<16x128xf32>
      %257 = math.tanh %256 : vector<16x128xf32>
      %258 = arith.mulf %251, %257 : vector<16x128xf32>
      %c16_i32_103 = arith.constant 16 : i32
      %259 = arith.muli %arg13, %c16_i32_103 : i32
      %260 = arith.addi %259, %c6_i32 : i32
      %c16_i32_104 = arith.constant 16 : i32
      %261 = arith.muli %260, %c16_i32_104 : i32
      %262 = tpu.assume_multiple %261, 16 : i32
      %263 = arith.truncf %258 : vector<16x128xf32> to vector<16x128xbf16>
      %264 = arith.index_cast %262 : i32 to index
      %c0_105 = arith.constant 0 : index
      %265 = vector.load %arg12[%264, %c0_105] : memref<768x128xbf16, #tpu.memory_space<vmem>>, vector<16x128xbf16>
      tpu.vector_store %arg12[%264, %c0_105], %263 {strides = array<i32>} : memref<768x128xbf16, #tpu.memory_space<vmem>>, vector<16x128xbf16>,
      %c7_i32 = arith.constant 7 : i32
      %c256_i32_106 = arith.constant 256 : i32
      %266 = arith.muli %29, %c256_i32_106 : i32
      %c16_i32_107 = arith.constant 16 : i32
      %267 = arith.muli %c7_i32, %c16_i32_107 : i32
      %268 = arith.addi %266, %267 : i32
      %269 = tpu.assume_multiple %268, 16 : i32
      %270 = arith.index_cast %269 : i32 to index
      %c0_108 = arith.constant 0 : index
      %271 = vector.load %arg11[%270, %c0_108] : memref<512x512xf32, #tpu.memory_space<vmem>>, vector<16x512xf32>
      %272 = arith.truncf %258 : vector<16x128xf32> to vector<16x128xbf16>
      %c0_109 = arith.constant 0 : index
      %c0_110 = arith.constant 0 : index
      %273 = vector.load %arg4[%c0_109, %c0_110] : memref<128x512xbf16, #tpu.memory_space<vmem>>, vector<128x512xbf16>
      %cst_111 = arith.constant dense<0.000000e+00> : vector<16x512xf32>
      %274 = tpu.matmul %272, %273, %cst_111 {dimension_numbers = #tpu.dot_dimension_numbers<[1], [0], [0], [1], [0, 0, 1, 1], [], []>} : vector<16x128xbf16>, vector<128x512xbf16>, vector<16x512xf32> -> vector<16x512xf32>
      %275 = arith.addf %271, %274 : vector<16x512xf32>
      %276 = vector.extract_strided_slice %275 {offsets = [0, 0], sizes = [16, 384], strides = [1, 1]} : vector<16x512xf32> to vector<16x384xf32>
      %277 = arith.negf %276 : vector<16x384xf32>
      %278 = math.exp %277 : vector<16x384xf32>
      %cst_112 = arith.constant 1.000000e+00 : f32
      %279 = vector.broadcast %cst_112 : f32 to vector<16x384xf32>
      %280 = arith.addf %279, %278 : vector<16x384xf32>
      %281 = arith.divf %279, %280 : vector<16x384xf32>
      %282 = vector.extract_strided_slice %281 {offsets = [0, 0], sizes = [16, 128], strides = [1, 1]} : vector<16x384xf32> to vector<16x128xf32>
      %283 = vector.extract_strided_slice %281 {offsets = [0, 128], sizes = [16, 128], strides = [1, 1]} : vector<16x384xf32> to vector<16x128xf32>
      %284 = vector.extract_strided_slice %281 {offsets = [0, 256], sizes = [16, 128], strides = [1, 1]} : vector<16x384xf32> to vector<16x128xf32>
      %285 = vector.extract_strided_slice %275 {offsets = [0, 384], sizes = [16, 128], strides = [1, 1]} : vector<16x512xf32> to vector<16x128xf32>
      %286 = math.tanh %285 : vector<16x128xf32>
      %287 = arith.mulf %283, %256 : vector<16x128xf32>
      %288 = arith.mulf %282, %286 : vector<16x128xf32>
      %289 = arith.addf %287, %288 : vector<16x128xf32>
      %290 = math.tanh %289 : vector<16x128xf32>
      %291 = arith.mulf %284, %290 : vector<16x128xf32>
      %c16_i32_113 = arith.constant 16 : i32
      %292 = arith.muli %arg13, %c16_i32_113 : i32
      %293 = arith.addi %292, %c7_i32 : i32
      %c16_i32_114 = arith.constant 16 : i32
      %294 = arith.muli %293, %c16_i32_114 : i32
      %295 = tpu.assume_multiple %294, 16 : i32
      %296 = arith.truncf %291 : vector<16x128xf32> to vector<16x128xbf16>
      %297 = arith.index_cast %295 : i32 to index
      %c0_115 = arith.constant 0 : index
      %298 = vector.load %arg12[%297, %c0_115] : memref<768x128xbf16, #tpu.memory_space<vmem>>, vector<16x128xbf16>
      tpu.vector_store %arg12[%297, %c0_115], %296 {strides = array<i32>} : memref<768x128xbf16, #tpu.memory_space<vmem>>, vector<16x128xbf16>,
      %c8_i32 = arith.constant 8 : i32
      %c256_i32_116 = arith.constant 256 : i32
      %299 = arith.muli %29, %c256_i32_116 : i32
      %c16_i32_117 = arith.constant 16 : i32
      %300 = arith.muli %c8_i32, %c16_i32_117 : i32
      %301 = arith.addi %299, %300 : i32
      %302 = tpu.assume_multiple %301, 16 : i32
      %303 = arith.index_cast %302 : i32 to index
      %c0_118 = arith.constant 0 : index
      %304 = vector.load %arg11[%303, %c0_118] : memref<512x512xf32, #tpu.memory_space<vmem>>, vector<16x512xf32>
      %305 = arith.truncf %291 : vector<16x128xf32> to vector<16x128xbf16>
      %c0_119 = arith.constant 0 : index
      %c0_120 = arith.constant 0 : index
      %306 = vector.load %arg4[%c0_119, %c0_120] : memref<128x512xbf16, #tpu.memory_space<vmem>>, vector<128x512xbf16>
      %cst_121 = arith.constant dense<0.000000e+00> : vector<16x512xf32>
      %307 = tpu.matmul %305, %306, %cst_121 {dimension_numbers = #tpu.dot_dimension_numbers<[1], [0], [0], [1], [0, 0, 1, 1], [], []>} : vector<16x128xbf16>, vector<128x512xbf16>, vector<16x512xf32> -> vector<16x512xf32>
      %308 = arith.addf %304, %307 : vector<16x512xf32>
      %309 = vector.extract_strided_slice %308 {offsets = [0, 0], sizes = [16, 384], strides = [1, 1]} : vector<16x512xf32> to vector<16x384xf32>
      %310 = arith.negf %309 : vector<16x384xf32>
      %311 = math.exp %310 : vector<16x384xf32>
      %cst_122 = arith.constant 1.000000e+00 : f32
      %312 = vector.broadcast %cst_122 : f32 to vector<16x384xf32>
      %313 = arith.addf %312, %311 : vector<16x384xf32>
      %314 = arith.divf %312, %313 : vector<16x384xf32>
      %315 = vector.extract_strided_slice %314 {offsets = [0, 0], sizes = [16, 128], strides = [1, 1]} : vector<16x384xf32> to vector<16x128xf32>
      %316 = vector.extract_strided_slice %314 {offsets = [0, 128], sizes = [16, 128], strides = [1, 1]} : vector<16x384xf32> to vector<16x128xf32>
      %317 = vector.extract_strided_slice %314 {offsets = [0, 256], sizes = [16, 128], strides = [1, 1]} : vector<16x384xf32> to vector<16x128xf32>
      %318 = vector.extract_strided_slice %308 {offsets = [0, 384], sizes = [16, 128], strides = [1, 1]} : vector<16x512xf32> to vector<16x128xf32>
      %319 = math.tanh %318 : vector<16x128xf32>
      %320 = arith.mulf %316, %289 : vector<16x128xf32>
      %321 = arith.mulf %315, %319 : vector<16x128xf32>
      %322 = arith.addf %320, %321 : vector<16x128xf32>
      %323 = math.tanh %322 : vector<16x128xf32>
      %324 = arith.mulf %317, %323 : vector<16x128xf32>
      %c16_i32_123 = arith.constant 16 : i32
      %325 = arith.muli %arg13, %c16_i32_123 : i32
      %326 = arith.addi %325, %c8_i32 : i32
      %c16_i32_124 = arith.constant 16 : i32
      %327 = arith.muli %326, %c16_i32_124 : i32
      %328 = tpu.assume_multiple %327, 16 : i32
      %329 = arith.truncf %324 : vector<16x128xf32> to vector<16x128xbf16>
      %330 = arith.index_cast %328 : i32 to index
      %c0_125 = arith.constant 0 : index
      %331 = vector.load %arg12[%330, %c0_125] : memref<768x128xbf16, #tpu.memory_space<vmem>>, vector<16x128xbf16>
      tpu.vector_store %arg12[%330, %c0_125], %329 {strides = array<i32>} : memref<768x128xbf16, #tpu.memory_space<vmem>>, vector<16x128xbf16>,
      %c9_i32 = arith.constant 9 : i32
      %c256_i32_126 = arith.constant 256 : i32
      %332 = arith.muli %29, %c256_i32_126 : i32
      %c16_i32_127 = arith.constant 16 : i32
      %333 = arith.muli %c9_i32, %c16_i32_127 : i32
      %334 = arith.addi %332, %333 : i32
      %335 = tpu.assume_multiple %334, 16 : i32
      %336 = arith.index_cast %335 : i32 to index
      %c0_128 = arith.constant 0 : index
      %337 = vector.load %arg11[%336, %c0_128] : memref<512x512xf32, #tpu.memory_space<vmem>>, vector<16x512xf32>
      %338 = arith.truncf %324 : vector<16x128xf32> to vector<16x128xbf16>
      %c0_129 = arith.constant 0 : index
      %c0_130 = arith.constant 0 : index
      %339 = vector.load %arg4[%c0_129, %c0_130] : memref<128x512xbf16, #tpu.memory_space<vmem>>, vector<128x512xbf16>
      %cst_131 = arith.constant dense<0.000000e+00> : vector<16x512xf32>
      %340 = tpu.matmul %338, %339, %cst_131 {dimension_numbers = #tpu.dot_dimension_numbers<[1], [0], [0], [1], [0, 0, 1, 1], [], []>} : vector<16x128xbf16>, vector<128x512xbf16>, vector<16x512xf32> -> vector<16x512xf32>
      %341 = arith.addf %337, %340 : vector<16x512xf32>
      %342 = vector.extract_strided_slice %341 {offsets = [0, 0], sizes = [16, 384], strides = [1, 1]} : vector<16x512xf32> to vector<16x384xf32>
      %343 = arith.negf %342 : vector<16x384xf32>
      %344 = math.exp %343 : vector<16x384xf32>
      %cst_132 = arith.constant 1.000000e+00 : f32
      %345 = vector.broadcast %cst_132 : f32 to vector<16x384xf32>
      %346 = arith.addf %345, %344 : vector<16x384xf32>
      %347 = arith.divf %345, %346 : vector<16x384xf32>
      %348 = vector.extract_strided_slice %347 {offsets = [0, 0], sizes = [16, 128], strides = [1, 1]} : vector<16x384xf32> to vector<16x128xf32>
      %349 = vector.extract_strided_slice %347 {offsets = [0, 128], sizes = [16, 128], strides = [1, 1]} : vector<16x384xf32> to vector<16x128xf32>
      %350 = vector.extract_strided_slice %347 {offsets = [0, 256], sizes = [16, 128], strides = [1, 1]} : vector<16x384xf32> to vector<16x128xf32>
      %351 = vector.extract_strided_slice %341 {offsets = [0, 384], sizes = [16, 128], strides = [1, 1]} : vector<16x512xf32> to vector<16x128xf32>
      %352 = math.tanh %351 : vector<16x128xf32>
      %353 = arith.mulf %349, %322 : vector<16x128xf32>
      %354 = arith.mulf %348, %352 : vector<16x128xf32>
      %355 = arith.addf %353, %354 : vector<16x128xf32>
      %356 = math.tanh %355 : vector<16x128xf32>
      %357 = arith.mulf %350, %356 : vector<16x128xf32>
      %c16_i32_133 = arith.constant 16 : i32
      %358 = arith.muli %arg13, %c16_i32_133 : i32
      %359 = arith.addi %358, %c9_i32 : i32
      %c16_i32_134 = arith.constant 16 : i32
      %360 = arith.muli %359, %c16_i32_134 : i32
      %361 = tpu.assume_multiple %360, 16 : i32
      %362 = arith.truncf %357 : vector<16x128xf32> to vector<16x128xbf16>
      %363 = arith.index_cast %361 : i32 to index
      %c0_135 = arith.constant 0 : index
      %364 = vector.load %arg12[%363, %c0_135] : memref<768x128xbf16, #tpu.memory_space<vmem>>, vector<16x128xbf16>
      tpu.vector_store %arg12[%363, %c0_135], %362 {strides = array<i32>} : memref<768x128xbf16, #tpu.memory_space<vmem>>, vector<16x128xbf16>,
      %c10_i32 = arith.constant 10 : i32
      %c256_i32_136 = arith.constant 256 : i32
      %365 = arith.muli %29, %c256_i32_136 : i32
      %c16_i32_137 = arith.constant 16 : i32
      %366 = arith.muli %c10_i32, %c16_i32_137 : i32
      %367 = arith.addi %365, %366 : i32
      %368 = tpu.assume_multiple %367, 16 : i32
      %369 = arith.index_cast %368 : i32 to index
      %c0_138 = arith.constant 0 : index
      %370 = vector.load %arg11[%369, %c0_138] : memref<512x512xf32, #tpu.memory_space<vmem>>, vector<16x512xf32>
      %371 = arith.truncf %357 : vector<16x128xf32> to vector<16x128xbf16>
      %c0_139 = arith.constant 0 : index
      %c0_140 = arith.constant 0 : index
      %372 = vector.load %arg4[%c0_139, %c0_140] : memref<128x512xbf16, #tpu.memory_space<vmem>>, vector<128x512xbf16>
      %cst_141 = arith.constant dense<0.000000e+00> : vector<16x512xf32>
      %373 = tpu.matmul %371, %372, %cst_141 {dimension_numbers = #tpu.dot_dimension_numbers<[1], [0], [0], [1], [0, 0, 1, 1], [], []>} : vector<16x128xbf16>, vector<128x512xbf16>, vector<16x512xf32> -> vector<16x512xf32>
      %374 = arith.addf %370, %373 : vector<16x512xf32>
      %375 = vector.extract_strided_slice %374 {offsets = [0, 0], sizes = [16, 384], strides = [1, 1]} : vector<16x512xf32> to vector<16x384xf32>
      %376 = arith.negf %375 : vector<16x384xf32>
      %377 = math.exp %376 : vector<16x384xf32>
      %cst_142 = arith.constant 1.000000e+00 : f32
      %378 = vector.broadcast %cst_142 : f32 to vector<16x384xf32>
      %379 = arith.addf %378, %377 : vector<16x384xf32>
      %380 = arith.divf %378, %379 : vector<16x384xf32>
      %381 = vector.extract_strided_slice %380 {offsets = [0, 0], sizes = [16, 128], strides = [1, 1]} : vector<16x384xf32> to vector<16x128xf32>
      %382 = vector.extract_strided_slice %380 {offsets = [0, 128], sizes = [16, 128], strides = [1, 1]} : vector<16x384xf32> to vector<16x128xf32>
      %383 = vector.extract_strided_slice %380 {offsets = [0, 256], sizes = [16, 128], strides = [1, 1]} : vector<16x384xf32> to vector<16x128xf32>
      %384 = vector.extract_strided_slice %374 {offsets = [0, 384], sizes = [16, 128], strides = [1, 1]} : vector<16x512xf32> to vector<16x128xf32>
      %385 = math.tanh %384 : vector<16x128xf32>
      %386 = arith.mulf %382, %355 : vector<16x128xf32>
      %387 = arith.mulf %381, %385 : vector<16x128xf32>
      %388 = arith.addf %386, %387 : vector<16x128xf32>
      %389 = math.tanh %388 : vector<16x128xf32>
      %390 = arith.mulf %383, %389 : vector<16x128xf32>
      %c16_i32_143 = arith.constant 16 : i32
      %391 = arith.muli %arg13, %c16_i32_143 : i32
      %392 = arith.addi %391, %c10_i32 : i32
      %c16_i32_144 = arith.constant 16 : i32
      %393 = arith.muli %392, %c16_i32_144 : i32
      %394 = tpu.assume_multiple %393, 16 : i32
      %395 = arith.truncf %390 : vector<16x128xf32> to vector<16x128xbf16>
      %396 = arith.index_cast %394 : i32 to index
      %c0_145 = arith.constant 0 : index
      %397 = vector.load %arg12[%396, %c0_145] : memref<768x128xbf16, #tpu.memory_space<vmem>>, vector<16x128xbf16>
      tpu.vector_store %arg12[%396, %c0_145], %395 {strides = array<i32>} : memref<768x128xbf16, #tpu.memory_space<vmem>>, vector<16x128xbf16>,
      %c11_i32 = arith.constant 11 : i32
      %c256_i32_146 = arith.constant 256 : i32
      %398 = arith.muli %29, %c256_i32_146 : i32
      %c16_i32_147 = arith.constant 16 : i32
      %399 = arith.muli %c11_i32, %c16_i32_147 : i32
      %400 = arith.addi %398, %399 : i32
      %401 = tpu.assume_multiple %400, 16 : i32
      %402 = arith.index_cast %401 : i32 to index
      %c0_148 = arith.constant 0 : index
      %403 = vector.load %arg11[%402, %c0_148] : memref<512x512xf32, #tpu.memory_space<vmem>>, vector<16x512xf32>
      %404 = arith.truncf %390 : vector<16x128xf32> to vector<16x128xbf16>
      %c0_149 = arith.constant 0 : index
      %c0_150 = arith.constant 0 : index
      %405 = vector.load %arg4[%c0_149, %c0_150] : memref<128x512xbf16, #tpu.memory_space<vmem>>, vector<128x512xbf16>
      %cst_151 = arith.constant dense<0.000000e+00> : vector<16x512xf32>
      %406 = tpu.matmul %404, %405, %cst_151 {dimension_numbers = #tpu.dot_dimension_numbers<[1], [0], [0], [1], [0, 0, 1, 1], [], []>} : vector<16x128xbf16>, vector<128x512xbf16>, vector<16x512xf32> -> vector<16x512xf32>
      %407 = arith.addf %403, %406 : vector<16x512xf32>
      %408 = vector.extract_strided_slice %407 {offsets = [0, 0], sizes = [16, 384], strides = [1, 1]} : vector<16x512xf32> to vector<16x384xf32>
      %409 = arith.negf %408 : vector<16x384xf32>
      %410 = math.exp %409 : vector<16x384xf32>
      %cst_152 = arith.constant 1.000000e+00 : f32
      %411 = vector.broadcast %cst_152 : f32 to vector<16x384xf32>
      %412 = arith.addf %411, %410 : vector<16x384xf32>
      %413 = arith.divf %411, %412 : vector<16x384xf32>
      %414 = vector.extract_strided_slice %413 {offsets = [0, 0], sizes = [16, 128], strides = [1, 1]} : vector<16x384xf32> to vector<16x128xf32>
      %415 = vector.extract_strided_slice %413 {offsets = [0, 128], sizes = [16, 128], strides = [1, 1]} : vector<16x384xf32> to vector<16x128xf32>
      %416 = vector.extract_strided_slice %413 {offsets = [0, 256], sizes = [16, 128], strides = [1, 1]} : vector<16x384xf32> to vector<16x128xf32>
      %417 = vector.extract_strided_slice %407 {offsets = [0, 384], sizes = [16, 128], strides = [1, 1]} : vector<16x512xf32> to vector<16x128xf32>
      %418 = math.tanh %417 : vector<16x128xf32>
      %419 = arith.mulf %415, %388 : vector<16x128xf32>
      %420 = arith.mulf %414, %418 : vector<16x128xf32>
      %421 = arith.addf %419, %420 : vector<16x128xf32>
      %422 = math.tanh %421 : vector<16x128xf32>
      %423 = arith.mulf %416, %422 : vector<16x128xf32>
      %c16_i32_153 = arith.constant 16 : i32
      %424 = arith.muli %arg13, %c16_i32_153 : i32
      %425 = arith.addi %424, %c11_i32 : i32
      %c16_i32_154 = arith.constant 16 : i32
      %426 = arith.muli %425, %c16_i32_154 : i32
      %427 = tpu.assume_multiple %426, 16 : i32
      %428 = arith.truncf %423 : vector<16x128xf32> to vector<16x128xbf16>
      %429 = arith.index_cast %427 : i32 to index
      %c0_155 = arith.constant 0 : index
      %430 = vector.load %arg12[%429, %c0_155] : memref<768x128xbf16, #tpu.memory_space<vmem>>, vector<16x128xbf16>
      tpu.vector_store %arg12[%429, %c0_155], %428 {strides = array<i32>} : memref<768x128xbf16, #tpu.memory_space<vmem>>, vector<16x128xbf16>,
      %c12_i32 = arith.constant 12 : i32
      %c256_i32_156 = arith.constant 256 : i32
      %431 = arith.muli %29, %c256_i32_156 : i32
      %c16_i32_157 = arith.constant 16 : i32
      %432 = arith.muli %c12_i32, %c16_i32_157 : i32
      %433 = arith.addi %431, %432 : i32
      %434 = tpu.assume_multiple %433, 16 : i32
      %435 = arith.index_cast %434 : i32 to index
      %c0_158 = arith.constant 0 : index
      %436 = vector.load %arg11[%435, %c0_158] : memref<512x512xf32, #tpu.memory_space<vmem>>, vector<16x512xf32>
      %437 = arith.truncf %423 : vector<16x128xf32> to vector<16x128xbf16>
      %c0_159 = arith.constant 0 : index
      %c0_160 = arith.constant 0 : index
      %438 = vector.load %arg4[%c0_159, %c0_160] : memref<128x512xbf16, #tpu.memory_space<vmem>>, vector<128x512xbf16>
      %cst_161 = arith.constant dense<0.000000e+00> : vector<16x512xf32>
      %439 = tpu.matmul %437, %438, %cst_161 {dimension_numbers = #tpu.dot_dimension_numbers<[1], [0], [0], [1], [0, 0, 1, 1], [], []>} : vector<16x128xbf16>, vector<128x512xbf16>, vector<16x512xf32> -> vector<16x512xf32>
      %440 = arith.addf %436, %439 : vector<16x512xf32>
      %441 = vector.extract_strided_slice %440 {offsets = [0, 0], sizes = [16, 384], strides = [1, 1]} : vector<16x512xf32> to vector<16x384xf32>
      %442 = arith.negf %441 : vector<16x384xf32>
      %443 = math.exp %442 : vector<16x384xf32>
      %cst_162 = arith.constant 1.000000e+00 : f32
      %444 = vector.broadcast %cst_162 : f32 to vector<16x384xf32>
      %445 = arith.addf %444, %443 : vector<16x384xf32>
      %446 = arith.divf %444, %445 : vector<16x384xf32>
      %447 = vector.extract_strided_slice %446 {offsets = [0, 0], sizes = [16, 128], strides = [1, 1]} : vector<16x384xf32> to vector<16x128xf32>
      %448 = vector.extract_strided_slice %446 {offsets = [0, 128], sizes = [16, 128], strides = [1, 1]} : vector<16x384xf32> to vector<16x128xf32>
      %449 = vector.extract_strided_slice %446 {offsets = [0, 256], sizes = [16, 128], strides = [1, 1]} : vector<16x384xf32> to vector<16x128xf32>
      %450 = vector.extract_strided_slice %440 {offsets = [0, 384], sizes = [16, 128], strides = [1, 1]} : vector<16x512xf32> to vector<16x128xf32>
      %451 = math.tanh %450 : vector<16x128xf32>
      %452 = arith.mulf %448, %421 : vector<16x128xf32>
      %453 = arith.mulf %447, %451 : vector<16x128xf32>
      %454 = arith.addf %452, %453 : vector<16x128xf32>
      %455 = math.tanh %454 : vector<16x128xf32>
      %456 = arith.mulf %449, %455 : vector<16x128xf32>
      %c16_i32_163 = arith.constant 16 : i32
      %457 = arith.muli %arg13, %c16_i32_163 : i32
      %458 = arith.addi %457, %c12_i32 : i32
      %c16_i32_164 = arith.constant 16 : i32
      %459 = arith.muli %458, %c16_i32_164 : i32
      %460 = tpu.assume_multiple %459, 16 : i32
      %461 = arith.truncf %456 : vector<16x128xf32> to vector<16x128xbf16>
      %462 = arith.index_cast %460 : i32 to index
      %c0_165 = arith.constant 0 : index
      %463 = vector.load %arg12[%462, %c0_165] : memref<768x128xbf16, #tpu.memory_space<vmem>>, vector<16x128xbf16>
      tpu.vector_store %arg12[%462, %c0_165], %461 {strides = array<i32>} : memref<768x128xbf16, #tpu.memory_space<vmem>>, vector<16x128xbf16>,
      %c13_i32 = arith.constant 13 : i32
      %c256_i32_166 = arith.constant 256 : i32
      %464 = arith.muli %29, %c256_i32_166 : i32
      %c16_i32_167 = arith.constant 16 : i32
      %465 = arith.muli %c13_i32, %c16_i32_167 : i32
      %466 = arith.addi %464, %465 : i32
      %467 = tpu.assume_multiple %466, 16 : i32
      %468 = arith.index_cast %467 : i32 to index
      %c0_168 = arith.constant 0 : index
      %469 = vector.load %arg11[%468, %c0_168] : memref<512x512xf32, #tpu.memory_space<vmem>>, vector<16x512xf32>
      %470 = arith.truncf %456 : vector<16x128xf32> to vector<16x128xbf16>
      %c0_169 = arith.constant 0 : index
      %c0_170 = arith.constant 0 : index
      %471 = vector.load %arg4[%c0_169, %c0_170] : memref<128x512xbf16, #tpu.memory_space<vmem>>, vector<128x512xbf16>
      %cst_171 = arith.constant dense<0.000000e+00> : vector<16x512xf32>
      %472 = tpu.matmul %470, %471, %cst_171 {dimension_numbers = #tpu.dot_dimension_numbers<[1], [0], [0], [1], [0, 0, 1, 1], [], []>} : vector<16x128xbf16>, vector<128x512xbf16>, vector<16x512xf32> -> vector<16x512xf32>
      %473 = arith.addf %469, %472 : vector<16x512xf32>
      %474 = vector.extract_strided_slice %473 {offsets = [0, 0], sizes = [16, 384], strides = [1, 1]} : vector<16x512xf32> to vector<16x384xf32>
      %475 = arith.negf %474 : vector<16x384xf32>
      %476 = math.exp %475 : vector<16x384xf32>
      %cst_172 = arith.constant 1.000000e+00 : f32
      %477 = vector.broadcast %cst_172 : f32 to vector<16x384xf32>
      %478 = arith.addf %477, %476 : vector<16x384xf32>
      %479 = arith.divf %477, %478 : vector<16x384xf32>
      %480 = vector.extract_strided_slice %479 {offsets = [0, 0], sizes = [16, 128], strides = [1, 1]} : vector<16x384xf32> to vector<16x128xf32>
      %481 = vector.extract_strided_slice %479 {offsets = [0, 128], sizes = [16, 128], strides = [1, 1]} : vector<16x384xf32> to vector<16x128xf32>
      %482 = vector.extract_strided_slice %479 {offsets = [0, 256], sizes = [16, 128], strides = [1, 1]} : vector<16x384xf32> to vector<16x128xf32>
      %483 = vector.extract_strided_slice %473 {offsets = [0, 384], sizes = [16, 128], strides = [1, 1]} : vector<16x512xf32> to vector<16x128xf32>
      %484 = math.tanh %483 : vector<16x128xf32>
      %485 = arith.mulf %481, %454 : vector<16x128xf32>
      %486 = arith.mulf %480, %484 : vector<16x128xf32>
      %487 = arith.addf %485, %486 : vector<16x128xf32>
      %488 = math.tanh %487 : vector<16x128xf32>
      %489 = arith.mulf %482, %488 : vector<16x128xf32>
      %c16_i32_173 = arith.constant 16 : i32
      %490 = arith.muli %arg13, %c16_i32_173 : i32
      %491 = arith.addi %490, %c13_i32 : i32
      %c16_i32_174 = arith.constant 16 : i32
      %492 = arith.muli %491, %c16_i32_174 : i32
      %493 = tpu.assume_multiple %492, 16 : i32
      %494 = arith.truncf %489 : vector<16x128xf32> to vector<16x128xbf16>
      %495 = arith.index_cast %493 : i32 to index
      %c0_175 = arith.constant 0 : index
      %496 = vector.load %arg12[%495, %c0_175] : memref<768x128xbf16, #tpu.memory_space<vmem>>, vector<16x128xbf16>
      tpu.vector_store %arg12[%495, %c0_175], %494 {strides = array<i32>} : memref<768x128xbf16, #tpu.memory_space<vmem>>, vector<16x128xbf16>,
      %c14_i32 = arith.constant 14 : i32
      %c256_i32_176 = arith.constant 256 : i32
      %497 = arith.muli %29, %c256_i32_176 : i32
      %c16_i32_177 = arith.constant 16 : i32
      %498 = arith.muli %c14_i32, %c16_i32_177 : i32
      %499 = arith.addi %497, %498 : i32
      %500 = tpu.assume_multiple %499, 16 : i32
      %501 = arith.index_cast %500 : i32 to index
      %c0_178 = arith.constant 0 : index
      %502 = vector.load %arg11[%501, %c0_178] : memref<512x512xf32, #tpu.memory_space<vmem>>, vector<16x512xf32>
      %503 = arith.truncf %489 : vector<16x128xf32> to vector<16x128xbf16>
      %c0_179 = arith.constant 0 : index
      %c0_180 = arith.constant 0 : index
      %504 = vector.load %arg4[%c0_179, %c0_180] : memref<128x512xbf16, #tpu.memory_space<vmem>>, vector<128x512xbf16>
      %cst_181 = arith.constant dense<0.000000e+00> : vector<16x512xf32>
      %505 = tpu.matmul %503, %504, %cst_181 {dimension_numbers = #tpu.dot_dimension_numbers<[1], [0], [0], [1], [0, 0, 1, 1], [], []>} : vector<16x128xbf16>, vector<128x512xbf16>, vector<16x512xf32> -> vector<16x512xf32>
      %506 = arith.addf %502, %505 : vector<16x512xf32>
      %507 = vector.extract_strided_slice %506 {offsets = [0, 0], sizes = [16, 384], strides = [1, 1]} : vector<16x512xf32> to vector<16x384xf32>
      %508 = arith.negf %507 : vector<16x384xf32>
      %509 = math.exp %508 : vector<16x384xf32>
      %cst_182 = arith.constant 1.000000e+00 : f32
      %510 = vector.broadcast %cst_182 : f32 to vector<16x384xf32>
      %511 = arith.addf %510, %509 : vector<16x384xf32>
      %512 = arith.divf %510, %511 : vector<16x384xf32>
      %513 = vector.extract_strided_slice %512 {offsets = [0, 0], sizes = [16, 128], strides = [1, 1]} : vector<16x384xf32> to vector<16x128xf32>
      %514 = vector.extract_strided_slice %512 {offsets = [0, 128], sizes = [16, 128], strides = [1, 1]} : vector<16x384xf32> to vector<16x128xf32>
      %515 = vector.extract_strided_slice %512 {offsets = [0, 256], sizes = [16, 128], strides = [1, 1]} : vector<16x384xf32> to vector<16x128xf32>
      %516 = vector.extract_strided_slice %506 {offsets = [0, 384], sizes = [16, 128], strides = [1, 1]} : vector<16x512xf32> to vector<16x128xf32>
      %517 = math.tanh %516 : vector<16x128xf32>
      %518 = arith.mulf %514, %487 : vector<16x128xf32>
      %519 = arith.mulf %513, %517 : vector<16x128xf32>
      %520 = arith.addf %518, %519 : vector<16x128xf32>
      %521 = math.tanh %520 : vector<16x128xf32>
      %522 = arith.mulf %515, %521 : vector<16x128xf32>
      %c16_i32_183 = arith.constant 16 : i32
      %523 = arith.muli %arg13, %c16_i32_183 : i32
      %524 = arith.addi %523, %c14_i32 : i32
      %c16_i32_184 = arith.constant 16 : i32
      %525 = arith.muli %524, %c16_i32_184 : i32
      %526 = tpu.assume_multiple %525, 16 : i32
      %527 = arith.truncf %522 : vector<16x128xf32> to vector<16x128xbf16>
      %528 = arith.index_cast %526 : i32 to index
      %c0_185 = arith.constant 0 : index
      %529 = vector.load %arg12[%528, %c0_185] : memref<768x128xbf16, #tpu.memory_space<vmem>>, vector<16x128xbf16>
      tpu.vector_store %arg12[%528, %c0_185], %527 {strides = array<i32>} : memref<768x128xbf16, #tpu.memory_space<vmem>>, vector<16x128xbf16>,
      %c15_i32 = arith.constant 15 : i32
      %c256_i32_186 = arith.constant 256 : i32
      %530 = arith.muli %29, %c256_i32_186 : i32
      %c16_i32_187 = arith.constant 16 : i32
      %531 = arith.muli %c15_i32, %c16_i32_187 : i32
      %532 = arith.addi %530, %531 : i32
      %533 = tpu.assume_multiple %532, 16 : i32
      %534 = arith.index_cast %533 : i32 to index
      %c0_188 = arith.constant 0 : index
      %535 = vector.load %arg11[%534, %c0_188] : memref<512x512xf32, #tpu.memory_space<vmem>>, vector<16x512xf32>
      %536 = arith.truncf %522 : vector<16x128xf32> to vector<16x128xbf16>
      %c0_189 = arith.constant 0 : index
      %c0_190 = arith.constant 0 : index
      %537 = vector.load %arg4[%c0_189, %c0_190] : memref<128x512xbf16, #tpu.memory_space<vmem>>, vector<128x512xbf16>
      %cst_191 = arith.constant dense<0.000000e+00> : vector<16x512xf32>
      %538 = tpu.matmul %536, %537, %cst_191 {dimension_numbers = #tpu.dot_dimension_numbers<[1], [0], [0], [1], [0, 0, 1, 1], [], []>} : vector<16x128xbf16>, vector<128x512xbf16>, vector<16x512xf32> -> vector<16x512xf32>
      %539 = arith.addf %535, %538 : vector<16x512xf32>
      %540 = vector.extract_strided_slice %539 {offsets = [0, 0], sizes = [16, 384], strides = [1, 1]} : vector<16x512xf32> to vector<16x384xf32>
      %541 = arith.negf %540 : vector<16x384xf32>
      %542 = math.exp %541 : vector<16x384xf32>
      %cst_192 = arith.constant 1.000000e+00 : f32
      %543 = vector.broadcast %cst_192 : f32 to vector<16x384xf32>
      %544 = arith.addf %543, %542 : vector<16x384xf32>
      %545 = arith.divf %543, %544 : vector<16x384xf32>
      %546 = vector.extract_strided_slice %545 {offsets = [0, 0], sizes = [16, 128], strides = [1, 1]} : vector<16x384xf32> to vector<16x128xf32>
      %547 = vector.extract_strided_slice %545 {offsets = [0, 128], sizes = [16, 128], strides = [1, 1]} : vector<16x384xf32> to vector<16x128xf32>
      %548 = vector.extract_strided_slice %545 {offsets = [0, 256], sizes = [16, 128], strides = [1, 1]} : vector<16x384xf32> to vector<16x128xf32>
      %549 = vector.extract_strided_slice %539 {offsets = [0, 384], sizes = [16, 128], strides = [1, 1]} : vector<16x512xf32> to vector<16x128xf32>
      %550 = math.tanh %549 : vector<16x128xf32>
      %551 = arith.mulf %547, %520 : vector<16x128xf32>
      %552 = arith.mulf %546, %550 : vector<16x128xf32>
      %553 = arith.addf %551, %552 : vector<16x128xf32>
      %554 = math.tanh %553 : vector<16x128xf32>
      %555 = arith.mulf %548, %554 : vector<16x128xf32>
      %c16_i32_193 = arith.constant 16 : i32
      %556 = arith.muli %arg13, %c16_i32_193 : i32
      %557 = arith.addi %556, %c15_i32 : i32
      %c16_i32_194 = arith.constant 16 : i32
      %558 = arith.muli %557, %c16_i32_194 : i32
      %559 = tpu.assume_multiple %558, 16 : i32
      %560 = arith.truncf %555 : vector<16x128xf32> to vector<16x128xbf16>
      %561 = arith.index_cast %559 : i32 to index
      %c0_195 = arith.constant 0 : index
      %562 = vector.load %arg12[%561, %c0_195] : memref<768x128xbf16, #tpu.memory_space<vmem>>, vector<16x128xbf16>
      tpu.vector_store %arg12[%561, %c0_195], %560 {strides = array<i32>} : memref<768x128xbf16, #tpu.memory_space<vmem>>, vector<16x128xbf16>,
      %c16_i32_196 = arith.constant 16 : i32
      scf.yield %555, %553 : vector<16x128xf32>, vector<16x128xf32>
    }
    %c3_i32_11 = arith.constant 3 : i32
    %c0_12 = arith.constant 0 : index
    %c0_13 = arith.constant 0 : index
    %11 = vector.load %arg12[%c0_12, %c0_13] : memref<768x128xbf16, #tpu.memory_space<vmem>>, vector<768x128xbf16>
    %c0_14 = arith.constant 0 : index
    %c0_15 = arith.constant 0 : index
    %12 = vector.load %arg6[%c0_14, %c0_15] : memref<128x128xbf16, #tpu.memory_space<vmem>>, vector<128x128xbf16>
    %cst_16 = arith.constant dense<0.000000e+00> : vector<768x128xf32>
    %13 = tpu.matmul %11, %12, %cst_16 {dimension_numbers = #tpu.dot_dimension_numbers<[1], [0], [0], [1], [0, 0, 1, 1], [], []>} : vector<768x128xbf16>, vector<128x128xbf16>, vector<768x128xf32> -> vector<768x128xf32>
    %c0_17 = arith.constant 0 : index
    %c0_18 = arith.constant 0 : index
    %14 = vector.load %arg7[%c0_17, %c0_18] : memref<1x128xf32, #tpu.memory_space<vmem>>, vector<1x128xf32>
    %15 = vector.broadcast %14 : vector<1x128xf32> to vector<768x128xf32>
    %16 = arith.addf %13, %15 : vector<768x128xf32>
    %c0_19 = arith.constant 0 : index
    %c0_20 = arith.constant 0 : index
    %17 = vector.load %arg8[%c0_19, %c0_20] : memref<768x128xf32, #tpu.memory_space<vmem>>, vector<768x128xf32>
    tpu.vector_store %arg8[%c0_19, %c0_20], %16 {strides = array<i32>} : memref<768x128xf32, #tpu.memory_space<vmem>>, vector<768x128xf32>,
    %c0_21 = arith.constant 0 : index
    %c0_22 = arith.constant 0 : index
    %18 = vector.load %arg9[%c0_21, %c0_22] : memref<16x128xf32, #tpu.memory_space<vmem>>, vector<16x128xf32>
    tpu.vector_store %arg9[%c0_21, %c0_22], %10#0 {strides = array<i32>} : memref<16x128xf32, #tpu.memory_space<vmem>>, vector<16x128xf32>,
    %c0_23 = arith.constant 0 : index
    %c0_24 = arith.constant 0 : index
    %19 = vector.load %arg10[%c0_23, %c0_24] : memref<16x128xf32, #tpu.memory_space<vmem>>, vector<16x128xf32>
    tpu.vector_store %arg10[%c0_23, %c0_24], %10#1 {strides = array<i32>} : memref<16x128xf32, #tpu.memory_space<vmem>>, vector<16x128xf32>,
    return
  }
}

</mosaic_0001>

<bundles_post_ra>
// kernel: lstm_pallas.1
= control target key start
LH: loop header
LB: loop body
LE: loop exit
PB: predicated region body
PF: predicated region fallthrough
CT: control target
= control target key end

     0   :  { %s20641_s3 = inlined_call_operand.vmem [shape: bf16[128,512], index: 3, kind: input, shape index: {}]   ;;  %s20642_s4 = inlined_call_operand.vmem [shape: bf16[128,512], index: 4, kind: input, shape index: {}]   ;;  %s20643_s6 = inlined_call_operand.vmem [shape: bf16[128,128], index: 6, kind: input, shape index: {}]   ;;  %s20644_s7 = inlined_call_operand.vmem [shape: f32[1,128], index: 7, kind: input, shape index: {}]   ;;  %s20645_s8 = inlined_call_operand.vmem [shape: f32[768,128], index: 8, kind: output, shape index: {0}]   ;;  %s20646_s9 = inlined_call_operand.vmem [shape: f32[16,128], index: 9, kind: output, shape index: {1}]   ;;  %s20647_s10 = inlined_call_operand.vmem [shape: f32[16,128], index: 10, kind: output, shape index: {2}]   ;;  %s20648_s0 = inlined_call_operand.vmem [shape: bf16[768,128], index: 0, kind: input, shape index: {}]   ;;  %s20649_s5 = inlined_call_operand.vmem [shape: f32[1,512], index: 5, kind: input, shape index: {}]   ;;  %s20650_s1 = inlined_call_operand.vmem [shape: f32[16,128], index: 1, kind: input, shape index: {}]   ;;  %s20651_s2 = inlined_call_operand.vmem [shape: f32[16,128], index: 2, kind: input, shape index: {}]  }
   0x1   :  { %v9366_v0 = vld [vmem:[%s20641_s3 + $0xe0] sm:$0xf]  ;;  %v12061_v1 = vld [vmem:[%s20641_s3 + $0xec] sm:$0xf0]  ;;  %v12059_v2 = vld [vmem:[%s20641_s3 + $0xe4] sm:$0xf] }
   0x2   :  { %v9367_v3 = vor.u32 %v12061_v1, %v9366_v0  ;;  %v9368_v4 = vld [vmem:[%s20641_s3 + $0xf0] sm:$0xf0]  ;;  %v9374_v5 = vld [vmem:[%s20641_s3 + $0xe8] sm:$0xf]  ;;  %v12062_v6 = vld [vmem:[%s20641_s3 + $0xf4] sm:$0xf0] }
   0x3   :  { %v9371_v7 = vor.u32 %v12059_v2, %v9368_v4  ;;  %v9375_v8 = vor.u32 %v12062_v6, %v9374_v5  ;;  %v12060_v9 = vld [vmem:[%s20641_s3 + $0xec] sm:$0xf]  ;;  %v9376_v10 = vld [vmem:[%s20641_s3 + $0xf8] sm:$0xf0]  ;;  %v9350_v11 = vld [vmem:[%s20641_s3 + $0xc0] sm:$0xf] }
   0x4   :  { %362 = vmatpush.bf16.msra.mxu0 %v9367_v3  ;;  %v9379_v12 = vor.u32 %v12060_v9, %v9376_v10  ;;  %v12057_v13 = vld [vmem:[%s20641_s3 + $0xcc] sm:$0xf0]  ;;  %v12055_v14 = vld [vmem:[%s20641_s3 + $0xc4] sm:$0xf]  ;;  %v9352_v15 = vld [vmem:[%s20641_s3 + $0xd0] sm:$0xf0] }
   0x5   :  { %451 = vmatpush.bf16.msra.mxu1 %v9371_v7  ;;  %540 = vmatpush.bf16.msra.mxu2 %v9375_v8  ;;  %v9351_v16 = vor.u32 %v12057_v13, %v9350_v11  ;;  %v9355_v17 = vor.u32 %v12055_v14, %v9352_v15  ;;  %v9358_v18 = vld [vmem:[%s20641_s3 + $0xc8] sm:$0xf]  ;;  %v12058_v19 = vld [vmem:[%s20641_s3 + $0xd4] sm:$0xf0]  ;;  %v12056_v20 = vld [vmem:[%s20641_s3 + $0xcc] sm:$0xf] }
   0x6   :  { %629 = vmatpush.bf16.msra.mxu3 %v9379_v12  ;;  %v9359_v21 = vor.u32 %v12058_v19, %v9358_v18  ;;  %v9360_v22 = vld [vmem:[%s20641_s3 + $0xd8] sm:$0xf0]  ;;  %v9334_v23 = vld [vmem:[%s20641_s3 + $0xa0] sm:$0xf]  ;;  %v12053_v24 = vld [vmem:[%s20641_s3 + $0xac] sm:$0xf0] }
   0x7   :  { %v9363_v25 = vor.u32 %v12056_v20, %v9360_v22  ;;  %v12051_v26 = vld [vmem:[%s20641_s3 + $0xa4] sm:$0xf]  ;;  %v9336_v27 = vld [vmem:[%s20641_s3 + $0xb0] sm:$0xf0]  ;;  %v9342_v28 = vld [vmem:[%s20641_s3 + $0xa8] sm:$0xf]  ;;  %v9335_v29 = vor.u32 %v12053_v24, %v9334_v23 }
   0x8   :  { %363 = vmatpush.bf16.msra.mxu0 %v9351_v16  ;;  %v12054_v30 = vld [vmem:[%s20641_s3 + $0xb4] sm:$0xf0]  ;;  %v12052_v31 = vld [vmem:[%s20641_s3 + $0xac] sm:$0xf]  ;;  %v9344_v32 = vld [vmem:[%s20641_s3 + $0xb8] sm:$0xf0]  ;;  %v9339_v33 = vor.u32 %v12051_v26, %v9336_v27 }
   0x9   :  { %452 = vmatpush.bf16.msra.mxu1 %v9355_v17  ;;  %541 = vmatpush.bf16.msra.mxu2 %v9359_v21  ;;  %v9343_v34 = vor.u32 %v12054_v30, %v9342_v28  ;;  %v9318_v35 = vld [vmem:[%s20641_s3 + $0x80] sm:$0xf]  ;;  %v12049_v36 = vld [vmem:[%s20641_s3 + $0x8c] sm:$0xf0]  ;;  %v12047_v37 = vld [vmem:[%s20641_s3 + $0x84] sm:$0xf]  ;;  %v9347_v38 = vor.u32 %v12052_v31, %v9344_v32 }
   0xa   :  { %630 = vmatpush.bf16.msra.mxu3 %v9363_v25  ;;  %v9320_v39 = vld [vmem:[%s20641_s3 + $0x90] sm:$0xf0]  ;;  %v9326_v40 = vld [vmem:[%s20641_s3 + $0x88] sm:$0xf]  ;;  %v12050_v41 = vld [vmem:[%s20641_s3 + $0x94] sm:$0xf0]  ;;  %v9319_v44 = vor.u32 %v12049_v36, %v9318_v35 }
   0xb   :  { %v12048_v42 = vld [vmem:[%s20641_s3 + $0x8c] sm:$0xf]  ;;  %v9328_v43 = vld [vmem:[%s20641_s3 + $0x98] sm:$0xf0]  ;;  %v9323_v45 = vor.u32 %v12047_v37, %v9320_v39  ;;  %v9327_v46 = vor.u32 %v12050_v41, %v9326_v40  ;;  %v9302_v47 = vld [vmem:[%s20641_s3 + $0x60] sm:$0xf] }
   0xc   :  { %364 = vmatpush.bf16.msra.mxu0 %v9335_v29  ;;  %v12045_v48 = vld [vmem:[%s20641_s3 + $0x6c] sm:$0xf0]  ;;  %v12043_v49 = vld [vmem:[%s20641_s3 + $0x64] sm:$0xf]  ;;  %v9331_v50 = vor.u32 %v12048_v42, %v9328_v43  ;;  %v9304_v51 = vld [vmem:[%s20641_s3 + $0x70] sm:$0xf0] }
   0xd   :  { %453 = vmatpush.bf16.msra.mxu1 %v9339_v33  ;;  %542 = vmatpush.bf16.msra.mxu2 %v9343_v34  ;;  %v9310_v52 = vld [vmem:[%s20641_s3 + $0x68] sm:$0xf]  ;;  %v12046_v53 = vld [vmem:[%s20641_s3 + $0x74] sm:$0xf0]  ;;  %v12044_v54 = vld [vmem:[%s20641_s3 + $0x6c] sm:$0xf]  ;;  %v9303_v56 = vor.u32 %v12045_v48, %v9302_v47  ;;  %v9307_v57 = vor.u32 %v12043_v49, %v9304_v51 }
   0xe   :  { %631 = vmatpush.bf16.msra.mxu3 %v9347_v38  ;;  %v9312_v55 = vld [vmem:[%s20641_s3 + $0x78] sm:$0xf0]  ;;  %v9311_v58 = vor.u32 %v12046_v53, %v9310_v52  ;;  %v9286_v59 = vld [vmem:[%s20641_s3 + $0x40] sm:$0xf]  ;;  %v12041_v60 = vld [vmem:[%s20641_s3 + $0x4c] sm:$0xf0] }
   0xf   :  { %v12039_v61 = vld [vmem:[%s20641_s3 + $0x44] sm:$0xf]  ;;  %v9315_v62 = vor.u32 %v12044_v54, %v9312_v55  ;;  %v9288_v63 = vld [vmem:[%s20641_s3 + $0x50] sm:$0xf0]  ;;  %v9294_v0 = vld [vmem:[%s20641_s3 + $0x48] sm:$0xf]  ;;  %v9287_v4 = vor.u32 %v12041_v60, %v9286_v59 }
  0x10   :  { %365 = vmatpush.bf16.msra.mxu0 %v9319_v44  ;;  %v12042_v1 = vld [vmem:[%s20641_s3 + $0x54] sm:$0xf0]  ;;  %v12040_v2 = vld [vmem:[%s20641_s3 + $0x4c] sm:$0xf]  ;;  %v9296_v3 = vld [vmem:[%s20641_s3 + $0x58] sm:$0xf0]  ;;  %v9291_v5 = vor.u32 %v12039_v61, %v9288_v63 }
  0x11   :  { %454 = vmatpush.bf16.msra.mxu1 %v9323_v45  ;;  %543 = vmatpush.bf16.msra.mxu2 %v9327_v46  ;;  %v9295_v6 = vor.u32 %v12042_v1, %v9294_v0  ;;  %v9270_v7 = vld [vmem:[%s20641_s3 + $0x20] sm:$0xf]  ;;  %v12037_v8 = vld [vmem:[%s20641_s3 + $0x2c] sm:$0xf0]  ;;  %v12035_v9 = vld [vmem:[%s20641_s3 + $0x24] sm:$0xf]  ;;  %v9299_v10 = vor.u32 %v12040_v2, %v9296_v3 }
  0x12   :  { %632 = vmatpush.bf16.msra.mxu3 %v9331_v50  ;;  %v9272_v11 = vld [vmem:[%s20641_s3 + $0x30] sm:$0xf0]  ;;  %v9278_v12 = vld [vmem:[%s20641_s3 + $0x28] sm:$0xf]  ;;  %v12038_v13 = vld [vmem:[%s20641_s3 + $0x34] sm:$0xf0]  ;;  %v9271_v16 = vor.u32 %v12037_v8, %v9270_v7 }
  0x13   :  { %v12036_v14 = vld [vmem:[%s20641_s3 + $0x2c] sm:$0xf]  ;;  %v9280_v15 = vld [vmem:[%s20641_s3 + $0x38] sm:$0xf0]  ;;  %v9275_v17 = vor.u32 %v12035_v9, %v9272_v11  ;;  %v9279_v18 = vor.u32 %v12038_v13, %v9278_v12  ;;  %v9254_v19 = vld [vmem:[%s20641_s3] sm:$0xf] }
  0x14   :  { %366 = vmatpush.bf16.msra.mxu0 %v9303_v56  ;;  %v12033_v20 = vld [vmem:[%s20641_s3 + $0xc] sm:$0xf0]  ;;  %v12031_v21 = vld [vmem:[%s20641_s3 + $0x4] sm:$0xf]  ;;  %v9283_v22 = vor.u32 %v12036_v14, %v9280_v15  ;;  %v9256_v23 = vld [vmem:[%s20641_s3 + $0x10] sm:$0xf0] }
  0x15   :  { %455 = vmatpush.bf16.msra.mxu1 %v9307_v57  ;;  %544 = vmatpush.bf16.msra.mxu2 %v9311_v58  ;;  %v9262_v24 = vld [vmem:[%s20641_s3 + $0x8] sm:$0xf]  ;;  %v12034_v25 = vld [vmem:[%s20641_s3 + $0x14] sm:$0xf0]  ;;  %v12032_v26 = vld [vmem:[%s20641_s3 + $0xc] sm:$0xf]  ;;  %v9255_v28 = vor.u32 %v12033_v20, %v9254_v19  ;;  %v9259_v29 = vor.u32 %v12031_v21, %v9256_v23 }
  0x16   :  { %633 = vmatpush.bf16.msra.mxu3 %v9315_v62  ;;  %v9264_v27 = vld [vmem:[%s20641_s3 + $0x18] sm:$0xf0]  ;;  %v9263_v30 = vor.u32 %v12034_v25, %v9262_v24  ;;  %v12015_v32 = vld [vmem:[%s20648_s0] sm:$0xff]  ;;  %v12016_v33 = vld [vmem:[%s20648_s0 + $0x8] sm:$0xff] }
  0x17   :  { %v9267_v31 = vor.u32 %v12032_v26, %v9264_v27  ;;  %v12017_v34 = vld [vmem:[%s20648_s0 + $0x10] sm:$0xff]  ;;  %v12018_v35 = vld [vmem:[%s20648_s0 + $0x18] sm:$0xff]  ;;  %v12019_v36 = vld [vmem:[%s20648_s0 + $0x20] sm:$0xff] }
  0x18   :  { %367 = vmatpush.bf16.msra.mxu0 %v9287_v4  ;;  %v12020_v37 = vld [vmem:[%s20648_s0 + $0x28] sm:$0xff]  ;;  %v12021_v38 = vld [vmem:[%s20648_s0 + $0x30] sm:$0xff]  ;;  %v12022_v39 = vld [vmem:[%s20648_s0 + $0x38] sm:$0xff] }
  0x19   :  { %456 = vmatpush.bf16.msra.mxu1 %v9291_v5  ;;  %545 = vmatpush.bf16.msra.mxu2 %v9295_v6  ;;  %v96_v40 = vld [vmem:[%s20649_s5] sm:$0xf]  ;;  %v12024_v59 = vld [vmem:[%s20648_s0 + $0x48] sm:$0xff]  ;;  %v12025_v12 = vld [vmem:[%s20648_s0 + $0x50] sm:$0xff] }
  0x1a   :  { %634 = vmatpush.bf16.msra.mxu3 %v9299_v10  ;;  %v13714_v41 = vperm.slane %v96_v40, 0  ;;  %v13716_v42 = vperm.slane %v96_v40, 1  ;;  %v12023_v43 = vld [vmem:[%s20648_s0 + $0x40] sm:$0xff]  ;;  %v13723_v48 = vperm.slane %v96_v40, 2  ;;  %v13725_v49 = vperm.slane %v96_v40, 3 }
  0x1c   :  { %368 = vmatpush.bf16.msra.mxu0 %v9271_v16 }
  0x1d   :  { %457 = vmatpush.bf16.msra.mxu1 %v9275_v17  ;;  %546 = vmatpush.bf16.msra.mxu2 %v9279_v18 }
  0x1e   :  { %635 = vmatpush.bf16.msra.mxu3 %v9283_v22 }
  0x20   :  { %369 = vmatpush.bf16.msra.mxu0 %v9255_v28 }
  0x21   :  { %458 = vmatpush.bf16.msra.mxu1 %v9259_v29  ;;  %547 = vmatpush.bf16.msra.mxu2 %v9263_v30  ;;  %v12026_v29 = vld [vmem:[%s20648_s0 + $0x58] sm:$0xff] }
  0x22   :  { %636 = vmatpush.bf16.msra.mxu3 %v9267_v31 }
  0x23   :  { %370 = vmatmul.bf16.vlgmr.msra.gmra.mxu0 %v12015_v32 }
  0x24   :  { %459 = vmatmul.bf16.vlgmr.msra.gmra.mxu1 %v12015_v32  ;;  %548 = vmatmul.bf16.vlgmr.msra.gmra.mxu2 %v12015_v32 }
  0x25   :  { %637 = vmatmul.bf16.vlgmr.msra.gmra.mxu3 %v12015_v32 }
  0x33   :  { %375 = vmatmul.bf16.gmra.mxu0 %v12016_v33 }
  0x34   :  { %464 = vmatmul.bf16.gmra.mxu1 %v12016_v33  ;;  %553 = vmatmul.bf16.gmra.mxu2 %v12016_v33 }
  0x35   :  { %642 = vmatmul.bf16.gmra.mxu3 %v12016_v33 }
  0x43   :  { %380 = vmatmul.bf16.gmra.mxu0 %v12017_v34 }
  0x44   :  { %469 = vmatmul.bf16.gmra.mxu1 %v12017_v34  ;;  %558 = vmatmul.bf16.gmra.mxu2 %v12017_v34 }
  0x45   :  { %647 = vmatmul.bf16.gmra.mxu3 %v12017_v34 }
  0x53   :  { %385 = vmatmul.bf16.gmra.mxu0 %v12018_v35 }
  0x54   :  { %474 = vmatmul.bf16.gmra.mxu1 %v12018_v35  ;;  %563 = vmatmul.bf16.gmra.mxu2 %v12018_v35 }
  0x55   :  { %652 = vmatmul.bf16.gmra.mxu3 %v12018_v35 }
  0x63   :  { %390 = vmatmul.bf16.gmra.mxu0 %v12019_v36 }
  0x64   :  { %479 = vmatmul.bf16.gmra.mxu1 %v12019_v36  ;;  %568 = vmatmul.bf16.gmra.mxu2 %v12019_v36 }
  0x65   :  { %657 = vmatmul.bf16.gmra.mxu3 %v12019_v36 }
  0x73   :  { %395 = vmatmul.bf16.gmra.mxu0 %v12020_v37 }
  0x74   :  { %484 = vmatmul.bf16.gmra.mxu1 %v12020_v37  ;;  %573 = vmatmul.bf16.gmra.mxu2 %v12020_v37 }
  0x75   :  { %662 = vmatmul.bf16.gmra.mxu3 %v12020_v37 }
  0x83   :  { %400 = vmatmul.bf16.gmra.mxu0 %v12021_v38 }
  0x84   :  { %489 = vmatmul.bf16.gmra.mxu1 %v12021_v38  ;;  %578 = vmatmul.bf16.gmra.mxu2 %v12021_v38 }
  0x85   :  { %667 = vmatmul.bf16.gmra.mxu3 %v12021_v38 }
  0x93   :  { %405 = vmatmul.bf16.gmra.mxu0 %v12022_v39 }
  0x94   :  { %494 = vmatmul.bf16.gmra.mxu1 %v12022_v39  ;;  %583 = vmatmul.bf16.gmra.mxu2 %v12022_v39 }
  0x95   :  { %672 = vmatmul.bf16.gmra.mxu3 %v12022_v39 }
  0xa0   :  { %v371_v44 = vpop.f32.mrf.mxu0 }
  0xa1   :  { %v372_v45 = vadd.f32 %v371_v44, %v13714_v41  ;;  %v460_v46 = vpop.f32.mrf.mxu1 }
  0xa2   :  { %v461_v47 = vadd.f32 %v460_v46, %v13716_v42 }
  0xa3   :  { %718 = vst [vmem:[#allocation2] sm:$0xff] %v372_v45  ;;  %410 = vmatmul.bf16.gmra.mxu0 %v12023_v43 }
  0xa4   :  { %719 = vst [vmem:[#allocation2 + $0x8] sm:$0xff] %v461_v47  ;;  %499 = vmatmul.bf16.gmra.mxu1 %v12023_v43  ;;  %588 = vmatmul.bf16.gmra.mxu2 %v12023_v43 }
  0xa5   :  { %677 = vmatmul.bf16.gmra.mxu3 %v12023_v43 }
  0xa7   :  { %v549_v50 = vpop.f32.mrf.mxu2 }
  0xa8   :  { %v550_v51 = vadd.f32 %v549_v50, %v13723_v48  ;;  %v638_v52 = vpop.f32.mrf.mxu3  ;;  %v373_v53 = vpop.f32.mrf.mxu0  ;;  %v12027_v50 = vld [vmem:[%s20648_s0 + $0x60] sm:$0xff] }
  0xa9   :  { %v639_v54 = vadd.f32 %v638_v52, %v13725_v49  ;;  %v374_v55 = vadd.f32 %v373_v53, %v13714_v41  ;;  %v462_v56 = vpop.f32.mrf.mxu1 }
  0xaa   :  { %720 = vst [vmem:[#allocation2 + $0x10] sm:$0xff] %v550_v51  ;;  %v463_v57 = vadd.f32 %v462_v56, %v13716_v42 }
  0xab   :  { %721 = vst [vmem:[#allocation2 + $0x18] sm:$0xff] %v639_v54 }
  0xac   :  { %722 = vst [vmem:[#allocation2 + $0x20] sm:$0xff] %v374_v55 }
  0xad   :  { %723 = vst [vmem:[#allocation2 + $0x28] sm:$0xff] %v463_v57 }
  0xaf   :  { %v551_v58 = vpop.f32.mrf.mxu2 }
  0xb0   :  { %v552_v60 = vadd.f32 %v551_v58, %v13723_v48  ;;  %v640_v61 = vpop.f32.mrf.mxu3  ;;  %v376_v62 = vpop.f32.mrf.mxu0 }
  0xb1   :  { %v641_v63 = vadd.f32 %v640_v61, %v13725_v49  ;;  %v377_v0 = vadd.f32 %v376_v62, %v13714_v41  ;;  %v465_v1 = vpop.f32.mrf.mxu1 }
  0xb2   :  { %724 = vst [vmem:[#allocation2 + $0x30] sm:$0xff] %v552_v60  ;;  %v466_v2 = vadd.f32 %v465_v1, %v13716_v42 }
  0xb3   :  { %725 = vst [vmem:[#allocation2 + $0x38] sm:$0xff] %v641_v63  ;;  %415 = vmatmul.bf16.gmra.mxu0 %v12024_v59 }
  0xb4   :  { %726 = vst [vmem:[#allocation2 + $0x40] sm:$0xff] %v377_v0  ;;  %504 = vmatmul.bf16.gmra.mxu1 %v12024_v59  ;;  %593 = vmatmul.bf16.gmra.mxu2 %v12024_v59 }
  0xb5   :  { %727 = vst [vmem:[#allocation2 + $0x48] sm:$0xff] %v466_v2  ;;  %682 = vmatmul.bf16.gmra.mxu3 %v12024_v59 }
  0xb7   :  { %v554_v3 = vpop.f32.mrf.mxu2 }
  0xb8   :  { %v555_v4 = vadd.f32 %v554_v3, %v13723_v48  ;;  %v643_v5 = vpop.f32.mrf.mxu3  ;;  %v378_v6 = vpop.f32.mrf.mxu0  ;;  %v12028_v3 = vld [vmem:[%s20648_s0 + $0x68] sm:$0xff] }
  0xb9   :  { %v644_v7 = vadd.f32 %v643_v5, %v13725_v49  ;;  %v379_v8 = vadd.f32 %v378_v6, %v13714_v41  ;;  %v467_v9 = vpop.f32.mrf.mxu1 }
  0xba   :  { %728 = vst [vmem:[#allocation2 + $0x50] sm:$0xff] %v555_v4  ;;  %v468_v10 = vadd.f32 %v467_v9, %v13716_v42 }
  0xbb   :  { %729 = vst [vmem:[#allocation2 + $0x58] sm:$0xff] %v644_v7 }
  0xbc   :  { %730 = vst [vmem:[#allocation2 + $0x60] sm:$0xff] %v379_v8 }
  0xbd   :  { %731 = vst [vmem:[#allocation2 + $0x68] sm:$0xff] %v468_v10 }
  0xbf   :  { %v556_v11 = vpop.f32.mrf.mxu2 }
  0xc0   :  { %v557_v13 = vadd.f32 %v556_v11, %v13723_v48  ;;  %v645_v14 = vpop.f32.mrf.mxu3  ;;  %v381_v15 = vpop.f32.mrf.mxu0 }
  0xc1   :  { %v646_v16 = vadd.f32 %v645_v14, %v13725_v49  ;;  %v382_v17 = vadd.f32 %v381_v15, %v13714_v41  ;;  %v470_v18 = vpop.f32.mrf.mxu1 }
  0xc2   :  { %732 = vst [vmem:[#allocation2 + $0x70] sm:$0xff] %v557_v13  ;;  %v471_v19 = vadd.f32 %v470_v18, %v13716_v42 }
  0xc3   :  { %733 = vst [vmem:[#allocation2 + $0x78] sm:$0xff] %v646_v16  ;;  %420 = vmatmul.bf16.gmra.mxu0 %v12025_v12 }
  0xc4   :  { %734 = vst [vmem:[#allocation2 + $0x80] sm:$0xff] %v382_v17  ;;  %509 = vmatmul.bf16.gmra.mxu1 %v12025_v12  ;;  %598 = vmatmul.bf16.gmra.mxu2 %v12025_v12 }
  0xc5   :  { %735 = vst [vmem:[#allocation2 + $0x88] sm:$0xff] %v471_v19  ;;  %687 = vmatmul.bf16.gmra.mxu3 %v12025_v12 }
  0xc7   :  { %v559_v20 = vpop.f32.mrf.mxu2 }
  0xc8   :  { %v560_v21 = vadd.f32 %v559_v20, %v13723_v48  ;;  %v648_v22 = vpop.f32.mrf.mxu3  ;;  %v383_v23 = vpop.f32.mrf.mxu0  ;;  %v12029_v20 = vld [vmem:[%s20648_s0 + $0x70] sm:$0xff] }
  0xc9   :  { %v649_v24 = vadd.f32 %v648_v22, %v13725_v49  ;;  %v384_v25 = vadd.f32 %v383_v23, %v13714_v41  ;;  %v472_v26 = vpop.f32.mrf.mxu1 }
  0xca   :  { %736 = vst [vmem:[#allocation2 + $0x90] sm:$0xff] %v560_v21  ;;  %v473_v27 = vadd.f32 %v472_v26, %v13716_v42 }
  0xcb   :  { %737 = vst [vmem:[#allocation2 + $0x98] sm:$0xff] %v649_v24 }
  0xcc   :  { %738 = vst [vmem:[#allocation2 + $0xa0] sm:$0xff] %v384_v25 }
  0xcd   :  { %739 = vst [vmem:[#allocation2 + $0xa8] sm:$0xff] %v473_v27 }
  0xcf   :  { %v561_v28 = vpop.f32.mrf.mxu2 }
  0xd0   :  { %v562_v30 = vadd.f32 %v561_v28, %v13723_v48  ;;  %v650_v31 = vpop.f32.mrf.mxu3  ;;  %v386_v32 = vpop.f32.mrf.mxu0 }
  0xd1   :  { %v651_v33 = vadd.f32 %v650_v31, %v13725_v49  ;;  %v387_v34 = vadd.f32 %v386_v32, %v13714_v41  ;;  %v475_v35 = vpop.f32.mrf.mxu1 }
  0xd2   :  { %740 = vst [vmem:[#allocation2 + $0xb0] sm:$0xff] %v562_v30  ;;  %v476_v36 = vadd.f32 %v475_v35, %v13716_v42 }
  0xd3   :  { %741 = vst [vmem:[#allocation2 + $0xb8] sm:$0xff] %v651_v33  ;;  %425 = vmatmul.bf16.gmra.mxu0 %v12026_v29 }
  0xd4   :  { %742 = vst [vmem:[#allocation2 + $0xc0] sm:$0xff] %v387_v34  ;;  %514 = vmatmul.bf16.gmra.mxu1 %v12026_v29  ;;  %603 = vmatmul.bf16.gmra.mxu2 %v12026_v29 }
  0xd5   :  { %743 = vst [vmem:[#allocation2 + $0xc8] sm:$0xff] %v476_v36  ;;  %692 = vmatmul.bf16.gmra.mxu3 %v12026_v29 }
  0xd7   :  { %v564_v37 = vpop.f32.mrf.mxu2 }
  0xd8   :  { %v565_v38 = vadd.f32 %v564_v37, %v13723_v48  ;;  %v653_v39 = vpop.f32.mrf.mxu3  ;;  %v388_v40 = vpop.f32.mrf.mxu0  ;;  %v12030_v37 = vld [vmem:[%s20648_s0 + $0x78] sm:$0xff] }
  0xd9   :  { %v654_v43 = vadd.f32 %v653_v39, %v13725_v49  ;;  %v389_v44 = vadd.f32 %v388_v40, %v13714_v41  ;;  %v477_v45 = vpop.f32.mrf.mxu1 }
  0xda   :  { %744 = vst [vmem:[#allocation2 + $0xd0] sm:$0xff] %v565_v38  ;;  %v478_v46 = vadd.f32 %v477_v45, %v13716_v42 }
  0xdb   :  { %745 = vst [vmem:[#allocation2 + $0xd8] sm:$0xff] %v654_v43 }
  0xdc   :  { %746 = vst [vmem:[#allocation2 + $0xe0] sm:$0xff] %v389_v44 }
  0xdd   :  { %747 = vst [vmem:[#allocation2 + $0xe8] sm:$0xff] %v478_v46 }
  0xdf   :  { %v566_v47 = vpop.f32.mrf.mxu2 }
  0xe0   :  { %v567_v51 = vadd.f32 %v566_v47, %v13723_v48  ;;  %v655_v52 = vpop.f32.mrf.mxu3  ;;  %v391_v53 = vpop.f32.mrf.mxu0 }
  0xe1   :  { %v656_v54 = vadd.f32 %v655_v52, %v13725_v49  ;;  %v392_v55 = vadd.f32 %v391_v53, %v13714_v41  ;;  %v480_v56 = vpop.f32.mrf.mxu1 }
  0xe2   :  { %748 = vst [vmem:[#allocation2 + $0xf0] sm:$0xff] %v567_v51  ;;  %v481_v57 = vadd.f32 %v480_v56, %v13716_v42 }
  0xe3   :  { %749 = vst [vmem:[#allocation2 + $0xf8] sm:$0xff] %v656_v54  ;;  %430 = vmatmul.bf16.gmra.mxu0 %v12027_v50 }
  0xe4   :  { %750 = vst [vmem:[#allocation2 + $0x100] sm:$0xff] %v392_v55  ;;  %519 = vmatmul.bf16.gmra.mxu1 %v12027_v50  ;;  %608 = vmatmul.bf16.gmra.mxu2 %v12027_v50 }
  0xe5   :  { %751 = vst [vmem:[#allocation2 + $0x108] sm:$0xff] %v481_v57  ;;  %697 = vmatmul.bf16.gmra.mxu3 %v12027_v50 }
  0xe7   :  { %v569_v58 = vpop.f32.mrf.mxu2 }
  0xe8   :  { %v570_v59 = vadd.f32 %v569_v58, %v13723_v48  ;;  %v658_v60 = vpop.f32.mrf.mxu3  ;;  %v393_v61 = vpop.f32.mrf.mxu0 }
  0xe9   :  { %v659_v62 = vadd.f32 %v658_v60, %v13725_v49  ;;  %v394_v63 = vadd.f32 %v393_v61, %v13714_v41  ;;  %v482_v0 = vpop.f32.mrf.mxu1 }
  0xea   :  { %752 = vst [vmem:[#allocation2 + $0x110] sm:$0xff] %v570_v59  ;;  %v483_v1 = vadd.f32 %v482_v0, %v13716_v42 }
  0xeb   :  { %753 = vst [vmem:[#allocation2 + $0x118] sm:$0xff] %v659_v62 }
  0xec   :  { %754 = vst [vmem:[#allocation2 + $0x120] sm:$0xff] %v394_v63 }
  0xed   :  { %755 = vst [vmem:[#allocation2 + $0x128] sm:$0xff] %v483_v1 }
  0xef   :  { %v571_v2 = vpop.f32.mrf.mxu2 }
  0xf0   :  { %v572_v4 = vadd.f32 %v571_v2, %v13723_v48  ;;  %v660_v5 = vpop.f32.mrf.mxu3  ;;  %v396_v6 = vpop.f32.mrf.mxu0 }
  0xf1   :  { %v661_v7 = vadd.f32 %v660_v5, %v13725_v49  ;;  %v397_v8 = vadd.f32 %v396_v6, %v13714_v41  ;;  %v485_v9 = vpop.f32.mrf.mxu1 }
  0xf2   :  { %756 = vst [vmem:[#allocation2 + $0x130] sm:$0xff] %v572_v4  ;;  %v486_v10 = vadd.f32 %v485_v9, %v13716_v42 }
  0xf3   :  { %757 = vst [vmem:[#allocation2 + $0x138] sm:$0xff] %v661_v7  ;;  %435 = vmatmul.bf16.gmra.mxu0 %v12028_v3 }
  0xf4   :  { %758 = vst [vmem:[#allocation2 + $0x140] sm:$0xff] %v397_v8  ;;  %524 = vmatmul.bf16.gmra.mxu1 %v12028_v3  ;;  %613 = vmatmul.bf16.gmra.mxu2 %v12028_v3 }
  0xf5   :  { %759 = vst [vmem:[#allocation2 + $0x148] sm:$0xff] %v486_v10  ;;  %702 = vmatmul.bf16.gmra.mxu3 %v12028_v3 }
  0xf7   :  { %v574_v11 = vpop.f32.mrf.mxu2 }
  0xf8   :  { %v575_v12 = vadd.f32 %v574_v11, %v13723_v48  ;;  %v663_v13 = vpop.f32.mrf.mxu3  ;;  %v398_v14 = vpop.f32.mrf.mxu0 }
  0xf9   :  { %v664_v15 = vadd.f32 %v663_v13, %v13725_v49  ;;  %v399_v16 = vadd.f32 %v398_v14, %v13714_v41  ;;  %v487_v17 = vpop.f32.mrf.mxu1 }
  0xfa   :  { %760 = vst [vmem:[#allocation2 + $0x150] sm:$0xff] %v575_v12  ;;  %v488_v18 = vadd.f32 %v487_v17, %v13716_v42 }
  0xfb   :  { %761 = vst [vmem:[#allocation2 + $0x158] sm:$0xff] %v664_v15 }
  0xfc   :  { %762 = vst [vmem:[#allocation2 + $0x160] sm:$0xff] %v399_v16 }
  0xfd   :  { %763 = vst [vmem:[#allocation2 + $0x168] sm:$0xff] %v488_v18 }
  0xff   :  { %v576_v19 = vpop.f32.mrf.mxu2 }
 0x100   :  { %v577_v21 = vadd.f32 %v576_v19, %v13723_v48  ;;  %v665_v22 = vpop.f32.mrf.mxu3  ;;  %v401_v23 = vpop.f32.mrf.mxu0 }
 0x101   :  { %v666_v24 = vadd.f32 %v665_v22, %v13725_v49  ;;  %v402_v25 = vadd.f32 %v401_v23, %v13714_v41  ;;  %v490_v26 = vpop.f32.mrf.mxu1 }
 0x102   :  { %764 = vst [vmem:[#allocation2 + $0x170] sm:$0xff] %v577_v21  ;;  %v491_v27 = vadd.f32 %v490_v26, %v13716_v42 }
 0x103   :  { %765 = vst [vmem:[#allocation2 + $0x178] sm:$0xff] %v666_v24  ;;  %440 = vmatmul.bf16.gmra.mxu0 %v12029_v20 }
 0x104   :  { %766 = vst [vmem:[#allocation2 + $0x180] sm:$0xff] %v402_v25  ;;  %529 = vmatmul.bf16.gmra.mxu1 %v12029_v20  ;;  %618 = vmatmul.bf16.gmra.mxu2 %v12029_v20 }
 0x105   :  { %767 = vst [vmem:[#allocation2 + $0x188] sm:$0xff] %v491_v27  ;;  %707 = vmatmul.bf16.gmra.mxu3 %v12029_v20 }
 0x107   :  { %v579_v28 = vpop.f32.mrf.mxu2 }
 0x108   :  { %v580_v29 = vadd.f32 %v579_v28, %v13723_v48  ;;  %v668_v30 = vpop.f32.mrf.mxu3  ;;  %v403_v31 = vpop.f32.mrf.mxu0 }
 0x109   :  { %v669_v32 = vadd.f32 %v668_v30, %v13725_v49  ;;  %v404_v33 = vadd.f32 %v403_v31, %v13714_v41  ;;  %v492_v34 = vpop.f32.mrf.mxu1 }
 0x10a   :  { %768 = vst [vmem:[#allocation2 + $0x190] sm:$0xff] %v580_v29  ;;  %v493_v35 = vadd.f32 %v492_v34, %v13716_v42 }
 0x10b   :  { %769 = vst [vmem:[#allocation2 + $0x198] sm:$0xff] %v669_v32 }
 0x10c   :  { %770 = vst [vmem:[#allocation2 + $0x1a0] sm:$0xff] %v404_v33 }
 0x10d   :  { %771 = vst [vmem:[#allocation2 + $0x1a8] sm:$0xff] %v493_v35 }
 0x10f   :  { %v581_v36 = vpop.f32.mrf.mxu2 }
 0x110   :  { %v582_v38 = vadd.f32 %v581_v36, %v13723_v48  ;;  %v670_v39 = vpop.f32.mrf.mxu3  ;;  %v406_v40 = vpop.f32.mrf.mxu0 }
 0x111   :  { %v671_v43 = vadd.f32 %v670_v39, %v13725_v49  ;;  %v407_v44 = vadd.f32 %v406_v40, %v13714_v41  ;;  %v495_v45 = vpop.f32.mrf.mxu1 }
 0x112   :  { %772 = vst [vmem:[#allocation2 + $0x1b0] sm:$0xff] %v582_v38  ;;  %v496_v46 = vadd.f32 %v495_v45, %v13716_v42 }
 0x113   :  { %773 = vst [vmem:[#allocation2 + $0x1b8] sm:$0xff] %v671_v43  ;;  %445 = vmatmul.bf16.gmra.mxu0 %v12030_v37 }
 0x114   :  { %774 = vst [vmem:[#allocation2 + $0x1c0] sm:$0xff] %v407_v44  ;;  %534 = vmatmul.bf16.gmra.mxu1 %v12030_v37  ;;  %623 = vmatmul.bf16.gmra.mxu2 %v12030_v37 }
 0x115   :  { %775 = vst [vmem:[#allocation2 + $0x1c8] sm:$0xff] %v496_v46  ;;  %712 = vmatmul.bf16.gmra.mxu3 %v12030_v37 }
 0x117   :  { %v584_v47 = vpop.f32.mrf.mxu2 }
 0x118   :  { %v585_v50 = vadd.f32 %v584_v47, %v13723_v48  ;;  %v673_v51 = vpop.f32.mrf.mxu3  ;;  %v408_v52 = vpop.f32.mrf.mxu0 }
 0x119   :  { %v674_v53 = vadd.f32 %v673_v51, %v13725_v49  ;;  %v409_v54 = vadd.f32 %v408_v52, %v13714_v41  ;;  %v497_v55 = vpop.f32.mrf.mxu1 }
 0x11a   :  { %776 = vst [vmem:[#allocation2 + $0x1d0] sm:$0xff] %v585_v50  ;;  %v498_v56 = vadd.f32 %v497_v55, %v13716_v42 }
 0x11b   :  { %777 = vst [vmem:[#allocation2 + $0x1d8] sm:$0xff] %v674_v53 }
 0x11c   :  { %778 = vst [vmem:[#allocation2 + $0x1e0] sm:$0xff] %v409_v54 }
 0x11d   :  { %779 = vst [vmem:[#allocation2 + $0x1e8] sm:$0xff] %v498_v56 }
 0x11f   :  { %v586_v57 = vpop.f32.mrf.mxu2 }
 0x120   :  { %v587_v58 = vadd.f32 %v586_v57, %v13723_v48  ;;  %v675_v59 = vpop.f32.mrf.mxu3  ;;  %v411_v60 = vpop.f32.mrf.mxu0 }
 0x121   :  { %v676_v61 = vadd.f32 %v675_v59, %v13725_v49  ;;  %v412_v62 = vadd.f32 %v411_v60, %v13714_v41  ;;  %v500_v63 = vpop.f32.mrf.mxu1 }
 0x122   :  { %780 = vst [vmem:[#allocation2 + $0x1f0] sm:$0xff] %v587_v58  ;;  %v501_v0 = vadd.f32 %v500_v63, %v13716_v42 }
 0x123   :  { %781 = vst [vmem:[#allocation2 + $0x1f8] sm:$0xff] %v676_v61 }
 0x124   :  { %782 = vst [vmem:[#allocation2 + $0x200] sm:$0xff] %v412_v62 }
 0x125   :  { %783 = vst [vmem:[#allocation2 + $0x208] sm:$0xff] %v501_v0 }
 0x127   :  { %v589_v1 = vpop.f32.mrf.mxu2 }
 0x128   :  { %v590_v2 = vadd.f32 %v589_v1, %v13723_v48  ;;  %v678_v3 = vpop.f32.mrf.mxu3  ;;  %v413_v4 = vpop.f32.mrf.mxu0 }
 0x129   :  { %v679_v5 = vadd.f32 %v678_v3, %v13725_v49  ;;  %v414_v6 = vadd.f32 %v413_v4, %v13714_v41  ;;  %v502_v7 = vpop.f32.mrf.mxu1 }
 0x12a   :  { %784 = vst [vmem:[#allocation2 + $0x210] sm:$0xff] %v590_v2  ;;  %v503_v8 = vadd.f32 %v502_v7, %v13716_v42 }
 0x12b   :  { %785 = vst [vmem:[#allocation2 + $0x218] sm:$0xff] %v679_v5 }
 0x12c   :  { %786 = vst [vmem:[#allocation2 + $0x220] sm:$0xff] %v414_v6 }
 0x12d   :  { %787 = vst [vmem:[#allocation2 + $0x228] sm:$0xff] %v503_v8 }
 0x12f   :  { %v591_v9 = vpop.f32.mrf.mxu2 }
 0x130   :  { %v592_v10 = vadd.f32 %v591_v9, %v13723_v48  ;;  %v680_v11 = vpop.f32.mrf.mxu3  ;;  %v416_v12 = vpop.f32.mrf.mxu0 }
 0x131   :  { %v681_v13 = vadd.f32 %v680_v11, %v13725_v49  ;;  %v417_v14 = vadd.f32 %v416_v12, %v13714_v41  ;;  %v505_v15 = vpop.f32.mrf.mxu1 }
 0x132   :  { %788 = vst [vmem:[#allocation2 + $0x230] sm:$0xff] %v592_v10  ;;  %v506_v16 = vadd.f32 %v505_v15, %v13716_v42 }
 0x133   :  { %789 = vst [vmem:[#allocation2 + $0x238] sm:$0xff] %v681_v13 }
 0x134   :  { %790 = vst [vmem:[#allocation2 + $0x240] sm:$0xff] %v417_v14 }
 0x135   :  { %791 = vst [vmem:[#allocation2 + $0x248] sm:$0xff] %v506_v16 }
 0x137   :  { %v594_v17 = vpop.f32.mrf.mxu2 }
 0x138   :  { %v595_v18 = vadd.f32 %v594_v17, %v13723_v48  ;;  %v683_v19 = vpop.f32.mrf.mxu3  ;;  %v418_v20 = vpop.f32.mrf.mxu0 }
 0x139   :  { %v684_v21 = vadd.f32 %v683_v19, %v13725_v49  ;;  %v419_v22 = vadd.f32 %v418_v20, %v13714_v41  ;;  %v507_v23 = vpop.f32.mrf.mxu1 }
 0x13a   :  { %792 = vst [vmem:[#allocation2 + $0x250] sm:$0xff] %v595_v18  ;;  %v508_v24 = vadd.f32 %v507_v23, %v13716_v42 }
 0x13b   :  { %793 = vst [vmem:[#allocation2 + $0x258] sm:$0xff] %v684_v21 }
 0x13c   :  { %794 = vst [vmem:[#allocation2 + $0x260] sm:$0xff] %v419_v22 }
 0x13d   :  { %795 = vst [vmem:[#allocation2 + $0x268] sm:$0xff] %v508_v24 }
 0x13f   :  { %v596_v25 = vpop.f32.mrf.mxu2 }
 0x140   :  { %v597_v26 = vadd.f32 %v596_v25, %v13723_v48  ;;  %v685_v27 = vpop.f32.mrf.mxu3  ;;  %v421_v28 = vpop.f32.mrf.mxu0 }
 0x141   :  { %v686_v29 = vadd.f32 %v685_v27, %v13725_v49  ;;  %v422_v30 = vadd.f32 %v421_v28, %v13714_v41  ;;  %v510_v31 = vpop.f32.mrf.mxu1 }
 0x142   :  { %796 = vst [vmem:[#allocation2 + $0x270] sm:$0xff] %v597_v26  ;;  %v511_v32 = vadd.f32 %v510_v31, %v13716_v42 }
 0x143   :  { %797 = vst [vmem:[#allocation2 + $0x278] sm:$0xff] %v686_v29 }
 0x144   :  { %798 = vst [vmem:[#allocation2 + $0x280] sm:$0xff] %v422_v30 }
 0x145   :  { %799 = vst [vmem:[#allocation2 + $0x288] sm:$0xff] %v511_v32 }
 0x147   :  { %v599_v33 = vpop.f32.mrf.mxu2 }
 0x148   :  { %v600_v34 = vadd.f32 %v599_v33, %v13723_v48  ;;  %v688_v35 = vpop.f32.mrf.mxu3  ;;  %v423_v36 = vpop.f32.mrf.mxu0 }
 0x149   :  { %v689_v37 = vadd.f32 %v688_v35, %v13725_v49  ;;  %v424_v38 = vadd.f32 %v423_v36, %v13714_v41  ;;  %v512_v39 = vpop.f32.mrf.mxu1 }
 0x14a   :  { %800 = vst [vmem:[#allocation2 + $0x290] sm:$0xff] %v600_v34  ;;  %v513_v40 = vadd.f32 %v512_v39, %v13716_v42  ;;  %v848_v39 = vld [vmem:[%s20651_s2] sm:$0xff]  }
 0x14b   :  { %801 = vst [vmem:[#allocation2 + $0x298] sm:$0xff] %v689_v37  ;;  %v846_v37 = vld [vmem:[%s20650_s1] sm:$0xff]  }
 0x14c   :  { %802 = vst [vmem:[#allocation2 + $0x2a0] sm:$0xff] %v424_v38  ;;  %v847_v38 = vld [vmem:[%s20650_s1 + $0x8] sm:$0xff]   ;;  %s13894_s1 = smov 0  }
 0x14d   :  { %803 = vst [vmem:[#allocation2 + $0x2a8] sm:$0xff] %v513_v40  ;;  %v849_v40 = vld [vmem:[%s20651_s2 + $0x8] sm:$0xff]  }
 0x14f   :  { %v601_v43 = vpop.f32.mrf.mxu2 }
 0x150   :  { %v602_v44 = vadd.f32 %v601_v43, %v13723_v48  ;;  %v690_v45 = vpop.f32.mrf.mxu3  ;;  %v426_v46 = vpop.f32.mrf.mxu0 }
 0x151   :  { %v691_v47 = vadd.f32 %v690_v45, %v13725_v49  ;;  %v427_v50 = vadd.f32 %v426_v46, %v13714_v41  ;;  %v515_v51 = vpop.f32.mrf.mxu1 }
 0x152   :  { %804 = vst [vmem:[#allocation2 + $0x2b0] sm:$0xff] %v602_v44  ;;  %v516_v52 = vadd.f32 %v515_v51, %v13716_v42 }
 0x153   :  { %805 = vst [vmem:[#allocation2 + $0x2b8] sm:$0xff] %v691_v47 }
 0x154   :  { %806 = vst [vmem:[#allocation2 + $0x2c0] sm:$0xff] %v427_v50 }
 0x155   :  { %807 = vst [vmem:[#allocation2 + $0x2c8] sm:$0xff] %v516_v52 }
 0x157   :  { %v604_v53 = vpop.f32.mrf.mxu2 }
 0x158   :  { %v605_v54 = vadd.f32 %v604_v53, %v13723_v48  ;;  %v693_v55 = vpop.f32.mrf.mxu3  ;;  %v428_v56 = vpop.f32.mrf.mxu0 }
 0x159   :  { %v694_v57 = vadd.f32 %v693_v55, %v13725_v49  ;;  %v429_v58 = vadd.f32 %v428_v56, %v13714_v41  ;;  %v517_v59 = vpop.f32.mrf.mxu1 }
 0x15a   :  { %808 = vst [vmem:[#allocation2 + $0x2d0] sm:$0xff] %v605_v54  ;;  %v518_v60 = vadd.f32 %v517_v59, %v13716_v42 }
 0x15b   :  { %809 = vst [vmem:[#allocation2 + $0x2d8] sm:$0xff] %v694_v57 }
 0x15c   :  { %810 = vst [vmem:[#allocation2 + $0x2e0] sm:$0xff] %v429_v58 }
 0x15d   :  { %811 = vst [vmem:[#allocation2 + $0x2e8] sm:$0xff] %v518_v60 }
 0x15f   :  { %v606_v61 = vpop.f32.mrf.mxu2 }
 0x160   :  { %v607_v62 = vadd.f32 %v606_v61, %v13723_v48  ;;  %v695_v63 = vpop.f32.mrf.mxu3  ;;  %v431_v0 = vpop.f32.mrf.mxu0 }
 0x161   :  { %v696_v1 = vadd.f32 %v695_v63, %v13725_v49  ;;  %v432_v2 = vadd.f32 %v431_v0, %v13714_v41  ;;  %v520_v3 = vpop.f32.mrf.mxu1 }
 0x162   :  { %812 = vst [vmem:[#allocation2 + $0x2f0] sm:$0xff] %v607_v62  ;;  %v521_v4 = vadd.f32 %v520_v3, %v13716_v42 }
 0x163   :  { %813 = vst [vmem:[#allocation2 + $0x2f8] sm:$0xff] %v696_v1 }
 0x164   :  { %814 = vst [vmem:[#allocation2 + $0x300] sm:$0xff] %v432_v2 }
 0x165   :  { %815 = vst [vmem:[#allocation2 + $0x308] sm:$0xff] %v521_v4 }
 0x167   :  { %v609_v5 = vpop.f32.mrf.mxu2 }
 0x168   :  { %v610_v6 = vadd.f32 %v609_v5, %v13723_v48  ;;  %v698_v7 = vpop.f32.mrf.mxu3  ;;  %v433_v8 = vpop.f32.mrf.mxu0 }
 0x169   :  { %v699_v9 = vadd.f32 %v698_v7, %v13725_v49  ;;  %v434_v10 = vadd.f32 %v433_v8, %v13714_v41  ;;  %v522_v11 = vpop.f32.mrf.mxu1 }
 0x16a   :  { %816 = vst [vmem:[#allocation2 + $0x310] sm:$0xff] %v610_v6  ;;  %v523_v12 = vadd.f32 %v522_v11, %v13716_v42 }
 0x16b   :  { %817 = vst [vmem:[#allocation2 + $0x318] sm:$0xff] %v699_v9 }
 0x16c   :  { %818 = vst [vmem:[#allocation2 + $0x320] sm:$0xff] %v434_v10 }
 0x16d   :  { %819 = vst [vmem:[#allocation2 + $0x328] sm:$0xff] %v523_v12 }
 0x16f   :  { %v611_v13 = vpop.f32.mrf.mxu2 }
 0x170   :  { %v612_v14 = vadd.f32 %v611_v13, %v13723_v48  ;;  %v700_v15 = vpop.f32.mrf.mxu3  ;;  %v436_v16 = vpop.f32.mrf.mxu0 }
 0x171   :  { %v701_v17 = vadd.f32 %v700_v15, %v13725_v49  ;;  %v437_v18 = vadd.f32 %v436_v16, %v13714_v41  ;;  %v525_v19 = vpop.f32.mrf.mxu1 }
 0x172   :  { %820 = vst [vmem:[#allocation2 + $0x330] sm:$0xff] %v612_v14  ;;  %v526_v20 = vadd.f32 %v525_v19, %v13716_v42 }
 0x173   :  { %821 = vst [vmem:[#allocation2 + $0x338] sm:$0xff] %v701_v17 }
 0x174   :  { %822 = vst [vmem:[#allocation2 + $0x340] sm:$0xff] %v437_v18 }
 0x175   :  { %823 = vst [vmem:[#allocation2 + $0x348] sm:$0xff] %v526_v20 }
 0x177   :  { %v614_v21 = vpop.f32.mrf.mxu2 }
 0x178   :  { %v615_v22 = vadd.f32 %v614_v21, %v13723_v48  ;;  %v703_v23 = vpop.f32.mrf.mxu3  ;;  %v438_v24 = vpop.f32.mrf.mxu0 }
 0x179   :  { %v704_v25 = vadd.f32 %v703_v23, %v13725_v49  ;;  %v439_v26 = vadd.f32 %v438_v24, %v13714_v41  ;;  %v527_v27 = vpop.f32.mrf.mxu1 }
 0x17a   :  { %824 = vst [vmem:[#allocation2 + $0x350] sm:$0xff] %v615_v22  ;;  %v528_v28 = vadd.f32 %v527_v27, %v13716_v42 }
 0x17b   :  { %825 = vst [vmem:[#allocation2 + $0x358] sm:$0xff] %v704_v25 }
 0x17c   :  { %826 = vst [vmem:[#allocation2 + $0x360] sm:$0xff] %v439_v26 }
 0x17d   :  { %827 = vst [vmem:[#allocation2 + $0x368] sm:$0xff] %v528_v28 }
 0x17f   :  { %v616_v29 = vpop.f32.mrf.mxu2 }
 0x180   :  { %v617_v30 = vadd.f32 %v616_v29, %v13723_v48  ;;  %v705_v31 = vpop.f32.mrf.mxu3  ;;  %v441_v32 = vpop.f32.mrf.mxu0 }
 0x181   :  { %v706_v33 = vadd.f32 %v705_v31, %v13725_v49  ;;  %v442_v34 = vadd.f32 %v441_v32, %v13714_v41  ;;  %v530_v35 = vpop.f32.mrf.mxu1 }
 0x182   :  { %828 = vst [vmem:[#allocation2 + $0x370] sm:$0xff] %v617_v30  ;;  %v531_v36 = vadd.f32 %v530_v35, %v13716_v42 }
 0x183   :  { %829 = vst [vmem:[#allocation2 + $0x378] sm:$0xff] %v706_v33 }
 0x184   :  { %830 = vst [vmem:[#allocation2 + $0x380] sm:$0xff] %v442_v34 }
 0x185   :  { %831 = vst [vmem:[#allocation2 + $0x388] sm:$0xff] %v531_v36 }
 0x187   :  { %v619_v43 = vpop.f32.mrf.mxu2 }
 0x188   :  { %v620_v44 = vadd.f32 %v619_v43, %v13723_v48  ;;  %v708_v45 = vpop.f32.mrf.mxu3  ;;  %v443_v46 = vpop.f32.mrf.mxu0 }
 0x189   :  { %v709_v47 = vadd.f32 %v708_v45, %v13725_v49  ;;  %v444_v50 = vadd.f32 %v443_v46, %v13714_v41  ;;  %v532_v51 = vpop.f32.mrf.mxu1 }
 0x18a   :  { %832 = vst [vmem:[#allocation2 + $0x390] sm:$0xff] %v620_v44  ;;  %v533_v52 = vadd.f32 %v532_v51, %v13716_v42 }
 0x18b   :  { %833 = vst [vmem:[#allocation2 + $0x398] sm:$0xff] %v709_v47 }
 0x18c   :  { %834 = vst [vmem:[#allocation2 + $0x3a0] sm:$0xff] %v444_v50 }
 0x18d   :  { %835 = vst [vmem:[#allocation2 + $0x3a8] sm:$0xff] %v533_v52 }
 0x18f   :  { %v621_v53 = vpop.f32.mrf.mxu2 }
 0x190   :  { %v622_v54 = vadd.f32 %v621_v53, %v13723_v48  ;;  %v710_v55 = vpop.f32.mrf.mxu3  ;;  %v446_v56 = vpop.f32.mrf.mxu0 }
 0x191   :  { %v711_v57 = vadd.f32 %v710_v55, %v13725_v49  ;;  %v447_v58 = vadd.f32 %v446_v56, %v13714_v41  ;;  %v535_v59 = vpop.f32.mrf.mxu1 }
 0x192   :  { %836 = vst [vmem:[#allocation2 + $0x3b0] sm:$0xff] %v622_v54  ;;  %v536_v60 = vadd.f32 %v535_v59, %v13716_v42 }
 0x193   :  { %837 = vst [vmem:[#allocation2 + $0x3b8] sm:$0xff] %v711_v57 }
 0x194   :  { %838 = vst [vmem:[#allocation2 + $0x3c0] sm:$0xff] %v447_v58 }
 0x195   :  { %839 = vst [vmem:[#allocation2 + $0x3c8] sm:$0xff] %v536_v60 }
 0x197   :  { %v624_v61 = vpop.f32.mrf.mxu2 }
 0x198   :  { %v625_v62 = vadd.f32 %v624_v61, %v13723_v48  ;;  %v713_v63 = vpop.f32.mrf.mxu3  ;;  %v448_v0 = vpop.f32.mrf.mxu0 }
 0x199   :  { %v714_v1 = vadd.f32 %v713_v63, %v13725_v49  ;;  %v449_v2 = vadd.f32 %v448_v0, %v13714_v41  ;;  %v537_v3 = vpop.f32.mrf.mxu1 }
 0x19a   :  { %840 = vst [vmem:[#allocation2 + $0x3d0] sm:$0xff] %v625_v62  ;;  %v538_v4 = vadd.f32 %v537_v3, %v13716_v42 }
 0x19b   :  { %841 = vst [vmem:[#allocation2 + $0x3d8] sm:$0xff] %v714_v1 }
 0x19c   :  { %842 = vst [vmem:[#allocation2 + $0x3e0] sm:$0xff] %v449_v2 }
 0x19d   :  { %843 = vst [vmem:[#allocation2 + $0x3e8] sm:$0xff] %v538_v4 }
 0x19f   :  { %v626_v5 = vpop.f32.mrf.mxu2 }
 0x1a0   :  { %v627_v6 = vadd.f32 %v626_v5, %v13723_v48  ;;  %v715_v7 = vpop.f32.mrf.mxu3 }
 0x1a1   :  { %v716_v8 = vadd.f32 %v715_v7, %v13725_v49 }
 0x1a2   :  { %844 = vst [vmem:[#allocation2 + $0x3f0] sm:$0xff] %v627_v6 }
 0x1a3   :  { %845 = vst [vmem:[#allocation2 + $0x3f8] sm:$0xff] %v716_v8 }
 0x1a4 LB: > { %p860_p0 = scmp.lt.s32.totalorder %s13438_s1, 0  ;;  %s861_s2 = ssub.s32 0, %s13438_s1  ;;  %s13438_s1 = sphi %s13894_s1, %s20913_s1   ;;  %v13434_v37 = vphi %v846_v37, %v20912_v37   ;;  %v13430_v38 = vphi %v847_v38, %v20911_v38   ;;  %v13426_v39 = vphi %v848_v39, %v20910_v39   ;;  %v13422_v40 = vphi %v849_v40, %v20909_v40  }
 0x1a5   : > { %s9380_s23 = smin.u32 %s13438_s1, %s861_s2  ;;  %s873_s24 = sadd.s32 1, %s13438_s1  }
 0x1a6   : > { %s863_s25 = sand.u32 1, %s9380_s23   ;;  %p13920_p2 = scmp.ge.s32.totalorder %s873_s24, 3 }
 0x1a7   : > { %s864_s26 = ssub.s32 0, %s863_s25  ;;  %s12063_s16 = sshll.u32 (!%p13920_p2), %s13438_s1, 8 }
 0x1a8   : > { %s20915_s26 = smov (!%p860_p0, %s864_s26), %s863_s25  ;;  %877 = sbr.rel (%p13920_p2) target bundleno = 848 (0x350), region = 44 }
 0x1a9   : > { %p9382_p1 = scmp.lt.s32.totalorder %s20915_s26, 0  ;;  %s870_s27 = sadd.s32 2, %s20915_s26 }
 0x1aa   : > { %s12064_s21 = sadd.s32 (!%p13920_p2), 256, %s12063_s16 }
 0x1ab   : > { %s20917_s27 = smov (!%p9382_p1, %s870_s27), %s20915_s26  ;;  %s880_s23 = sshra.s32 (!%p13920_p2), %s12064_s21, 3 }
 0x1ac   : > { %s872_s28 = ssub.s32 1, %s20917_s27  ;;  %s9386_s12 = sshll.u32 (!%p13920_p2), %s880_s23, 2 }
 0x1ad   : > { %v9565_v41 = vld [vmem:[%s20641_s3 + $0xe0] sm:$0xf]  ;;  %v12111_v42 = vld [vmem:[%s20641_s3 + $0xec] sm:$0xf0]  ;;  %v12109_v48 = vld [vmem:[%s20641_s3 + $0xe4] sm:$0xf]  ;;  %s14122_s25 = scalar_lea.vmem %s20648_s0, %s9386_s12 }
 0x1ae   : > { %v9566_v49 = vor.u32 %v12111_v42, %v9565_v41  ;;  %v9567_v9 = vld [vmem:[%s20641_s3 + $0xf0] sm:$0xf0]  ;;  %v9573_v10 = vld [vmem:[%s20641_s3 + $0xe8] sm:$0xf]  ;;  %v12112_v11 = vld [vmem:[%s20641_s3 + $0xf4] sm:$0xf0] }
 0x1af   : > { %v9570_v12 = vor.u32 %v12109_v48, %v9567_v9  ;;  %v9574_v13 = vor.u32 %v12112_v11, %v9573_v10  ;;  %v12110_v14 = vld [vmem:[%s20641_s3 + $0xec] sm:$0xf]  ;;  %v9575_v15 = vld [vmem:[%s20641_s3 + $0xf8] sm:$0xf0]  ;;  %v9549_v16 = vld [vmem:[%s20641_s3 + $0xc0] sm:$0xf] }
 0x1b0   : > { %1214 = vmatpush.bf16.msra.mxu0 %v9566_v49  ;;  %v9578_v17 = vor.u32 %v12110_v14, %v9575_v15  ;;  %v12107_v18 = vld [vmem:[%s20641_s3 + $0xcc] sm:$0xf0]  ;;  %v12105_v19 = vld [vmem:[%s20641_s3 + $0xc4] sm:$0xf]  ;;  %v9551_v20 = vld [vmem:[%s20641_s3 + $0xd0] sm:$0xf0] }
 0x1b1   : > { %1303 = vmatpush.bf16.msra.mxu1 %v9570_v12  ;;  %1392 = vmatpush.bf16.msra.mxu2 %v9574_v13  ;;  %v9550_v21 = vor.u32 %v12107_v18, %v9549_v16  ;;  %v9554_v22 = vor.u32 %v12105_v19, %v9551_v20  ;;  %v9557_v23 = vld [vmem:[%s20641_s3 + $0xc8] sm:$0xf]  ;;  %v12108_v24 = vld [vmem:[%s20641_s3 + $0xd4] sm:$0xf0]  ;;  %v12106_v25 = vld [vmem:[%s20641_s3 + $0xcc] sm:$0xf] }
 0x1b2   : > { %1481 = vmatpush.bf16.msra.mxu3 %v9578_v17  ;;  %v9558_v26 = vor.u32 %v12108_v24, %v9557_v23  ;;  %v9559_v27 = vld [vmem:[%s20641_s3 + $0xd8] sm:$0xf0]  ;;  %v9533_v28 = vld [vmem:[%s20641_s3 + $0xa0] sm:$0xf]  ;;  %v12103_v29 = vld [vmem:[%s20641_s3 + $0xac] sm:$0xf0] }
 0x1b3   : > { %v9562_v30 = vor.u32 %v12106_v25, %v9559_v27  ;;  %v12101_v31 = vld [vmem:[%s20641_s3 + $0xa4] sm:$0xf]  ;;  %v9535_v32 = vld [vmem:[%s20641_s3 + $0xb0] sm:$0xf0]  ;;  %v9541_v33 = vld [vmem:[%s20641_s3 + $0xa8] sm:$0xf]  ;;  %v9534_v34 = vor.u32 %v12103_v29, %v9533_v28 }
 0x1b4   : > { %1215 = vmatpush.bf16.msra.mxu0 %v9550_v21  ;;  %v12104_v35 = vld [vmem:[%s20641_s3 + $0xb4] sm:$0xf0]  ;;  %v12102_v36 = vld [vmem:[%s20641_s3 + $0xac] sm:$0xf]  ;;  %v9543_v43 = vld [vmem:[%s20641_s3 + $0xb8] sm:$0xf0]  ;;  %v9538_v44 = vor.u32 %v12101_v31, %v9535_v32 }
 0x1b5   : > { %1304 = vmatpush.bf16.msra.mxu1 %v9554_v22  ;;  %1393 = vmatpush.bf16.msra.mxu2 %v9558_v26  ;;  %v9542_v45 = vor.u32 %v12104_v35, %v9541_v33  ;;  %v9517_v46 = vld [vmem:[%s20641_s3 + $0x80] sm:$0xf]  ;;  %v12099_v47 = vld [vmem:[%s20641_s3 + $0x8c] sm:$0xf0]  ;;  %v12097_v50 = vld [vmem:[%s20641_s3 + $0x84] sm:$0xf]  ;;  %v9546_v51 = vor.u32 %v12102_v36, %v9543_v43 }
 0x1b6   : > { %1482 = vmatpush.bf16.msra.mxu3 %v9562_v30  ;;  %v9519_v52 = vld [vmem:[%s20641_s3 + $0x90] sm:$0xf0]  ;;  %v9525_v53 = vld [vmem:[%s20641_s3 + $0x88] sm:$0xf]  ;;  %v12100_v54 = vld [vmem:[%s20641_s3 + $0x94] sm:$0xf0]  ;;  %v9518_v57 = vor.u32 %v12099_v47, %v9517_v46 }
 0x1b7   : > { %v12098_v55 = vld [vmem:[%s20641_s3 + $0x8c] sm:$0xf]  ;;  %v9527_v56 = vld [vmem:[%s20641_s3 + $0x98] sm:$0xf0]  ;;  %v9522_v58 = vor.u32 %v12097_v50, %v9519_v52  ;;  %v9526_v59 = vor.u32 %v12100_v54, %v9525_v53  ;;  %v9501_v60 = vld [vmem:[%s20641_s3 + $0x60] sm:$0xf] }
 0x1b8   : > { %1216 = vmatpush.bf16.msra.mxu0 %v9534_v34  ;;  %v12095_v61 = vld [vmem:[%s20641_s3 + $0x6c] sm:$0xf0]  ;;  %v12093_v62 = vld [vmem:[%s20641_s3 + $0x64] sm:$0xf]  ;;  %v9530_v63 = vor.u32 %v12098_v55, %v9527_v56  ;;  %v9503_v0 = vld [vmem:[%s20641_s3 + $0x70] sm:$0xf0] }
 0x1b9   : > { %1305 = vmatpush.bf16.msra.mxu1 %v9538_v44  ;;  %1394 = vmatpush.bf16.msra.mxu2 %v9542_v45  ;;  %v9509_v1 = vld [vmem:[%s20641_s3 + $0x68] sm:$0xf]  ;;  %v12096_v2 = vld [vmem:[%s20641_s3 + $0x74] sm:$0xf0]  ;;  %v12094_v3 = vld [vmem:[%s20641_s3 + $0x6c] sm:$0xf]  ;;  %v9502_v5 = vor.u32 %v12095_v61, %v9501_v60  ;;  %v9506_v6 = vor.u32 %v12093_v62, %v9503_v0 }
 0x1ba   : > { %1483 = vmatpush.bf16.msra.mxu3 %v9546_v51  ;;  %v9511_v4 = vld [vmem:[%s20641_s3 + $0x78] sm:$0xf0]  ;;  %v9510_v7 = vor.u32 %v12096_v2, %v9509_v1  ;;  %v9485_v8 = vld [vmem:[%s20641_s3 + $0x40] sm:$0xf]  ;;  %v12091_v41 = vld [vmem:[%s20641_s3 + $0x4c] sm:$0xf0] }
 0x1bb   : > { %v12089_v42 = vld [vmem:[%s20641_s3 + $0x44] sm:$0xf]  ;;  %v9514_v48 = vor.u32 %v12094_v3, %v9511_v4  ;;  %v9487_v49 = vld [vmem:[%s20641_s3 + $0x50] sm:$0xf0]  ;;  %v9493_v9 = vld [vmem:[%s20641_s3 + $0x48] sm:$0xf]  ;;  %v9486_v13 = vor.u32 %v12091_v41, %v9485_v8 }
 0x1bc   : > { %1217 = vmatpush.bf16.msra.mxu0 %v9518_v57  ;;  %v12092_v10 = vld [vmem:[%s20641_s3 + $0x54] sm:$0xf0]  ;;  %v12090_v11 = vld [vmem:[%s20641_s3 + $0x4c] sm:$0xf]  ;;  %v9495_v12 = vld [vmem:[%s20641_s3 + $0x58] sm:$0xf0]  ;;  %v9490_v15 = vor.u32 %v12089_v42, %v9487_v49 }
 0x1bd   : > { %1306 = vmatpush.bf16.msra.mxu1 %v9522_v58  ;;  %1395 = vmatpush.bf16.msra.mxu2 %v9526_v59  ;;  %v9469_v14 = vld [vmem:[%s20641_s3 + $0x20] sm:$0xf]  ;;  %v9494_v16 = vor.u32 %v12092_v10, %v9493_v9  ;;  %v12087_v17 = vld [vmem:[%s20641_s3 + $0x2c] sm:$0xf0]  ;;  %v12085_v18 = vld [vmem:[%s20641_s3 + $0x24] sm:$0xf]  ;;  %v9498_v20 = vor.u32 %v12090_v11, %v9495_v12 }
 0x1be   : > { %1484 = vmatpush.bf16.msra.mxu3 %v9530_v63  ;;  %v9471_v19 = vld [vmem:[%s20641_s3 + $0x30] sm:$0xf0]  ;;  %v9477_v21 = vld [vmem:[%s20641_s3 + $0x28] sm:$0xf]  ;;  %v12088_v22 = vld [vmem:[%s20641_s3 + $0x34] sm:$0xf0]  ;;  %v9470_v25 = vor.u32 %v12087_v17, %v9469_v14 }
 0x1bf   : > { %v12086_v23 = vld [vmem:[%s20641_s3 + $0x2c] sm:$0xf]  ;;  %v9479_v24 = vld [vmem:[%s20641_s3 + $0x38] sm:$0xf0]  ;;  %v9453_v26 = vld [vmem:[%s20641_s3] sm:$0xf]  ;;  %v9474_v27 = vor.u32 %v12085_v18, %v9471_v19  ;;  %v9478_v28 = vor.u32 %v12088_v22, %v9477_v21 }
 0x1c0   : > { %1218 = vmatpush.bf16.msra.mxu0 %v9502_v5  ;;  %v12083_v29 = vld [vmem:[%s20641_s3 + $0xc] sm:$0xf0]  ;;  %v12081_v30 = vld [vmem:[%s20641_s3 + $0x4] sm:$0xf]  ;;  %v9482_v31 = vor.u32 %v12086_v23, %v9479_v24  ;;  %v9455_v32 = vld [vmem:[%s20641_s3 + $0x10] sm:$0xf0] }
 0x1c1   : > { %1307 = vmatpush.bf16.msra.mxu1 %v9506_v6  ;;  %1396 = vmatpush.bf16.msra.mxu2 %v9510_v7  ;;  %v9461_v33 = vld [vmem:[%s20641_s3 + $0x8] sm:$0xf]  ;;  %v12084_v34 = vld [vmem:[%s20641_s3 + $0x14] sm:$0xf0]  ;;  %v12082_v35 = vld [vmem:[%s20641_s3 + $0xc] sm:$0xf]  ;;  %v9454_v43 = vor.u32 %v12083_v29, %v9453_v26  ;;  %v9458_v44 = vor.u32 %v12081_v30, %v9455_v32 }
 0x1c2   : > { %1485 = vmatpush.bf16.msra.mxu3 %v9514_v48  ;;  %v9463_v36 = vld [vmem:[%s20641_s3 + $0x18] sm:$0xf0]  ;;  %v9462_v45 = vor.u32 %v12084_v34, %v9461_v33  ;;  %v12065_v47 = vld [vmem:[%s14122_s25] sm:$0xff]  ;;  %v12066_v50 = vld [vmem:[%s14122_s25 + $0x8] sm:$0xff]  ;;  %s9385_s26 = sshll.u32 %s872_s28, 8 }
 0x1c3   : > { %v9466_v46 = vor.u32 %v12082_v35, %v9463_v36  ;;  %v12067_v51 = vld [vmem:[%s14122_s25 + $0x10] sm:$0xff]  ;;  %v12068_v52 = vld [vmem:[%s14122_s25 + $0x18] sm:$0xff]  ;;  %v12069_v53 = vld [vmem:[%s14122_s25 + $0x20] sm:$0xff]  ;;  %s1570_s12 = sshra.s32 %s9385_s26, 3 }
 0x1c4   : > { %1219 = vmatpush.bf16.msra.mxu0 %v9486_v13  ;;  %v12070_v54 = vld [vmem:[%s14122_s25 + $0x28] sm:$0xff]  ;;  %v12071_v55 = vld [vmem:[%s14122_s25 + $0x30] sm:$0xff]  ;;  %v12072_v56 = vld [vmem:[%s14122_s25 + $0x38] sm:$0xff]  ;;  %s12113_s13 = sshll.u32 %s1570_s12, 5 }
 0x1c5   : > { %1308 = vmatpush.bf16.msra.mxu1 %v9490_v15  ;;  %1397 = vmatpush.bf16.msra.mxu2 %v9494_v16  ;;  %v948_v57 = vld [vmem:[%s20649_s5] sm:$0xf]  ;;  %s14144_s14 = scalar_lea.vmem [#allocation2], %s12113_s13  ;;  %v12074_v49 = vld [vmem:[%s14122_s25 + $0x48] sm:$0xff] }
 0x1c6   : > { %1486 = vmatpush.bf16.msra.mxu3 %v9498_v20  ;;  %v14137_v58 = vperm.slane %v948_v57, 0  ;;  %v14139_v59 = vperm.slane %v948_v57, 1  ;;  %v12073_v60 = vld [vmem:[%s14122_s25 + $0x40] sm:$0xff]  ;;  %v14148_v1 = vperm.slane %v948_v57, 2  ;;  %v14150_v2 = vperm.slane %v948_v57, 3 }
 0x1c8   : > { %1220 = vmatpush.bf16.msra.mxu0 %v9470_v25  ;;  %v12075_v25 = vld [vmem:[%s14122_s25 + $0x50] sm:$0xff] }
 0x1c9   : > { %1309 = vmatpush.bf16.msra.mxu1 %v9474_v27  ;;  %1398 = vmatpush.bf16.msra.mxu2 %v9478_v28 }
 0x1ca   : > { %1487 = vmatpush.bf16.msra.mxu3 %v9482_v31 }
 0x1cc   : > { %1221 = vmatpush.bf16.msra.mxu0 %v9454_v43 }
 0x1cd   : > { %1310 = vmatpush.bf16.msra.mxu1 %v9458_v44  ;;  %1399 = vmatpush.bf16.msra.mxu2 %v9462_v45 }
 0x1ce   : > { %1488 = vmatpush.bf16.msra.mxu3 %v9466_v46 }
 0x1cf   : > { %1222 = vmatmul.bf16.vlgmr.msra.gmra.mxu0 %v12065_v47 }
 0x1d0   : > { %1311 = vmatmul.bf16.vlgmr.msra.gmra.mxu1 %v12065_v47  ;;  %1400 = vmatmul.bf16.vlgmr.msra.gmra.mxu2 %v12065_v47 }
 0x1d1   : > { %1489 = vmatmul.bf16.vlgmr.msra.gmra.mxu3 %v12065_v47 }
 0x1df   : > { %1227 = vmatmul.bf16.gmra.mxu0 %v12066_v50 }
 0x1e0   : > { %1316 = vmatmul.bf16.gmra.mxu1 %v12066_v50  ;;  %1405 = vmatmul.bf16.gmra.mxu2 %v12066_v50 }
 0x1e1   : > { %1494 = vmatmul.bf16.gmra.mxu3 %v12066_v50  ;;  %v12076_v50 = vld [vmem:[%s14122_s25 + $0x58] sm:$0xff] }
 0x1ef   : > { %1232 = vmatmul.bf16.gmra.mxu0 %v12067_v51 }
 0x1f0   : > { %1321 = vmatmul.bf16.gmra.mxu1 %v12067_v51  ;;  %1410 = vmatmul.bf16.gmra.mxu2 %v12067_v51 }
 0x1f1   : > { %1499 = vmatmul.bf16.gmra.mxu3 %v12067_v51 }
 0x1ff   : > { %1237 = vmatmul.bf16.gmra.mxu0 %v12068_v52 }
 0x200   : > { %1326 = vmatmul.bf16.gmra.mxu1 %v12068_v52  ;;  %1415 = vmatmul.bf16.gmra.mxu2 %v12068_v52 }
 0x201   : > { %1504 = vmatmul.bf16.gmra.mxu3 %v12068_v52 }
 0x20f   : > { %1242 = vmatmul.bf16.gmra.mxu0 %v12069_v53 }
 0x210   : > { %1331 = vmatmul.bf16.gmra.mxu1 %v12069_v53  ;;  %1420 = vmatmul.bf16.gmra.mxu2 %v12069_v53 }
 0x211   : > { %1509 = vmatmul.bf16.gmra.mxu3 %v12069_v53 }
 0x21f   : > { %1247 = vmatmul.bf16.gmra.mxu0 %v12070_v54 }
 0x220   : > { %1336 = vmatmul.bf16.gmra.mxu1 %v12070_v54  ;;  %1425 = vmatmul.bf16.gmra.mxu2 %v12070_v54 }
 0x221   : > { %1514 = vmatmul.bf16.gmra.mxu3 %v12070_v54 }
 0x22f   : > { %1252 = vmatmul.bf16.gmra.mxu0 %v12071_v55 }
 0x230   : > { %1341 = vmatmul.bf16.gmra.mxu1 %v12071_v55  ;;  %1430 = vmatmul.bf16.gmra.mxu2 %v12071_v55 }
 0x231   : > { %1519 = vmatmul.bf16.gmra.mxu3 %v12071_v55 }
 0x23f   : > { %1257 = vmatmul.bf16.gmra.mxu0 %v12072_v56 }
 0x240   : > { %1346 = vmatmul.bf16.gmra.mxu1 %v12072_v56  ;;  %1435 = vmatmul.bf16.gmra.mxu2 %v12072_v56 }
 0x241   : > { %1524 = vmatmul.bf16.gmra.mxu3 %v12072_v56 }
 0x24c   : > { %v1223_v61 = vpop.f32.mrf.mxu0 }
 0x24d   : > { %v1224_v62 = vadd.f32 %v1223_v61, %v14137_v58  ;;  %v1312_v63 = vpop.f32.mrf.mxu1 }
 0x24e   : > { %v1313_v0 = vadd.f32 %v1312_v63, %v14139_v59 }
 0x24f   : > { %1575 = vst [vmem:[%s14144_s14] sm:$0xff] %v1224_v62  ;;  %1262 = vmatmul.bf16.gmra.mxu0 %v12073_v60 }
 0x250   : > { %1576 = vst [vmem:[%s14144_s14 + $0x8] sm:$0xff] %v1313_v0  ;;  %1351 = vmatmul.bf16.gmra.mxu1 %v12073_v60  ;;  %1440 = vmatmul.bf16.gmra.mxu2 %v12073_v60 }
 0x251   : > { %1529 = vmatmul.bf16.gmra.mxu3 %v12073_v60 }
 0x253   : > { %v1401_v3 = vpop.f32.mrf.mxu2 }
 0x254   : > { %v1402_v4 = vadd.f32 %v1401_v3, %v14148_v1  ;;  %v1490_v5 = vpop.f32.mrf.mxu3  ;;  %v1225_v6 = vpop.f32.mrf.mxu0 }
 0x255   : > { %v1491_v7 = vadd.f32 %v1490_v5, %v14150_v2  ;;  %v1226_v8 = vadd.f32 %v1225_v6, %v14137_v58  ;;  %v1314_v41 = vpop.f32.mrf.mxu1 }
 0x256   : > { %1577 = vst [vmem:[%s14144_s14 + $0x10] sm:$0xff] %v1402_v4  ;;  %v1315_v42 = vadd.f32 %v1314_v41, %v14139_v59 }
 0x257   : > { %1578 = vst [vmem:[%s14144_s14 + $0x18] sm:$0xff] %v1491_v7  ;;  %v12077_v7 = vld [vmem:[%s14122_s25 + $0x60] sm:$0xff] }
 0x258   : > { %1579 = vst [vmem:[%s14144_s14 + $0x20] sm:$0xff] %v1226_v8 }
 0x259   : > { %1580 = vst [vmem:[%s14144_s14 + $0x28] sm:$0xff] %v1315_v42 }
 0x25b   : > { %v1403_v48 = vpop.f32.mrf.mxu2 }
 0x25c   : > { %v1404_v9 = vadd.f32 %v1403_v48, %v14148_v1  ;;  %v1492_v10 = vpop.f32.mrf.mxu3  ;;  %v1228_v11 = vpop.f32.mrf.mxu0 }
 0x25d   : > { %v1493_v12 = vadd.f32 %v1492_v10, %v14150_v2  ;;  %v1229_v13 = vadd.f32 %v1228_v11, %v14137_v58  ;;  %v1317_v14 = vpop.f32.mrf.mxu1 }
 0x25e   : > { %1581 = vst [vmem:[%s14144_s14 + $0x30] sm:$0xff] %v1404_v9  ;;  %v1318_v15 = vadd.f32 %v1317_v14, %v14139_v59 }
 0x25f   : > { %1582 = vst [vmem:[%s14144_s14 + $0x38] sm:$0xff] %v1493_v12  ;;  %1267 = vmatmul.bf16.gmra.mxu0 %v12074_v49 }
 0x260   : > { %1583 = vst [vmem:[%s14144_s14 + $0x40] sm:$0xff] %v1229_v13  ;;  %1356 = vmatmul.bf16.gmra.mxu1 %v12074_v49  ;;  %1445 = vmatmul.bf16.gmra.mxu2 %v12074_v49 }
 0x261   : > { %1584 = vst [vmem:[%s14144_s14 + $0x48] sm:$0xff] %v1318_v15  ;;  %1534 = vmatmul.bf16.gmra.mxu3 %v12074_v49 }
 0x263   : > { %v1406_v16 = vpop.f32.mrf.mxu2 }
 0x264   : > { %v1407_v17 = vadd.f32 %v1406_v16, %v14148_v1  ;;  %v1495_v18 = vpop.f32.mrf.mxu3  ;;  %v1230_v19 = vpop.f32.mrf.mxu0 }
 0x265   : > { %v1496_v20 = vadd.f32 %v1495_v18, %v14150_v2  ;;  %v1231_v21 = vadd.f32 %v1230_v19, %v14137_v58  ;;  %v1319_v22 = vpop.f32.mrf.mxu1 }
 0x266   : > { %1585 = vst [vmem:[%s14144_s14 + $0x50] sm:$0xff] %v1407_v17  ;;  %v1320_v23 = vadd.f32 %v1319_v22, %v14139_v59 }
 0x267   : > { %1586 = vst [vmem:[%s14144_s14 + $0x58] sm:$0xff] %v1496_v20  ;;  %v12078_v20 = vld [vmem:[%s14122_s25 + $0x68] sm:$0xff] }
 0x268   : > { %1587 = vst [vmem:[%s14144_s14 + $0x60] sm:$0xff] %v1231_v21 }
 0x269   : > { %1588 = vst [vmem:[%s14144_s14 + $0x68] sm:$0xff] %v1320_v23 }
 0x26b   : > { %v1408_v24 = vpop.f32.mrf.mxu2 }
 0x26c   : > { %v1409_v26 = vadd.f32 %v1408_v24, %v14148_v1  ;;  %v1497_v27 = vpop.f32.mrf.mxu3  ;;  %v1233_v28 = vpop.f32.mrf.mxu0 }
 0x26d   : > { %v1498_v29 = vadd.f32 %v1497_v27, %v14150_v2  ;;  %v1234_v30 = vadd.f32 %v1233_v28, %v14137_v58  ;;  %v1322_v31 = vpop.f32.mrf.mxu1 }
 0x26e   : > { %1589 = vst [vmem:[%s14144_s14 + $0x70] sm:$0xff] %v1409_v26  ;;  %v1323_v32 = vadd.f32 %v1322_v31, %v14139_v59 }
 0x26f   : > { %1590 = vst [vmem:[%s14144_s14 + $0x78] sm:$0xff] %v1498_v29  ;;  %1272 = vmatmul.bf16.gmra.mxu0 %v12075_v25 }
 0x270   : > { %1591 = vst [vmem:[%s14144_s14 + $0x80] sm:$0xff] %v1234_v30  ;;  %1361 = vmatmul.bf16.gmra.mxu1 %v12075_v25  ;;  %1450 = vmatmul.bf16.gmra.mxu2 %v12075_v25 }
 0x271   : > { %1592 = vst [vmem:[%s14144_s14 + $0x88] sm:$0xff] %v1323_v32  ;;  %1539 = vmatmul.bf16.gmra.mxu3 %v12075_v25 }
 0x273   : > { %v1411_v33 = vpop.f32.mrf.mxu2 }
 0x274   : > { %v1412_v34 = vadd.f32 %v1411_v33, %v14148_v1  ;;  %v1500_v35 = vpop.f32.mrf.mxu3  ;;  %v1235_v36 = vpop.f32.mrf.mxu0 }
 0x275   : > { %v1501_v43 = vadd.f32 %v1500_v35, %v14150_v2  ;;  %v1236_v44 = vadd.f32 %v1235_v36, %v14137_v58  ;;  %v1324_v45 = vpop.f32.mrf.mxu1 }
 0x276   : > { %1593 = vst [vmem:[%s14144_s14 + $0x90] sm:$0xff] %v1412_v34  ;;  %v1325_v46 = vadd.f32 %v1324_v45, %v14139_v59 }
 0x277   : > { %1594 = vst [vmem:[%s14144_s14 + $0x98] sm:$0xff] %v1501_v43  ;;  %v12079_v43 = vld [vmem:[%s14122_s25 + $0x70] sm:$0xff] }
 0x278   : > { %1595 = vst [vmem:[%s14144_s14 + $0xa0] sm:$0xff] %v1236_v44 }
 0x279   : > { %1596 = vst [vmem:[%s14144_s14 + $0xa8] sm:$0xff] %v1325_v46 }
 0x27b   : > { %v1413_v47 = vpop.f32.mrf.mxu2 }
 0x27c   : > { %v1414_v51 = vadd.f32 %v1413_v47, %v14148_v1  ;;  %v1502_v52 = vpop.f32.mrf.mxu3  ;;  %v1238_v53 = vpop.f32.mrf.mxu0 }
 0x27d   : > { %v1503_v54 = vadd.f32 %v1502_v52, %v14150_v2  ;;  %v1239_v55 = vadd.f32 %v1238_v53, %v14137_v58  ;;  %v1327_v56 = vpop.f32.mrf.mxu1 }
 0x27e   : > { %1597 = vst [vmem:[%s14144_s14 + $0xb0] sm:$0xff] %v1414_v51  ;;  %v1328_v57 = vadd.f32 %v1327_v56, %v14139_v59 }
 0x27f   : > { %1598 = vst [vmem:[%s14144_s14 + $0xb8] sm:$0xff] %v1503_v54  ;;  %1277 = vmatmul.bf16.gmra.mxu0 %v12076_v50 }
 0x280   : > { %1599 = vst [vmem:[%s14144_s14 + $0xc0] sm:$0xff] %v1239_v55  ;;  %1366 = vmatmul.bf16.gmra.mxu1 %v12076_v50  ;;  %1455 = vmatmul.bf16.gmra.mxu2 %v12076_v50 }
 0x281   : > { %1600 = vst [vmem:[%s14144_s14 + $0xc8] sm:$0xff] %v1328_v57  ;;  %1544 = vmatmul.bf16.gmra.mxu3 %v12076_v50 }
 0x283   : > { %v1416_v60 = vpop.f32.mrf.mxu2 }
 0x284   : > { %v1417_v61 = vadd.f32 %v1416_v60, %v14148_v1  ;;  %v1505_v62 = vpop.f32.mrf.mxu3  ;;  %v1240_v63 = vpop.f32.mrf.mxu0 }
 0x285   : > { %v1506_v0 = vadd.f32 %v1505_v62, %v14150_v2  ;;  %v1241_v3 = vadd.f32 %v1240_v63, %v14137_v58  ;;  %v1329_v4 = vpop.f32.mrf.mxu1 }
 0x286   : > { %1601 = vst [vmem:[%s14144_s14 + $0xd0] sm:$0xff] %v1417_v61  ;;  %v1330_v5 = vadd.f32 %v1329_v4, %v14139_v59 }
 0x287   : > { %1602 = vst [vmem:[%s14144_s14 + $0xd8] sm:$0xff] %v1506_v0  ;;  %v12080_v0 = vld [vmem:[%s14122_s25 + $0x78] sm:$0xff] }
 0x288   : > { %1603 = vst [vmem:[%s14144_s14 + $0xe0] sm:$0xff] %v1241_v3 }
 0x289   : > { %1604 = vst [vmem:[%s14144_s14 + $0xe8] sm:$0xff] %v1330_v5 }
 0x28b   : > { %v1418_v6 = vpop.f32.mrf.mxu2 }
 0x28c   : > { %v1419_v8 = vadd.f32 %v1418_v6, %v14148_v1  ;;  %v1507_v41 = vpop.f32.mrf.mxu3  ;;  %v1243_v42 = vpop.f32.mrf.mxu0 }
 0x28d   : > { %v1508_v48 = vadd.f32 %v1507_v41, %v14150_v2  ;;  %v1244_v49 = vadd.f32 %v1243_v42, %v14137_v58  ;;  %v1332_v9 = vpop.f32.mrf.mxu1 }
 0x28e   : > { %1605 = vst [vmem:[%s14144_s14 + $0xf0] sm:$0xff] %v1419_v8  ;;  %v1333_v10 = vadd.f32 %v1332_v9, %v14139_v59 }
 0x28f   : > { %1606 = vst [vmem:[%s14144_s14 + $0xf8] sm:$0xff] %v1508_v48  ;;  %1282 = vmatmul.bf16.gmra.mxu0 %v12077_v7 }
 0x290   : > { %1607 = vst [vmem:[%s14144_s14 + $0x100] sm:$0xff] %v1244_v49  ;;  %1371 = vmatmul.bf16.gmra.mxu1 %v12077_v7  ;;  %1460 = vmatmul.bf16.gmra.mxu2 %v12077_v7 }
 0x291   : > { %1608 = vst [vmem:[%s14144_s14 + $0x108] sm:$0xff] %v1333_v10  ;;  %1549 = vmatmul.bf16.gmra.mxu3 %v12077_v7 }
 0x293   : > { %v1421_v11 = vpop.f32.mrf.mxu2 }
 0x294   : > { %v1422_v12 = vadd.f32 %v1421_v11, %v14148_v1  ;;  %v1510_v13 = vpop.f32.mrf.mxu3  ;;  %v1245_v14 = vpop.f32.mrf.mxu0 }
 0x295   : > { %v1511_v15 = vadd.f32 %v1510_v13, %v14150_v2  ;;  %v1246_v16 = vadd.f32 %v1245_v14, %v14137_v58  ;;  %v1334_v17 = vpop.f32.mrf.mxu1 }
 0x296   : > { %1609 = vst [vmem:[%s14144_s14 + $0x110] sm:$0xff] %v1422_v12  ;;  %v1335_v18 = vadd.f32 %v1334_v17, %v14139_v59 }
 0x297   : > { %1610 = vst [vmem:[%s14144_s14 + $0x118] sm:$0xff] %v1511_v15 }
 0x298   : > { %1611 = vst [vmem:[%s14144_s14 + $0x120] sm:$0xff] %v1246_v16 }
 0x299   : > { %1612 = vst [vmem:[%s14144_s14 + $0x128] sm:$0xff] %v1335_v18 }
 0x29b   : > { %v1423_v19 = vpop.f32.mrf.mxu2 }
 0x29c   : > { %v1424_v21 = vadd.f32 %v1423_v19, %v14148_v1  ;;  %v1512_v22 = vpop.f32.mrf.mxu3  ;;  %v1248_v23 = vpop.f32.mrf.mxu0 }
 0x29d   : > { %v1513_v24 = vadd.f32 %v1512_v22, %v14150_v2  ;;  %v1249_v25 = vadd.f32 %v1248_v23, %v14137_v58  ;;  %v1337_v26 = vpop.f32.mrf.mxu1 }
 0x29e   : > { %1613 = vst [vmem:[%s14144_s14 + $0x130] sm:$0xff] %v1424_v21  ;;  %v1338_v27 = vadd.f32 %v1337_v26, %v14139_v59 }
 0x29f   : > { %1614 = vst [vmem:[%s14144_s14 + $0x138] sm:$0xff] %v1513_v24  ;;  %1287 = vmatmul.bf16.gmra.mxu0 %v12078_v20 }
 0x2a0   : > { %1615 = vst [vmem:[%s14144_s14 + $0x140] sm:$0xff] %v1249_v25  ;;  %1376 = vmatmul.bf16.gmra.mxu1 %v12078_v20  ;;  %1465 = vmatmul.bf16.gmra.mxu2 %v12078_v20 }
 0x2a1   : > { %1616 = vst [vmem:[%s14144_s14 + $0x148] sm:$0xff] %v1338_v27  ;;  %1554 = vmatmul.bf16.gmra.mxu3 %v12078_v20 }
 0x2a3   : > { %v1426_v28 = vpop.f32.mrf.mxu2 }
 0x2a4   : > { %v1427_v29 = vadd.f32 %v1426_v28, %v14148_v1  ;;  %v1515_v30 = vpop.f32.mrf.mxu3  ;;  %v1250_v31 = vpop.f32.mrf.mxu0 }
 0x2a5   : > { %v1516_v32 = vadd.f32 %v1515_v30, %v14150_v2  ;;  %v1251_v33 = vadd.f32 %v1250_v31, %v14137_v58  ;;  %v1339_v34 = vpop.f32.mrf.mxu1 }
 0x2a6   : > { %1617 = vst [vmem:[%s14144_s14 + $0x150] sm:$0xff] %v1427_v29  ;;  %v1340_v35 = vadd.f32 %v1339_v34, %v14139_v59 }
 0x2a7   : > { %1618 = vst [vmem:[%s14144_s14 + $0x158] sm:$0xff] %v1516_v32 }
 0x2a8   : > { %1619 = vst [vmem:[%s14144_s14 + $0x160] sm:$0xff] %v1251_v33 }
 0x2a9   : > { %1620 = vst [vmem:[%s14144_s14 + $0x168] sm:$0xff] %v1340_v35 }
 0x2ab   : > { %v1428_v36 = vpop.f32.mrf.mxu2 }
 0x2ac   : > { %v1429_v44 = vadd.f32 %v1428_v36, %v14148_v1  ;;  %v1517_v45 = vpop.f32.mrf.mxu3  ;;  %v1253_v46 = vpop.f32.mrf.mxu0 }
 0x2ad   : > { %v1518_v47 = vadd.f32 %v1517_v45, %v14150_v2  ;;  %v1254_v50 = vadd.f32 %v1253_v46, %v14137_v58  ;;  %v1342_v51 = vpop.f32.mrf.mxu1 }
 0x2ae   : > { %1621 = vst [vmem:[%s14144_s14 + $0x170] sm:$0xff] %v1429_v44  ;;  %v1343_v52 = vadd.f32 %v1342_v51, %v14139_v59 }
 0x2af   : > { %1622 = vst [vmem:[%s14144_s14 + $0x178] sm:$0xff] %v1518_v47  ;;  %1292 = vmatmul.bf16.gmra.mxu0 %v12079_v43 }
 0x2b0   : > { %1623 = vst [vmem:[%s14144_s14 + $0x180] sm:$0xff] %v1254_v50  ;;  %1381 = vmatmul.bf16.gmra.mxu1 %v12079_v43  ;;  %1470 = vmatmul.bf16.gmra.mxu2 %v12079_v43 }
 0x2b1   : > { %1624 = vst [vmem:[%s14144_s14 + $0x188] sm:$0xff] %v1343_v52  ;;  %1559 = vmatmul.bf16.gmra.mxu3 %v12079_v43 }
 0x2b3   : > { %v1431_v53 = vpop.f32.mrf.mxu2 }
 0x2b4   : > { %v1432_v54 = vadd.f32 %v1431_v53, %v14148_v1  ;;  %v1520_v55 = vpop.f32.mrf.mxu3  ;;  %v1255_v56 = vpop.f32.mrf.mxu0 }
 0x2b5   : > { %v1521_v57 = vadd.f32 %v1520_v55, %v14150_v2  ;;  %v1256_v60 = vadd.f32 %v1255_v56, %v14137_v58  ;;  %v1344_v61 = vpop.f32.mrf.mxu1 }
 0x2b6   : > { %1625 = vst [vmem:[%s14144_s14 + $0x190] sm:$0xff] %v1432_v54  ;;  %v1345_v62 = vadd.f32 %v1344_v61, %v14139_v59 }
 0x2b7   : > { %1626 = vst [vmem:[%s14144_s14 + $0x198] sm:$0xff] %v1521_v57 }
 0x2b8   : > { %1627 = vst [vmem:[%s14144_s14 + $0x1a0] sm:$0xff] %v1256_v60 }
 0x2b9   : > { %1628 = vst [vmem:[%s14144_s14 + $0x1a8] sm:$0xff] %v1345_v62 }
 0x2bb   : > { %v1433_v63 = vpop.f32.mrf.mxu2 }
 0x2bc   : > { %v1434_v3 = vadd.f32 %v1433_v63, %v14148_v1  ;;  %v1522_v4 = vpop.f32.mrf.mxu3  ;;  %v1258_v5 = vpop.f32.mrf.mxu0 }
 0x2bd   : > { %v1523_v6 = vadd.f32 %v1522_v4, %v14150_v2  ;;  %v1259_v7 = vadd.f32 %v1258_v5, %v14137_v58  ;;  %v1347_v8 = vpop.f32.mrf.mxu1 }
 0x2be   : > { %1629 = vst [vmem:[%s14144_s14 + $0x1b0] sm:$0xff] %v1434_v3  ;;  %v1348_v41 = vadd.f32 %v1347_v8, %v14139_v59 }
 0x2bf   : > { %1630 = vst [vmem:[%s14144_s14 + $0x1b8] sm:$0xff] %v1523_v6  ;;  %1297 = vmatmul.bf16.gmra.mxu0 %v12080_v0 }
 0x2c0   : > { %1631 = vst [vmem:[%s14144_s14 + $0x1c0] sm:$0xff] %v1259_v7  ;;  %1386 = vmatmul.bf16.gmra.mxu1 %v12080_v0  ;;  %1475 = vmatmul.bf16.gmra.mxu2 %v12080_v0 }
 0x2c1   : > { %1632 = vst [vmem:[%s14144_s14 + $0x1c8] sm:$0xff] %v1348_v41  ;;  %1564 = vmatmul.bf16.gmra.mxu3 %v12080_v0 }
 0x2c3   : > { %v1436_v42 = vpop.f32.mrf.mxu2 }
 0x2c4   : > { %v1437_v48 = vadd.f32 %v1436_v42, %v14148_v1  ;;  %v1525_v49 = vpop.f32.mrf.mxu3  ;;  %v1260_v9 = vpop.f32.mrf.mxu0 }
 0x2c5   : > { %v1526_v10 = vadd.f32 %v1525_v49, %v14150_v2  ;;  %v1261_v11 = vadd.f32 %v1260_v9, %v14137_v58  ;;  %v1349_v12 = vpop.f32.mrf.mxu1 }
 0x2c6   : > { %1633 = vst [vmem:[%s14144_s14 + $0x1d0] sm:$0xff] %v1437_v48  ;;  %v1350_v13 = vadd.f32 %v1349_v12, %v14139_v59 }
 0x2c7   : > { %1634 = vst [vmem:[%s14144_s14 + $0x1d8] sm:$0xff] %v1526_v10 }
 0x2c8   : > { %1635 = vst [vmem:[%s14144_s14 + $0x1e0] sm:$0xff] %v1261_v11 }
 0x2c9   : > { %1636 = vst [vmem:[%s14144_s14 + $0x1e8] sm:$0xff] %v1350_v13 }
 0x2cb   : > { %v1438_v14 = vpop.f32.mrf.mxu2 }
 0x2cc   : > { %v1439_v15 = vadd.f32 %v1438_v14, %v14148_v1  ;;  %v1527_v16 = vpop.f32.mrf.mxu3  ;;  %v1263_v17 = vpop.f32.mrf.mxu0 }
 0x2cd   : > { %v1528_v18 = vadd.f32 %v1527_v16, %v14150_v2  ;;  %v1264_v19 = vadd.f32 %v1263_v17, %v14137_v58  ;;  %v1352_v20 = vpop.f32.mrf.mxu1 }
 0x2ce   : > { %1637 = vst [vmem:[%s14144_s14 + $0x1f0] sm:$0xff] %v1439_v15  ;;  %v1353_v21 = vadd.f32 %v1352_v20, %v14139_v59 }
 0x2cf   : > { %1638 = vst [vmem:[%s14144_s14 + $0x1f8] sm:$0xff] %v1528_v18 }
 0x2d0   : > { %1639 = vst [vmem:[%s14144_s14 + $0x200] sm:$0xff] %v1264_v19 }
 0x2d1   : > { %1640 = vst [vmem:[%s14144_s14 + $0x208] sm:$0xff] %v1353_v21 }
 0x2d3   : > { %v1441_v22 = vpop.f32.mrf.mxu2 }
 0x2d4   : > { %v1442_v23 = vadd.f32 %v1441_v22, %v14148_v1  ;;  %v1530_v24 = vpop.f32.mrf.mxu3  ;;  %v1265_v25 = vpop.f32.mrf.mxu0 }
 0x2d5   : > { %v1531_v26 = vadd.f32 %v1530_v24, %v14150_v2  ;;  %v1266_v27 = vadd.f32 %v1265_v25, %v14137_v58  ;;  %v1354_v28 = vpop.f32.mrf.mxu1 }
 0x2d6   : > { %1641 = vst [vmem:[%s14144_s14 + $0x210] sm:$0xff] %v1442_v23  ;;  %v1355_v29 = vadd.f32 %v1354_v28, %v14139_v59 }
 0x2d7   : > { %1642 = vst [vmem:[%s14144_s14 + $0x218] sm:$0xff] %v1531_v26 }
 0x2d8   : > { %1643 = vst [vmem:[%s14144_s14 + $0x220] sm:$0xff] %v1266_v27 }
 0x2d9   : > { %1644 = vst [vmem:[%s14144_s14 + $0x228] sm:$0xff] %v1355_v29 }
 0x2db   : > { %v1443_v30 = vpop.f32.mrf.mxu2 }
 0x2dc   : > { %v1444_v31 = vadd.f32 %v1443_v30, %v14148_v1  ;;  %v1532_v32 = vpop.f32.mrf.mxu3  ;;  %v1268_v33 = vpop.f32.mrf.mxu0 }
 0x2dd   : > { %v1533_v34 = vadd.f32 %v1532_v32, %v14150_v2  ;;  %v1269_v35 = vadd.f32 %v1268_v33, %v14137_v58  ;;  %v1357_v36 = vpop.f32.mrf.mxu1 }
 0x2de   : > { %1645 = vst [vmem:[%s14144_s14 + $0x230] sm:$0xff] %v1444_v31  ;;  %v1358_v43 = vadd.f32 %v1357_v36, %v14139_v59 }
 0x2df   : > { %1646 = vst [vmem:[%s14144_s14 + $0x238] sm:$0xff] %v1533_v34 }
 0x2e0   : > { %1647 = vst [vmem:[%s14144_s14 + $0x240] sm:$0xff] %v1269_v35 }
 0x2e1   : > { %1648 = vst [vmem:[%s14144_s14 + $0x248] sm:$0xff] %v1358_v43 }
 0x2e3   : > { %v1446_v44 = vpop.f32.mrf.mxu2 }
 0x2e4   : > { %v1447_v45 = vadd.f32 %v1446_v44, %v14148_v1  ;;  %v1535_v46 = vpop.f32.mrf.mxu3  ;;  %v1270_v47 = vpop.f32.mrf.mxu0 }
 0x2e5   : > { %v1536_v50 = vadd.f32 %v1535_v46, %v14150_v2  ;;  %v1271_v51 = vadd.f32 %v1270_v47, %v14137_v58  ;;  %v1359_v52 = vpop.f32.mrf.mxu1 }
 0x2e6   : > { %1649 = vst [vmem:[%s14144_s14 + $0x250] sm:$0xff] %v1447_v45  ;;  %v1360_v53 = vadd.f32 %v1359_v52, %v14139_v59 }
 0x2e7   : > { %1650 = vst [vmem:[%s14144_s14 + $0x258] sm:$0xff] %v1536_v50 }
 0x2e8   : > { %1651 = vst [vmem:[%s14144_s14 + $0x260] sm:$0xff] %v1271_v51 }
 0x2e9   : > { %1652 = vst [vmem:[%s14144_s14 + $0x268] sm:$0xff] %v1360_v53 }
 0x2eb   : > { %v1448_v54 = vpop.f32.mrf.mxu2 }
 0x2ec   : > { %v1449_v55 = vadd.f32 %v1448_v54, %v14148_v1  ;;  %v1537_v56 = vpop.f32.mrf.mxu3  ;;  %v1273_v57 = vpop.f32.mrf.mxu0 }
 0x2ed   : > { %v1538_v60 = vadd.f32 %v1537_v56, %v14150_v2  ;;  %v1274_v61 = vadd.f32 %v1273_v57, %v14137_v58  ;;  %v1362_v62 = vpop.f32.mrf.mxu1 }
 0x2ee   : > { %1653 = vst [vmem:[%s14144_s14 + $0x270] sm:$0xff] %v1449_v55  ;;  %v1363_v63 = vadd.f32 %v1362_v62, %v14139_v59 }
 0x2ef   : > { %1654 = vst [vmem:[%s14144_s14 + $0x278] sm:$0xff] %v1538_v60 }
 0x2f0   : > { %1655 = vst [vmem:[%s14144_s14 + $0x280] sm:$0xff] %v1274_v61 }
 0x2f1   : > { %1656 = vst [vmem:[%s14144_s14 + $0x288] sm:$0xff] %v1363_v63 }
 0x2f3   : > { %v1451_v0 = vpop.f32.mrf.mxu2 }
 0x2f4   : > { %v1452_v3 = vadd.f32 %v1451_v0, %v14148_v1  ;;  %v1540_v4 = vpop.f32.mrf.mxu3  ;;  %v1275_v5 = vpop.f32.mrf.mxu0 }
 0x2f5   : > { %v1541_v6 = vadd.f32 %v1540_v4, %v14150_v2  ;;  %v1276_v7 = vadd.f32 %v1275_v5, %v14137_v58  ;;  %v1364_v8 = vpop.f32.mrf.mxu1 }
 0x2f6   : > { %1657 = vst [vmem:[%s14144_s14 + $0x290] sm:$0xff] %v1452_v3  ;;  %v1365_v41 = vadd.f32 %v1364_v8, %v14139_v59 }
 0x2f7   : > { %1658 = vst [vmem:[%s14144_s14 + $0x298] sm:$0xff] %v1541_v6 }
 0x2f8   : > { %1659 = vst [vmem:[%s14144_s14 + $0x2a0] sm:$0xff] %v1276_v7 }
 0x2f9   : > { %1660 = vst [vmem:[%s14144_s14 + $0x2a8] sm:$0xff] %v1365_v41 }
 0x2fb   : > { %v1453_v42 = vpop.f32.mrf.mxu2 }
 0x2fc   : > { %v1454_v48 = vadd.f32 %v1453_v42, %v14148_v1  ;;  %v1542_v49 = vpop.f32.mrf.mxu3  ;;  %v1278_v9 = vpop.f32.mrf.mxu0 }
 0x2fd   : > { %v1543_v10 = vadd.f32 %v1542_v49, %v14150_v2  ;;  %v1279_v11 = vadd.f32 %v1278_v9, %v14137_v58  ;;  %v1367_v12 = vpop.f32.mrf.mxu1 }
 0x2fe   : > { %1661 = vst [vmem:[%s14144_s14 + $0x2b0] sm:$0xff] %v1454_v48  ;;  %v1368_v13 = vadd.f32 %v1367_v12, %v14139_v59 }
 0x2ff   : > { %1662 = vst [vmem:[%s14144_s14 + $0x2b8] sm:$0xff] %v1543_v10 }
 0x300   : > { %1663 = vst [vmem:[%s14144_s14 + $0x2c0] sm:$0xff] %v1279_v11 }
 0x301   : > { %1664 = vst [vmem:[%s14144_s14 + $0x2c8] sm:$0xff] %v1368_v13 }
 0x303   : > { %v1456_v14 = vpop.f32.mrf.mxu2 }
 0x304   : > { %v1457_v15 = vadd.f32 %v1456_v14, %v14148_v1  ;;  %v1545_v16 = vpop.f32.mrf.mxu3  ;;  %v1280_v17 = vpop.f32.mrf.mxu0 }
 0x305   : > { %v1546_v18 = vadd.f32 %v1545_v16, %v14150_v2  ;;  %v1281_v19 = vadd.f32 %v1280_v17, %v14137_v58  ;;  %v1369_v20 = vpop.f32.mrf.mxu1 }
 0x306   : > { %1665 = vst [vmem:[%s14144_s14 + $0x2d0] sm:$0xff] %v1457_v15  ;;  %v1370_v21 = vadd.f32 %v1369_v20, %v14139_v59 }
 0x307   : > { %1666 = vst [vmem:[%s14144_s14 + $0x2d8] sm:$0xff] %v1546_v18 }
 0x308   : > { %1667 = vst [vmem:[%s14144_s14 + $0x2e0] sm:$0xff] %v1281_v19 }
 0x309   : > { %1668 = vst [vmem:[%s14144_s14 + $0x2e8] sm:$0xff] %v1370_v21 }
 0x30b   : > { %v1458_v22 = vpop.f32.mrf.mxu2 }
 0x30c   : > { %v1459_v23 = vadd.f32 %v1458_v22, %v14148_v1  ;;  %v1547_v24 = vpop.f32.mrf.mxu3  ;;  %v1283_v25 = vpop.f32.mrf.mxu0 }
 0x30d   : > { %v1548_v26 = vadd.f32 %v1547_v24, %v14150_v2  ;;  %v1284_v27 = vadd.f32 %v1283_v25, %v14137_v58  ;;  %v1372_v28 = vpop.f32.mrf.mxu1 }
 0x30e   : > { %1669 = vst [vmem:[%s14144_s14 + $0x2f0] sm:$0xff] %v1459_v23  ;;  %v1373_v29 = vadd.f32 %v1372_v28, %v14139_v59 }
 0x30f   : > { %1670 = vst [vmem:[%s14144_s14 + $0x2f8] sm:$0xff] %v1548_v26 }
 0x310   : > { %1671 = vst [vmem:[%s14144_s14 + $0x300] sm:$0xff] %v1284_v27 }
 0x311   : > { %1672 = vst [vmem:[%s14144_s14 + $0x308] sm:$0xff] %v1373_v29 }
 0x313   : > { %v1461_v30 = vpop.f32.mrf.mxu2 }
 0x314   : > { %v1462_v31 = vadd.f32 %v1461_v30, %v14148_v1  ;;  %v1550_v32 = vpop.f32.mrf.mxu3  ;;  %v1285_v33 = vpop.f32.mrf.mxu0 }
 0x315   : > { %v1551_v34 = vadd.f32 %v1550_v32, %v14150_v2  ;;  %v1286_v35 = vadd.f32 %v1285_v33, %v14137_v58  ;;  %v1374_v36 = vpop.f32.mrf.mxu1 }
 0x316   : > { %1673 = vst [vmem:[%s14144_s14 + $0x310] sm:$0xff] %v1462_v31  ;;  %v1375_v43 = vadd.f32 %v1374_v36, %v14139_v59 }
 0x317   : > { %1674 = vst [vmem:[%s14144_s14 + $0x318] sm:$0xff] %v1551_v34 }
 0x318   : > { %1675 = vst [vmem:[%s14144_s14 + $0x320] sm:$0xff] %v1286_v35 }
 0x319   : > { %1676 = vst [vmem:[%s14144_s14 + $0x328] sm:$0xff] %v1375_v43 }
 0x31b   : > { %v1463_v44 = vpop.f32.mrf.mxu2 }
 0x31c   : > { %v1464_v45 = vadd.f32 %v1463_v44, %v14148_v1  ;;  %v1552_v46 = vpop.f32.mrf.mxu3  ;;  %v1288_v47 = vpop.f32.mrf.mxu0 }
 0x31d   : > { %v1553_v50 = vadd.f32 %v1552_v46, %v14150_v2  ;;  %v1289_v51 = vadd.f32 %v1288_v47, %v14137_v58  ;;  %v1377_v52 = vpop.f32.mrf.mxu1 }
 0x31e   : > { %1677 = vst [vmem:[%s14144_s14 + $0x330] sm:$0xff] %v1464_v45  ;;  %v1378_v53 = vadd.f32 %v1377_v52, %v14139_v59 }
 0x31f   : > { %1678 = vst [vmem:[%s14144_s14 + $0x338] sm:$0xff] %v1553_v50 }
 0x320   : > { %1679 = vst [vmem:[%s14144_s14 + $0x340] sm:$0xff] %v1289_v51 }
 0x321   : > { %1680 = vst [vmem:[%s14144_s14 + $0x348] sm:$0xff] %v1378_v53 }
 0x323   : > { %v1466_v54 = vpop.f32.mrf.mxu2 }
 0x324   : > { %v1467_v55 = vadd.f32 %v1466_v54, %v14148_v1  ;;  %v1555_v56 = vpop.f32.mrf.mxu3  ;;  %v1290_v57 = vpop.f32.mrf.mxu0 }
 0x325   : > { %v1556_v60 = vadd.f32 %v1555_v56, %v14150_v2  ;;  %v1291_v61 = vadd.f32 %v1290_v57, %v14137_v58  ;;  %v1379_v62 = vpop.f32.mrf.mxu1 }
 0x326   : > { %1681 = vst [vmem:[%s14144_s14 + $0x350] sm:$0xff] %v1467_v55  ;;  %v1380_v63 = vadd.f32 %v1379_v62, %v14139_v59 }
 0x327   : > { %1682 = vst [vmem:[%s14144_s14 + $0x358] sm:$0xff] %v1556_v60 }
 0x328   : > { %1683 = vst [vmem:[%s14144_s14 + $0x360] sm:$0xff] %v1291_v61 }
 0x329   : > { %1684 = vst [vmem:[%s14144_s14 + $0x368] sm:$0xff] %v1380_v63 }
 0x32b   : > { %v1468_v0 = vpop.f32.mrf.mxu2 }
 0x32c   : > { %v1469_v3 = vadd.f32 %v1468_v0, %v14148_v1  ;;  %v1557_v4 = vpop.f32.mrf.mxu3  ;;  %v1293_v5 = vpop.f32.mrf.mxu0 }
 0x32d   : > { %v1558_v6 = vadd.f32 %v1557_v4, %v14150_v2  ;;  %v1294_v7 = vadd.f32 %v1293_v5, %v14137_v58  ;;  %v1382_v8 = vpop.f32.mrf.mxu1 }
 0x32e   : > { %1685 = vst [vmem:[%s14144_s14 + $0x370] sm:$0xff] %v1469_v3  ;;  %v1383_v41 = vadd.f32 %v1382_v8, %v14139_v59 }
 0x32f   : > { %1686 = vst [vmem:[%s14144_s14 + $0x378] sm:$0xff] %v1558_v6 }
 0x330   : > { %1687 = vst [vmem:[%s14144_s14 + $0x380] sm:$0xff] %v1294_v7 }
 0x331   : > { %1688 = vst [vmem:[%s14144_s14 + $0x388] sm:$0xff] %v1383_v41 }
 0x333   : > { %v1471_v42 = vpop.f32.mrf.mxu2 }
 0x334   : > { %v1472_v48 = vadd.f32 %v1471_v42, %v14148_v1  ;;  %v1560_v49 = vpop.f32.mrf.mxu3  ;;  %v1295_v9 = vpop.f32.mrf.mxu0 }
 0x335   : > { %v1561_v10 = vadd.f32 %v1560_v49, %v14150_v2  ;;  %v1296_v11 = vadd.f32 %v1295_v9, %v14137_v58  ;;  %v1384_v12 = vpop.f32.mrf.mxu1 }
 0x336   : > { %1689 = vst [vmem:[%s14144_s14 + $0x390] sm:$0xff] %v1472_v48  ;;  %v1385_v13 = vadd.f32 %v1384_v12, %v14139_v59 }
 0x337   : > { %1690 = vst [vmem:[%s14144_s14 + $0x398] sm:$0xff] %v1561_v10 }
 0x338   : > { %1691 = vst [vmem:[%s14144_s14 + $0x3a0] sm:$0xff] %v1296_v11 }
 0x339   : > { %1692 = vst [vmem:[%s14144_s14 + $0x3a8] sm:$0xff] %v1385_v13 }
 0x33b   : > { %v1473_v14 = vpop.f32.mrf.mxu2 }
 0x33c   : > { %v1474_v15 = vadd.f32 %v1473_v14, %v14148_v1  ;;  %v1562_v16 = vpop.f32.mrf.mxu3  ;;  %v1298_v17 = vpop.f32.mrf.mxu0 }
 0x33d   : > { %v1563_v18 = vadd.f32 %v1562_v16, %v14150_v2  ;;  %v1299_v19 = vadd.f32 %v1298_v17, %v14137_v58  ;;  %v1387_v20 = vpop.f32.mrf.mxu1 }
 0x33e   : > { %1693 = vst [vmem:[%s14144_s14 + $0x3b0] sm:$0xff] %v1474_v15  ;;  %v1388_v21 = vadd.f32 %v1387_v20, %v14139_v59 }
 0x33f   : > { %1694 = vst [vmem:[%s14144_s14 + $0x3b8] sm:$0xff] %v1563_v18 }
 0x340   : > { %1695 = vst [vmem:[%s14144_s14 + $0x3c0] sm:$0xff] %v1299_v19 }
 0x341   : > { %1696 = vst [vmem:[%s14144_s14 + $0x3c8] sm:$0xff] %v1388_v21 }
 0x343   : > { %v1476_v22 = vpop.f32.mrf.mxu2 }
 0x344   : > { %v1477_v23 = vadd.f32 %v1476_v22, %v14148_v1  ;;  %v1565_v24 = vpop.f32.mrf.mxu3  ;;  %v1300_v25 = vpop.f32.mrf.mxu0 }
 0x345   : > { %v1566_v26 = vadd.f32 %v1565_v24, %v14150_v2  ;;  %v1301_v27 = vadd.f32 %v1300_v25, %v14137_v58  ;;  %v1389_v28 = vpop.f32.mrf.mxu1 }
 0x346   : > { %1697 = vst [vmem:[%s14144_s14 + $0x3d0] sm:$0xff] %v1477_v23  ;;  %v1390_v29 = vadd.f32 %v1389_v28, %v14139_v59 }
 0x347   : > { %1698 = vst [vmem:[%s14144_s14 + $0x3d8] sm:$0xff] %v1566_v26 }
 0x348   : > { %1699 = vst [vmem:[%s14144_s14 + $0x3e0] sm:$0xff] %v1301_v27 }
 0x349   : > { %1700 = vst [vmem:[%s14144_s14 + $0x3e8] sm:$0xff] %v1390_v29 }
 0x34b   : > { %v1478_v30 = vpop.f32.mrf.mxu2 }
 0x34c   : > { %v1479_v31 = vadd.f32 %v1478_v30, %v14148_v1  ;;  %v1567_v32 = vpop.f32.mrf.mxu3 }
 0x34d   : > { %v1568_v33 = vadd.f32 %v1567_v32, %v14150_v2 }
 0x34e   : > { %1701 = vst [vmem:[%s14144_s14 + $0x3f0] sm:$0xff] %v1479_v31 }
 0x34f   : > { %1702 = vst [vmem:[%s14144_s14 + $0x3f8] sm:$0xff] %v1568_v33 }
 0x350 PF: > { %v9698_v58 = vld [vmem:[%s20642_s4 + $0xe0] sm:$0xf]  ;;  %v12145_v59 = vld [vmem:[%s20642_s4 + $0xec] sm:$0xf0]  ;;  %v12143_v34 = vld [vmem:[%s20642_s4 + $0xe4] sm:$0xf] }
 0x351   : > { %v9699_v35 = vor.u32 %v12145_v59, %v9698_v58  ;;  %v9700_v1 = vld [vmem:[%s20642_s4 + $0xf0] sm:$0xf0]  ;;  %v9706_v2 = vld [vmem:[%s20642_s4 + $0xe8] sm:$0xf]  ;;  %v12146_v36 = vld [vmem:[%s20642_s4 + $0xf4] sm:$0xf0] }
 0x352   : > { %v9703_v43 = vor.u32 %v12143_v34, %v9700_v1  ;;  %v9707_v44 = vor.u32 %v12146_v36, %v9706_v2  ;;  %v9682_v45 = vld [vmem:[%s20642_s4 + $0xc0] sm:$0xf]  ;;  %v12141_v46 = vld [vmem:[%s20642_s4 + $0xcc] sm:$0xf0]  ;;  %v12139_v47 = vld [vmem:[%s20642_s4 + $0xc4] sm:$0xf] }
 0x353   : > { %1910 = vmatpush.bf16.msra.mxu0 %v9699_v35  ;;  %v9683_v50 = vor.u32 %v12141_v46, %v9682_v45  ;;  %v9684_v51 = vld [vmem:[%s20642_s4 + $0xd0] sm:$0xf0]  ;;  %v9690_v52 = vld [vmem:[%s20642_s4 + $0xc8] sm:$0xf]  ;;  %v12142_v53 = vld [vmem:[%s20642_s4 + $0xd4] sm:$0xf0] }
 0x354   : > { %1924 = vmatpush.bf16.msra.mxu1 %v9703_v43  ;;  %1938 = vmatpush.bf16.msra.mxu2 %v9707_v44  ;;  %v9687_v54 = vor.u32 %v12139_v47, %v9684_v51  ;;  %v9691_v55 = vor.u32 %v12142_v53, %v9690_v52  ;;  %v12144_v56 = vld [vmem:[%s20642_s4 + $0xec] sm:$0xf]  ;;  %v9708_v57 = vld [vmem:[%s20642_s4 + $0xf8] sm:$0xf0]  ;;  %v9666_v60 = vld [vmem:[%s20642_s4 + $0xa0] sm:$0xf] }
 0x355   : > { %v9711_v61 = vor.u32 %v12144_v56, %v9708_v57  ;;  %v12137_v62 = vld [vmem:[%s20642_s4 + $0xac] sm:$0xf0]  ;;  %v12135_v63 = vld [vmem:[%s20642_s4 + $0xa4] sm:$0xf]  ;;  %v9668_v0 = vld [vmem:[%s20642_s4 + $0xb0] sm:$0xf0] }
 0x356   : > { %v9674_v3 = vld [vmem:[%s20642_s4 + $0xa8] sm:$0xf]  ;;  %v12138_v4 = vld [vmem:[%s20642_s4 + $0xb4] sm:$0xf0]  ;;  %v12140_v5 = vld [vmem:[%s20642_s4 + $0xcc] sm:$0xf]  ;;  %v9667_v6 = vor.u32 %v12137_v62, %v9666_v60  ;;  %v9671_v42 = vor.u32 %v12135_v63, %v9668_v0 }
 0x357   : > { %1911 = vmatpush.bf16.msra.mxu0 %v9683_v50  ;;  %1952 = vmatpush.bf16.msra.mxu3 %v9711_v61  ;;  %v9692_v7 = vld [vmem:[%s20642_s4 + $0xd8] sm:$0xf0]  ;;  %v9650_v8 = vld [vmem:[%s20642_s4 + $0x80] sm:$0xf]  ;;  %v12133_v41 = vld [vmem:[%s20642_s4 + $0x8c] sm:$0xf0]  ;;  %v9675_v48 = vor.u32 %v12138_v4, %v9674_v3 }
 0x358   : > { %1925 = vmatpush.bf16.msra.mxu1 %v9687_v54  ;;  %1939 = vmatpush.bf16.msra.mxu2 %v9691_v55  ;;  %v9695_v49 = vor.u32 %v12140_v5, %v9692_v7  ;;  %v12131_v9 = vld [vmem:[%s20642_s4 + $0x84] sm:$0xf]  ;;  %v9652_v10 = vld [vmem:[%s20642_s4 + $0x90] sm:$0xf0]  ;;  %v9658_v11 = vld [vmem:[%s20642_s4 + $0x88] sm:$0xf]  ;;  %v9651_v15 = vor.u32 %v12133_v41, %v9650_v8 }
 0x359   : > { %v12134_v12 = vld [vmem:[%s20642_s4 + $0x94] sm:$0xf0]  ;;  %v12136_v13 = vld [vmem:[%s20642_s4 + $0xac] sm:$0xf]  ;;  %v9676_v14 = vld [vmem:[%s20642_s4 + $0xb8] sm:$0xf0]  ;;  %v9655_v19 = vor.u32 %v12131_v9, %v9652_v10  ;;  %v1717_v9 = vpack.c.bf16 %v13430_v38, %v13434_v37 }
 0x35a   : > { %v9679_v16 = vor.u32 %v12136_v13, %v9676_v14  ;;  %v9634_v17 = vld [vmem:[%s20642_s4 + $0x60] sm:$0xf]  ;;  %v12129_v18 = vld [vmem:[%s20642_s4 + $0x6c] sm:$0xf0]  ;;  %v9659_v20 = vor.u32 %v12134_v12, %v9658_v11  ;;  %v12127_v21 = vld [vmem:[%s20642_s4 + $0x64] sm:$0xf] }
 0x35b   : > { %1912 = vmatpush.bf16.msra.mxu0 %v9667_v6  ;;  %1953 = vmatpush.bf16.msra.mxu3 %v9695_v49  ;;  %v12132_v22 = vld [vmem:[%s20642_s4 + $0x8c] sm:$0xf]  ;;  %v9660_v23 = vld [vmem:[%s20642_s4 + $0x98] sm:$0xf0]  ;;  %v9636_v24 = vld [vmem:[%s20642_s4 + $0x70] sm:$0xf0]  ;;  %v9635_v27 = vor.u32 %v12129_v18, %v9634_v17 }
 0x35c   : > { %1926 = vmatpush.bf16.msra.mxu1 %v9671_v42  ;;  %1940 = vmatpush.bf16.msra.mxu2 %v9675_v48  ;;  %v9642_v25 = vld [vmem:[%s20642_s4 + $0x68] sm:$0xf]  ;;  %v12130_v26 = vld [vmem:[%s20642_s4 + $0x74] sm:$0xf0]  ;;  %v9663_v28 = vor.u32 %v12132_v22, %v9660_v23  ;;  %v9618_v29 = vld [vmem:[%s20642_s4 + $0x40] sm:$0xf]  ;;  %v9639_v31 = vor.u32 %v12127_v21, %v9636_v24 }
 0x35d   : > { %v12125_v30 = vld [vmem:[%s20642_s4 + $0x4c] sm:$0xf0]  ;;  %v9643_v32 = vor.u32 %v12130_v26, %v9642_v25  ;;  %v12123_v33 = vld [vmem:[%s20642_s4 + $0x44] sm:$0xf]  ;;  %v12128_v58 = vld [vmem:[%s20642_s4 + $0x6c] sm:$0xf] }
 0x35e   : > { %v9644_v59 = vld [vmem:[%s20642_s4 + $0x78] sm:$0xf0]  ;;  %v9620_v34 = vld [vmem:[%s20642_s4 + $0x50] sm:$0xf0]  ;;  %v9626_v35 = vld [vmem:[%s20642_s4 + $0x48] sm:$0xf]  ;;  %v9619_v2 = vor.u32 %v12125_v30, %v9618_v29 }
 0x35f   : > { %1913 = vmatpush.bf16.msra.mxu0 %v9651_v15  ;;  %1954 = vmatpush.bf16.msra.mxu3 %v9679_v16  ;;  %v12126_v1 = vld [vmem:[%s20642_s4 + $0x54] sm:$0xf0]  ;;  %v9647_v36 = vor.u32 %v12128_v58, %v9644_v59  ;;  %v9602_v43 = vld [vmem:[%s20642_s4 + $0x20] sm:$0xf]  ;;  %v12121_v44 = vld [vmem:[%s20642_s4 + $0x2c] sm:$0xf0]  ;;  %v9623_v45 = vor.u32 %v12123_v33, %v9620_v34 }
 0x360   : > { %1927 = vmatpush.bf16.msra.mxu1 %v9655_v19  ;;  %1941 = vmatpush.bf16.msra.mxu2 %v9659_v20  ;;  %v9627_v46 = vor.u32 %v12126_v1, %v9626_v35  ;;  %v12119_v47 = vld [vmem:[%s20642_s4 + $0x24] sm:$0xf]  ;;  %v12124_v50 = vld [vmem:[%s20642_s4 + $0x4c] sm:$0xf]  ;;  %v9628_v51 = vld [vmem:[%s20642_s4 + $0x58] sm:$0xf0]  ;;  %v9603_v55 = vor.u32 %v12121_v44, %v9602_v43 }
 0x361   : > { %v9604_v52 = vld [vmem:[%s20642_s4 + $0x30] sm:$0xf0]  ;;  %v9610_v53 = vld [vmem:[%s20642_s4 + $0x28] sm:$0xf]  ;;  %v12122_v54 = vld [vmem:[%s20642_s4 + $0x34] sm:$0xf0]  ;;  %v9631_v56 = vor.u32 %v12124_v50, %v9628_v51 }
 0x362   : > { %v9586_v57 = vld [vmem:[%s20642_s4] sm:$0xf]  ;;  %v12117_v60 = vld [vmem:[%s20642_s4 + $0xc] sm:$0xf0]  ;;  %v9607_v61 = vor.u32 %v12119_v47, %v9604_v52  ;;  %v9611_v62 = vor.u32 %v12122_v54, %v9610_v53  ;;  %v12115_v63 = vld [vmem:[%s20642_s4 + $0x4] sm:$0xf] }
 0x363   : > { %1914 = vmatpush.bf16.msra.mxu0 %v9635_v27  ;;  %1955 = vmatpush.bf16.msra.mxu3 %v9663_v28  ;;  %v12120_v0 = vld [vmem:[%s20642_s4 + $0x2c] sm:$0xf]  ;;  %v9612_v3 = vld [vmem:[%s20642_s4 + $0x38] sm:$0xf0]  ;;  %v9588_v4 = vld [vmem:[%s20642_s4 + $0x10] sm:$0xf0]  ;;  %v9587_v7 = vor.u32 %v12117_v60, %v9586_v57 }
 0x364   : > { %1928 = vmatpush.bf16.msra.mxu1 %v9639_v31  ;;  %1942 = vmatpush.bf16.msra.mxu2 %v9643_v32  ;;  %v9594_v5 = vld [vmem:[%s20642_s4 + $0x8] sm:$0xf]  ;;  %v12118_v6 = vld [vmem:[%s20642_s4 + $0x14] sm:$0xf0]  ;;  %v9615_v8 = vor.u32 %v12120_v0, %v9612_v3  ;;  %v9591_v41 = vor.u32 %v12115_v63, %v9588_v4  ;;  %v12116_v48 = vld [vmem:[%s20642_s4 + $0xc] sm:$0xf] }
 0x365   : > { %v9595_v42 = vor.u32 %v12118_v6, %v9594_v5  ;;  %v9596_v49 = vld [vmem:[%s20642_s4 + $0x18] sm:$0xf0]  ;;  %s14606_s16 = sshll.u32 %s20917_s27, 8  ;;  %v9836_v11 = vld [vmem:[%s20642_s4 + $0xe0] sm:$0xf] }
 0x366   : > { %v9599_v10 = vor.u32 %v12116_v48, %v9596_v49  ;;  %s1704_s17 = sshra.s32 %s14606_s16, 3  ;;  %v12178_v37 = vld [vmem:[%s20642_s4 + $0xec] sm:$0xf0]  ;;  %v12176_v38 = vld [vmem:[%s20642_s4 + $0xe4] sm:$0xf]  ;;  %s2109_s11 = sadd.s32 16, %s14606_s16 }
 0x367   : > { %1915 = vmatpush.bf16.msra.mxu0 %v9619_v2  ;;  %1956 = vmatpush.bf16.msra.mxu3 %v9647_v36  ;;  %s12114_s18 = sshll.u32 %s1704_s17, 5  ;;  %v9837_v12 = vor.u32 %v12178_v37, %v9836_v11  ;;  %v9838_v13 = vld [vmem:[%s20642_s4 + $0xf0] sm:$0xf0]  ;;  %v9844_v14 = vld [vmem:[%s20642_s4 + $0xe8] sm:$0xf]  ;;  %s2110_s12 = sshra.s32 %s2109_s11, 3 }
 0x368   : > { %1929 = vmatpush.bf16.msra.mxu1 %v9623_v45  ;;  %1943 = vmatpush.bf16.msra.mxu2 %v9627_v46  ;;  %v12179_v15 = vld [vmem:[%s20642_s4 + $0xf4] sm:$0xf0]  ;;  %s14627_s13 = scalar_lea.vmem [#allocation2], %s12114_s18  ;;  %v9841_v17 = vor.u32 %v12176_v38, %v9838_v13  ;;  %v12177_v19 = vld [vmem:[%s20642_s4 + $0xec] sm:$0xf]  ;;  %s12147_s14 = sshll.u32 %s2110_s12, 5 }
 0x369   : > { %v1709_v16 = vld [vmem:[%s14627_s13] sm:$0xff]  ;;  %v9845_v18 = vor.u32 %v12179_v15, %v9844_v14  ;;  %v9846_v20 = vld [vmem:[%s20642_s4 + $0xf8] sm:$0xf0]  ;;  %v1710_v21 = vld [vmem:[%s14627_s13 + $0x8] sm:$0xff]  ;;  %s14932_s28 = scalar_lea.vmem [#allocation2], %s12147_s14  ;;  %s2522_s17 = sadd.s32 32, %s14606_s16 }
 0x36a   : > { %v9849_v22 = vor.u32 %v12177_v19, %v9846_v20  ;;  %v9820_v24 = vld [vmem:[%s20642_s4 + $0xc0] sm:$0xf]  ;;  %v12174_v25 = vld [vmem:[%s20642_s4 + $0xcc] sm:$0xf0]  ;;  %v12172_v26 = vld [vmem:[%s20642_s4 + $0xc4] sm:$0xf] }
 0x36b   : > { %1916 = vmatpush.bf16.msra.mxu0 %v9603_v55  ;;  %1957 = vmatpush.bf16.msra.mxu3 %v9631_v56  ;;  %v9821_v29 = vor.u32 %v12174_v25, %v9820_v24  ;;  %v9822_v30 = vld [vmem:[%s20642_s4 + $0xd0] sm:$0xf0]  ;;  %v9828_v31 = vld [vmem:[%s20642_s4 + $0xc8] sm:$0xf]  ;;  %v12175_v32 = vld [vmem:[%s20642_s4 + $0xd4] sm:$0xf0] }
 0x36c   : > { %1930 = vmatpush.bf16.msra.mxu1 %v9607_v61  ;;  %1944 = vmatpush.bf16.msra.mxu2 %v9611_v62  ;;  %v9825_v58 = vor.u32 %v12172_v26, %v9822_v30  ;;  %v9829_v59 = vor.u32 %v12175_v32, %v9828_v31  ;;  %v12173_v34 = vld [vmem:[%s20642_s4 + $0xcc] sm:$0xf]  ;;  %v9830_v35 = vld [vmem:[%s20642_s4 + $0xd8] sm:$0xf0]  ;;  %v1711_v2 = vld [vmem:[%s14627_s13 + $0x10] sm:$0xff]  ;;  %s2523_s18 = sshra.s32 %s2522_s17, 3 }
 0x36d   : > { %v9833_v36 = vor.u32 %v12173_v34, %v9830_v35  ;;  %v1713_v44 = vld [vmem:[%s14627_s13 + $0x20] sm:$0xff]  ;;  %v12170_v46 = vld [vmem:[%s20642_s4 + $0xac] sm:$0xf0]  ;;  %v9806_v51 = vld [vmem:[%s20642_s4 + $0xb0] sm:$0xf0]  ;;  %s12182_s19 = sshll.u32 %s2523_s18, 5 }
 0x36e   : > { %v9804_v45 = vld [vmem:[%s20642_s4 + $0xa0] sm:$0xf]  ;;  %v12168_v50 = vld [vmem:[%s20642_s4 + $0xa4] sm:$0xf]  ;;  %v9812_v52 = vld [vmem:[%s20642_s4 + $0xa8] sm:$0xf] }
 0x36f   : > { %1917 = vmatpush.bf16.msra.mxu0 %v9587_v7  ;;  %1958 = vmatpush.bf16.msra.mxu3 %v9615_v8  ;;  %v9805_v47 = vor.u32 %v12170_v46, %v9804_v45  ;;  %v9809_v53 = vor.u32 %v12168_v50, %v9806_v51  ;;  %v12171_v54 = vld [vmem:[%s20642_s4 + $0xb4] sm:$0xf0]  ;;  %v12169_v55 = vld [vmem:[%s20642_s4 + $0xac] sm:$0xf]  ;;  %v9814_v56 = vld [vmem:[%s20642_s4 + $0xb8] sm:$0xf0] }
 0x370   : > { %1931 = vmatpush.bf16.msra.mxu1 %v9591_v41  ;;  %1945 = vmatpush.bf16.msra.mxu2 %v9595_v42  ;;  %v1714_v60 = vld [vmem:[%s14627_s13 + $0x28] sm:$0xff]  ;;  %v9813_v61 = vor.u32 %v12171_v54, %v9812_v52  ;;  %v9817_v62 = vor.u32 %v12169_v55, %v9814_v56  ;;  %v9788_v3 = vld [vmem:[%s20642_s4 + $0x80] sm:$0xf]  ;;  %v12166_v4 = vld [vmem:[%s20642_s4 + $0x8c] sm:$0xf0] }
 0x371   : > { %v12164_v5 = vld [vmem:[%s20642_s4 + $0x84] sm:$0xf]  ;;  %v9789_v8 = vor.u32 %v12166_v4, %v9788_v3  ;;  %v9790_v41 = vld [vmem:[%s20642_s4 + $0x90] sm:$0xf0]  ;;  %v9796_v42 = vld [vmem:[%s20642_s4 + $0x88] sm:$0xf] }
 0x372   : > { %1918 = vmatmul.bf16.vlgmr.msra.gmra.mxu0 %v1717_v9  ;;  %v12167_v48 = vld [vmem:[%s20642_s4 + $0x94] sm:$0xf0]  ;;  %v12165_v37 = vld [vmem:[%s20642_s4 + $0x8c] sm:$0xf]  ;;  %v9798_v38 = vld [vmem:[%s20642_s4 + $0x98] sm:$0xf0] }
 0x373   : > { %1932 = vmatmul.bf16.vlgmr.msra.gmra.mxu1 %v1717_v9  ;;  %1946 = vmatmul.bf16.vlgmr.msra.gmra.mxu2 %v1717_v9  ;;  %v9797_v11 = vor.u32 %v12167_v48, %v9796_v42  ;;  %v9801_v14 = vor.u32 %v12165_v37, %v9798_v38  ;;  %v12160_v26 = vld [vmem:[%s20642_s4 + $0x64] sm:$0xf]  ;;  %v12163_v30 = vld [vmem:[%s20642_s4 + $0x74] sm:$0xf0]  ;;  %v12161_v31 = vld [vmem:[%s20642_s4 + $0x6c] sm:$0xf] }
 0x374   : > { %1959 = vmatpush.bf16.msra.mxu3 %v9599_v10  ;;  %2321 = vmatpush.bf16.msrb.mxu0 %v9837_v12  ;;  %v9793_v10 = vor.u32 %v12164_v5, %v9790_v41  ;;  %v1716_v3 = vld [vmem:[%s14627_s13 + $0x38] sm:$0xff] }
 0x375   : > { %2335 = vmatpush.bf16.msrb.mxu1 %v9841_v17  ;;  %2349 = vmatpush.bf16.msrb.mxu2 %v9845_v18  ;;  %v1712_v18 = vld [vmem:[%s14627_s13 + $0x18] sm:$0xff] }
 0x377   : > { %1960 = vmatmul.bf16.vlgmr.msra.gmra.mxu3 %v1717_v9 }
 0x378   : > { %2363 = vmatpush.bf16.msrb.mxu3 %v9849_v22  ;;  %2322 = vmatpush.bf16.msrb.mxu0 %v9821_v29  ;;  %v9772_v22 = vld [vmem:[%s20642_s4 + $0x60] sm:$0xf] }
 0x379   : > { %2336 = vmatpush.bf16.msrb.mxu1 %v9825_v58  ;;  %2350 = vmatpush.bf16.msrb.mxu2 %v9829_v59  ;;  %v9756_v58 = vld [vmem:[%s20642_s4 + $0x40] sm:$0xf] }
 0x37c   : > { %2364 = vmatpush.bf16.msrb.mxu3 %v9833_v36  ;;  %2323 = vmatpush.bf16.msrb.mxu0 %v9805_v47  ;;  %v12158_v36 = vld [vmem:[%s20642_s4 + $0x4c] sm:$0xf0]  ;;  %v9758_v47 = vld [vmem:[%s20642_s4 + $0x50] sm:$0xf0] }
 0x37d   : > { %2337 = vmatpush.bf16.msrb.mxu1 %v9809_v53  ;;  %2351 = vmatpush.bf16.msrb.mxu2 %v9813_v61  ;;  %v9757_v46 = vor.u32 %v12158_v36, %v9756_v58  ;;  %v12153_v58 = vld [vmem:[%s20642_s4 + $0x2c] sm:$0xf] }
 0x380   : > { %2365 = vmatpush.bf16.msrb.mxu3 %v9817_v62  ;;  %2324 = vmatpush.bf16.msrb.mxu0 %v9789_v8  ;;  %v12159_v8 = vld [vmem:[%s20642_s4 + $0x54] sm:$0xf0] }
 0x381   : > { %2338 = vmatpush.bf16.msrb.mxu1 %v9793_v10  ;;  %2352 = vmatpush.bf16.msrb.mxu2 %v9797_v11 }
 0x384   : > { %2366 = vmatpush.bf16.msrb.mxu3 %v9801_v14 }
 0x3ef   : > { %v1919_v23 = vpop.f32.mrf.mxu0 }
 0x3f0   : > { %v1966_v27 = vadd.f32 %v1919_v23, %v1709_v16  ;;  %v1933_v28 = vpop.f32.mrf.mxu1  ;;  %v12162_v23 = vld [vmem:[%s20642_s4 + $0x6c] sm:$0xf0] }
 0x3f1   : > { %v1967_v33 = vadd.f32 %v1933_v28, %v1710_v21  ;;  %v1715_v21 = vld [vmem:[%s14627_s13 + $0x30] sm:$0xff]  ;;  %v9780_v28 = vld [vmem:[%s20642_s4 + $0x68] sm:$0xf]  ;;  %v9773_v32 = vor.u32 %v12162_v23, %v9772_v22  ;;  %v12157_v22 = vld [vmem:[%s20642_s4 + $0x4c] sm:$0xf]  ;;  %s14923_s13 = sshll.u32 %s13438_s1, 8  ;;  %s20913_s1 = smov %s873_s24 }
 0x3f2   : > { %v9712_v1 = vmul.f32 -1.442695, %v1966_v27  ;;  %v9774_v27 = vld [vmem:[%s20642_s4 + $0x70] sm:$0xf0]  ;;  %v9740_v23 = vld [vmem:[%s20642_s4 + $0x20] sm:$0xf] }
 0x3f3   : > { %v9713_v43 = vmul.f32 -1.442695, %v1967_v33  ;;  %v9782_v33 = vld [vmem:[%s20642_s4 + $0x78] sm:$0xf0]  ;;  %v9777_v35 = vor.u32 %v12160_v26, %v9774_v27  ;;  %2325 = vmatpush.bf16.msrb.mxu0 %v9773_v32  ;;  %v9742_v26 = vld [vmem:[%s20642_s4 + $0x30] sm:$0xf0] }
 0x3f4   : > { %12887 = vpow2.f32 %v9712_v1  ;;  %v9781_v1 = vor.u32 %v12163_v30, %v9780_v28  ;;  %v9748_v30 = vld [vmem:[%s20642_s4 + $0x28] sm:$0xf]  ;;  %s2103_s26 = sshra.s32 %s14923_s13, 3  ;;  %s12181_s11 = sadd.s32 16, %s14923_s13 }
 0x3f5   : > { %12889 = vpow2.f32 %v9713_v43  ;;  %v12156_v43 = vld [vmem:[%s20642_s4 + $0x44] sm:$0xf]  ;;  %2339 = vmatpush.bf16.msrb.mxu1 %v9777_v35  ;;  %s9719_s27 = sshll.u32 %s2103_s26, 2  ;;  %s2516_s12 = sshra.s32 %s12181_s11, 3 }
 0x3f6   : > { %v1947_v57 = vpop.f32.mrf.mxu2  ;;  %2353 = vmatpush.bf16.msrb.mxu2 %v9781_v1  ;;  %v9761_v53 = vor.u32 %v12156_v43, %v9758_v47  ;;  %v9724_v43 = vld [vmem:[%s20642_s4] sm:$0xf]  ;;  %s2106_s30 = scalar_lea.vmem [#allocation3], %s9719_s27  ;;  %s9858_s14 = sshll.u32 %s2516_s12, 2 }
 0x3f7   : > { %v1968_v63 = vadd.f32 %v1947_v57, %v1711_v2  ;;  %v1921_v0 = vpop.f32.mrf.mxu0  ;;  %v9785_v2 = vor.u32 %v12161_v31, %v9782_v33  ;;  %2326 = vmatpush.bf16.msrb.mxu0 %v9757_v46  ;;  %v12155_v31 = vld [vmem:[%s20642_s4 + $0x34] sm:$0xf0]  ;;  %s2519_s15 = scalar_lea.vmem [#allocation3], %s9858_s14  ;;  %s12216_s14 = sadd.s32 32, %s14923_s13 }
 0x3f8   : > { %v1970_v6 = vadd.f32 %v1921_v0, %v1713_v44  ;;  %v1935_v7 = vpop.f32.mrf.mxu1 }
 0x3f9   : > { %v9714_v49 = vmul.f32 -1.442695, %v1968_v63  ;;  %v1971_v9 = vadd.f32 %v1935_v7, %v1714_v60  ;;  %2367 = vmatpush.bf16.msrb.mxu3 %v9785_v2  ;;  %2340 = vmatpush.bf16.msrb.mxu1 %v9761_v53  ;;  %v9764_v7 = vld [vmem:[%s20642_s4 + $0x48] sm:$0xf]  ;;  %v9726_v53 = vld [vmem:[%s20642_s4 + $0x10] sm:$0xf0] }
 0x3fa   : > { %v12888_v12 = vpop.eup %12887  ;;  %v9715_v13 = vmul.f32 -1.442695, %v1970_v6  ;;  %v1961_v20 = vpop.f32.mrf.mxu3  ;;  %v9765_v14 = vor.u32 %v12159_v8, %v9764_v7 }
 0x3fb   : > { %v12890_v15 = vpop.eup %12889  ;;  %v14712_v16 = vadd.f32 1.0, %v12888_v12  ;;  %12891 = vpow2.f32 %v9714_v49  ;;  %v9716_v17 = vmul.f32 -1.442695, %v1971_v9  ;;  %v1969_v24 = vadd.f32 %v1961_v20, %v1712_v18 }
 0x3fc   : > { %v14715_v19 = vadd.f32 1.0, %v12890_v15  ;;  %12893 = vpow2.f32 %v9715_v13  ;;  %2354 = vmatpush.bf16.msrb.mxu2 %v9765_v14 }
 0x3fd   : > { %12895 = vrcp.f32 %v14712_v16  ;;  %v2007_v52 = vand.u32 2147483647, %v14712_v16  ;;  %v2009_v56 = vand.u32 2147483648, %v14712_v16  ;;  %vm2003_vm1 = vweird.f32 %v14712_v16 }
 0x3fe   : > { %12897 = vrcp.f32 %v14715_v19  ;;  %v1949_v25 = vpop.f32.mrf.mxu2  ;;  %v2024_v61 = vand.u32 2147483648, %v14715_v19  ;;  %v2022_v0 = vand.u32 2147483647, %v14715_v19  ;;  %vm2018_vm0 = vweird.f32 %v14715_v19 }
 0x3ff   : > { %12899 = vpow2.f32 %v9716_v17  ;;  %v1972_v29 = vadd.f32 %v1949_v25, %v1715_v21  ;;  %vm14779_vm2 = vcmp.eq.f32.partialorder %v2007_v52, 8.507059e+37  ;;  %v2010_v48 = vor.u32 1.1754944e-38, %v2009_v56  ;;  %v12152_v25 = vld [vmem:[%s20642_s4 + $0x24] sm:$0xf] }
 0x400   : > { %12901 = vtanh.f32 %v1969_v24  ;;  %v2025_v10 = vor.u32 1.1754944e-38, %v2024_v61  ;;  %vm14813_vm6 = vcmp.eq.f32.partialorder %v2022_v0, 8.507059e+37  ;;  %v12154_v24 = vld [vmem:[%s20642_s4 + $0x2c] sm:$0xf0]  ;;  %v12148_v52 = vld [vmem:[%s20642_s4 + $0x4] sm:$0xf]  ;;  %v9749_v0 = vor.u32 %v12155_v31, %v9748_v30 }
 0x401   : > { %v12892_v59 = vpop.eup %12891  ;;  %v9717_v34 = vmul.f32 -1.442695, %v1972_v29  ;;  %v9741_v56 = vor.u32 %v12154_v24, %v9740_v23  ;;  %v9729_v8 = vor.u32 %v12148_v52, %v9726_v53  ;;  %v12211_v52 = vld [vmem:[%s20642_s4 + $0xe4] sm:$0xf] }
 0x402   : > { %v12894_v44 = vpop.eup %12893  ;;  %v14753_v45 = vadd.f32 1.0, %v12892_v59  ;;  %v1963_v4 = vpop.f32.mrf.mxu3  ;;  %v9750_v59 = vld [vmem:[%s20642_s4 + $0x38] sm:$0xf0]  ;;  %2355 = vmatpush.bf16.msrb.mxu2 %v9749_v0  ;;  %v12212_v0 = vld [vmem:[%s20642_s4 + $0xec] sm:$0xf] }
 0x403   : > { %v14758_v50 = vpop.eup %12895  ;;  %v14760_v51 = vadd.f32 1.0, %v12894_v44  ;;  %12903 = vpow2.f32 %v9717_v34  ;;  %v1973_v11 = vadd.f32 %v1963_v4, %v1716_v3  ;;  %v12150_v44 = vld [vmem:[%s20642_s4 + $0xc] sm:$0xf0]  ;;  %v9753_v3 = vor.u32 %v12153_v58, %v9750_v59  ;;  %2327 = vmatpush.bf16.msrb.mxu0 %v9741_v56  ;;  %v9977_v56 = vld [vmem:[%s20642_s4 + $0xf0] sm:$0xf0] }
 0x404   : > { %v14763_v54 = vpop.eup %12897  ;;  %v1999_v55 = vmul.f32 %v14758_v50, %v14712_v16  ;;  %12905 = vrcp.f32 %v14753_v45  ;;  %vm2004_vm3 = vweird.f32 %v14758_v50  ;;  %v9766_v16 = vld [vmem:[%s20642_s4 + $0x58] sm:$0xf0]  ;;  %v9725_v7 = vor.u32 %v12150_v44, %v9724_v43  ;;  %v2116_v43 = vld [vmem:[%s14932_s28 + $0x8] sm:$0xff] }
 0x405   : > { %v12900_v57 = vpop.eup %12899  ;;  %v2014_v60 = vmul.f32 %v14763_v54, %v14715_v19  ;;  %12907 = vrcp.f32 %v14760_v51  ;;  %vm2019_vm4 = vweird.f32 %v14763_v54  ;;  %v2054_v13 = vand.u32 2147483648, %v14760_v51  ;;  %vm14808_vm5 = vmor %vm2003_vm1, %vm2004_vm3 }
 0x406   : > { %v2000_v62 = vsub.f32 1.0, %v1999_v55  ;;  %v14773_v63 = vadd.f32 1.0, %v12900_v57  ;;  %v12902_v41 = vpop.eup %12901  ;;  %vm2048_vm7 = vweird.f32 %v14760_v51  ;;  %vm2020_vm8 = vmor %vm2018_vm0, %vm2019_vm4  ;;  %v2052_v29 = vand.u32 2147483647, %v14760_v51 }
 0x407   : > { %v2015_v5 = vsub.f32 1.0, %v2014_v60  ;;  %v2055_v36 = vor.u32 1.1754944e-38, %v2054_v13  ;;  %v9769_v55 = vor.u32 %v12157_v22, %v9766_v16  ;;  %v9745_v57 = vor.u32 %v12152_v25, %v9742_v26  ;;  %v9732_v60 = vld [vmem:[%s20642_s4 + $0x8] sm:$0xf]  ;;  %2328 = vmatpush.bf16.msrb.mxu0 %v9725_v7 }
 0x408   : > { %12909 = vrcp.f32 %v14773_v63  ;;  %v2001_v42 = vmul.f32 %v14758_v50, %v2000_v62  ;;  %v2069_v32 = vand.u32 2147483648, %v14773_v63  ;;  %v2067_v6 = vand.u32 2147483647, %v14773_v63 }
 0x409   : > { %v12904_v49 = vpop.eup %12903  ;;  %v2016_v9 = vmul.f32 %v14763_v54, %v2015_v5  ;;  %2368 = vmatpush.bf16.msrb.mxu3 %v9769_v55  ;;  %2341 = vmatpush.bf16.msrb.mxu1 %v9745_v57  ;;  %vm2053_vm12 = vcmp.eq.f32.partialorder %v2052_v29, 8.507059e+37  ;;  %vm2063_vm13 = vweird.f32 %v14773_v63  ;;  %v2039_v16 = vand.u32 2147483648, %v14753_v45  ;;  %v9983_v57 = vld [vmem:[%s20642_s4 + $0xe8] sm:$0xf] }
 0x40a   : > { %v14794_v37 = vpop.eup %12905  ;;  %v2002_v38 = vadd.f32 %v14758_v50, %v2001_v42  ;;  %v14797_v12 = vadd.f32 1.0, %v12904_v49  ;;  %vm2068_vm15 = vcmp.eq.f32.partialorder %v2067_v6, 8.507059e+37  ;;  %vm2033_vm1 = vweird.f32 %v14753_v45  ;;  %v2117_v6 = vld [vmem:[%s14932_s28 + $0x10] sm:$0xff] }
 0x40b   : > { %v14800_v15 = vpop.eup %12907  ;;  %v14804_v17 = vmul.f32 %v14794_v37, %v14753_v45  ;;  %v2017_v20 = vadd.f32 %v14763_v54, %v2016_v9  ;;  %v12149_v9 = vld [vmem:[%s20642_s4 + $0xc] sm:$0xf]  ;;  %vm2034_vm0 = vweird.f32 %v14794_v37  ;;  %v2037_v24 = vand.u32 2147483647, %v14753_v45 }
 0x40c   : > { %v2044_v27 = vmul.f32 %v14800_v15, %v14760_v51  ;;  %v2006_v28 = vsel %vm14808_vm5, %v14758_v50, %v2002_v38  ;;  %12911 = vrcp.f32 %v14797_v12  ;;  %vm2049_vm9 = vweird.f32 %v14800_v15 }
 0x40d   : > { %v2011_v33 = vsel %vm14779_vm2, %v2010_v48, %v2006_v28  ;;  %v2021_v19 = vsel %vm2020_vm8, %v14763_v54, %v2017_v20  ;;  %12913 = vtanh.f32 %v1973_v11  ;;  %v2030_v46 = vsub.f32 1.0, %v14804_v17  ;;  %vm2050_vm10 = vmor %vm2048_vm7, %vm2049_vm9  ;;  %2369 = vmatpush.bf16.msrb.mxu3 %v9753_v3  ;;  %2342 = vmatpush.bf16.msrb.mxu1 %v9729_v8  ;;  %v9985_v3 = vld [vmem:[%s20642_s4 + $0xf8] sm:$0xf0]  ;;  %v2119_v8 = vld [vmem:[%s14932_s28 + $0x20] sm:$0xff] }
 0x40e   : > { %v12910_v34 = vpop.eup %12909  ;;  %v2045_v35 = vsub.f32 1.0, %v2044_v27  ;;  %v2026_v1 = vsel %vm14813_vm6, %v2025_v10, %v2021_v19  ;;  %v2092_v2 = vmul.f32 %v12902_v41, %v2011_v33  ;;  %v9734_v10 = vld [vmem:[%s20642_s4 + $0x18] sm:$0xf0]  ;;  %v2070_v17 = vor.u32 1.1754944e-38, %v2069_v32  ;;  %vm2035_vm2 = vmor %vm2033_vm1, %vm2034_vm0 }
 0x40f   : > { %v2059_v47 = vmul.f32 %v12910_v34, %v14773_v63  ;;  %v2090_v50 = vmul.f32 %v13426_v39, %v2026_v1  ;;  %v12151_v39 = vld [vmem:[%s20642_s4 + $0x14] sm:$0xf0]  ;;  %vm2064_vm11 = vweird.f32 %v12910_v34  ;;  %v2031_v11 = vmul.f32 %v14794_v37, %v2030_v46 }
 0x410   : > { %v2046_v54 = vmul.f32 %v14800_v15, %v2045_v35  ;;  %v9733_v49 = vor.u32 %v12151_v39, %v9732_v60  ;;  %vm2065_vm14 = vmor %vm2063_vm13, %vm2064_vm11  ;;  %v9737_v18 = vor.u32 %v12149_v9, %v9734_v10  ;;  %v2040_v29 = vor.u32 1.1754944e-38, %v2039_v16  ;;  %v12214_v60 = vld [vmem:[%s20642_s4 + $0xf4] sm:$0xf0]  ;;  %v9961_v9 = vld [vmem:[%s20642_s4 + $0xd0] sm:$0xf0] }
 0x411   : > { %v2060_v61 = vsub.f32 1.0, %v2059_v47  ;;  %v14888_v62 = vadd.f32 %v2092_v2, %v2090_v50  ;;  %v2032_v22 = vadd.f32 %v14794_v37, %v2031_v11  ;;  %vm2078_vm4 = vweird.f32 %v14797_v12  ;;  %v9975_v47 = vld [vmem:[%s20642_s4 + $0xe0] sm:$0xf]  ;;  %v12213_v50 = vld [vmem:[%s20642_s4 + $0xec] sm:$0xf0] }
 0x412   : > { %v14890_v4 = vpop.eup %12911  ;;  %v2047_v5 = vadd.f32 %v14800_v15, %v2046_v54  ;;  %2356 = vmatpush.bf16.msrb.mxu2 %v9733_v49  ;;  %2370 = vmatpush.bf16.msrb.mxu3 %v9737_v18  ;;  %vm2038_vm5 = vcmp.eq.f32.partialorder %v2037_v24, 8.507059e+37  ;;  %v2082_v45 = vand.u32 2147483647, %v14797_v12  ;;  %v9976_v55 = vor.u32 %v12213_v50, %v9975_v47  ;;  %v9967_v10 = vld [vmem:[%s20642_s4 + $0xc8] sm:$0xf] }
 0x413   : > { %v12914_v41 = vpop.eup %12913  ;;  %v2061_v42 = vmul.f32 %v12910_v34, %v2060_v61  ;;  %v2074_v48 = vmul.f32 %v14890_v4, %v14797_v12  ;;  %12915 = vtanh.f32 %v14888_v62  ;;  %v2036_v26 = vsel %vm2035_vm2, %v14794_v37, %v2032_v22  ;;  %v12210_v11 = vld [vmem:[%s20642_s4 + $0xd4] sm:$0xf0]  ;;  %v9943_v22 = vld [vmem:[%s20642_s4 + $0xa0] sm:$0xf]  ;;  %v12205_v16 = vld [vmem:[%s20642_s4 + $0xac] sm:$0xf0] }
 0x414   : > { %v2051_v38 = vsel %vm2050_vm10, %v14800_v15, %v2047_v5  ;;  %vm2079_vm3 = vweird.f32 %v14890_v4  ;;  %v2041_v30 = vsel %vm2038_vm5, %v2040_v29, %v2036_v26  ;;  %vm2083_vm7 = vcmp.eq.f32.partialorder %v2082_v45, 8.507059e+37  ;;  %2734 = vmatpush.bf16.msra.mxu0 %v9976_v55  ;;  %v9951_v29 = vld [vmem:[%s20642_s4 + $0xa8] sm:$0xf]  ;;  %v9929_v47 = vld [vmem:[%s20642_s4 + $0x90] sm:$0xf0] }
 0x415   : > { %v2075_v51 = vsub.f32 1.0, %v2074_v48  ;;  %v2056_v13 = vsel %vm2053_vm12, %v2055_v36, %v2051_v38  ;;  %v2062_v14 = vadd.f32 %v12910_v34, %v2061_v42  ;;  %vm2080_vm6 = vmor %vm2078_vm4, %vm2079_vm3  ;;  %v2115_v36 = vld [vmem:[%s14932_s28] sm:$0xff]  ;;  %v9980_v39 = vor.u32 %v12211_v52, %v9977_v56  ;;  %v12209_v42 = vld [vmem:[%s20642_s4 + $0xcc] sm:$0xf0] }
 0x416   : > { %v2093_v21 = vmul.f32 %v12914_v41, %v2056_v13  ;;  %v9984_v61 = vor.u32 %v12214_v60, %v9983_v57  ;;  %v9988_v7 = vor.u32 %v12212_v0, %v9985_v3  ;;  %v9959_v41 = vld [vmem:[%s20642_s4 + $0xc0] sm:$0xf]  ;;  %v12207_v48 = vld [vmem:[%s20642_s4 + $0xc4] sm:$0xf]  ;;  %v2120_v38 = vld [vmem:[%s14932_s28 + $0x28] sm:$0xff]  ;;  %v9968_v13 = vor.u32 %v12210_v11, %v9967_v10 }
 0x417   : > { %v2066_v20 = vsel %vm2065_vm14, %v12910_v34, %v2062_v14  ;;  %v2076_v63 = vmul.f32 %v14890_v4, %v2075_v51  ;;  %2748 = vmatpush.bf16.msra.mxu1 %v9980_v39  ;;  %v9960_v49 = vor.u32 %v12209_v42, %v9959_v41  ;;  %v9964_v51 = vor.u32 %v12207_v48, %v9961_v9  ;;  %v12208_v14 = vld [vmem:[%s20642_s4 + $0xcc] sm:$0xf]  ;;  %v9935_v52 = vld [vmem:[%s20642_s4 + $0x88] sm:$0xf]  ;;  %v9937_v57 = vld [vmem:[%s20642_s4 + $0x98] sm:$0xf0] }
 0x418   : > { %v2071_v15 = vsel %vm2068_vm15, %v2070_v17, %v2066_v20  ;;  %2762 = vmatpush.bf16.msra.mxu2 %v9984_v61  ;;  %2776 = vmatpush.bf16.msra.mxu3 %v9988_v7  ;;  %v9969_v17 = vld [vmem:[%s20642_s4 + $0xd8] sm:$0xf0]  ;;  %v12200_v56 = vld [vmem:[%s20642_s4 + $0x8c] sm:$0xf]  ;;  %v9911_v61 = vld [vmem:[%s20642_s4 + $0x60] sm:$0xf] }
 0x419   : > { %v2091_v23 = vmul.f32 %v13422_v40, %v2071_v15  ;;  %v2077_v27 = vadd.f32 %v14890_v4, %v2076_v63  ;;  %v12916_v28 = vpop.eup %12915  ;;  %v2084_v40 = vand.u32 2147483648, %v14797_v12  ;;  %2735 = vmatpush.bf16.msra.mxu0 %v9960_v49  ;;  %v9972_v20 = vor.u32 %v12208_v14, %v9969_v17  ;;  %v12197_v0 = vld [vmem:[%s20642_s4 + $0x6c] sm:$0xf0]  ;;  %v9913_v41 = vld [vmem:[%s20642_s4 + $0x70] sm:$0xf0] }
 0x41a   : > { %v2098_v31 = vmul.f32 %v12916_v28, %v2041_v30  ;;  %v9945_v28 = vld [vmem:[%s20642_s4 + $0xb0] sm:$0xf0]  ;;  %v9912_v7 = vor.u32 %v12197_v0, %v9911_v61  ;;  %v9919_v10 = vld [vmem:[%s20642_s4 + $0x68] sm:$0xf]  ;;  %v12198_v11 = vld [vmem:[%s20642_s4 + $0x74] sm:$0xf0] }
 0x41b   : > { %v14917_v25 = vadd.f32 %v2093_v21, %v2091_v23  ;;  %v2081_v37 = vsel %vm2080_vm6, %v14890_v4, %v2077_v27  ;;  %v2085_v32 = vor.u32 1.1754944e-38, %v2084_v40  ;;  %2749 = vmatpush.bf16.msra.mxu1 %v9964_v51  ;;  %v12203_v23 = vld [vmem:[%s20642_s4 + $0xa4] sm:$0xf]  ;;  %v9944_v27 = vor.u32 %v12205_v16, %v9943_v22  ;;  %v12206_v40 = vld [vmem:[%s20642_s4 + $0xb4] sm:$0xf0] }
 0x41c   : > { %v2101_v59 = vpack.c.bf16 %v2098_v31, %v2098_v31  ;;  %2763 = vmatpush.bf16.msra.mxu2 %v9968_v13  ;;  %2777 = vmatpush.bf16.msra.mxu3 %v9972_v20  ;;  %v9948_v30 = vor.u32 %v12203_v23, %v9945_v28  ;;  %v9920_v14 = vor.u32 %v12198_v11, %v9919_v10  ;;  %v9905_v0 = vld [vmem:[%s20642_s4 + $0x58] sm:$0xf0]  ;;  %v9887_v11 = vld [vmem:[%s20642_s4 + $0x28] sm:$0xf] }
 0x41d   : > { %12917 = vtanh.f32 %v14917_v25  ;;  %v2086_v19 = vsel %vm2083_vm7, %v2085_v32, %v2081_v37  ;;  %v9952_v37 = vor.u32 %v12206_v40, %v9951_v29  ;;  %v9953_v32 = vld [vmem:[%s20642_s4 + $0xb8] sm:$0xf0]  ;;  %2736 = vmatpush.bf16.msra.mxu0 %v9944_v27 }
 0x41e   : > { %v2157_v1 = vunpack.c.l.b16 %v2101_v59  ;;  %v2122_v27 = vld [vmem:[%s14932_s28 + $0x38] sm:$0xff] }
 0x41f   : > { %2750 = vmatpush.bf16.msra.mxu1 %v9948_v30  ;;  %v9895_v30 = vld [vmem:[%s20642_s4 + $0x40] sm:$0xf] }
 0x420   : > { %2764 = vmatpush.bf16.msra.mxu2 %v9952_v37  ;;  %v12193_v37 = vld [vmem:[%s20642_s4 + $0x4c] sm:$0xf0] }
 0x423   : > { %v12918_v33 = vpop.eup %12917 }
 0x424   : > { %v2099_v58 = vmul.f32 %v12918_v33, %v2086_v19 }
 0x426   : > { %v2102_v34 = vpack.c.bf16 %v2099_v58, %v2099_v58  ;;  %v12731_v35 = vpack.c.bf16 %v2099_v58, %v2098_v31  ;;  %v12204_v31 = vld [vmem:[%s20642_s4 + $0xac] sm:$0xf] }
 0x427   : > { %v9956_v59 = vor.u32 %v12204_v31, %v9953_v32 }
 0x428   : > { %12732 = vst [vmem:[%s2106_s30] sm:$0xff] %v12731_v35   ;;  %v2158_v12 = vunpack.c.l.b16 %v2102_v34 }
 0x429   : > { %2778 = vmatpush.bf16.msra.mxu3 %v9956_v59 }
 0x42a   : > { %v2159_v2 = vpack.c.b16 %v2158_v12, %v2157_v1  ;;  %v9927_v1 = vld [vmem:[%s20642_s4 + $0x80] sm:$0xf]  ;;  %v12201_v12 = vld [vmem:[%s20642_s4 + $0x8c] sm:$0xf0] }
 0x42c   : > { %2329 = vmatmul.bf16.vlgmr.msrb.gmra.mxu0 %v2159_v2  ;;  %2343 = vmatmul.bf16.vlgmr.msrb.gmra.mxu1 %v2159_v2 }
 0x42d   : > { %2357 = vmatmul.bf16.vlgmr.msrb.gmra.mxu2 %v2159_v2  ;;  %2371 = vmatmul.bf16.vlgmr.msrb.gmra.mxu3 %v2159_v2 }
 0x4a9   : > { %v2330_v44 = vpop.f32.mrf.mxu0  ;;  %v2344_v46 = vpop.f32.mrf.mxu1 }
 0x4aa   : > { %v2377_v53 = vadd.f32 %v2330_v44, %v2115_v36  ;;  %v2378_v54 = vadd.f32 %v2344_v46, %v2116_v43  ;;  %v2121_v43 = vld [vmem:[%s14932_s28 + $0x30] sm:$0xff]  ;;  %v9928_v44 = vor.u32 %v12201_v12, %v9927_v1  ;;  %v12199_v46 = vld [vmem:[%s20642_s4 + $0x84] sm:$0xf] }
 0x4ab   : > { %v9932_v39 = vor.u32 %v12199_v46, %v9929_v47  ;;  %v12184_v47 = vld [vmem:[%s20642_s4 + $0xc] sm:$0xf] }
 0x4ac   : > { %v9850_v4 = vmul.f32 -1.442695, %v2377_v53  ;;  %v9851_v5 = vmul.f32 -1.442695, %v2378_v54  ;;  %2737 = vmatpush.bf16.msra.mxu0 %v9928_v44  ;;  %v12202_v53 = vld [vmem:[%s20642_s4 + $0x94] sm:$0xf0] }
 0x4ad   : > { %v2118_v54 = vld [vmem:[%s14932_s28 + $0x18] sm:$0xff]  ;;  %2751 = vmatpush.bf16.msra.mxu1 %v9932_v39  ;;  %s15277_s28 = scalar_lea.vmem [#allocation2], %s12182_s19  ;;  %s2934_s19 = sadd.s32 48, %s14606_s16 }
 0x4ae   : > { %12919 = vpow2.f32 %v9850_v4  ;;  %s2935_s20 = sshra.s32 %s2934_s19, 3 }
 0x4af   : > { %12921 = vpow2.f32 %v9851_v5  ;;  %v9936_v5 = vor.u32 %v12202_v53, %v9935_v52  ;;  %v9897_v53 = vld [vmem:[%s20642_s4 + $0x50] sm:$0xf0]  ;;  %s12217_s21 = sshll.u32 %s2935_s20, 5 }
 0x4b0   : > { %v2358_v18 = vpop.f32.mrf.mxu2  ;;  %v2372_v36 = vpop.f32.mrf.mxu3  ;;  %2738 = vmatpush.bf16.msra.mxu0 %v9912_v7  ;;  %v12187_v7 = vld [vmem:[%s20642_s4 + $0x24] sm:$0xf]  ;;  %s15646_s22 = scalar_lea.vmem [#allocation2], %s12217_s21 }
 0x4b1   : > { %v2379_v21 = vadd.f32 %v2358_v18, %v2117_v6  ;;  %v2332_v63 = vpop.f32.mrf.mxu0  ;;  %v2346_v15 = vpop.f32.mrf.mxu1  ;;  %v9940_v6 = vor.u32 %v12200_v56, %v9937_v57  ;;  %v2380_v49 = vadd.f32 %v2372_v36, %v2118_v54  ;;  %2765 = vmatpush.bf16.msra.mxu2 %v9936_v5  ;;  %v12194_v54 = vld [vmem:[%s20642_s4 + $0x54] sm:$0xf0] }
 0x4b2   : > { %v2381_v24 = vadd.f32 %v2332_v63, %v2119_v8  ;;  %v2382_v26 = vadd.f32 %v2346_v15, %v2120_v38  ;;  %v12195_v8 = vld [vmem:[%s20642_s4 + $0x64] sm:$0xf]  ;;  %v9921_v63 = vld [vmem:[%s20642_s4 + $0x78] sm:$0xf0] }
 0x4b3   : > { %v9852_v45 = vmul.f32 -1.442695, %v2379_v21  ;;  %v9916_v9 = vor.u32 %v12195_v8, %v9913_v41  ;;  %2779 = vmatpush.bf16.msra.mxu3 %v9940_v6  ;;  %v12196_v21 = vld [vmem:[%s20642_s4 + $0x6c] sm:$0xf]  ;;  %v12189_v6 = vld [vmem:[%s20642_s4 + $0x2c] sm:$0xf0] }
 0x4b4   : > { %v12920_v33 = vpop.eup %12919  ;;  %v9853_v19 = vmul.f32 -1.442695, %v2381_v24  ;;  %v9854_v58 = vmul.f32 -1.442695, %v2382_v26  ;;  %v9881_v8 = vld [vmem:[%s20642_s4 + $0x30] sm:$0xf0] }
 0x4b5   : > { %v12922_v34 = vpop.eup %12921  ;;  %v15011_v35 = vadd.f32 1.0, %v12920_v33  ;;  %12923 = vpow2.f32 %v9852_v45  ;;  %2752 = vmatpush.bf16.msra.mxu1 %v9916_v9  ;;  %2766 = vmatpush.bf16.msra.mxu2 %v9920_v14  ;;  %v9924_v45 = vor.u32 %v12196_v21, %v9921_v63 }
 0x4b6   : > { %v15019_v2 = vadd.f32 1.0, %v12922_v34  ;;  %12925 = vpow2.f32 %v9853_v19 }
 0x4b7   : > { %12927 = vrcp.f32 %v15011_v35  ;;  %v2418_v60 = vand.u32 2147483647, %v15011_v35  ;;  %v2420_v51 = vand.u32 2147483648, %v15011_v35  ;;  %vm2414_vm9 = vweird.f32 %v15011_v35  ;;  %2780 = vmatpush.bf16.msra.mxu3 %v9924_v45 }
 0x4b8   : > { %12929 = vrcp.f32 %v15019_v2  ;;  %v2360_v50 = vpop.f32.mrf.mxu2  ;;  %v2435_v20 = vand.u32 2147483648, %v15019_v2  ;;  %v2433_v16 = vand.u32 2147483647, %v15019_v2  ;;  %v2374_v28 = vpop.f32.mrf.mxu3  ;;  %vm2429_vm13 = vweird.f32 %v15019_v2 }
 0x4b9   : > { %12931 = vpow2.f32 %v9854_v58  ;;  %v2383_v55 = vadd.f32 %v2360_v50, %v2121_v43  ;;  %vm15085_vm8 = vcmp.eq.f32.partialorder %v2418_v60, 8.507059e+37  ;;  %v2421_v40 = vor.u32 1.1754944e-38, %v2420_v51 }
 0x4ba   : > { %v2436_v31 = vor.u32 1.1754944e-38, %v2435_v20  ;;  %vm15104_vm12 = vcmp.eq.f32.partialorder %v2433_v16, 8.507059e+37  ;;  %v2384_v59 = vadd.f32 %v2374_v28, %v2122_v27  ;;  %v9896_v43 = vor.u32 %v12193_v37, %v9895_v30  ;;  %v9889_v20 = vld [vmem:[%s20642_s4 + $0x38] sm:$0xf0]  ;;  %v12185_v16 = vld [vmem:[%s20642_s4 + $0xc] sm:$0xf0] }
 0x4bb   : > { %v12924_v3 = vpop.eup %12923  ;;  %v9855_v4 = vmul.f32 -1.442695, %v2383_v55  ;;  %v12192_v55 = vld [vmem:[%s20642_s4 + $0x4c] sm:$0xf]  ;;  %v9884_v28 = vor.u32 %v12187_v7, %v9881_v8 }
 0x4bc   : > { %v12926_v42 = vpop.eup %12925  ;;  %v15056_v48 = vadd.f32 1.0, %v12924_v3  ;;  %2739 = vmatpush.bf16.msra.mxu0 %v9896_v43  ;;  %v9879_v3 = vld [vmem:[%s20642_s4 + $0x20] sm:$0xf] }
 0x4bd   : > { %v15064_v38 = vpop.eup %12927  ;;  %v15067_v13 = vadd.f32 1.0, %v12926_v42  ;;  %12933 = vpow2.f32 %v9855_v4  ;;  %v9880_v27 = vor.u32 %v12189_v6, %v9879_v3 }
 0x4be   : > { %v15069_v17 = vpop.eup %12929  ;;  %v2410_v18 = vmul.f32 %v15064_v38, %v15011_v35  ;;  %12935 = vrcp.f32 %v15056_v48  ;;  %vm2415_vm10 = vweird.f32 %v15064_v38  ;;  %v9903_v35 = vld [vmem:[%s20642_s4 + $0x48] sm:$0xf]  ;;  %v2448_v3 = vand.u32 2147483647, %v15056_v48 }
 0x4bf   : > { %v12932_v15 = vpop.eup %12931  ;;  %v2425_v22 = vmul.f32 %v15069_v17, %v15019_v2  ;;  %12937 = vrcp.f32 %v15067_v13  ;;  %vm2430_vm11 = vweird.f32 %v15069_v17  ;;  %v2465_v36 = vand.u32 2147483648, %v15067_v13  ;;  %vm15125_vm14 = vmor %vm2414_vm9, %vm2415_vm10  ;;  %v12191_v2 = vld [vmem:[%s20642_s4 + $0x44] sm:$0xf] }
 0x4c0   : > { %v2411_v23 = vsub.f32 1.0, %v2410_v18  ;;  %12939 = vtanh.f32 %v2380_v49  ;;  %v15089_v26 = vadd.f32 1.0, %v12932_v15  ;;  %v2463_v52 = vand.u32 2147483647, %v15067_v13  ;;  %vm15148_vm15 = vmor %vm2429_vm13, %vm2430_vm11  ;;  %v12188_v18 = vld [vmem:[%s20642_s4 + $0x2c] sm:$0xf]  ;;  %2740 = vmatpush.bf16.msra.mxu0 %v9880_v27 }
 0x4c1   : > { %v2426_v29 = vsub.f32 1.0, %v2425_v22  ;;  %vm2459_vm0 = vweird.f32 %v15067_v13  ;;  %v2466_v10 = vor.u32 1.1754944e-38, %v2465_v36  ;;  %v9900_v63 = vor.u32 %v12191_v2, %v9897_v53  ;;  %v12186_v36 = vld [vmem:[%s20642_s4 + $0x14] sm:$0xf0]  ;;  %v2530_v27 = vld [vmem:[%s15277_s28 + $0x10] sm:$0xff] }
 0x4c2   : > { %v2412_v32 = vmul.f32 %v15064_v38, %v2411_v23  ;;  %12941 = vrcp.f32 %v15089_v26  ;;  %v2480_v61 = vand.u32 2147483648, %v15089_v26  ;;  %v9904_v15 = vor.u32 %v12194_v54, %v9903_v35 }
 0x4c3   : > { %v12934_v33 = vpop.eup %12933  ;;  %v2427_v19 = vmul.f32 %v15069_v17, %v2426_v29  ;;  %v9908_v22 = vor.u32 %v12192_v55, %v9905_v0  ;;  %v2478_v45 = vand.u32 2147483647, %v15089_v26  ;;  %2753 = vmatpush.bf16.msra.mxu1 %v9900_v63  ;;  %v9892_v37 = vor.u32 %v12188_v18, %v9889_v20  ;;  %v2528_v20 = vld [vmem:[%s15277_s28] sm:$0xff] }
 0x4c4   : > { %v15108_v34 = vpop.eup %12935  ;;  %v2413_v1 = vadd.f32 %v15064_v38, %v2412_v32  ;;  %v15111_v12 = vadd.f32 1.0, %v12934_v33  ;;  %2767 = vmatpush.bf16.msra.mxu2 %v9904_v15  ;;  %v9865_v32 = vld [vmem:[%s20642_s4 + $0x10] sm:$0xf0]  ;;  %vm2464_vm4 = vcmp.eq.f32.partialorder %v2463_v52, 8.507059e+37  ;;  %vm2474_vm5 = vweird.f32 %v15089_v26 }
 0x4c5   : > { %v15114_v44 = vpop.eup %12937  ;;  %v15119_v46 = vmul.f32 %v15108_v34, %v15056_v48  ;;  %v2428_v50 = vadd.f32 %v15069_v17, %v2427_v19  ;;  %2781 = vmatpush.bf16.msra.mxu3 %v9908_v22  ;;  %vm2479_vm7 = vcmp.eq.f32.partialorder %v2478_v45, 8.507059e+37  ;;  %vm2444_vm9 = vweird.f32 %v15056_v48  ;;  %v12248_v45 = vld [vmem:[%s20642_s4 + $0xec] sm:$0xf0] }
 0x4c6   : > { %v12940_v56 = vpop.eup %12939  ;;  %v2417_v60 = vsel %vm15125_vm14, %v15064_v38, %v2413_v1  ;;  %v2455_v39 = vmul.f32 %v15114_v44, %v15067_v13  ;;  %12943 = vrcp.f32 %v15111_v12  ;;  %v12190_v38 = vld [vmem:[%s20642_s4 + $0x34] sm:$0xf0]  ;;  %vm2460_vm1 = vweird.f32 %v15114_v44  ;;  %v9871_v1 = vld [vmem:[%s20642_s4 + $0x8] sm:$0xf] }
 0x4c7   : > { %v2422_v4 = vsel %vm15085_vm8, %v2421_v40, %v2417_v60  ;;  %v2432_v5 = vsel %vm15148_vm15, %v15069_v17, %v2428_v50  ;;  %12945 = vtanh.f32 %v2384_v59  ;;  %v2441_v51 = vsub.f32 1.0, %v15119_v46  ;;  %vm2461_vm3 = vmor %vm2459_vm0, %vm2460_vm1  ;;  %v9873_v50 = vld [vmem:[%s20642_s4 + $0x18] sm:$0xf0]  ;;  %2754 = vmatpush.bf16.msra.mxu1 %v9884_v28  ;;  %v2532_v28 = vld [vmem:[%s15277_s28 + $0x20] sm:$0xff] }
 0x4c8   : > { %v15180_v41 = vpop.eup %12941  ;;  %v2437_v42 = vsel %vm15104_vm12, %v2436_v31, %v2432_v5  ;;  %v2503_v49 = vmul.f32 %v12940_v56, %v2422_v4  ;;  %v2456_v9 = vsub.f32 1.0, %v2455_v39  ;;  %v9888_v30 = vor.u32 %v12190_v38, %v9887_v11  ;;  %v12183_v31 = vld [vmem:[%s20642_s4 + $0x4] sm:$0xf] }
 0x4c9   : > { %v2501_v14 = vmul.f32 %v2437_v42, %v14888_v62  ;;  %v2470_v17 = vmul.f32 %v15180_v41, %v15089_v26  ;;  %v9863_v62 = vld [vmem:[%s20642_s4] sm:$0xf]  ;;  %vm2475_vm2 = vweird.f32 %v15180_v41  ;;  %v2442_v43 = vmul.f32 %v15108_v34, %v2441_v51  ;;  %2782 = vmatpush.bf16.msra.mxu3 %v9892_v37 }
 0x4ca   : > { %v2457_v21 = vmul.f32 %v15114_v44, %v2456_v9  ;;  %v9864_v59 = vor.u32 %v12185_v16, %v9863_v62  ;;  %vm15248_vm6 = vmor %vm2474_vm5, %vm2475_vm2  ;;  %v2481_v13 = vor.u32 1.1754944e-38, %v2480_v61  ;;  %2768 = vmatpush.bf16.msra.mxu2 %v9888_v30  ;;  %v9868_v52 = vor.u32 %v12183_v31, %v9865_v32  ;;  %v12246_v30 = vld [vmem:[%s20642_s4 + $0xe4] sm:$0xf]  ;;  %v10115_v32 = vld [vmem:[%s20642_s4 + $0xf0] sm:$0xf0] }
 0x4cb   : > { %v15208_v23 = vadd.f32 %v2503_v49, %v2501_v14  ;;  %v2471_v24 = vsub.f32 1.0, %v2470_v17  ;;  %v9872_v54 = vor.u32 %v12186_v36, %v9871_v1  ;;  %v9876_v57 = vor.u32 %v12184_v47, %v9873_v50  ;;  %v10123_v47 = vld [vmem:[%s20642_s4 + $0xf8] sm:$0xf0] }
 0x4cc   : > { %v15210_v29 = vpop.eup %12943  ;;  %v2458_v40 = vadd.f32 %v15114_v44, %v2457_v21  ;;  %2741 = vmatpush.bf16.msra.mxu0 %v9864_v59  ;;  %vm2445_vm8 = vweird.f32 %v15108_v34  ;;  %v2443_v39 = vadd.f32 %v15108_v34, %v2442_v43  ;;  %v2450_v61 = vand.u32 2147483648, %v15056_v48  ;;  %2755 = vmatpush.bf16.msra.mxu1 %v9868_v52  ;;  %v2529_v21 = vld [vmem:[%s15277_s28 + $0x8] sm:$0xff] }
 0x4cd   : > { %v12946_v33 = vpop.eup %12945  ;;  %v2472_v19 = vmul.f32 %v15180_v41, %v2471_v24  ;;  %v2485_v58 = vmul.f32 %v15210_v29, %v15111_v12  ;;  %12947 = vtanh.f32 %v15208_v23  ;;  %vm2446_vm10 = vmor %vm2444_vm9, %vm2445_vm8  ;;  %2783 = vmatpush.bf16.msra.mxu3 %v9876_v57  ;;  %vm2490_vm11 = vweird.f32 %v15210_v29  ;;  %v12242_v57 = vld [vmem:[%s20642_s4 + $0xc4] sm:$0xf] }
 0x4ce   : > { %v2462_v46 = vsel %vm2461_vm3, %v15114_v44, %v2458_v40  ;;  %2769 = vmatpush.bf16.msra.mxu2 %v9872_v54  ;;  %v2447_v5 = vsel %vm2446_vm10, %v15108_v34, %v2443_v39  ;;  %v2451_v8 = vor.u32 1.1754944e-38, %v2450_v61  ;;  %vm2489_vm12 = vweird.f32 %v15111_v12  ;;  %v10113_v40 = vld [vmem:[%s20642_s4 + $0xe0] sm:$0xf]  ;;  %v2531_v39 = vld [vmem:[%s15277_s28 + $0x18] sm:$0xff] }
 0x4cf   : > { %v2486_v2 = vsub.f32 1.0, %v2485_v58  ;;  %v2467_v53 = vsel %vm2464_vm4, %v2466_v10, %v2462_v46  ;;  %v2473_v35 = vadd.f32 %v15180_v41, %v2472_v19  ;;  %vm2449_vm13 = vcmp.eq.f32.partialorder %v2448_v3, 8.507059e+37  ;;  %vm2491_vm14 = vmor %vm2489_vm12, %vm2490_vm11  ;;  %v12249_v19 = vld [vmem:[%s20642_s4 + $0xf4] sm:$0xf0]  ;;  %v12247_v46 = vld [vmem:[%s20642_s4 + $0xec] sm:$0xf] }
 0x4d0   : > { %v2504_v56 = vmul.f32 %v12946_v33, %v2467_v53  ;;  %v2493_v48 = vand.u32 2147483647, %v15111_v12  ;;  %v10114_v31 = vor.u32 %v12248_v45, %v10113_v40  ;;  %v10121_v33 = vld [vmem:[%s20642_s4 + $0xe8] sm:$0xf]  ;;  %v10118_v36 = vor.u32 %v12246_v30, %v10115_v32  ;;  %v10097_v44 = vld [vmem:[%s20642_s4 + $0xc0] sm:$0xf] }
 0x4d1   : > { %v2477_v55 = vsel %vm15248_vm6, %v15180_v41, %v2473_v35  ;;  %v2487_v26 = vmul.f32 %v15210_v29, %v2486_v2  ;;  %v2452_v41 = vsel %vm2449_vm13, %v2451_v8, %v2447_v5  ;;  %v10122_v43 = vor.u32 %v12249_v19, %v10121_v33  ;;  %v2534_v5 = vld [vmem:[%s15277_s28 + $0x30] sm:$0xff]  ;;  %v12245_v8 = vld [vmem:[%s20642_s4 + $0xd4] sm:$0xf0]  ;;  %v10065_v32 = vld [vmem:[%s20642_s4 + $0x80] sm:$0xf] }
 0x4d2   : > { %v2482_v60 = vsel %vm2479_vm7, %v2481_v13, %v2477_v55  ;;  %vm2494_vm15 = vcmp.eq.f32.partialorder %v2493_v48, 8.507059e+37  ;;  %3146 = vmatpush.bf16.msrb.mxu0 %v10114_v31  ;;  %v10126_v53 = vor.u32 %v12247_v46, %v10123_v47  ;;  %3160 = vmatpush.bf16.msrb.mxu1 %v10118_v36  ;;  %v12244_v13 = vld [vmem:[%s20642_s4 + $0xcc] sm:$0xf0] }
 0x4d3   : > { %v2502_v0 = vmul.f32 %v2482_v60, %v14917_v25  ;;  %v2488_v6 = vadd.f32 %v15210_v29, %v2487_v26  ;;  %v12948_v7 = vpop.eup %12947  ;;  %v2495_v25 = vand.u32 2147483648, %v15111_v12  ;;  %3174 = vmatpush.bf16.msrb.mxu2 %v10122_v43  ;;  %v12236_v33 = vld [vmem:[%s20642_s4 + $0x8c] sm:$0xf0] }
 0x4d4   : > { %v2509_v42 = vmul.f32 %v12948_v7, %v2452_v41  ;;  %3188 = vmatpush.bf16.msrb.mxu3 %v10126_v53  ;;  %v10105_v7 = vld [vmem:[%s20642_s4 + $0xc8] sm:$0xf]  ;;  %v12243_v41 = vld [vmem:[%s20642_s4 + $0xcc] sm:$0xf]  ;;  %v12234_v53 = vld [vmem:[%s20642_s4 + $0x84] sm:$0xf] }
 0x4d5   : > { %v15265_v4 = vadd.f32 %v2504_v56, %v2502_v0  ;;  %v2492_v34 = vsel %vm2491_vm14, %v15210_v29, %v2488_v6  ;;  %v2496_v49 = vor.u32 1.1754944e-38, %v2495_v25  ;;  %v2533_v29 = vld [vmem:[%s15277_s28 + $0x28] sm:$0xff]  ;;  %v10098_v56 = vor.u32 %v12244_v13, %v10097_v44  ;;  %v10099_v0 = vld [vmem:[%s20642_s4 + $0xd0] sm:$0xf0] }
 0x4d6   : > { %v2514_v38 = vpack.c.bf16 %v2509_v42, %v2509_v42  ;;  %v10102_v6 = vor.u32 %v12242_v57, %v10099_v0 }
 0x4d7   : > { %12949 = vtanh.f32 %v15265_v4  ;;  %v2497_v10 = vsel %vm2494_vm15, %v2496_v49, %v2492_v34  ;;  %3147 = vmatpush.bf16.msrb.mxu0 %v10098_v56  ;;  %v10107_v34 = vld [vmem:[%s20642_s4 + $0xd8] sm:$0xf0] }
 0x4d8   : > { %v2570_v17 = vunpack.c.l.b16 %v2514_v38  ;;  %3161 = vmatpush.bf16.msrb.mxu1 %v10102_v6  ;;  %v10083_v38 = vld [vmem:[%s20642_s4 + $0xb0] sm:$0xf0] }
 0x4dd   : > { %v12950_v9 = vpop.eup %12949 }
 0x4de   : > { %v2510_v11 = vmul.f32 %v12950_v9, %v2497_v10  ;;  %v12240_v9 = vld [vmem:[%s20642_s4 + $0xac] sm:$0xf0]  ;;  %v12238_v10 = vld [vmem:[%s20642_s4 + $0xa4] sm:$0xf] }
 0x4e0   : > { %v2515_v51 = vpack.c.bf16 %v2510_v11, %v2510_v11  ;;  %v12736_v14 = vpack.c.bf16 %v2510_v11, %v2509_v42  ;;  %v10081_v42 = vld [vmem:[%s20642_s4 + $0xa0] sm:$0xf]  ;;  %v10106_v11 = vor.u32 %v12245_v8, %v10105_v7 }
 0x4e2   : > { %12737 = vst [vmem:[%s2519_s15] sm:$0xff] %v12736_v14   ;;  %v2571_v12 = vunpack.c.l.b16 %v2515_v51  ;;  %v10089_v51 = vld [vmem:[%s20642_s4 + $0xa8] sm:$0xf]  ;;  %3175 = vmatpush.bf16.msrb.mxu2 %v10106_v11  ;;  %s2928_s15 = sshra.s32 %s12216_s14, 3 }
 0x4e3   : > { %s9996_s17 = sshll.u32 %s2928_s15, 2 }
 0x4e4   : > { %v2572_v18 = vpack.c.b16 %v2571_v12, %v2570_v17  ;;  %v10110_v12 = vor.u32 %v12243_v41, %v10107_v34  ;;  %v10073_v41 = vld [vmem:[%s20642_s4 + $0x88] sm:$0xf]  ;;  %v12237_v34 = vld [vmem:[%s20642_s4 + $0x94] sm:$0xf0]  ;;  %s2931_s18 = scalar_lea.vmem [#allocation3], %s9996_s17 }
 0x4e6   : > { %2742 = vmatmul.bf16.vlgmr.msra.gmra.mxu0 %v2572_v18  ;;  %2756 = vmatmul.bf16.vlgmr.msra.gmra.mxu1 %v2572_v18 }
 0x4e7   : > { %2770 = vmatmul.bf16.vlgmr.msra.gmra.mxu2 %v2572_v18  ;;  %2784 = vmatmul.bf16.vlgmr.msra.gmra.mxu3 %v2572_v18  ;;  %v10082_v18 = vor.u32 %v12240_v9, %v10081_v42  ;;  %v10075_v42 = vld [vmem:[%s20642_s4 + $0x98] sm:$0xf0] }
 0x4e8   : > { %3189 = vmatpush.bf16.msrb.mxu3 %v10110_v12  ;;  %v10051_v12 = vld [vmem:[%s20642_s4 + $0x70] sm:$0xf0] }
 0x4e9   : > { %3148 = vmatpush.bf16.msrb.mxu0 %v10082_v18  ;;  %v10057_v18 = vld [vmem:[%s20642_s4 + $0x68] sm:$0xf] }
 0x563   : > { %v2743_v63 = vpop.f32.mrf.mxu0  ;;  %v2757_v15 = vpop.f32.mrf.mxu1 }
 0x564   : > { %v2790_v22 = vadd.f32 %v2743_v63, %v2528_v20  ;;  %v2791_v62 = vadd.f32 %v2757_v15, %v2529_v21  ;;  %v10086_v20 = vor.u32 %v12238_v10, %v10083_v38  ;;  %v12241_v21 = vld [vmem:[%s20642_s4 + $0xb4] sm:$0xf0]  ;;  %v12239_v63 = vld [vmem:[%s20642_s4 + $0xac] sm:$0xf] }
 0x566   : > { %v9989_v16 = vmul.f32 -1.442695, %v2790_v22  ;;  %v9990_v24 = vmul.f32 -1.442695, %v2791_v62  ;;  %v10090_v62 = vor.u32 %v12241_v21, %v10089_v51  ;;  %3162 = vmatpush.bf16.msrb.mxu1 %v10086_v20  ;;  %v12230_v51 = vld [vmem:[%s20642_s4 + $0x64] sm:$0xf] }
 0x567   : > { %v12233_v20 = vld [vmem:[%s20642_s4 + $0x74] sm:$0xf0] }
 0x568   : > { %12951 = vpow2.f32 %v9989_v16  ;;  %v10091_v16 = vld [vmem:[%s20642_s4 + $0xb8] sm:$0xf0]  ;;  %3176 = vmatpush.bf16.msrb.mxu2 %v10090_v62  ;;  %v10058_v47 = vor.u32 %v12233_v20, %v10057_v18  ;;  %v10001_v18 = vld [vmem:[%s20642_s4] sm:$0xf] }
 0x569   : > { %12953 = vpow2.f32 %v9990_v24 }
 0x56a   : > { %v2771_v37 = vpop.f32.mrf.mxu2  ;;  %v2785_v54 = vpop.f32.mrf.mxu3 }
 0x56b   : > { %v2792_v58 = vadd.f32 %v2771_v37, %v2530_v27  ;;  %v2745_v59 = vpop.f32.mrf.mxu0  ;;  %v2759_v1 = vpop.f32.mrf.mxu1  ;;  %v2793_v25 = vadd.f32 %v2785_v54, %v2531_v39  ;;  %v2535_v37 = vld [vmem:[%s15277_s28 + $0x38] sm:$0xff] }
 0x56c   : > { %v2794_v50 = vadd.f32 %v2745_v59, %v2532_v28  ;;  %v2795_v2 = vadd.f32 %v2759_v1, %v2533_v29  ;;  %v10094_v29 = vor.u32 %v12239_v63, %v10091_v16 }
 0x56d   : > { %v9991_v35 = vmul.f32 -1.442695, %v2792_v58 }
 0x56e   : > { %v12952_v52 = vpop.eup %12951  ;;  %v9992_v55 = vmul.f32 -1.442695, %v2794_v50  ;;  %v9993_v61 = vmul.f32 -1.442695, %v2795_v2  ;;  %3190 = vmatpush.bf16.msrb.mxu3 %v10094_v29  ;;  %v10066_v2 = vor.u32 %v12236_v33, %v10065_v32  ;;  %v10074_v32 = vor.u32 %v12237_v34, %v10073_v41  ;;  %v12222_v41 = vld [vmem:[%s20642_s4 + $0x24] sm:$0xf] }
 0x56f   : > { %v12954_v26 = vpop.eup %12953  ;;  %v15317_v60 = vadd.f32 1.0, %v12952_v52  ;;  %12955 = vpow2.f32 %v9991_v35  ;;  %v10067_v35 = vld [vmem:[%s20642_s4 + $0x90] sm:$0xf0] }
 0x570   : > { %v15323_v3 = vadd.f32 1.0, %v12954_v26  ;;  %12957 = vpow2.f32 %v9992_v55  ;;  %3149 = vmatpush.bf16.msrb.mxu0 %v10066_v2  ;;  %3177 = vmatpush.bf16.msrb.mxu2 %v10074_v32  ;;  %v10019_v34 = vld [vmem:[%s20642_s4 + $0x30] sm:$0xf0] }
 0x571   : > { %12959 = vrcp.f32 %v15317_v60  ;;  %v2831_v27 = vand.u32 2147483647, %v15317_v60  ;;  %v2833_v30 = vand.u32 2147483648, %v15317_v60  ;;  %vm2827_vm1 = vweird.f32 %v15317_v60 }
 0x572   : > { %12961 = vrcp.f32 %v15323_v3  ;;  %v2773_v48 = vpop.f32.mrf.mxu2  ;;  %v2787_v31 = vpop.f32.mrf.mxu3  ;;  %v2848_v59 = vand.u32 2147483648, %v15323_v3  ;;  %v2846_v1 = vand.u32 2147483647, %v15323_v3  ;;  %vm2842_vm0 = vweird.f32 %v15323_v3 }
 0x573   : > { %12963 = vpow2.f32 %v9993_v61  ;;  %v2796_v49 = vadd.f32 %v2773_v48, %v2534_v5  ;;  %vm15393_vm2 = vcmp.eq.f32.partialorder %v2831_v27, 8.507059e+37  ;;  %v2797_v50 = vadd.f32 %v2787_v31, %v2535_v37  ;;  %v10059_v27 = vld [vmem:[%s20642_s4 + $0x78] sm:$0xf0]  ;;  %v12228_v37 = vld [vmem:[%s20642_s4 + $0x4c] sm:$0xf0] }
 0x574   : > { %12965 = vtanh.f32 %v2793_v25  ;;  %v2834_v52 = vor.u32 1.1754944e-38, %v2833_v30  ;;  %v2849_v56 = vor.u32 1.1754944e-38, %v2848_v59  ;;  %vm15408_vm5 = vcmp.eq.f32.partialorder %v2846_v1, 8.507059e+37  ;;  %v10033_v30 = vld [vmem:[%s20642_s4 + $0x40] sm:$0xf]  ;;  %3178 = vmatpush.bf16.msrb.mxu2 %v10058_v47 }
 0x575   : > { %v12956_v14 = vpop.eup %12955  ;;  %v9994_v17 = vmul.f32 -1.442695, %v2796_v49  ;;  %v10070_v5 = vor.u32 %v12234_v53, %v10067_v35  ;;  %v10049_v49 = vld [vmem:[%s20642_s4 + $0x60] sm:$0xf] }
 0x576   : > { %v12958_v15 = vpop.eup %12957  ;;  %v15361_v22 = vadd.f32 1.0, %v12956_v14 }
 0x577   : > { %v15366_v24 = vpop.eup %12959  ;;  %v15369_v28 = vadd.f32 1.0, %v12958_v15  ;;  %12967 = vpow2.f32 %v9994_v17  ;;  %3163 = vmatpush.bf16.msrb.mxu1 %v10070_v5  ;;  %v10017_v5 = vld [vmem:[%s20642_s4 + $0x20] sm:$0xf] }
 0x578   : > { %v15371_v40 = vpop.eup %12961  ;;  %v2823_v45 = vmul.f32 %v15366_v24, %v15317_v60  ;;  %12969 = vrcp.f32 %v15361_v22  ;;  %vm2828_vm3 = vweird.f32 %v15366_v24  ;;  %v12235_v60 = vld [vmem:[%s20642_s4 + $0x8c] sm:$0xf] }
 0x579   : > { %v12964_v19 = vpop.eup %12963  ;;  %v2838_v58 = vmul.f32 %v15371_v40, %v15323_v3  ;;  %12971 = vrcp.f32 %v15369_v28  ;;  %vm2843_vm4 = vweird.f32 %v15371_v40  ;;  %v2878_v0 = vand.u32 2147483648, %v15369_v28  ;;  %vm15428_vm6 = vmor %vm2827_vm1, %vm2828_vm3  ;;  %v12232_v3 = vld [vmem:[%s20642_s4 + $0x6c] sm:$0xf0] }
 0x57a   : > { %v2824_v36 = vsub.f32 1.0, %v2823_v45  ;;  %v15391_v43 = vadd.f32 1.0, %v12964_v19  ;;  %v12966_v44 = vpop.eup %12965  ;;  %v2876_v48 = vand.u32 2147483647, %v15369_v28  ;;  %vm15453_vm7 = vmor %vm2842_vm0, %vm2843_vm4  ;;  %vm2872_vm9 = vweird.f32 %v15369_v28 }
 0x57b   : > { %v2839_v46 = vsub.f32 1.0, %v2838_v58  ;;  %v2879_v16 = vor.u32 1.1754944e-38, %v2878_v0  ;;  %v10078_v33 = vor.u32 %v12235_v60, %v10075_v42  ;;  %v10050_v19 = vor.u32 %v12232_v3, %v10049_v49  ;;  %v10035_v58 = vld [vmem:[%s20642_s4 + $0x50] sm:$0xf0]  ;;  %v10043_v0 = vld [vmem:[%s20642_s4 + $0x58] sm:$0xf0] }
 0x57c   : > { %v2825_v13 = vmul.f32 %v15366_v24, %v2824_v36  ;;  %12973 = vrcp.f32 %v15391_v43  ;;  %v2893_v38 = vand.u32 2147483648, %v15391_v43  ;;  %vm2887_vm8 = vweird.f32 %v15391_v43 }
 0x57d   : > { %v12968_v54 = vpop.eup %12967  ;;  %v2840_v55 = vmul.f32 %v15371_v40, %v2839_v46  ;;  %12975 = vtanh.f32 %v2797_v50  ;;  %v10054_v46 = vor.u32 %v12230_v51, %v10051_v12  ;;  %v10041_v50 = vld [vmem:[%s20642_s4 + $0x48] sm:$0xf]  ;;  %3191 = vmatpush.bf16.msrb.mxu3 %v10078_v33  ;;  %3150 = vmatpush.bf16.msrb.mxu0 %v10050_v19  ;;  %vm2877_vm14 = vcmp.eq.f32.partialorder %v2876_v48, 8.507059e+37  ;;  %v10027_v12 = vld [vmem:[%s20642_s4 + $0x38] sm:$0xf0] }
 0x57e   : > { %v15412_v26 = vpop.eup %12969  ;;  %v2826_v39 = vadd.f32 %v15366_v24, %v2825_v13  ;;  %v15415_v61 = vadd.f32 1.0, %v12968_v54  ;;  %v12229_v54 = vld [vmem:[%s20642_s4 + $0x54] sm:$0xf0]  ;;  %v2894_v8 = vor.u32 1.1754944e-38, %v2893_v38  ;;  %v10025_v38 = vld [vmem:[%s20642_s4 + $0x28] sm:$0xf]  ;;  %vm2857_vm1 = vweird.f32 %v15361_v22 }
 0x57f   : > { %v15418_v6 = vpop.eup %12971  ;;  %v15422_v7 = vmul.f32 %v15412_v26, %v15361_v22  ;;  %v2841_v25 = vadd.f32 %v15371_v40, %v2840_v55  ;;  %v12227_v55 = vld [vmem:[%s20642_s4 + $0x4c] sm:$0xf]  ;;  %3164 = vmatpush.bf16.msrb.mxu1 %v10054_v46  ;;  %vm2858_vm13 = vweird.f32 %v15412_v26  ;;  %v10042_v48 = vor.u32 %v12229_v54, %v10041_v50  ;;  %v12221_v33 = vld [vmem:[%s20642_s4 + $0x14] sm:$0xf0] }
 0x580   : > { %v2830_v10 = vsel %vm15428_vm6, %v15366_v24, %v2826_v39  ;;  %v2868_v11 = vmul.f32 %v15418_v6, %v15369_v28  ;;  %12977 = vrcp.f32 %v15415_v61  ;;  %v12231_v24 = vld [vmem:[%s20642_s4 + $0x6c] sm:$0xf]  ;;  %vm2873_vm10 = vweird.f32 %v15418_v6 }
 0x581   : > { %v2835_v14 = vsel %vm15393_vm2, %v2834_v52, %v2830_v10  ;;  %v2845_v17 = vsel %vm15453_vm7, %v15371_v40, %v2841_v25  ;;  %v2854_v29 = vsub.f32 1.0, %v15422_v7  ;;  %vm15526_vm11 = vmor %vm2872_vm9, %vm2873_vm10  ;;  %v10062_v13 = vor.u32 %v12231_v24, %v10059_v27  ;;  %v12224_v7 = vld [vmem:[%s20642_s4 + $0x2c] sm:$0xf0]  ;;  %3179 = vmatpush.bf16.msrb.mxu2 %v10042_v48  ;;  %v12219_v19 = vld [vmem:[%s20642_s4 + $0xc] sm:$0xf] }
 0x582   : > { %v15486_v21 = vpop.eup %12973  ;;  %v2850_v63 = vsel %vm15408_vm5, %v2849_v56, %v2845_v17  ;;  %v2916_v15 = vmul.f32 %v12966_v44, %v2835_v14  ;;  %v2869_v62 = vsub.f32 1.0, %v2868_v11  ;;  %v2891_v44 = vand.u32 2147483647, %v15391_v43  ;;  %v12223_v17 = vld [vmem:[%s20642_s4 + $0x2c] sm:$0xf]  ;;  %vm15613_vm2 = vmor %vm2857_vm1, %vm2858_vm13 }
 0x583   : > { %v2914_v40 = vmul.f32 %v2850_v63, %v15208_v23  ;;  %v2883_v45 = vmul.f32 %v15486_v21, %v15391_v43  ;;  %v12226_v23 = vld [vmem:[%s20642_s4 + $0x44] sm:$0xf]  ;;  %v12976_v59 = vpop.eup %12975  ;;  %v10034_v52 = vor.u32 %v12228_v37, %v10033_v30  ;;  %vm2888_vm12 = vweird.f32 %v15486_v21  ;;  %3192 = vmatpush.bf16.msrb.mxu3 %v10062_v13  ;;  %v12225_v43 = vld [vmem:[%s20642_s4 + $0x34] sm:$0xf0]  ;;  %v12220_v63 = vld [vmem:[%s20642_s4 + $0xc] sm:$0xf0] }
 0x584   : > { %v2870_v31 = vmul.f32 %v15418_v6, %v2869_v62  ;;  %v10038_v39 = vor.u32 %v12226_v23, %v10035_v58  ;;  %v2855_v60 = vmul.f32 %v15412_v26, %v2854_v29  ;;  %vm15568_vm15 = vmor %vm2887_vm8, %vm2888_vm12  ;;  %vm15572_vm0 = vcmp.eq.f32.partialorder %v2891_v44, 8.507059e+37  ;;  %v10003_v62 = vld [vmem:[%s20642_s4 + $0x10] sm:$0xf0]  ;;  %v10009_v30 = vld [vmem:[%s20642_s4 + $0x8] sm:$0xf] }
 0x585   : > { %v15514_v1 = vadd.f32 %v2916_v15, %v2914_v40  ;;  %v2884_v36 = vsub.f32 1.0, %v2883_v45  ;;  %v10046_v10 = vor.u32 %v12227_v55, %v10043_v0  ;;  %v10018_v11 = vor.u32 %v12224_v7, %v10017_v5  ;;  %3151 = vmatpush.bf16.msrb.mxu0 %v10034_v52  ;;  %v12218_v15 = vld [vmem:[%s20642_s4 + $0x4] sm:$0xf]  ;;  %v10011_v23 = vld [vmem:[%s20642_s4 + $0x18] sm:$0xf0]  ;;  %v2941_v7 = vld [vmem:[%s15646_s22 + $0x8] sm:$0xff] }
 0x586   : > { %v15519_v2 = vpop.eup %12977  ;;  %v2871_v53 = vadd.f32 %v15418_v6, %v2870_v31  ;;  %3165 = vmatpush.bf16.msrb.mxu1 %v10038_v39  ;;  %v10022_v14 = vor.u32 %v12222_v41, %v10019_v34  ;;  %v2856_v27 = vadd.f32 %v15412_v26, %v2855_v60  ;;  %v10026_v40 = vor.u32 %v12225_v43, %v10025_v38  ;;  %v2945_v28 = vld [vmem:[%s15646_s22 + $0x28] sm:$0xff] }
 0x587   : > { %v2885_v56 = vmul.f32 %v15486_v21, %v2884_v36  ;;  %v2898_v57 = vmul.f32 %v15519_v2, %v15415_v61  ;;  %12979 = vtanh.f32 %v15514_v1  ;;  %3193 = vmatpush.bf16.msrb.mxu3 %v10046_v10  ;;  %v10030_v45 = vor.u32 %v12223_v17, %v10027_v12 }
 0x588   : > { %v2875_v25 = vsel %vm15526_vm11, %v15418_v6, %v2871_v53  ;;  %v2861_v37 = vand.u32 2147483647, %v15361_v22  ;;  %v10002_v31 = vor.u32 %v12220_v63, %v10001_v18  ;;  %v10006_v32 = vor.u32 %v12218_v15, %v10003_v62  ;;  %3180 = vmatpush.bf16.msrb.mxu2 %v10026_v40  ;;  %v10253_v18 = vld [vmem:[%s20642_s4 + $0xf0] sm:$0xf0]  ;;  %v2943_v40 = vld [vmem:[%s15646_s22 + $0x18] sm:$0xff] }
 0x589   : > { %v2899_v42 = vsub.f32 1.0, %v2898_v57  ;;  %v2880_v49 = vsel %vm2877_vm14, %v2879_v16, %v2875_v25  ;;  %v2886_v9 = vadd.f32 %v15486_v21, %v2885_v56  ;;  %v2863_v16 = vand.u32 2147483648, %v15361_v22  ;;  %3152 = vmatpush.bf16.msrb.mxu0 %v10018_v11 }
 0x58a   : > { %v2917_v51 = vmul.f32 %v12976_v59, %v2880_v49  ;;  %3166 = vmatpush.bf16.msrb.mxu1 %v10022_v14  ;;  %v2860_v22 = vsel %vm15613_vm2, %v15412_v26, %v2856_v27  ;;  %vm2903_vm3 = vweird.f32 %v15519_v2  ;;  %vm2902_vm4 = vweird.f32 %v15415_v61  ;;  %v2942_v49 = vld [vmem:[%s15646_s22 + $0x10] sm:$0xff]  ;;  %v12281_v14 = vld [vmem:[%s20642_s4 + $0xe4] sm:$0xf] }
 0x58b   : > { %v2890_v3 = vsel %vm15568_vm15, %v15486_v21, %v2886_v9  ;;  %v2900_v20 = vmul.f32 %v15519_v2, %v2899_v42  ;;  %v2864_v36 = vor.u32 1.1754944e-38, %v2863_v16  ;;  %v2908_v46 = vand.u32 2147483648, %v15415_v61  ;;  %3194 = vmatpush.bf16.msrb.mxu3 %v10030_v45  ;;  %vm2904_vm6 = vmor %vm2902_vm4, %vm2903_vm3  ;;  %v2944_v9 = vld [vmem:[%s15646_s22 + $0x20] sm:$0xff] }
 0x58c   : > { %v2895_v21 = vsel %vm15572_vm0, %v2894_v8, %v2890_v3  ;;  %v10010_v47 = vor.u32 %v12221_v33, %v10009_v30  ;;  %v10014_v50 = vor.u32 %v12219_v19, %v10011_v23  ;;  %vm2862_vm5 = vcmp.eq.f32.partialorder %v2861_v37, 8.507059e+37  ;;  %v10251_v3 = vld [vmem:[%s20642_s4 + $0xe0] sm:$0xf]  ;;  %v12282_v30 = vld [vmem:[%s20642_s4 + $0xec] sm:$0xf] }
 0x58d   : > { %v2915_v24 = vmul.f32 %v2895_v21, %v15265_v4  ;;  %v2901_v58 = vadd.f32 %v15519_v2, %v2900_v20  ;;  %v12980_v59 = vpop.eup %12979  ;;  %v2906_v26 = vand.u32 2147483647, %v15415_v61  ;;  %3153 = vmatpush.bf16.msrb.mxu0 %v10002_v31  ;;  %v2865_v53 = vsel %vm2862_vm5, %v2864_v36, %v2860_v22  ;;  %v10259_v20 = vld [vmem:[%s20642_s4 + $0xe8] sm:$0xf]  ;;  %v10261_v37 = vld [vmem:[%s20642_s4 + $0xf8] sm:$0xf0] }
 0x58e   : > { %3167 = vmatpush.bf16.msrb.mxu1 %v10006_v32  ;;  %v2922_v44 = vmul.f32 %v12980_v59, %v2865_v53  ;;  %v2909_v13 = vor.u32 1.1754944e-38, %v2908_v46  ;;  %3181 = vmatpush.bf16.msrb.mxu2 %v10010_v47  ;;  %v10256_v16 = vor.u32 %v12281_v14, %v10253_v18  ;;  %v2946_v32 = vld [vmem:[%s15646_s22 + $0x30] sm:$0xff]  ;;  %v10264_v33 = vor.u32 %v12282_v30, %v10261_v37  ;;  %v10235_v19 = vld [vmem:[%s20642_s4 + $0xc0] sm:$0xf]  ;;  %v12277_v59 = vld [vmem:[%s20642_s4 + $0xc4] sm:$0xf] }
 0x58f   : > { %v15621_v4 = vadd.f32 %v2917_v51, %v2915_v24  ;;  %v2905_v35 = vsel %vm2904_vm6, %v15519_v2, %v2901_v58  ;;  %3195 = vmatpush.bf16.msrb.mxu3 %v10014_v50  ;;  %vm2907_vm7 = vcmp.eq.f32.partialorder %v2906_v26, 8.507059e+37  ;;  %v2940_v2 = vld [vmem:[%s15646_s22] sm:$0xff]  ;;  %v12283_v51 = vld [vmem:[%s20642_s4 + $0xec] sm:$0xf0]  ;;  %v12284_v24 = vld [vmem:[%s20642_s4 + $0xf4] sm:$0xf0] }
 0x590   : > { %v2910_v54 = vsel %vm2907_vm7, %v2909_v13, %v2905_v35  ;;  %v2926_v61 = vpack.c.bf16 %v2922_v44, %v2922_v44  ;;  %v10252_v12 = vor.u32 %v12283_v51, %v10251_v3  ;;  %v10260_v45 = vor.u32 %v12284_v24, %v10259_v20  ;;  %v12279_v23 = vld [vmem:[%s20642_s4 + $0xcc] sm:$0xf0]  ;;  %v10237_v36 = vld [vmem:[%s20642_s4 + $0xd0] sm:$0xf0]  ;;  %v10243_v47 = vld [vmem:[%s20642_s4 + $0xc8] sm:$0xf] }
 0x591   : > { %12981 = vtanh.f32 %v15621_v4  ;;  %v12280_v50 = vld [vmem:[%s20642_s4 + $0xd4] sm:$0xf0]  ;;  %v10236_v26 = vor.u32 %v12279_v23, %v10235_v19  ;;  %v12278_v53 = vld [vmem:[%s20642_s4 + $0xcc] sm:$0xf]  ;;  %v10245_v35 = vld [vmem:[%s20642_s4 + $0xd8] sm:$0xf0] }
 0x592   : > { %v2982_v39 = vunpack.c.l.b16 %v2926_v61  ;;  %3558 = vmatpush.bf16.msra.mxu0 %v10252_v12  ;;  %3572 = vmatpush.bf16.msra.mxu1 %v10256_v16  ;;  %v10219_v61 = vld [vmem:[%s20642_s4 + $0xa0] sm:$0xf]  ;;  %v12274_v18 = vld [vmem:[%s20642_s4 + $0xac] sm:$0xf]  ;;  %v10229_v20 = vld [vmem:[%s20642_s4 + $0xb8] sm:$0xf0] }
 0x593   : > { %3586 = vmatpush.bf16.msra.mxu2 %v10260_v45  ;;  %3600 = vmatpush.bf16.msra.mxu3 %v10264_v33 }
 0x596   : > { %3559 = vmatpush.bf16.msra.mxu0 %v10236_v26 }
 0x597   : > { %v12982_v52 = vpop.eup %12981 }
 0x598   : > { %v2923_v55 = vmul.f32 %v12982_v52, %v2910_v54  ;;  %v10240_v52 = vor.u32 %v12277_v59, %v10237_v36  ;;  %v10244_v54 = vor.u32 %v12280_v50, %v10243_v47  ;;  %v10203_v59 = vld [vmem:[%s20642_s4 + $0x80] sm:$0xf]  ;;  %v12271_v36 = vld [vmem:[%s20642_s4 + $0x8c] sm:$0xf0]  ;;  %v10211_v47 = vld [vmem:[%s20642_s4 + $0x88] sm:$0xf] }
 0x59a   : > { %v2927_v56 = vpack.c.bf16 %v2923_v55, %v2923_v55  ;;  %v12741_v57 = vpack.c.bf16 %v2923_v55, %v2922_v44  ;;  %v10248_v55 = vor.u32 %v12278_v53, %v10245_v35  ;;  %3573 = vmatpush.bf16.msra.mxu1 %v10240_v52  ;;  %3587 = vmatpush.bf16.msra.mxu2 %v10244_v54  ;;  %v10213_v54 = vld [vmem:[%s20642_s4 + $0x98] sm:$0xf0] }
 0x59c   : > { %12742 = vst [vmem:[%s2931_s18] sm:$0xff] %v12741_v57   ;;  %v2983_v0 = vunpack.c.l.b16 %v2927_v56  ;;  %v12275_v56 = vld [vmem:[%s20642_s4 + $0xac] sm:$0xf0]  ;;  %3601 = vmatpush.bf16.msra.mxu3 %v10248_v55  ;;  %v10187_v55 = vld [vmem:[%s20642_s4 + $0x60] sm:$0xf] }
 0x59e   : > { %v2984_v5 = vpack.c.b16 %v2983_v0, %v2982_v39  ;;  %v10220_v0 = vor.u32 %v12275_v56, %v10219_v61  ;;  %v12267_v61 = vld [vmem:[%s20642_s4 + $0x6c] sm:$0xf0] }
 0x59f   : > { %v10188_v14 = vor.u32 %v12267_v61, %v10187_v55  ;;  %v10163_v55 = vld [vmem:[%s20642_s4 + $0x28] sm:$0xf] }
 0x5a0   : > { %3154 = vmatmul.bf16.vlgmr.msrb.gmra.mxu0 %v2984_v5  ;;  %3168 = vmatmul.bf16.vlgmr.msrb.gmra.mxu1 %v2984_v5 }
 0x5a1   : > { %3182 = vmatmul.bf16.vlgmr.msrb.gmra.mxu2 %v2984_v5  ;;  %3196 = vmatmul.bf16.vlgmr.msrb.gmra.mxu3 %v2984_v5  ;;  %v12273_v5 = vld [vmem:[%s20642_s4 + $0xa4] sm:$0xf] }
 0x5a2   : > { %3560 = vmatpush.bf16.msra.mxu0 %v10220_v0 }
 0x61d   : > { %v3155_v8 = vpop.f32.mrf.mxu0  ;;  %v3169_v25 = vpop.f32.mrf.mxu1 }
 0x61e   : > { %v3202_v41 = vadd.f32 %v3155_v8, %v2940_v2  ;;  %v3203_v34 = vadd.f32 %v3169_v25, %v2941_v7  ;;  %v10221_v2 = vld [vmem:[%s20642_s4 + $0xb0] sm:$0xf0] }
 0x620   : > { %v10127_v60 = vmul.f32 -1.442695, %v3202_v41  ;;  %v10128_v42 = vmul.f32 -1.442695, %v3203_v34  ;;  %v10224_v41 = vor.u32 %v12273_v5, %v10221_v2 }
 0x622   : > { %12983 = vpow2.f32 %v10127_v60  ;;  %3574 = vmatpush.bf16.msra.mxu1 %v10224_v41 }
 0x623   : > { %12985 = vpow2.f32 %v10128_v42 }
 0x624   : > { %v3183_v6 = vpop.f32.mrf.mxu2  ;;  %v3197_v63 = vpop.f32.mrf.mxu3 }
 0x625   : > { %v3204_v48 = vadd.f32 %v3183_v6, %v2942_v49  ;;  %v3157_v10 = vpop.f32.mrf.mxu0  ;;  %v3171_v11 = vpop.f32.mrf.mxu1  ;;  %v3205_v22 = vadd.f32 %v3197_v63, %v2943_v40  ;;  %v2947_v49 = vld [vmem:[%s15646_s22 + $0x38] sm:$0xff]  ;;  %s12251_s22 = sadd.s32 48, %s14923_s13 }
 0x626   : > { %v3206_v38 = vadd.f32 %v3157_v10, %v2944_v9  ;;  %v3207_v43 = vadd.f32 %v3171_v11, %v2945_v28  ;;  %v10227_v28 = vld [vmem:[%s20642_s4 + $0xa8] sm:$0xf]  ;;  %v12276_v6 = vld [vmem:[%s20642_s4 + $0xb4] sm:$0xf0]  ;;  %s3340_s18 = sshra.s32 %s12251_s22, 3  ;;  %s3346_s22 = sadd.s32 64, %s14606_s16 }
 0x627   : > { %v10129_v17 = vmul.f32 -1.442695, %v3204_v48  ;;  %v10228_v12 = vor.u32 %v12276_v6, %v10227_v28  ;;  %v10204_v28 = vor.u32 %v12271_v36, %v10203_v59  ;;  %v12262_v59 = vld [vmem:[%s20642_s4 + $0x4c] sm:$0xf]  ;;  %v10181_v36 = vld [vmem:[%s20642_s4 + $0x58] sm:$0xf0] }
 0x628   : > { %v12984_v21 = vpop.eup %12983  ;;  %v10130_v15 = vmul.f32 -1.442695, %v3206_v38  ;;  %v10131_v62 = vmul.f32 -1.442695, %v3207_v43  ;;  %s10134_s19 = sshll.u32 %s3340_s18, 2  ;;  %s3347_s21 = sshra.s32 %s3346_s22, 3 }
 0x629   : > { %v12986_v27 = vpop.eup %12985  ;;  %v15671_v29 = vadd.f32 1.0, %v12984_v21  ;;  %12987 = vpow2.f32 %v10129_v17  ;;  %3588 = vmatpush.bf16.msra.mxu2 %v10228_v12  ;;  %3561 = vmatpush.bf16.msra.mxu0 %v10204_v28  ;;  %s3343_s20 = scalar_lea.vmem [#allocation3], %s10134_s19  ;;  %s12252_s2 = sshll.u32 %s3347_s21, 5 }
 0x62a   : > { %v15680_v31 = vadd.f32 1.0, %v12986_v27  ;;  %12989 = vpow2.f32 %v10130_v15  ;;  %s16017_s28 = scalar_lea.vmem [#allocation2], %s12252_s2  ;;  %s3758_s21 = sadd.s32 80, %s14606_s16 }
 0x62b   : > { %12991 = vrcp.f32 %v15671_v29  ;;  %v3243_v8 = vand.u32 2147483647, %v15671_v29  ;;  %v3245_v42 = vand.u32 2147483648, %v15671_v29  ;;  %vm3239_vm9 = vweird.f32 %v15671_v29  ;;  %s3759_s2 = sshra.s32 %s3758_s21, 3 }
 0x62c   : > { %12993 = vrcp.f32 %v15680_v31  ;;  %v3185_v58 = vpop.f32.mrf.mxu2  ;;  %v3199_v9 = vpop.f32.mrf.mxu3  ;;  %v3260_v11 = vand.u32 2147483648, %v15680_v31  ;;  %v3258_v38 = vand.u32 2147483647, %v15680_v31  ;;  %vm3254_vm8 = vweird.f32 %v15680_v31  ;;  %s12287_s23 = sshll.u32 %s3759_s2, 5  ;;  %s4170_s2 = sadd.s32 96, %s14606_s16 }
 0x62d   : > { %12995 = vpow2.f32 %v10131_v62  ;;  %v3208_v46 = vadd.f32 %v3185_v58, %v2946_v32  ;;  %vm15750_vm10 = vcmp.eq.f32.partialorder %v3243_v8, 8.507059e+37  ;;  %v3209_v17 = vadd.f32 %v3199_v9, %v2947_v49  ;;  %v10189_v8 = vld [vmem:[%s20642_s4 + $0x70] sm:$0xf0]  ;;  %v12268_v49 = vld [vmem:[%s20642_s4 + $0x74] sm:$0xf0]  ;;  %3562 = vmatpush.bf16.msra.mxu0 %v10188_v14  ;;  %s16398_s25 = scalar_lea.vmem [#allocation2], %s12287_s23 }
 0x62e   : > { %12997 = vtanh.f32 %v3205_v22  ;;  %v3246_v15 = vor.u32 1.1754944e-38, %v3245_v42  ;;  %v3261_v24 = vor.u32 1.1754944e-38, %v3260_v11  ;;  %vm15765_vm13 = vcmp.eq.f32.partialorder %v3258_v38, 8.507059e+37  ;;  %v10195_v42 = vld [vmem:[%s20642_s4 + $0x68] sm:$0xf]  ;;  %s4171_s23 = sshra.s32 %s4170_s2, 3 }
 0x62f   : > { %v12988_v44 = vpop.eup %12987  ;;  %v10132_v13 = vmul.f32 -1.442695, %v3208_v46  ;;  %v10232_v32 = vor.u32 %v12274_v18, %v10229_v20  ;;  %v10205_v46 = vld [vmem:[%s20642_s4 + $0x90] sm:$0xf0]  ;;  %s12322_s26 = sshll.u32 %s4171_s23, 5  ;;  %s4582_s23 = sadd.s32 112, %s14606_s16 }
 0x630   : > { %v12990_v57 = vpop.eup %12989  ;;  %v15715_v39 = vadd.f32 1.0, %v12988_v44  ;;  %v12270_v44 = vld [vmem:[%s20642_s4 + $0x8c] sm:$0xf]  ;;  %s16782_s27 = scalar_lea.vmem [#allocation2], %s12322_s26  ;;  %s4583_s26 = sshra.s32 %s4582_s23, 3 }
 0x631   : > { %v15723_v7 = vpop.eup %12991  ;;  %v15726_v25 = vadd.f32 1.0, %v12990_v57  ;;  %12999 = vpow2.f32 %v10132_v13  ;;  %3602 = vmatpush.bf16.msra.mxu3 %v10232_v32  ;;  %v10179_v32 = vld [vmem:[%s20642_s4 + $0x48] sm:$0xf] }
 0x632   : > { %v15728_v34 = vpop.eup %12993  ;;  %v3235_v60 = vmul.f32 %v15723_v7, %v15671_v29  ;;  %13001 = vrcp.f32 %v15715_v39  ;;  %vm3240_vm11 = vweird.f32 %v15723_v7  ;;  %v12269_v29 = vld [vmem:[%s20642_s4 + $0x84] sm:$0xf] }
 0x633   : > { %v12996_v48 = vpop.eup %12995  ;;  %v3250_v10 = vmul.f32 %v15728_v34, %v15680_v31  ;;  %13003 = vrcp.f32 %v15726_v25  ;;  %vm3255_vm12 = vweird.f32 %v15728_v34  ;;  %v3290_v37 = vand.u32 2147483648, %v15726_v25  ;;  %vm15785_vm14 = vmor %vm3239_vm9, %vm3240_vm11  ;;  %v12272_v31 = vld [vmem:[%s20642_s4 + $0x94] sm:$0xf0] }
 0x634   : > { %v3236_v43 = vsub.f32 1.0, %v3235_v60  ;;  %v15748_v3 = vadd.f32 1.0, %v12996_v48  ;;  %v12998_v21 = vpop.eup %12997  ;;  %v3288_v58 = vand.u32 2147483647, %v15726_v25  ;;  %vm15810_vm15 = vmor %vm3254_vm8, %vm3255_vm12  ;;  %vm3284_vm1 = vweird.f32 %v15726_v25 }
 0x635   : > { %v3251_v51 = vsub.f32 1.0, %v3250_v10  ;;  %v3291_v2 = vor.u32 1.1754944e-38, %v3290_v37  ;;  %v10208_v6 = vor.u32 %v12269_v29, %v10205_v46  ;;  %v10212_v48 = vor.u32 %v12272_v31, %v10211_v47  ;;  %v10197_v10 = vld [vmem:[%s20642_s4 + $0x78] sm:$0xf0]  ;;  %v10173_v37 = vld [vmem:[%s20642_s4 + $0x50] sm:$0xf0] }
 0x636   : > { %v3237_v63 = vmul.f32 %v15723_v7, %v3236_v43  ;;  %13005 = vrcp.f32 %v15748_v3  ;;  %v3305_v35 = vand.u32 2147483648, %v15748_v3  ;;  %vm3299_vm0 = vweird.f32 %v15748_v3 }
 0x637   : > { %v13000_v62 = vpop.eup %12999  ;;  %v3252_v16 = vmul.f32 %v15728_v34, %v3251_v51  ;;  %13007 = vtanh.f32 %v3209_v17  ;;  %v10216_v51 = vor.u32 %v12270_v44, %v10213_v54  ;;  %v10171_v17 = vld [vmem:[%s20642_s4 + $0x40] sm:$0xf]  ;;  %3575 = vmatpush.bf16.msra.mxu1 %v10208_v6  ;;  %3589 = vmatpush.bf16.msra.mxu2 %v10212_v48  ;;  %vm3289_vm6 = vcmp.eq.f32.partialorder %v3288_v58, 8.507059e+37  ;;  %v10157_v54 = vld [vmem:[%s20642_s4 + $0x30] sm:$0xf0] }
 0x638   : > { %v15769_v40 = vpop.eup %13001  ;;  %v3238_v45 = vadd.f32 %v15723_v7, %v3237_v63  ;;  %v15772_v30 = vadd.f32 1.0, %v13000_v62  ;;  %v12263_v62 = vld [vmem:[%s20642_s4 + $0x4c] sm:$0xf0]  ;;  %v3306_v23 = vor.u32 1.1754944e-38, %v3305_v35  ;;  %v10155_v35 = vld [vmem:[%s20642_s4 + $0x20] sm:$0xf]  ;;  %vm3269_vm9 = vweird.f32 %v15715_v39 }
 0x639   : > { %v15775_v33 = vpop.eup %13003  ;;  %v15779_v19 = vmul.f32 %v15769_v40, %v15715_v39  ;;  %v3253_v22 = vadd.f32 %v15728_v34, %v3252_v16  ;;  %v12261_v16 = vld [vmem:[%s20642_s4 + $0x44] sm:$0xf]  ;;  %3603 = vmatpush.bf16.msra.mxu3 %v10216_v51  ;;  %vm3270_vm5 = vweird.f32 %v15769_v40  ;;  %v10172_v58 = vor.u32 %v12263_v62, %v10171_v17 }
 0x63a   : > { %v3242_v26 = vsel %vm15785_vm14, %v15723_v7, %v3238_v45  ;;  %v3280_v53 = vmul.f32 %v15775_v33, %v15726_v25  ;;  %13009 = vrcp.f32 %v15772_v30  ;;  %v12265_v7 = vld [vmem:[%s20642_s4 + $0x64] sm:$0xf]  ;;  %vm3285_vm2 = vweird.f32 %v15775_v33 }
 0x63b   : > { %v3247_v13 = vsel %vm15750_vm10, %v3246_v15, %v3242_v26  ;;  %v3257_v52 = vsel %vm15810_vm15, %v15728_v34, %v3253_v22  ;;  %v3266_v41 = vsub.f32 1.0, %v15779_v19  ;;  %vm15883_vm3 = vmor %vm3284_vm1, %vm3285_vm2  ;;  %v10192_v63 = vor.u32 %v12265_v7, %v10189_v8  ;;  %v12264_v19 = vld [vmem:[%s20642_s4 + $0x54] sm:$0xf0]  ;;  %3563 = vmatpush.bf16.msra.mxu0 %v10172_v58  ;;  %v12253_v48 = vld [vmem:[%s20642_s4 + $0x4] sm:$0xf] }
 0x63c   : > { %v15843_v56 = vpop.eup %13005  ;;  %v3262_v57 = vsel %vm15765_vm13, %v3261_v24, %v3257_v52  ;;  %v3328_v0 = vmul.f32 %v12998_v21, %v3247_v13  ;;  %v3281_v5 = vsub.f32 1.0, %v3280_v53  ;;  %v3303_v21 = vand.u32 2147483647, %v15748_v3  ;;  %v12257_v52 = vld [vmem:[%s20642_s4 + $0x24] sm:$0xf]  ;;  %vm15971_vm10 = vmor %vm3269_vm9, %vm3270_vm5 }
 0x63d   : > { %v3326_v34 = vmul.f32 %v3262_v57, %v15514_v1  ;;  %v3295_v60 = vmul.f32 %v15843_v56, %v15748_v3  ;;  %v12266_v1 = vld [vmem:[%s20642_s4 + $0x6c] sm:$0xf]  ;;  %v13008_v11 = vpop.eup %13007  ;;  %v10196_v15 = vor.u32 %v12268_v49, %v10195_v42  ;;  %vm3300_vm4 = vweird.f32 %v15843_v56  ;;  %3576 = vmatpush.bf16.msra.mxu1 %v10192_v63  ;;  %v12259_v3 = vld [vmem:[%s20642_s4 + $0x2c] sm:$0xf0]  ;;  %v12260_v57 = vld [vmem:[%s20642_s4 + $0x34] sm:$0xf0] }
 0x63e   : > { %v3282_v9 = vmul.f32 %v15775_v33, %v3281_v5  ;;  %v10200_v45 = vor.u32 %v12266_v1, %v10197_v10  ;;  %v3267_v29 = vmul.f32 %v15769_v40, %v3266_v41  ;;  %vm15925_vm7 = vmor %vm3299_vm0, %vm3300_vm4  ;;  %vm15929_vm8 = vcmp.eq.f32.partialorder %v3303_v21, 8.507059e+37  ;;  %v10165_v5 = vld [vmem:[%s20642_s4 + $0x38] sm:$0xf0]  ;;  %v10139_v42 = vld [vmem:[%s20642_s4] sm:$0xf] }
 0x63f   : > { %v15871_v38 = vadd.f32 %v3328_v0, %v3326_v34  ;;  %v3296_v43 = vsub.f32 1.0, %v3295_v60  ;;  %v10176_v26 = vor.u32 %v12261_v16, %v10173_v37  ;;  %v10180_v53 = vor.u32 %v12264_v19, %v10179_v32  ;;  %3590 = vmatpush.bf16.msra.mxu2 %v10196_v15  ;;  %v12258_v0 = vld [vmem:[%s20642_s4 + $0x2c] sm:$0xf]  ;;  %v10141_v1 = vld [vmem:[%s20642_s4 + $0x10] sm:$0xf0] }
 0x640   : > { %v15876_v12 = vpop.eup %13009  ;;  %v3283_v18 = vadd.f32 %v15775_v33, %v3282_v9  ;;  %3604 = vmatpush.bf16.msra.mxu3 %v10200_v45  ;;  %v10184_v13 = vor.u32 %v12262_v59, %v10181_v36  ;;  %v3268_v8 = vadd.f32 %v15769_v40, %v3267_v29  ;;  %v10156_v34 = vor.u32 %v12259_v3, %v10155_v35  ;;  %v10147_v10 = vld [vmem:[%s20642_s4 + $0x8] sm:$0xf]  ;;  %v3352_v29 = vld [vmem:[%s16017_s28] sm:$0xff] }
 0x641   : > { %v3297_v24 = vmul.f32 %v15843_v56, %v3296_v43  ;;  %v3310_v27 = vmul.f32 %v15876_v12, %v15772_v30  ;;  %13011 = vtanh.f32 %v15871_v38  ;;  %3577 = vmatpush.bf16.msra.mxu1 %v10176_v26  ;;  %v10160_v60 = vor.u32 %v12257_v52, %v10157_v54  ;;  %v10149_v43 = vld [vmem:[%s20642_s4 + $0x18] sm:$0xf0]  ;;  %v3356_v35 = vld [vmem:[%s16017_s28 + $0x20] sm:$0xff]  ;;  %v3357_v3 = vld [vmem:[%s16017_s28 + $0x28] sm:$0xff] }
 0x642   : > { %v3287_v22 = vsel %vm15883_vm3, %v15775_v33, %v3283_v18  ;;  %v3273_v49 = vand.u32 2147483647, %v15715_v39  ;;  %v10164_v28 = vor.u32 %v12260_v57, %v10163_v55  ;;  %v10168_v6 = vor.u32 %v12258_v0, %v10165_v5  ;;  %3564 = vmatpush.bf16.msra.mxu0 %v10156_v34  ;;  %v12318_v57 = vld [vmem:[%s20642_s4 + $0xec] sm:$0xf0] }
 0x643   : > { %v3311_v46 = vsub.f32 1.0, %v3310_v27  ;;  %v3292_v47 = vsel %vm3289_vm6, %v3291_v2, %v3287_v22  ;;  %v3298_v50 = vadd.f32 %v15843_v56, %v3297_v24  ;;  %v3275_v2 = vand.u32 2147483648, %v15715_v39  ;;  %3591 = vmatpush.bf16.msra.mxu2 %v10180_v53  ;;  %v12256_v39 = vld [vmem:[%s20642_s4 + $0x14] sm:$0xf0]  ;;  %v3354_v53 = vld [vmem:[%s16017_s28 + $0x10] sm:$0xff] }
 0x644   : > { %v3329_v44 = vmul.f32 %v13008_v11, %v3292_v47  ;;  %3605 = vmatpush.bf16.msra.mxu3 %v10184_v13  ;;  %v12254_v11 = vld [vmem:[%s20642_s4 + $0xc] sm:$0xf]  ;;  %v3272_v51 = vsel %vm15971_vm10, %v15769_v40, %v3268_v8  ;;  %vm3315_vm11 = vweird.f32 %v15876_v12  ;;  %vm3314_vm12 = vweird.f32 %v15772_v30  ;;  %v12316_v8 = vld [vmem:[%s20642_s4 + $0xe4] sm:$0xf] }
 0x645   : > { %v3302_v31 = vsel %vm15925_vm7, %v15843_v56, %v3298_v50  ;;  %v3312_v61 = vmul.f32 %v15876_v12, %v3311_v46  ;;  %v3276_v18 = vor.u32 1.1754944e-38, %v3275_v2  ;;  %v3320_v20 = vand.u32 2147483648, %v15772_v30  ;;  %3578 = vmatpush.bf16.msra.mxu1 %v10160_v60  ;;  %vm3316_vm14 = vmor %vm3314_vm12, %vm3315_vm11  ;;  %v3353_v46 = vld [vmem:[%s16017_s28 + $0x8] sm:$0xff]  ;;  %v3355_v60 = vld [vmem:[%s16017_s28 + $0x18] sm:$0xff] }
 0x646   : > { %v3307_v56 = vsel %vm15929_vm8, %v3306_v23, %v3302_v31  ;;  %v10144_v63 = vor.u32 %v12253_v48, %v10141_v1  ;;  %vm3274_vm13 = vcmp.eq.f32.partialorder %v3273_v49, 8.507059e+37  ;;  %v3318_v40 = vand.u32 2147483647, %v15772_v30  ;;  %v10397_v48 = vld [vmem:[%s20642_s4 + $0xe8] sm:$0xf] }
 0x647   : > { %v3327_v7 = vmul.f32 %v3307_v56, %v15621_v4  ;;  %v12255_v4 = vld [vmem:[%s20642_s4 + $0xc] sm:$0xf0]  ;;  %v3313_v14 = vadd.f32 %v15876_v12, %v3312_v61  ;;  %v13012_v17 = vpop.eup %13011  ;;  %3592 = vmatpush.bf16.msra.mxu2 %v10164_v28  ;;  %v10148_v15 = vor.u32 %v12256_v39, %v10147_v10  ;;  %v10152_v62 = vor.u32 %v12254_v11, %v10149_v43  ;;  %v10389_v56 = vld [vmem:[%s20642_s4 + $0xe0] sm:$0xf]  ;;  %v12319_v1 = vld [vmem:[%s20642_s4 + $0xf4] sm:$0xf0] }
 0x648   : > { %v10140_v21 = vor.u32 %v12255_v4, %v10139_v42  ;;  %3606 = vmatpush.bf16.msra.mxu3 %v10168_v6  ;;  %v3277_v16 = vsel %vm3274_vm13, %v3276_v18, %v3272_v51  ;;  %v3321_v45 = vor.u32 1.1754944e-38, %v3320_v20  ;;  %vm3319_vm15 = vcmp.eq.f32.partialorder %v3318_v40, 8.507059e+37  ;;  %v10391_v4 = vld [vmem:[%s20642_s4 + $0xf0] sm:$0xf0]  ;;  %v12317_v11 = vld [vmem:[%s20642_s4 + $0xec] sm:$0xf] }
 0x649   : > { %v15982_v9 = vadd.f32 %v3329_v44, %v3327_v7  ;;  %v3317_v24 = vsel %vm3316_vm14, %v15876_v12, %v3313_v14  ;;  %v3334_v27 = vmul.f32 %v13012_v17, %v3277_v16  ;;  %3579 = vmatpush.bf16.msra.mxu1 %v10144_v63  ;;  %v10390_v7 = vor.u32 %v12318_v57, %v10389_v56  ;;  %v3358_v28 = vld [vmem:[%s16017_s28 + $0x30] sm:$0xff]  ;;  %v10399_v43 = vld [vmem:[%s20642_s4 + $0xf8] sm:$0xf0]  ;;  %v10373_v51 = vld [vmem:[%s20642_s4 + $0xc0] sm:$0xf] }
 0x64a   : > { %3565 = vmatpush.bf16.msra.mxu0 %v10140_v21  ;;  %v3322_v30 = vsel %vm3319_vm15, %v3321_v45, %v3317_v24  ;;  %v10394_v6 = vor.u32 %v12316_v8, %v10391_v4  ;;  %v12314_v17 = vld [vmem:[%s20642_s4 + $0xcc] sm:$0xf0]  ;;  %v12312_v18 = vld [vmem:[%s20642_s4 + $0xc4] sm:$0xf]  ;;  %v10398_v20 = vor.u32 %v12319_v1, %v10397_v48  ;;  %v10375_v21 = vld [vmem:[%s20642_s4 + $0xd0] sm:$0xf0] }
 0x64b   : > { %13013 = vtanh.f32 %v15982_v9  ;;  %3593 = vmatpush.bf16.msra.mxu2 %v10148_v15  ;;  %v3338_v19 = vpack.c.bf16 %v3334_v27, %v3334_v27  ;;  %v10381_v63 = vld [vmem:[%s20642_s4 + $0xc8] sm:$0xf]  ;;  %v10374_v16 = vor.u32 %v12314_v17, %v10373_v51  ;;  %v10378_v24 = vor.u32 %v12312_v18, %v10375_v21  ;;  %v12313_v45 = vld [vmem:[%s20642_s4 + $0xcc] sm:$0xf]  ;;  %v10359_v56 = vld [vmem:[%s20642_s4 + $0xb0] sm:$0xf0] }
 0x64c   : > { %3607 = vmatpush.bf16.msra.mxu3 %v10152_v62  ;;  %v10402_v62 = vor.u32 %v12317_v11, %v10399_v43  ;;  %v10365_v43 = vld [vmem:[%s20642_s4 + $0xa8] sm:$0xf]  ;;  %v12311_v51 = vld [vmem:[%s20642_s4 + $0xb4] sm:$0xf0]  ;;  %v12297_v21 = vld [vmem:[%s20642_s4 + $0x4c] sm:$0xf] }
 0x64d   : > { %v3394_v59 = vunpack.c.l.b16 %v3338_v19  ;;  %3984 = vmatpush.bf16.msrb.mxu1 %v10394_v6 }
 0x64e   : > { %3970 = vmatpush.bf16.msrb.mxu0 %v10390_v7 }
 0x64f   : > { %3998 = vmatpush.bf16.msrb.mxu2 %v10398_v20 }
 0x650   : > { %4012 = vmatpush.bf16.msrb.mxu3 %v10402_v62 }
 0x651   : > { %v13014_v37 = vpop.eup %13013  ;;  %3985 = vmatpush.bf16.msrb.mxu1 %v10378_v24  ;;  %v12304_v24 = vld [vmem:[%s20642_s4 + $0x84] sm:$0xf] }
 0x652   : > { %v3335_v32 = vmul.f32 %v13014_v37, %v3322_v30  ;;  %3971 = vmatpush.bf16.msrb.mxu0 %v10374_v16 }
 0x654   : > { %v3339_v23 = vpack.c.bf16 %v3335_v32, %v3335_v32  ;;  %v12746_v22 = vpack.c.bf16 %v3335_v32, %v3334_v27  ;;  %v12315_v27 = vld [vmem:[%s20642_s4 + $0xd4] sm:$0xf0] }
 0x655   : > { %v10382_v19 = vor.u32 %v12315_v27, %v10381_v63  ;;  %v12306_v63 = vld [vmem:[%s20642_s4 + $0x8c] sm:$0xf0]  ;;  %v10343_v27 = vld [vmem:[%s20642_s4 + $0x90] sm:$0xf0] }
 0x656   : > { %12747 = vst [vmem:[%s3343_s20] sm:$0xff] %v12746_v22   ;;  %v3395_v36 = vunpack.c.l.b16 %v3339_v23  ;;  %v10383_v23 = vld [vmem:[%s20642_s4 + $0xd8] sm:$0xf0] }
 0x657   : > { %3999 = vmatpush.bf16.msrb.mxu2 %v10382_v19 }
 0x658   : > { %v3396_v12 = vpack.c.b16 %v3395_v36, %v3394_v59 }
 0x65a   : > { %3566 = vmatmul.bf16.vlgmr.msra.gmra.mxu0 %v3396_v12  ;;  %3580 = vmatmul.bf16.vlgmr.msra.gmra.mxu1 %v3396_v12 }
 0x65b   : > { %3594 = vmatmul.bf16.vlgmr.msra.gmra.mxu2 %v3396_v12  ;;  %3608 = vmatmul.bf16.vlgmr.msra.gmra.mxu3 %v3396_v12  ;;  %v10386_v12 = vor.u32 %v12313_v45, %v10383_v23 }
 0x65d   : > { %4013 = vmatpush.bf16.msrb.mxu3 %v10386_v12 }
 0x6d7   : > { %v3567_v47 = vpop.f32.mrf.mxu0  ;;  %v3581_v50 = vpop.f32.mrf.mxu1 }
 0x6d8   : > { %v3614_v25 = vadd.f32 %v3567_v47, %v3352_v29  ;;  %v3615_v33 = vadd.f32 %v3581_v50, %v3353_v46  ;;  %v3359_v47 = vld [vmem:[%s16017_s28 + $0x38] sm:$0xff]  ;;  %s12286_s28 = sadd.s32 64, %s14923_s13 }
 0x6d9   : > { %s3752_s12 = sshra.s32 %s12286_s28, 3 }
 0x6da   : > { %v10265_v58 = vmul.f32 -1.442695, %v3614_v25  ;;  %v10266_v26 = vmul.f32 -1.442695, %v3615_v33  ;;  %v10357_v25 = vld [vmem:[%s20642_s4 + $0xa0] sm:$0xf] }
 0x6db   : > { %v12310_v33 = vld [vmem:[%s20642_s4 + $0xac] sm:$0xf0]  ;;  %s10272_s28 = sshll.u32 %s3752_s12, 2 }
 0x6dc   : > { %13015 = vpow2.f32 %v10265_v58  ;;  %s3755_s22 = scalar_lea.vmem [#allocation3], %s10272_s28 }
 0x6dd   : > { %13017 = vpow2.f32 %v10266_v26 }
 0x6de   : > { %v3595_v31 = vpop.f32.mrf.mxu2  ;;  %v3609_v5 = vpop.f32.mrf.mxu3 }
 0x6df   : > { %v3616_v44 = vadd.f32 %v3595_v31, %v3354_v53  ;;  %v3569_v13 = vpop.f32.mrf.mxu0  ;;  %v3583_v52 = vpop.f32.mrf.mxu1  ;;  %v3617_v10 = vadd.f32 %v3609_v5, %v3355_v60 }
 0x6e0   : > { %v3618_v54 = vadd.f32 %v3569_v13, %v3356_v35  ;;  %v3619_v55 = vadd.f32 %v3583_v52, %v3357_v3 }
 0x6e1   : > { %v10267_v61 = vmul.f32 -1.442695, %v3616_v44 }
 0x6e2   : > { %v13016_v0 = vpop.eup %13015  ;;  %v10268_v2 = vmul.f32 -1.442695, %v3618_v54  ;;  %v10269_v42 = vmul.f32 -1.442695, %v3619_v55  ;;  %v10358_v55 = vor.u32 %v12310_v33, %v10357_v25  ;;  %v10366_v25 = vor.u32 %v12311_v51, %v10365_v43  ;;  %v12298_v43 = vld [vmem:[%s20642_s4 + $0x4c] sm:$0xf0] }
 0x6e3   : > { %v13018_v41 = vpop.eup %13017  ;;  %v16033_v34 = vadd.f32 1.0, %v13016_v0  ;;  %13019 = vpow2.f32 %v10267_v61  ;;  %v12308_v61 = vld [vmem:[%s20642_s4 + $0xa4] sm:$0xf] }
 0x6e4   : > { %v16039_v49 = vadd.f32 1.0, %v13018_v41  ;;  %13021 = vpow2.f32 %v10268_v2  ;;  %3972 = vmatpush.bf16.msrb.mxu0 %v10358_v55  ;;  %v10362_v6 = vor.u32 %v12308_v61, %v10359_v56  ;;  %4000 = vmatpush.bf16.msrb.mxu2 %v10366_v25  ;;  %v12296_v51 = vld [vmem:[%s20642_s4 + $0x44] sm:$0xf] }
 0x6e5   : > { %13023 = vrcp.f32 %v16033_v34  ;;  %v3655_v32 = vand.u32 2147483647, %v16033_v34  ;;  %v3657_v59 = vand.u32 2147483648, %v16033_v34  ;;  %vm3651_vm0 = vweird.f32 %v16033_v34 }
 0x6e6   : > { %13025 = vrcp.f32 %v16039_v49  ;;  %v3597_v39 = vpop.f32.mrf.mxu2  ;;  %v3611_v50 = vpop.f32.mrf.mxu3  ;;  %vm3666_vm1 = vweird.f32 %v16039_v49  ;;  %v3672_v53 = vand.u32 2147483648, %v16039_v49  ;;  %v3670_v31 = vand.u32 2147483647, %v16039_v49  ;;  %3986 = vmatpush.bf16.msrb.mxu1 %v10362_v6  ;;  %v10335_v6 = vld [vmem:[%s20642_s4 + $0x78] sm:$0xf0] }
 0x6e7   : > { %13027 = vpow2.f32 %v10269_v42  ;;  %v3620_v14 = vadd.f32 %v3597_v39, %v3358_v28  ;;  %vm16106_vm2 = vcmp.eq.f32.partialorder %v3655_v32, 8.507059e+37  ;;  %v3658_v52 = vor.u32 1.1754944e-38, %v3657_v59 }
 0x6e8   : > { %13029 = vtanh.f32 %v3617_v10  ;;  %v3621_v54 = vadd.f32 %v3611_v50, %v3359_v47  ;;  %v3673_v8 = vor.u32 1.1754944e-38, %v3672_v53  ;;  %vm16144_vm6 = vcmp.eq.f32.partialorder %v3670_v31, 8.507059e+37  ;;  %v12305_v47 = vld [vmem:[%s20642_s4 + $0x8c] sm:$0xf]  ;;  %v10351_v50 = vld [vmem:[%s20642_s4 + $0x98] sm:$0xf0] }
 0x6e9   : > { %v13020_v40 = vpop.eup %13019  ;;  %v10270_v15 = vmul.f32 -1.442695, %v3620_v14  ;;  %v10367_v14 = vld [vmem:[%s20642_s4 + $0xb8] sm:$0xf0]  ;;  %v10309_v10 = vld [vmem:[%s20642_s4 + $0x40] sm:$0xf] }
 0x6ea   : > { %v13022_v37 = vpop.eup %13021  ;;  %v16077_v30 = vadd.f32 1.0, %v13020_v40 }
 0x6eb   : > { %v16083_v22 = vpop.eup %13023  ;;  %v16086_v36 = vadd.f32 1.0, %v13022_v37  ;;  %13031 = vpow2.f32 %v10270_v15 }
 0x6ec   : > { %v16088_v29 = vpop.eup %13025  ;;  %v3647_v46 = vmul.f32 %v16083_v22, %v16033_v34  ;;  %13033 = vrcp.f32 %v16077_v30  ;;  %vm3652_vm3 = vweird.f32 %v16083_v22  ;;  %v3687_v1 = vand.u32 2147483648, %v16077_v30  ;;  %v12309_v34 = vld [vmem:[%s20642_s4 + $0xac] sm:$0xf] }
 0x6ed   : > { %v13028_v58 = vpop.eup %13027  ;;  %v3662_v26 = vmul.f32 %v16088_v29, %v16039_v49  ;;  %13035 = vrcp.f32 %v16086_v36  ;;  %v3700_v5 = vand.u32 2147483647, %v16086_v36  ;;  %vm3667_vm4 = vweird.f32 %v16088_v29  ;;  %vm16139_vm5 = vmor %vm3651_vm0, %vm3652_vm3  ;;  %v10341_v49 = vld [vmem:[%s20642_s4 + $0x80] sm:$0xf] }
 0x6ee   : > { %v3648_v35 = vsub.f32 1.0, %v3647_v46  ;;  %v16111_v44 = vadd.f32 1.0, %v13028_v58  ;;  %v13030_v57 = vpop.eup %13029  ;;  %v3702_v41 = vand.u32 2147483648, %v16086_v36  ;;  %vm16164_vm7 = vmor %vm3666_vm1, %vm3667_vm4  ;;  %vm3696_vm9 = vweird.f32 %v16086_v36  ;;  %v12307_v46 = vld [vmem:[%s20642_s4 + $0x94] sm:$0xf0] }
 0x6ef   : > { %v3663_v13 = vsub.f32 1.0, %v3662_v26  ;;  %vm16174_vm8 = vcmp.eq.f32.partialorder %v3700_v5, 8.507059e+37  ;;  %v10370_v33 = vor.u32 %v12309_v34, %v10367_v14  ;;  %v10325_v58 = vld [vmem:[%s20642_s4 + $0x60] sm:$0xf]  ;;  %v12302_v26 = vld [vmem:[%s20642_s4 + $0x6c] sm:$0xf0]  ;;  %v10342_v31 = vor.u32 %v12306_v63, %v10341_v49 }
 0x6f0   : > { %v3649_v0 = vmul.f32 %v16083_v22, %v3648_v35  ;;  %13037 = vrcp.f32 %v16111_v44  ;;  %v3717_v4 = vand.u32 2147483648, %v16111_v44  ;;  %v3703_v16 = vor.u32 1.1754944e-38, %v3702_v41  ;;  %v12303_v5 = vld [vmem:[%s20642_s4 + $0x74] sm:$0xf0]  ;;  %v10311_v34 = vld [vmem:[%s20642_s4 + $0x50] sm:$0xf0] }
 0x6f1   : > { %v13032_v2 = vpop.eup %13031  ;;  %v3664_v7 = vmul.f32 %v16088_v29, %v3663_v13  ;;  %13039 = vtanh.f32 %v3621_v54  ;;  %v3715_v23 = vand.u32 2147483647, %v16111_v44  ;;  %v10346_v13 = vor.u32 %v12304_v24, %v10343_v27  ;;  %v10327_v54 = vld [vmem:[%s20642_s4 + $0x70] sm:$0xf0]  ;;  %4014 = vmatpush.bf16.msrb.mxu3 %v10370_v33  ;;  %3973 = vmatpush.bf16.msrb.mxu0 %v10342_v31  ;;  %v10319_v27 = vld [vmem:[%s20642_s4 + $0x58] sm:$0xf0] }
 0x6f2   : > { %v16126_v60 = vpop.eup %13033  ;;  %v3650_v42 = vadd.f32 %v16083_v22, %v3649_v0  ;;  %v16130_v28 = vadd.f32 1.0, %v13032_v2  ;;  %v16201_v19 = vor.u32 1.1754944e-38, %v3717_v4  ;;  %v10333_v0 = vld [vmem:[%s20642_s4 + $0x68] sm:$0xf]  ;;  %v12301_v2 = vld [vmem:[%s20642_s4 + $0x6c] sm:$0xf]  ;;  %vm3711_vm14 = vweird.f32 %v16111_v44 }
 0x6f3   : > { %v16132_v48 = vpop.eup %13035  ;;  %v3665_v39 = vadd.f32 %v16088_v29, %v3664_v7  ;;  %v3677_v40 = vmul.f32 %v16126_v60, %v16077_v30  ;;  %vm16260_vm13 = vcmp.eq.f32.partialorder %v3715_v23, 8.507059e+37  ;;  %3987 = vmatpush.bf16.msrb.mxu1 %v10346_v13  ;;  %vm3682_vm0 = vweird.f32 %v16126_v60  ;;  %v10279_v31 = vld [vmem:[%s20642_s4 + $0x10] sm:$0xf0]  ;;  %v10287_v4 = vld [vmem:[%s20642_s4 + $0x18] sm:$0xf0] }
 0x6f4   : > { %v3654_v18 = vsel %vm16139_vm5, %v16083_v22, %v3650_v42  ;;  %v3692_v20 = vmul.f32 %v16132_v48, %v16086_v36  ;;  %13041 = vrcp.f32 %v16130_v28  ;;  %v10349_v22 = vld [vmem:[%s20642_s4 + $0x88] sm:$0xf]  ;;  %vm3697_vm10 = vweird.f32 %v16132_v48  ;;  %v12289_v42 = vld [vmem:[%s20642_s4 + $0xc] sm:$0xf] }
 0x6f5   : > { %v3659_v15 = vsel %vm16106_vm2, %v3658_v52, %v3654_v18  ;;  %v3669_v62 = vsel %vm16164_vm7, %v16088_v29, %v3665_v39  ;;  %v3678_v35 = vsub.f32 1.0, %v3677_v40  ;;  %v12300_v52 = vld [vmem:[%s20642_s4 + $0x64] sm:$0xf]  ;;  %v10350_v56 = vor.u32 %v12307_v46, %v10349_v22  ;;  %vm16256_vm12 = vmor %vm3696_vm9, %vm3697_vm10  ;;  %v10317_v40 = vld [vmem:[%s20642_s4 + $0x48] sm:$0xf] }
 0x6f6   : > { %v16197_v45 = vpop.eup %13037  ;;  %v3674_v37 = vsel %vm16144_vm6, %v3673_v8, %v3669_v62  ;;  %v3693_v32 = vsub.f32 1.0, %v3692_v20  ;;  %v3740_v12 = vmul.f32 %v13030_v57, %v3659_v15  ;;  %v10354_v57 = vor.u32 %v12305_v47, %v10351_v50  ;;  %v12299_v15 = vld [vmem:[%s20642_s4 + $0x54] sm:$0xf0]  ;;  %v12292_v22 = vld [vmem:[%s20642_s4 + $0x24] sm:$0xf] }
 0x6f7   : > { %v3738_v59 = vmul.f32 %v3674_v37, %v15871_v38  ;;  %v3707_v29 = vmul.f32 %v16197_v45, %v16111_v44  ;;  %v13040_v53 = vpop.eup %13039  ;;  %vm3712_vm11 = vweird.f32 %v16197_v45  ;;  %v10326_v39 = vor.u32 %v12302_v26, %v10325_v58  ;;  %4001 = vmatpush.bf16.msrb.mxu2 %v10350_v56  ;;  %v10293_v37 = vld [vmem:[%s20642_s4 + $0x20] sm:$0xf]  ;;  %v12293_v58 = vld [vmem:[%s20642_s4 + $0x2c] sm:$0xf]  ;;  %v10303_v26 = vld [vmem:[%s20642_s4 + $0x38] sm:$0xf0] }
 0x6f8   : > { %v3694_v38 = vmul.f32 %v16132_v48, %v3693_v32  ;;  %v10330_v11 = vor.u32 %v12300_v52, %v10327_v54  ;;  %v3679_v44 = vmul.f32 %v16126_v60, %v3678_v35  ;;  %vm16286_vm15 = vmor %vm3711_vm14, %vm3712_vm11  ;;  %4015 = vmatpush.bf16.msrb.mxu3 %v10354_v57  ;;  %v10334_v49 = vor.u32 %v12303_v5, %v10333_v0  ;;  %v12294_v32 = vld [vmem:[%s20642_s4 + $0x2c] sm:$0xf0]  ;;  %v10285_v5 = vld [vmem:[%s20642_s4 + $0x8] sm:$0xf] }
 0x6f9   : > { %v3708_v3 = vsub.f32 1.0, %v3707_v29  ;;  %v16247_v7 = vadd.f32 %v3740_v12, %v3738_v59  ;;  %v10338_v63 = vor.u32 %v12301_v2, %v10335_v6  ;;  %3974 = vmatpush.bf16.msrb.mxu0 %v10326_v39  ;;  %v10314_v24 = vor.u32 %v12296_v51, %v10311_v34  ;;  %v10295_v59 = vld [vmem:[%s20642_s4 + $0x30] sm:$0xf0]  ;;  %v12290_v35 = vld [vmem:[%s20642_s4 + $0xc] sm:$0xf0] }
 0x6fa   : > { %v16234_v55 = vpop.eup %13041  ;;  %v3695_v61 = vadd.f32 %v16132_v48, %v3694_v38  ;;  %3988 = vmatpush.bf16.msrb.mxu1 %v10330_v11  ;;  %vm3681_vm1 = vweird.f32 %v16077_v30  ;;  %v3688_v12 = vor.u32 1.1754944e-38, %v3687_v1  ;;  %v10318_v46 = vor.u32 %v12299_v15, %v10317_v40  ;;  %v10301_v38 = vld [vmem:[%s20642_s4 + $0x28] sm:$0xf]  ;;  %v12352_v56 = vld [vmem:[%s20642_s4 + $0xec] sm:$0xf] }
 0x6fb   : > { %v3709_v8 = vmul.f32 %v16197_v45, %v3708_v3  ;;  %v3722_v41 = vmul.f32 %v16234_v55, %v16130_v28  ;;  %13043 = vtanh.f32 %v16247_v7  ;;  %vm16333_vm2 = vmor %vm3681_vm1, %vm3682_vm0  ;;  %4002 = vmatpush.bf16.msrb.mxu2 %v10334_v49  ;;  %v10322_v47 = vor.u32 %v12297_v21, %v10319_v27  ;;  %v12288_v3 = vld [vmem:[%s20642_s4 + $0x4] sm:$0xf]  ;;  %v3765_v49 = vld [vmem:[%s16398_s25 + $0x8] sm:$0xff] }
 0x6fc   : > { %v3699_v36 = vsel %vm16256_vm12, %v16132_v48, %v3695_v61  ;;  %4016 = vmatpush.bf16.msrb.mxu3 %v10338_v63  ;;  %v10294_v50 = vor.u32 %v12294_v32, %v10293_v37  ;;  %v3685_v1 = vand.u32 2147483647, %v16077_v30  ;;  %vm3727_vm3 = vweird.f32 %v16234_v55  ;;  %v3768_v27 = vld [vmem:[%s16398_s25 + $0x20] sm:$0xff]  ;;  %v3769_v37 = vld [vmem:[%s16398_s25 + $0x28] sm:$0xff] }
 0x6fd   : > { %v3723_v14 = vsub.f32 1.0, %v3722_v41  ;;  %v3704_v17 = vsel %vm16174_vm8, %v3703_v16, %v3699_v36  ;;  %v3710_v18 = vadd.f32 %v16197_v45, %v3709_v8  ;;  %v10310_v16 = vor.u32 %v12298_v43, %v10309_v10  ;;  %v12291_v41 = vld [vmem:[%s20642_s4 + $0x14] sm:$0xf0] }
 0x6fe   : > { %v3741_v20 = vmul.f32 %v13040_v53, %v3704_v17  ;;  %3989 = vmatpush.bf16.msrb.mxu1 %v10314_v24  ;;  %v10298_v33 = vor.u32 %v12292_v22, %v10295_v59  ;;  %v10277_v53 = vld [vmem:[%s20642_s4] sm:$0xf]  ;;  %v3680_v30 = vadd.f32 %v16126_v60, %v3679_v44  ;;  %vm3726_vm4 = vweird.f32 %v16130_v28  ;;  %v3766_v24 = vld [vmem:[%s16398_s25 + $0x10] sm:$0xff] }
 0x6ff   : > { %v3714_v62 = vsel %vm16286_vm15, %v16197_v45, %v3710_v18  ;;  %v3724_v23 = vmul.f32 %v16234_v55, %v3723_v14  ;;  %3975 = vmatpush.bf16.msrb.mxu0 %v10310_v16  ;;  %v3732_v54 = vand.u32 2147483648, %v16130_v28  ;;  %vm16375_vm5 = vmor %vm3726_vm4, %vm3727_vm3  ;;  %4003 = vmatpush.bf16.msrb.mxu2 %v10318_v46  ;;  %v10306_v0 = vor.u32 %v12293_v58, %v10303_v26  ;;  %v12353_v58 = vld [vmem:[%s20642_s4 + $0xec] sm:$0xf0] }
 0x700   : > { %v3719_v45 = vsel %vm16260_vm13, %v16201_v19, %v3714_v62  ;;  %v3684_v61 = vsel %vm16333_vm2, %v16126_v60, %v3680_v30  ;;  %4017 = vmatpush.bf16.msrb.mxu3 %v10322_v47  ;;  %vm3686_vm6 = vcmp.eq.f32.partialorder %v3685_v1, 8.507059e+37  ;;  %v3730_v2 = vand.u32 2147483647, %v16130_v28  ;;  %v3767_v1 = vld [vmem:[%s16398_s25 + $0x18] sm:$0xff] }
 0x701   : > { %v3739_v29 = vmul.f32 %v3719_v45, %v15982_v9  ;;  %v12295_v9 = vld [vmem:[%s20642_s4 + $0x34] sm:$0xf0]  ;;  %v3725_v13 = vadd.f32 %v16234_v55, %v3724_v23  ;;  %v13044_v52 = vpop.eup %13043  ;;  %v10278_v60 = vor.u32 %v12290_v35, %v10277_v53  ;;  %v10282_v8 = vor.u32 %v12288_v3, %v10279_v31  ;;  %v3770_v53 = vld [vmem:[%s16398_s25 + $0x30] sm:$0xff]  ;;  %v12351_v35 = vld [vmem:[%s20642_s4 + $0xe4] sm:$0xf] }
 0x702   : > { %v10302_v57 = vor.u32 %v12295_v9, %v10301_v38  ;;  %3990 = vmatpush.bf16.msrb.mxu1 %v10298_v33  ;;  %v3689_v6 = vsel %vm3686_vm6, %v3688_v12, %v3684_v61  ;;  %v3733_v36 = vor.u32 1.1754944e-38, %v3732_v54  ;;  %v10286_v39 = vor.u32 %v12291_v41, %v10285_v5  ;;  %v10527_v33 = vld [vmem:[%s20642_s4 + $0xe0] sm:$0xf]  ;;  %v10529_v3 = vld [vmem:[%s20642_s4 + $0xf0] sm:$0xf0] }
 0x703   : > { %v16345_v25 = vadd.f32 %v3741_v20, %v3739_v29  ;;  %3976 = vmatpush.bf16.msrb.mxu0 %v10294_v50  ;;  %v3729_v28 = vsel %vm16375_vm5, %v16234_v55, %v3725_v13  ;;  %v3746_v10 = vmul.f32 %v13044_v52, %v3689_v6  ;;  %v10290_v11 = vor.u32 %v12289_v42, %v10287_v4  ;;  %v3764_v20 = vld [vmem:[%s16398_s25] sm:$0xff]  ;;  %v10535_v52 = vld [vmem:[%s20642_s4 + $0xe8] sm:$0xf]  ;;  %v12354_v54 = vld [vmem:[%s20642_s4 + $0xf4] sm:$0xf0] }
 0x704   : > { %4004 = vmatpush.bf16.msrb.mxu2 %v10302_v57  ;;  %4018 = vmatpush.bf16.msrb.mxu3 %v10306_v0  ;;  %vm3731_vm7 = vcmp.eq.f32.partialorder %v3730_v2, 8.507059e+37  ;;  %v10528_v30 = vor.u32 %v12353_v58, %v10527_v33  ;;  %v10537_v57 = vld [vmem:[%s20642_s4 + $0xf8] sm:$0xf0]  ;;  %v10532_v5 = vor.u32 %v12351_v35, %v10529_v3  ;;  %v10511_v2 = vld [vmem:[%s20642_s4 + $0xc0] sm:$0xf]  ;;  %v10536_v42 = vor.u32 %v12354_v54, %v10535_v52 }
 0x705   : > { %13045 = vtanh.f32 %v16345_v25  ;;  %v3734_v51 = vsel %vm3731_vm7, %v3733_v36, %v3729_v28  ;;  %v3750_v44 = vpack.c.bf16 %v3746_v10, %v3746_v10  ;;  %v10540_v4 = vor.u32 %v12352_v56, %v10537_v57  ;;  %v12347_v28 = vld [vmem:[%s20642_s4 + $0xc4] sm:$0xf] }
 0x706   : > { %3991 = vmatpush.bf16.msrb.mxu1 %v10282_v8  ;;  %v12343_v54 = vld [vmem:[%s20642_s4 + $0xa4] sm:$0xf] }
 0x707   : > { %3977 = vmatpush.bf16.msrb.mxu0 %v10278_v60  ;;  %v3806_v55 = vunpack.c.l.b16 %v3750_v44  ;;  %v12349_v60 = vld [vmem:[%s20642_s4 + $0xcc] sm:$0xf0] }
 0x708   : > { %4005 = vmatpush.bf16.msrb.mxu2 %v10286_v39  ;;  %4019 = vmatpush.bf16.msrb.mxu3 %v10290_v11  ;;  %v10512_v6 = vor.u32 %v12349_v60, %v10511_v2  ;;  %v12344_v60 = vld [vmem:[%s20642_s4 + $0xac] sm:$0xf] }
 0x70a   : > { %4396 = vmatpush.bf16.msra.mxu1 %v10532_v5  ;;  %v10455_v5 = vld [vmem:[%s20642_s4 + $0x48] sm:$0xf] }
 0x70b   : > { %v13046_v43 = vpop.eup %13045  ;;  %4382 = vmatpush.bf16.msra.mxu0 %v10528_v30 }
 0x70c   : > { %v3747_v34 = vmul.f32 %v13046_v43, %v3734_v51  ;;  %v10519_v43 = vld [vmem:[%s20642_s4 + $0xc8] sm:$0xf]  ;;  %v12350_v51 = vld [vmem:[%s20642_s4 + $0xd4] sm:$0xf0]  ;;  %4410 = vmatpush.bf16.msra.mxu2 %v10536_v42  ;;  %4424 = vmatpush.bf16.msra.mxu3 %v10540_v4 }
 0x70e   : > { %v3751_v48 = vpack.c.bf16 %v3747_v34, %v3747_v34  ;;  %v12751_v14 = vpack.c.bf16 %v3747_v34, %v3746_v10  ;;  %v10513_v10 = vld [vmem:[%s20642_s4 + $0xd0] sm:$0xf0] }
 0x70f   : > { %v10516_v11 = vor.u32 %v12347_v28, %v10513_v10  ;;  %4383 = vmatpush.bf16.msra.mxu0 %v10512_v6  ;;  %v10505_v6 = vld [vmem:[%s20642_s4 + $0xb8] sm:$0xf0]  ;;  %v10479_v28 = vld [vmem:[%s20642_s4 + $0x80] sm:$0xf] }
 0x710   : > { %12752 = vst [vmem:[%s3755_s22] sm:$0xff] %v12751_v14   ;;  %v3807_v17 = vunpack.c.l.b16 %v3751_v48  ;;  %v10520_v14 = vor.u32 %v12350_v51, %v10519_v43  ;;  %v12341_v51 = vld [vmem:[%s20642_s4 + $0x8c] sm:$0xf0] }
 0x711   : > { %4397 = vmatpush.bf16.msra.mxu1 %v10516_v11 }
 0x712   : > { %v3808_v18 = vpack.c.b16 %v3807_v17, %v3806_v55  ;;  %4411 = vmatpush.bf16.msra.mxu2 %v10520_v14 }
 0x714   : > { %3978 = vmatmul.bf16.vlgmr.msrb.gmra.mxu0 %v3808_v18  ;;  %3992 = vmatmul.bf16.vlgmr.msrb.gmra.mxu1 %v3808_v18 }
 0x715   : > { %4006 = vmatmul.bf16.vlgmr.msrb.gmra.mxu2 %v3808_v18  ;;  %4020 = vmatmul.bf16.vlgmr.msrb.gmra.mxu3 %v3808_v18  ;;  %v3771_v18 = vld [vmem:[%s16398_s25 + $0x38] sm:$0xff]  ;;  %s12321_s25 = sadd.s32 80, %s14923_s13 }
 0x716   : > { %s16760_s30 = sshra.s32 %s12321_s25, 3 }
 0x717   : > { %s10410_s22 = sshll.u32 %s16760_s30, 2  ;;  %s12357_s30 = sshll.u32 %s4583_s26, 5 }
 0x718   : > { %s4167_s21 = scalar_lea.vmem [#allocation3], %s10410_s22  ;;  %s17166_s11 = scalar_lea.vmem [#allocation2], %s12357_s30 }
 0x719   : > { %s4994_s26 = sadd.s32 128, %s14606_s16 }
 0x71a   : > { %s4995_s30 = sshra.s32 %s4994_s26, 3 }
 0x791   : > { %v3979_v63 = vpop.f32.mrf.mxu0  ;;  %v3993_v40 = vpop.f32.mrf.mxu1 }
 0x792   : > { %v4026_v15 = vadd.f32 %v3979_v63, %v3764_v20  ;;  %v4027_v21 = vadd.f32 %v3993_v40, %v3765_v49  ;;  %v12348_v49 = vld [vmem:[%s20642_s4 + $0xcc] sm:$0xf]  ;;  %v10521_v63 = vld [vmem:[%s20642_s4 + $0xd8] sm:$0xf0] }
 0x794   : > { %v10403_v62 = vmul.f32 -1.442695, %v4026_v15  ;;  %v10404_v16 = vmul.f32 -1.442695, %v4027_v21 }
 0x796   : > { %13047 = vpow2.f32 %v10403_v62 }
 0x797   : > { %13049 = vpow2.f32 %v10404_v16 }
 0x798   : > { %v4007_v32 = vpop.f32.mrf.mxu2  ;;  %v4021_v46 = vpop.f32.mrf.mxu3 }
 0x799   : > { %v4028_v23 = vadd.f32 %v4007_v32, %v3766_v24  ;;  %v3981_v45 = vpop.f32.mrf.mxu0  ;;  %v3995_v22 = vpop.f32.mrf.mxu1  ;;  %v4029_v31 = vadd.f32 %v4021_v46, %v3767_v1 }
 0x79a   : > { %v4030_v59 = vadd.f32 %v3981_v45, %v3768_v27  ;;  %v4031_v12 = vadd.f32 %v3995_v22, %v3769_v37  ;;  %v10524_v45 = vor.u32 %v12348_v49, %v10521_v63  ;;  %v10495_v22 = vld [vmem:[%s20642_s4 + $0xa0] sm:$0xf] }
 0x79b   : > { %v10405_v29 = vmul.f32 -1.442695, %v4028_v23 }
 0x79c   : > { %v13048_v19 = vpop.eup %13047  ;;  %v10406_v47 = vmul.f32 -1.442695, %v4030_v59  ;;  %v10407_v50 = vmul.f32 -1.442695, %v4031_v12  ;;  %v12345_v59 = vld [vmem:[%s20642_s4 + $0xac] sm:$0xf0]  ;;  %4425 = vmatpush.bf16.msra.mxu3 %v10524_v45 }
 0x79d   : > { %v13050_v38 = vpop.eup %13049  ;;  %v16405_v9 = vadd.f32 1.0, %v13048_v19  ;;  %13051 = vpow2.f32 %v10405_v29  ;;  %v10496_v30 = vor.u32 %v12345_v59, %v10495_v22  ;;  %v12337_v45 = vld [vmem:[%s20642_s4 + $0x6c] sm:$0xf0] }
 0x79e   : > { %v16414_v26 = vadd.f32 1.0, %v13050_v38  ;;  %13053 = vpow2.f32 %v10406_v47 }
 0x79f   : > { %13055 = vrcp.f32 %v16405_v9  ;;  %v4067_v0 = vand.u32 2147483647, %v16405_v9  ;;  %v4069_v44 = vand.u32 2147483648, %v16405_v9  ;;  %vm4063_vm8 = vweird.f32 %v16405_v9  ;;  %4384 = vmatpush.bf16.msra.mxu0 %v10496_v30  ;;  %v12336_v30 = vld [vmem:[%s20642_s4 + $0x6c] sm:$0xf] }
 0x7a0   : > { %13057 = vrcp.f32 %v16414_v26  ;;  %v4009_v13 = vpop.f32.mrf.mxu2  ;;  %v4023_v20 = vpop.f32.mrf.mxu3  ;;  %vm4078_vm9 = vweird.f32 %v16414_v26  ;;  %v4084_v21 = vand.u32 2147483648, %v16414_v26  ;;  %v4082_v24 = vand.u32 2147483647, %v16414_v26 }
 0x7a1   : > { %13059 = vpow2.f32 %v10407_v50  ;;  %v4032_v61 = vadd.f32 %v4009_v13, %v3770_v53  ;;  %vm16481_vm10 = vcmp.eq.f32.partialorder %v4067_v0, 8.507059e+37  ;;  %v4070_v32 = vor.u32 1.1754944e-38, %v4069_v44 }
 0x7a2   : > { %13061 = vtanh.f32 %v4029_v31  ;;  %v4033_v23 = vadd.f32 %v4023_v20, %v3771_v18  ;;  %v4085_v50 = vor.u32 1.1754944e-38, %v4084_v21  ;;  %vm16519_vm14 = vcmp.eq.f32.partialorder %v4082_v24, 8.507059e+37  ;;  %v10487_v18 = vld [vmem:[%s20642_s4 + $0x88] sm:$0xf]  ;;  %v12342_v20 = vld [vmem:[%s20642_s4 + $0x94] sm:$0xf0] }
 0x7a3   : > { %v13052_v8 = vpop.eup %13051  ;;  %v10408_v41 = vmul.f32 -1.442695, %v4032_v61  ;;  %v10497_v61 = vld [vmem:[%s20642_s4 + $0xb0] sm:$0xf0]  ;;  %v10489_v21 = vld [vmem:[%s20642_s4 + $0x98] sm:$0xf0] }
 0x7a4   : > { %v13054_v36 = vpop.eup %13053  ;;  %v16450_v39 = vadd.f32 1.0, %v13052_v8  ;;  %v10500_v63 = vor.u32 %v12343_v54, %v10497_v61  ;;  %v10473_v54 = vld [vmem:[%s20642_s4 + $0x78] sm:$0xf0]  ;;  %v10447_v61 = vld [vmem:[%s20642_s4 + $0x40] sm:$0xf] }
 0x7a5   : > { %v16458_v34 = vpop.eup %13055  ;;  %v16461_v48 = vadd.f32 1.0, %v13054_v36  ;;  %13063 = vpow2.f32 %v10408_v41 }
 0x7a6   : > { %v16463_v55 = vpop.eup %13057  ;;  %v4059_v17 = vmul.f32 %v16458_v34, %v16405_v9  ;;  %13065 = vrcp.f32 %v16450_v39  ;;  %vm4064_vm11 = vweird.f32 %v16458_v34  ;;  %v4099_v3 = vand.u32 2147483648, %v16450_v39  ;;  %v10503_v9 = vld [vmem:[%s20642_s4 + $0xa8] sm:$0xf]  ;;  %4398 = vmatpush.bf16.msra.mxu1 %v10500_v63 }
 0x7a7   : > { %v13060_v40 = vpop.eup %13059  ;;  %v4074_v15 = vmul.f32 %v16463_v55, %v16414_v26  ;;  %13067 = vrcp.f32 %v16461_v48  ;;  %v4112_v19 = vand.u32 2147483647, %v16461_v48  ;;  %vm4079_vm12 = vweird.f32 %v16463_v55  ;;  %vm16514_vm13 = vmor %vm4063_vm8, %vm4064_vm11  ;;  %v12346_v26 = vld [vmem:[%s20642_s4 + $0xb4] sm:$0xf0] }
 0x7a8   : > { %v4060_v62 = vsub.f32 1.0, %v4059_v17  ;;  %v16486_v27 = vadd.f32 1.0, %v13060_v40  ;;  %v13062_v12 = vpop.eup %13061  ;;  %v4114_v38 = vand.u32 2147483648, %v16461_v48  ;;  %vm16536_vm15 = vmor %vm4078_vm9, %vm4079_vm12  ;;  %vm4108_vm1 = vweird.f32 %v16461_v48  ;;  %v10481_v17 = vld [vmem:[%s20642_s4 + $0x90] sm:$0xf0] }
 0x7a9   : > { %v4075_v37 = vsub.f32 1.0, %v4074_v15  ;;  %vm16546_vm0 = vcmp.eq.f32.partialorder %v4112_v19, 8.507059e+37  ;;  %v10504_v40 = vor.u32 %v12346_v26, %v10503_v9  ;;  %v12340_v15 = vld [vmem:[%s20642_s4 + $0x8c] sm:$0xf]  ;;  %v10488_v19 = vor.u32 %v12342_v20, %v10487_v18  ;;  %v12333_v9 = vld [vmem:[%s20642_s4 + $0x4c] sm:$0xf0] }
 0x7aa   : > { %v4061_v29 = vmul.f32 %v16458_v34, %v4060_v62  ;;  %13069 = vrcp.f32 %v16486_v27  ;;  %v4129_v58 = vand.u32 2147483648, %v16486_v27  ;;  %v4127_v2 = vand.u32 2147483647, %v16486_v27 }
 0x7ab   : > { %v13064_v46 = vpop.eup %13063  ;;  %v4076_v47 = vmul.f32 %v16463_v55, %v4075_v37  ;;  %13071 = vtanh.f32 %v4033_v23  ;;  %v4115_v4 = vor.u32 1.1754944e-38, %v4114_v38  ;;  %v10508_v37 = vor.u32 %v12344_v60, %v10505_v6  ;;  %v10463_v23 = vld [vmem:[%s20642_s4 + $0x60] sm:$0xf]  ;;  %4412 = vmatpush.bf16.msra.mxu2 %v10504_v40  ;;  %v10439_v40 = vld [vmem:[%s20642_s4 + $0x28] sm:$0xf] }
 0x7ac   : > { %v16501_v1 = vpop.eup %13065  ;;  %v4062_v33 = vadd.f32 %v16458_v34, %v4061_v29  ;;  %v16505_v53 = vadd.f32 1.0, %v13064_v46  ;;  %v16574_v43 = vor.u32 1.1754944e-38, %v4129_v58  ;;  %vm16597_vm3 = vcmp.eq.f32.partialorder %v4127_v2, 8.507059e+37  ;;  %v12335_v46 = vld [vmem:[%s20642_s4 + $0x64] sm:$0xf] }
 0x7ad   : > { %v16507_v35 = vpop.eup %13067  ;;  %v4077_v13 = vadd.f32 %v16463_v55, %v4076_v47  ;;  %v4089_v8 = vmul.f32 %v16501_v1, %v16450_v39  ;;  %v10465_v47 = vld [vmem:[%s20642_s4 + $0x70] sm:$0xf0]  ;;  %4426 = vmatpush.bf16.msra.mxu3 %v10508_v37  ;;  %v12338_v58 = vld [vmem:[%s20642_s4 + $0x74] sm:$0xf0]  ;;  %vm4123_vm6 = vweird.f32 %v16486_v27  ;;  %v10464_v52 = vor.u32 %v12337_v45, %v10463_v23 }
 0x7ae   : > { %v4066_v57 = vsel %vm16514_vm13, %v16458_v34, %v4062_v33  ;;  %v4104_v0 = vmul.f32 %v16507_v35, %v16461_v48  ;;  %13073 = vrcp.f32 %v16505_v53  ;;  %v12339_v34 = vld [vmem:[%s20642_s4 + $0x84] sm:$0xf]  ;;  %vm4109_vm2 = vweird.f32 %v16507_v35  ;;  %v10471_v33 = vld [vmem:[%s20642_s4 + $0x68] sm:$0xf] }
 0x7af   : > { %v4071_v41 = vsel %vm16481_vm10, %v4070_v32, %v4066_v57  ;;  %v4081_v42 = vsel %vm16536_vm15, %v16463_v55, %v4077_v13  ;;  %v4090_v16 = vsub.f32 1.0, %v4089_v8  ;;  %v10480_v32 = vor.u32 %v12341_v51, %v10479_v28  ;;  %vm16621_vm5 = vmor %vm4108_vm1, %vm4109_vm2  ;;  %4413 = vmatpush.bf16.msra.mxu2 %v10488_v19  ;;  %v12331_v8 = vld [vmem:[%s20642_s4 + $0x44] sm:$0xf]  ;;  %v12334_v28 = vld [vmem:[%s20642_s4 + $0x54] sm:$0xf0] }
 0x7b0   : > { %v16570_v10 = vpop.eup %13069  ;;  %v4086_v36 = vsel %vm16519_vm14, %v4085_v50, %v4081_v42  ;;  %v4105_v11 = vsub.f32 1.0, %v4104_v0  ;;  %v4152_v14 = vmul.f32 %v13062_v12, %v4071_v41  ;;  %v10484_v29 = vor.u32 %v12339_v34, %v10481_v17  ;;  %v10449_v41 = vld [vmem:[%s20642_s4 + $0x50] sm:$0xf0]  ;;  %v10431_v34 = vld [vmem:[%s20642_s4 + $0x20] sm:$0xf] }
 0x7b1   : > { %v4150_v44 = vmul.f32 %v4086_v36, %v16247_v7  ;;  %v4119_v55 = vmul.f32 %v16570_v10, %v16486_v27  ;;  %v13072_v62 = vpop.eup %13071  ;;  %vm4124_vm4 = vweird.f32 %v16570_v10  ;;  %4385 = vmatpush.bf16.msra.mxu0 %v10480_v32  ;;  %v10492_v13 = vor.u32 %v12340_v15, %v10489_v21  ;;  %v12332_v36 = vld [vmem:[%s20642_s4 + $0x4c] sm:$0xf]  ;;  %v12330_v15 = vld [vmem:[%s20642_s4 + $0x34] sm:$0xf0]  ;;  %v12323_v19 = vld [vmem:[%s20642_s4 + $0x4] sm:$0xf] }
 0x7b2   : > { %v4106_v7 = vmul.f32 %v16507_v35, %v4105_v11  ;;  %v4091_v27 = vmul.f32 %v16501_v1, %v4090_v16  ;;  %vm16661_vm7 = vmor %vm4123_vm6, %vm4124_vm4  ;;  %vm4094_vm8 = vweird.f32 %v16501_v1  ;;  %4399 = vmatpush.bf16.msra.mxu1 %v10484_v29  ;;  %v10468_v26 = vor.u32 %v12335_v46, %v10465_v47  ;;  %v10457_v11 = vld [vmem:[%s20642_s4 + $0x58] sm:$0xf0]  ;;  %v12328_v21 = vld [vmem:[%s20642_s4 + $0x2c] sm:$0xf] }
 0x7b3   : > { %v4120_v24 = vsub.f32 1.0, %v4119_v55  ;;  %v16631_v50 = vadd.f32 %v4152_v14, %v4150_v44  ;;  %v10472_v60 = vor.u32 %v12338_v58, %v10471_v33  ;;  %4427 = vmatpush.bf16.msra.mxu3 %v10492_v13  ;;  %v10448_v6 = vor.u32 %v12333_v9, %v10447_v61  ;;  %v12329_v44 = vld [vmem:[%s20642_s4 + $0x2c] sm:$0xf0]  ;;  %v10415_v16 = vld [vmem:[%s20642_s4] sm:$0xf] }
 0x7b4   : > { %v16613_v22 = vpop.eup %13073  ;;  %v4107_v59 = vadd.f32 %v16507_v35, %v4106_v7  ;;  %vm4093_vm9 = vweird.f32 %v16450_v39  ;;  %v4100_v14 = vor.u32 1.1754944e-38, %v4099_v3  ;;  %v10452_v17 = vor.u32 %v12331_v8, %v10449_v41  ;;  %v12327_v7 = vld [vmem:[%s20642_s4 + $0x24] sm:$0xf]  ;;  %v12324_v58 = vld [vmem:[%s20642_s4 + $0xc] sm:$0xf] }
 0x7b5   : > { %v4121_v48 = vmul.f32 %v16570_v10, %v4120_v24  ;;  %v4134_v38 = vmul.f32 %v16613_v22, %v16505_v53  ;;  %13075 = vtanh.f32 %v16631_v50  ;;  %4386 = vmatpush.bf16.msra.mxu0 %v10464_v52  ;;  %vm16708_vm10 = vmor %vm4093_vm9, %vm4094_vm8  ;;  %4414 = vmatpush.bf16.msra.mxu2 %v10472_v60  ;;  %v10456_v18 = vor.u32 %v12334_v28, %v10455_v5  ;;  %v12325_v24 = vld [vmem:[%s20642_s4 + $0xc] sm:$0xf0]  ;;  %v4176_v8 = vld [vmem:[%s16782_s27] sm:$0xff] }
 0x7b6   : > { %v4111_v31 = vsel %vm16621_vm5, %v16507_v35, %v4107_v59  ;;  %4400 = vmatpush.bf16.msra.mxu1 %v10468_v26  ;;  %v10460_v20 = vor.u32 %v12332_v36, %v10457_v11  ;;  %v4097_v3 = vand.u32 2147483647, %v16450_v39  ;;  %vm4139_vm11 = vweird.f32 %v16613_v22  ;;  %v4177_v41 = vld [vmem:[%s16782_s27 + $0x8] sm:$0xff]  ;;  %v4178_v11 = vld [vmem:[%s16782_s27 + $0x10] sm:$0xff] }
 0x7b7   : > { %v4135_v56 = vsub.f32 1.0, %v4134_v38  ;;  %v4116_v57 = vsel %vm16546_vm0, %v4115_v4, %v4111_v31  ;;  %v4122_v0 = vadd.f32 %v16570_v10, %v4121_v48  ;;  %v10476_v4 = vor.u32 %v12336_v30, %v10473_v54  ;;  %v10417_v48 = vld [vmem:[%s20642_s4 + $0x10] sm:$0xf0]  ;;  %v10423_v38 = vld [vmem:[%s20642_s4 + $0x8] sm:$0xf] }
 0x7b8   : > { %v4153_v2 = vmul.f32 %v13072_v62, %v4116_v57  ;;  %v10432_v63 = vor.u32 %v12329_v44, %v10431_v34  ;;  %v4092_v39 = vadd.f32 %v16501_v1, %v4091_v27  ;;  %v10441_v62 = vld [vmem:[%s20642_s4 + $0x38] sm:$0xf0]  ;;  %vm4138_vm12 = vweird.f32 %v16505_v53  ;;  %v10673_v59 = vld [vmem:[%s20642_s4 + $0xe8] sm:$0xf] }
 0x7b9   : > { %v4126_v42 = vsel %vm16661_vm7, %v16570_v10, %v4122_v0  ;;  %v4136_v51 = vmul.f32 %v16613_v22, %v4135_v56  ;;  %4428 = vmatpush.bf16.msra.mxu3 %v10476_v4  ;;  %4387 = vmatpush.bf16.msra.mxu0 %v10448_v6  ;;  %v4144_v23 = vand.u32 2147483648, %v16505_v53  ;;  %vm16750_vm13 = vmor %vm4138_vm12, %vm4139_vm11  ;;  %v10440_v29 = vor.u32 %v12330_v15, %v10439_v40  ;;  %v10425_v30 = vld [vmem:[%s20642_s4 + $0x18] sm:$0xf0] }
 0x7ba   : > { %v4131_v10 = vsel %vm16597_vm3, %v16574_v43, %v4126_v42  ;;  %v4096_v45 = vsel %vm16708_vm10, %v16501_v1, %v4092_v39  ;;  %4401 = vmatpush.bf16.msra.mxu1 %v10452_v17  ;;  %4415 = vmatpush.bf16.msra.mxu2 %v10456_v18  ;;  %vm4098_vm14 = vcmp.eq.f32.partialorder %v4097_v3, 8.507059e+37  ;;  %v4142_v46 = vand.u32 2147483647, %v16505_v53  ;;  %v12326_v53 = vld [vmem:[%s20642_s4 + $0x14] sm:$0xf0] }
 0x7bb   : > { %v4151_v55 = vmul.f32 %v4131_v10, %v16345_v25  ;;  %v10433_v25 = vld [vmem:[%s20642_s4 + $0x30] sm:$0xf0]  ;;  %v4137_v37 = vadd.f32 %v16613_v22, %v4136_v51  ;;  %v13076_v32 = vpop.eup %13075  ;;  %v10444_v1 = vor.u32 %v12328_v21, %v10441_v62  ;;  %v10416_v47 = vor.u32 %v12325_v24, %v10415_v16  ;;  %v4180_v51 = vld [vmem:[%s16782_s27 + $0x20] sm:$0xff]  ;;  %v4181_v10 = vld [vmem:[%s16782_s27 + $0x28] sm:$0xff] }
 0x7bc   : > { %v10436_v12 = vor.u32 %v12327_v7, %v10433_v25  ;;  %v4101_v33 = vsel %vm4098_vm14, %v4100_v14, %v4096_v45  ;;  %v4145_v52 = vor.u32 1.1754944e-38, %v4144_v23  ;;  %v10420_v54 = vor.u32 %v12323_v19, %v10417_v48  ;;  %v4179_v15 = vld [vmem:[%s16782_s27 + $0x18] sm:$0xff]  ;;  %v10665_v21 = vld [vmem:[%s20642_s4 + $0xe0] sm:$0xf]  ;;  %v12388_v39 = vld [vmem:[%s20642_s4 + $0xec] sm:$0xf0] }
 0x7bd   : > { %v16720_v49 = vadd.f32 %v4153_v2, %v4151_v55  ;;  %4429 = vmatpush.bf16.msra.mxu3 %v10460_v20  ;;  %4388 = vmatpush.bf16.msra.mxu0 %v10432_v63  ;;  %v4141_v31 = vsel %vm16750_vm13, %v16613_v22, %v4137_v37  ;;  %v4158_v13 = vmul.f32 %v13076_v32, %v4101_v33  ;;  %vm4143_vm15 = vcmp.eq.f32.partialorder %v4142_v46, 8.507059e+37  ;;  %v4182_v16 = vld [vmem:[%s16782_s27 + $0x30] sm:$0xff]  ;;  %v12386_v37 = vld [vmem:[%s20642_s4 + $0xe4] sm:$0xf]  ;;  %v12387_v19 = vld [vmem:[%s20642_s4 + $0xec] sm:$0xf] }
 0x7be   : > { %4402 = vmatpush.bf16.msra.mxu1 %v10436_v12  ;;  %4416 = vmatpush.bf16.msra.mxu2 %v10440_v29  ;;  %v10424_v61 = vor.u32 %v12326_v53, %v10423_v38  ;;  %v10428_v27 = vor.u32 %v12324_v58, %v10425_v30  ;;  %v4146_v35 = vsel %vm4143_vm15, %v4145_v52, %v4141_v31  ;;  %v10667_v32 = vld [vmem:[%s20642_s4 + $0xf0] sm:$0xf0]  ;;  %v12389_v12 = vld [vmem:[%s20642_s4 + $0xf4] sm:$0xf0]  ;;  %v10675_v46 = vld [vmem:[%s20642_s4 + $0xf8] sm:$0xf0] }
 0x7bf   : > { %13077 = vtanh.f32 %v16720_v49  ;;  %v4162_v57 = vpack.c.bf16 %v4158_v13, %v4158_v13  ;;  %v10666_v24 = vor.u32 %v12388_v39, %v10665_v21  ;;  %v10649_v48 = vld [vmem:[%s20642_s4 + $0xc0] sm:$0xf]  ;;  %v12384_v38 = vld [vmem:[%s20642_s4 + $0xcc] sm:$0xf0]  ;;  %v10674_v58 = vor.u32 %v12389_v12, %v10673_v59  ;;  %v10651_v52 = vld [vmem:[%s20642_s4 + $0xd0] sm:$0xf0] }
 0x7c0   : > { %v10678_v30 = vor.u32 %v12387_v19, %v10675_v46  ;;  %v10650_v31 = vor.u32 %v12384_v38, %v10649_v48  ;;  %v12378_v12 = vld [vmem:[%s20642_s4 + $0xa4] sm:$0xf]  ;;  %v12379_v38 = vld [vmem:[%s20642_s4 + $0xac] sm:$0xf] }
 0x7c1   : > { %4430 = vmatpush.bf16.msra.mxu3 %v10444_v1  ;;  %4389 = vmatpush.bf16.msra.mxu0 %v10416_v47  ;;  %v4218_v2 = vunpack.c.l.b16 %v4162_v57  ;;  %v10670_v47 = vor.u32 %v12386_v37, %v10667_v32 }
 0x7c2   : > { %4403 = vmatpush.bf16.msra.mxu1 %v10420_v54  ;;  %4417 = vmatpush.bf16.msra.mxu2 %v10424_v61 }
 0x7c5   : > { %v13078_v9 = vpop.eup %13077  ;;  %4431 = vmatpush.bf16.msra.mxu3 %v10428_v27  ;;  %4794 = vmatpush.bf16.msrb.mxu0 %v10666_v24  ;;  %v10657_v27 = vld [vmem:[%s20642_s4 + $0xc8] sm:$0xf] }
 0x7c6   : > { %v4159_v56 = vmul.f32 %v13078_v9, %v4146_v35  ;;  %4808 = vmatpush.bf16.msrb.mxu1 %v10670_v47  ;;  %v12385_v35 = vld [vmem:[%s20642_s4 + $0xd4] sm:$0xf0]  ;;  %4822 = vmatpush.bf16.msrb.mxu2 %v10674_v58  ;;  %v10593_v47 = vld [vmem:[%s20642_s4 + $0x48] sm:$0xf] }
 0x7c8   : > { %v4163_v0 = vpack.c.bf16 %v4159_v56, %v4159_v56  ;;  %v12756_v22 = vpack.c.bf16 %v4159_v56, %v4158_v13  ;;  %v12382_v13 = vld [vmem:[%s20642_s4 + $0xc4] sm:$0xf] }
 0x7c9   : > { %v10654_v9 = vor.u32 %v12382_v13, %v10651_v52  ;;  %4836 = vmatpush.bf16.msrb.mxu3 %v10678_v30  ;;  %4795 = vmatpush.bf16.msrb.mxu0 %v10650_v31  ;;  %v10643_v31 = vld [vmem:[%s20642_s4 + $0xb8] sm:$0xf0]  ;;  %v10617_v13 = vld [vmem:[%s20642_s4 + $0x80] sm:$0xf] }
 0x7ca   : > { %12757 = vst [vmem:[%s4167_s21] sm:$0xff] %v12756_v22   ;;  %v4219_v26 = vunpack.c.l.b16 %v4163_v0  ;;  %v10658_v22 = vor.u32 %v12385_v35, %v10657_v27  ;;  %v12376_v35 = vld [vmem:[%s20642_s4 + $0x8c] sm:$0xf0] }
 0x7cb   : > { %4809 = vmatpush.bf16.msrb.mxu1 %v10654_v9 }
 0x7cc   : > { %v4220_v60 = vpack.c.b16 %v4219_v26, %v4218_v2  ;;  %4823 = vmatpush.bf16.msrb.mxu2 %v10658_v22 }
 0x7ce   : > { %4390 = vmatmul.bf16.vlgmr.msra.gmra.mxu0 %v4220_v60  ;;  %4404 = vmatmul.bf16.vlgmr.msra.gmra.mxu1 %v4220_v60 }
 0x7cf   : > { %4418 = vmatmul.bf16.vlgmr.msra.gmra.mxu2 %v4220_v60  ;;  %4432 = vmatmul.bf16.vlgmr.msra.gmra.mxu3 %v4220_v60  ;;  %v4183_v60 = vld [vmem:[%s16782_s27 + $0x38] sm:$0xff]  ;;  %s12356_s27 = sadd.s32 96, %s14923_s13 }
 0x7d0   : > { %s17144_s12 = sshra.s32 %s12356_s27, 3 }
 0x7d1   : > { %s10548_s21 = sshll.u32 %s17144_s12, 2  ;;  %s12392_s12 = sshll.u32 %s4995_s30, 5 }
 0x7d2   : > { %s4579_s2 = scalar_lea.vmem [#allocation3], %s10548_s21  ;;  %s17550_s14 = scalar_lea.vmem [#allocation2], %s12392_s12 }
 0x7d3   : > { %s5406_s30 = sadd.s32 144, %s14606_s16 }
 0x7d4   : > { %s5407_s12 = sshra.s32 %s5406_s30, 3 }
 0x84b   : > { %v4391_v5 = vpop.f32.mrf.mxu0  ;;  %v4405_v42 = vpop.f32.mrf.mxu1 }
 0x84c   : > { %v4438_v4 = vadd.f32 %v4391_v5, %v4176_v8  ;;  %v4439_v6 = vadd.f32 %v4405_v42, %v4177_v41  ;;  %v12383_v41 = vld [vmem:[%s20642_s4 + $0xcc] sm:$0xf]  ;;  %v10659_v5 = vld [vmem:[%s20642_s4 + $0xd8] sm:$0xf0] }
 0x84e   : > { %v10541_v28 = vmul.f32 -1.442695, %v4438_v4  ;;  %v10542_v36 = vmul.f32 -1.442695, %v4439_v6 }
 0x850   : > { %13079 = vpow2.f32 %v10541_v28 }
 0x851   : > { %13081 = vpow2.f32 %v10542_v36 }
 0x852   : > { %v4419_v34 = vpop.f32.mrf.mxu2  ;;  %v4433_v7 = vpop.f32.mrf.mxu3 }
 0x853   : > { %v4440_v44 = vadd.f32 %v4419_v34, %v4178_v11  ;;  %v4393_v14 = vpop.f32.mrf.mxu0  ;;  %v4407_v55 = vpop.f32.mrf.mxu1  ;;  %v4441_v23 = vadd.f32 %v4433_v7, %v4179_v15 }
 0x854   : > { %v4442_v43 = vadd.f32 %v4393_v14, %v4180_v51  ;;  %v4443_v17 = vadd.f32 %v4407_v55, %v4181_v10  ;;  %v10662_v14 = vor.u32 %v12383_v41, %v10659_v5  ;;  %v10633_v55 = vld [vmem:[%s20642_s4 + $0xa0] sm:$0xf] }
 0x855   : > { %v10543_v18 = vmul.f32 -1.442695, %v4440_v44 }
 0x856   : > { %v13080_v20 = vpop.eup %13079  ;;  %v10544_v25 = vmul.f32 -1.442695, %v4442_v43  ;;  %v10545_v3 = vmul.f32 -1.442695, %v4443_v17  ;;  %v12380_v43 = vld [vmem:[%s20642_s4 + $0xac] sm:$0xf0]  ;;  %4837 = vmatpush.bf16.msrb.mxu3 %v10662_v14 }
 0x857   : > { %v13082_v63 = vpop.eup %13081  ;;  %v16789_v40 = vadd.f32 1.0, %v13080_v20  ;;  %13083 = vpow2.f32 %v10543_v18  ;;  %v10634_v24 = vor.u32 %v12380_v43, %v10633_v55  ;;  %v12372_v14 = vld [vmem:[%s20642_s4 + $0x6c] sm:$0xf0] }
 0x858   : > { %v16798_v62 = vadd.f32 1.0, %v13082_v63  ;;  %13085 = vpow2.f32 %v10544_v25 }
 0x859   : > { %13087 = vrcp.f32 %v16789_v40  ;;  %v4479_v1 = vand.u32 2147483647, %v16789_v40  ;;  %v4481_v57 = vand.u32 2147483648, %v16789_v40  ;;  %vm4475_vm0 = vweird.f32 %v16789_v40  ;;  %4796 = vmatpush.bf16.msrb.mxu0 %v10634_v24  ;;  %v12371_v24 = vld [vmem:[%s20642_s4 + $0x6c] sm:$0xf] }
 0x85a   : > { %13089 = vrcp.f32 %v16798_v62  ;;  %v4421_v45 = vpop.f32.mrf.mxu2  ;;  %v4435_v8 = vpop.f32.mrf.mxu3  ;;  %vm4490_vm1 = vweird.f32 %v16798_v62  ;;  %v4496_v6 = vand.u32 2147483648, %v16798_v62  ;;  %v4494_v11 = vand.u32 2147483647, %v16798_v62 }
 0x85b   : > { %13091 = vpow2.f32 %v10545_v3  ;;  %v4444_v29 = vadd.f32 %v4421_v45, %v4182_v16  ;;  %vm16865_vm2 = vcmp.eq.f32.partialorder %v4479_v1, 8.507059e+37  ;;  %v4482_v34 = vor.u32 1.1754944e-38, %v4481_v57 }
 0x85c   : > { %13093 = vtanh.f32 %v4441_v23  ;;  %v4445_v44 = vadd.f32 %v4435_v8, %v4183_v60  ;;  %v4497_v3 = vor.u32 1.1754944e-38, %v4496_v6  ;;  %vm16903_vm6 = vcmp.eq.f32.partialorder %v4494_v11, 8.507059e+37  ;;  %v10625_v60 = vld [vmem:[%s20642_s4 + $0x88] sm:$0xf]  ;;  %v12377_v8 = vld [vmem:[%s20642_s4 + $0x94] sm:$0xf0] }
 0x85d   : > { %v13084_v53 = vpop.eup %13083  ;;  %v10546_v33 = vmul.f32 -1.442695, %v4444_v29  ;;  %v10635_v29 = vld [vmem:[%s20642_s4 + $0xb0] sm:$0xf0]  ;;  %v10627_v6 = vld [vmem:[%s20642_s4 + $0x98] sm:$0xf0] }
 0x85e   : > { %v13086_v54 = vpop.eup %13085  ;;  %v16834_v61 = vadd.f32 1.0, %v13084_v53  ;;  %v10638_v5 = vor.u32 %v12378_v12, %v10635_v29  ;;  %v10611_v12 = vld [vmem:[%s20642_s4 + $0x78] sm:$0xf0]  ;;  %v10585_v29 = vld [vmem:[%s20642_s4 + $0x40] sm:$0xf] }
 0x85f   : > { %v16842_v56 = vpop.eup %13087  ;;  %v16845_v0 = vadd.f32 1.0, %v13086_v54  ;;  %13095 = vpow2.f32 %v10546_v33 }
 0x860   : > { %v16847_v2 = vpop.eup %13089  ;;  %v4471_v26 = vmul.f32 %v16842_v56, %v16789_v40  ;;  %13097 = vrcp.f32 %v16834_v61  ;;  %vm4476_vm3 = vweird.f32 %v16842_v56  ;;  %v4511_v32 = vand.u32 2147483648, %v16834_v61  ;;  %v10641_v40 = vld [vmem:[%s20642_s4 + $0xa8] sm:$0xf]  ;;  %4810 = vmatpush.bf16.msrb.mxu1 %v10638_v5 }
 0x861   : > { %v13092_v42 = vpop.eup %13091  ;;  %v4486_v4 = vmul.f32 %v16847_v2, %v16798_v62  ;;  %13099 = vrcp.f32 %v16845_v0  ;;  %v4524_v20 = vand.u32 2147483647, %v16845_v0  ;;  %vm4491_vm4 = vweird.f32 %v16847_v2  ;;  %vm16898_vm5 = vmor %vm4475_vm0, %vm4476_vm3  ;;  %v12381_v62 = vld [vmem:[%s20642_s4 + $0xb4] sm:$0xf0] }
 0x862   : > { %v4472_v28 = vsub.f32 1.0, %v4471_v26  ;;  %v16870_v51 = vadd.f32 1.0, %v13092_v42  ;;  %v13094_v17 = vpop.eup %13093  ;;  %v4526_v63 = vand.u32 2147483648, %v16845_v0  ;;  %vm16920_vm7 = vmor %vm4490_vm1, %vm4491_vm4  ;;  %vm4520_vm9 = vweird.f32 %v16845_v0  ;;  %v10619_v26 = vld [vmem:[%s20642_s4 + $0x90] sm:$0xf0] }
 0x863   : > { %v4487_v10 = vsub.f32 1.0, %v4486_v4  ;;  %vm16930_vm8 = vcmp.eq.f32.partialorder %v4524_v20, 8.507059e+37  ;;  %v10642_v42 = vor.u32 %v12381_v62, %v10641_v40  ;;  %v12375_v4 = vld [vmem:[%s20642_s4 + $0x8c] sm:$0xf]  ;;  %v10626_v20 = vor.u32 %v12377_v8, %v10625_v60  ;;  %v12368_v40 = vld [vmem:[%s20642_s4 + $0x4c] sm:$0xf0] }
 0x864   : > { %v4473_v18 = vmul.f32 %v16842_v56, %v4472_v28  ;;  %13101 = vrcp.f32 %v16870_v51  ;;  %v4541_v39 = vand.u32 2147483648, %v16870_v51  ;;  %v4539_v48 = vand.u32 2147483647, %v16870_v51 }
 0x865   : > { %v13096_v7 = vpop.eup %13095  ;;  %v4488_v25 = vmul.f32 %v16847_v2, %v4487_v10  ;;  %13103 = vtanh.f32 %v4445_v44  ;;  %v4527_v30 = vor.u32 1.1754944e-38, %v4526_v63  ;;  %v10646_v10 = vor.u32 %v12379_v38, %v10643_v31  ;;  %v10601_v44 = vld [vmem:[%s20642_s4 + $0x60] sm:$0xf]  ;;  %4824 = vmatpush.bf16.msrb.mxu2 %v10642_v42  ;;  %v10577_v42 = vld [vmem:[%s20642_s4 + $0x28] sm:$0xf] }
 0x866   : > { %v16885_v15 = vpop.eup %13097  ;;  %v4474_v21 = vadd.f32 %v16842_v56, %v4473_v18  ;;  %v16889_v16 = vadd.f32 1.0, %v13096_v7  ;;  %v16958_v27 = vor.u32 1.1754944e-38, %v4541_v39  ;;  %vm16981_vm11 = vcmp.eq.f32.partialorder %v4539_v48, 8.507059e+37  ;;  %v12370_v7 = vld [vmem:[%s20642_s4 + $0x64] sm:$0xf] }
 0x867   : > { %v16891_v37 = vpop.eup %13099  ;;  %v4489_v45 = vadd.f32 %v16847_v2, %v4488_v25  ;;  %v4501_v53 = vmul.f32 %v16885_v15, %v16834_v61  ;;  %v10603_v25 = vld [vmem:[%s20642_s4 + $0x70] sm:$0xf0]  ;;  %4838 = vmatpush.bf16.msrb.mxu3 %v10646_v10  ;;  %v12373_v39 = vld [vmem:[%s20642_s4 + $0x74] sm:$0xf0]  ;;  %vm4535_vm14 = vweird.f32 %v16870_v51  ;;  %v10602_v59 = vor.u32 %v12372_v14, %v10601_v44 }
 0x868   : > { %v4478_v46 = vsel %vm16898_vm5, %v16842_v56, %v4474_v21  ;;  %v4516_v1 = vmul.f32 %v16891_v37, %v16845_v0  ;;  %13105 = vrcp.f32 %v16889_v16  ;;  %v12374_v56 = vld [vmem:[%s20642_s4 + $0x84] sm:$0xf]  ;;  %vm4521_vm10 = vweird.f32 %v16891_v37  ;;  %v10609_v21 = vld [vmem:[%s20642_s4 + $0x68] sm:$0xf] }
 0x869   : > { %v4483_v33 = vsel %vm16865_vm2, %v4482_v34, %v4478_v46  ;;  %v4493_v58 = vsel %vm16920_vm7, %v16847_v2, %v4489_v45  ;;  %v4502_v36 = vsub.f32 1.0, %v4501_v53  ;;  %v10618_v34 = vor.u32 %v12376_v35, %v10617_v13  ;;  %vm17005_vm13 = vmor %vm4520_vm9, %vm4521_vm10  ;;  %4825 = vmatpush.bf16.msrb.mxu2 %v10626_v20  ;;  %v12366_v53 = vld [vmem:[%s20642_s4 + $0x44] sm:$0xf]  ;;  %v12369_v13 = vld [vmem:[%s20642_s4 + $0x54] sm:$0xf0] }
 0x86a   : > { %v16954_v52 = vpop.eup %13101  ;;  %v4498_v54 = vsel %vm16903_vm6, %v4497_v3, %v4493_v58  ;;  %v4517_v9 = vsub.f32 1.0, %v4516_v1  ;;  %v4564_v22 = vmul.f32 %v13094_v17, %v4483_v33  ;;  %v10622_v18 = vor.u32 %v12374_v56, %v10619_v26  ;;  %v10587_v33 = vld [vmem:[%s20642_s4 + $0x50] sm:$0xf0]  ;;  %v10569_v56 = vld [vmem:[%s20642_s4 + $0x20] sm:$0xf] }
 0x86b   : > { %v4562_v57 = vmul.f32 %v4498_v54, %v16631_v50  ;;  %v4531_v2 = vmul.f32 %v16954_v52, %v16870_v51  ;;  %v13104_v28 = vpop.eup %13103  ;;  %vm4536_vm12 = vweird.f32 %v16954_v52  ;;  %4797 = vmatpush.bf16.msrb.mxu0 %v10618_v34  ;;  %v10630_v45 = vor.u32 %v12375_v4, %v10627_v6  ;;  %v12367_v54 = vld [vmem:[%s20642_s4 + $0x4c] sm:$0xf]  ;;  %v12365_v4 = vld [vmem:[%s20642_s4 + $0x34] sm:$0xf0]  ;;  %v12358_v20 = vld [vmem:[%s20642_s4 + $0x4] sm:$0xf] }
 0x86c   : > { %v4518_v50 = vmul.f32 %v16891_v37, %v4517_v9  ;;  %v4503_v51 = vmul.f32 %v16885_v15, %v4502_v36  ;;  %vm17045_vm15 = vmor %vm4535_vm14, %vm4536_vm12  ;;  %vm4506_vm0 = vweird.f32 %v16885_v15  ;;  %4811 = vmatpush.bf16.msrb.mxu1 %v10622_v18  ;;  %v10606_v62 = vor.u32 %v12370_v7, %v10603_v25  ;;  %v10595_v9 = vld [vmem:[%s20642_s4 + $0x58] sm:$0xf0]  ;;  %v12363_v6 = vld [vmem:[%s20642_s4 + $0x2c] sm:$0xf] }
 0x86d   : > { %v4532_v11 = vsub.f32 1.0, %v4531_v2  ;;  %v17015_v3 = vadd.f32 %v4564_v22, %v4562_v57  ;;  %v10610_v38 = vor.u32 %v12373_v39, %v10609_v21  ;;  %4839 = vmatpush.bf16.msrb.mxu3 %v10630_v45  ;;  %v10586_v31 = vor.u32 %v12368_v40, %v10585_v29  ;;  %v12364_v57 = vld [vmem:[%s20642_s4 + $0x2c] sm:$0xf0]  ;;  %v10553_v36 = vld [vmem:[%s20642_s4] sm:$0xf] }
 0x86e   : > { %v16997_v55 = vpop.eup %13105  ;;  %v4519_v43 = vadd.f32 %v16891_v37, %v4518_v50  ;;  %vm4505_vm1 = vweird.f32 %v16834_v61  ;;  %v4512_v22 = vor.u32 1.1754944e-38, %v4511_v32  ;;  %v10590_v26 = vor.u32 %v12366_v53, %v10587_v33  ;;  %v12362_v50 = vld [vmem:[%s20642_s4 + $0x24] sm:$0xf]  ;;  %v12359_v39 = vld [vmem:[%s20642_s4 + $0xc] sm:$0xf] }
 0x86f   : > { %v4533_v0 = vmul.f32 %v16954_v52, %v4532_v11  ;;  %v4546_v63 = vmul.f32 %v16997_v55, %v16889_v16  ;;  %13107 = vtanh.f32 %v17015_v3  ;;  %4798 = vmatpush.bf16.msrb.mxu0 %v10602_v59  ;;  %vm17092_vm2 = vmor %vm4505_vm1, %vm4506_vm0  ;;  %4826 = vmatpush.bf16.msrb.mxu2 %v10610_v38  ;;  %v10594_v60 = vor.u32 %v12369_v13, %v10593_v47  ;;  %v12360_v11 = vld [vmem:[%s20642_s4 + $0xc] sm:$0xf0]  ;;  %v4588_v53 = vld [vmem:[%s17166_s11] sm:$0xff] }
 0x870   : > { %v4523_v23 = vsel %vm17005_vm13, %v16891_v37, %v4519_v43  ;;  %4812 = vmatpush.bf16.msrb.mxu1 %v10606_v62  ;;  %v10598_v8 = vor.u32 %v12367_v54, %v10595_v9  ;;  %v4509_v32 = vand.u32 2147483647, %v16834_v61  ;;  %vm4551_vm3 = vweird.f32 %v16997_v55  ;;  %v4589_v33 = vld [vmem:[%s17166_s11 + $0x8] sm:$0xff]  ;;  %v4590_v9 = vld [vmem:[%s17166_s11 + $0x10] sm:$0xff] }
 0x871   : > { %v4547_v19 = vsub.f32 1.0, %v4546_v63  ;;  %v4528_v46 = vsel %vm16930_vm8, %v4527_v30, %v4523_v23  ;;  %v4534_v1 = vadd.f32 %v16954_v52, %v4533_v0  ;;  %v10614_v30 = vor.u32 %v12371_v24, %v10611_v12  ;;  %v10555_v0 = vld [vmem:[%s20642_s4 + $0x10] sm:$0xf0]  ;;  %v10561_v63 = vld [vmem:[%s20642_s4 + $0x8] sm:$0xf] }
 0x872   : > { %v4565_v48 = vmul.f32 %v13104_v28, %v4528_v46  ;;  %v10570_v5 = vor.u32 %v12364_v57, %v10569_v56  ;;  %v4504_v61 = vadd.f32 %v16885_v15, %v4503_v51  ;;  %v10579_v28 = vld [vmem:[%s20642_s4 + $0x38] sm:$0xf0]  ;;  %vm4550_vm4 = vweird.f32 %v16889_v16  ;;  %v10811_v43 = vld [vmem:[%s20642_s4 + $0xe8] sm:$0xf] }
 0x873   : > { %v4538_v58 = vsel %vm17045_vm15, %v16954_v52, %v4534_v1  ;;  %v4548_v35 = vmul.f32 %v16997_v55, %v4547_v19  ;;  %4840 = vmatpush.bf16.msrb.mxu3 %v10614_v30  ;;  %4799 = vmatpush.bf16.msrb.mxu0 %v10586_v31  ;;  %v4556_v44 = vand.u32 2147483648, %v16889_v16  ;;  %vm17134_vm5 = vmor %vm4550_vm4, %vm4551_vm3  ;;  %v10578_v18 = vor.u32 %v12365_v4, %v10577_v42  ;;  %v10563_v24 = vld [vmem:[%s20642_s4 + $0x18] sm:$0xf0] }
 0x874   : > { %v4543_v52 = vsel %vm16981_vm11, %v16958_v27, %v4538_v58  ;;  %v4508_v14 = vsel %vm17092_vm2, %v16885_v15, %v4504_v61  ;;  %4813 = vmatpush.bf16.msrb.mxu1 %v10590_v26  ;;  %4827 = vmatpush.bf16.msrb.mxu2 %v10594_v60  ;;  %vm4510_vm6 = vcmp.eq.f32.partialorder %v4509_v32, 8.507059e+37  ;;  %v4554_v7 = vand.u32 2147483647, %v16889_v16  ;;  %v12361_v16 = vld [vmem:[%s20642_s4 + $0x14] sm:$0xf0] }
 0x875   : > { %v4563_v2 = vmul.f32 %v4543_v52, %v16720_v49  ;;  %v10571_v49 = vld [vmem:[%s20642_s4 + $0x30] sm:$0xf0]  ;;  %v4549_v10 = vadd.f32 %v16997_v55, %v4548_v35  ;;  %v13108_v34 = vpop.eup %13107  ;;  %v10582_v15 = vor.u32 %v12363_v6, %v10579_v28  ;;  %v10554_v25 = vor.u32 %v12360_v11, %v10553_v36  ;;  %v4592_v35 = vld [vmem:[%s17166_s11 + $0x20] sm:$0xff]  ;;  %v4593_v52 = vld [vmem:[%s17166_s11 + $0x28] sm:$0xff] }
 0x876   : > { %v10574_v17 = vor.u32 %v12362_v50, %v10571_v49  ;;  %v4513_v21 = vsel %vm4510_vm6, %v4512_v22, %v4508_v14  ;;  %v4557_v59 = vor.u32 1.1754944e-38, %v4556_v44  ;;  %v10558_v12 = vor.u32 %v12358_v20, %v10555_v0  ;;  %v4591_v4 = vld [vmem:[%s17166_s11 + $0x18] sm:$0xff]  ;;  %v10803_v6 = vld [vmem:[%s20642_s4 + $0xe0] sm:$0xf]  ;;  %v12423_v61 = vld [vmem:[%s20642_s4 + $0xec] sm:$0xf0] }
 0x877   : > { %v17104_v41 = vadd.f32 %v4565_v48, %v4563_v2  ;;  %4841 = vmatpush.bf16.msrb.mxu3 %v10598_v8  ;;  %4800 = vmatpush.bf16.msrb.mxu0 %v10570_v5  ;;  %v4553_v23 = vsel %vm17134_vm5, %v16997_v55, %v4549_v10  ;;  %v4570_v45 = vmul.f32 %v13108_v34, %v4513_v21  ;;  %vm4555_vm7 = vcmp.eq.f32.partialorder %v4554_v7, 8.507059e+37  ;;  %v4594_v36 = vld [vmem:[%s17166_s11 + $0x30] sm:$0xff]  ;;  %v12421_v10 = vld [vmem:[%s20642_s4 + $0xe4] sm:$0xf]  ;;  %v12422_v20 = vld [vmem:[%s20642_s4 + $0xec] sm:$0xf] }
 0x878   : > { %4814 = vmatpush.bf16.msrb.mxu1 %v10574_v17  ;;  %4828 = vmatpush.bf16.msrb.mxu2 %v10578_v18  ;;  %v10562_v29 = vor.u32 %v12361_v16, %v10561_v63  ;;  %v10566_v51 = vor.u32 %v12359_v39, %v10563_v24  ;;  %v4558_v37 = vsel %vm4555_vm7, %v4557_v59, %v4553_v23  ;;  %v10805_v34 = vld [vmem:[%s20642_s4 + $0xf0] sm:$0xf0]  ;;  %v12424_v17 = vld [vmem:[%s20642_s4 + $0xf4] sm:$0xf0]  ;;  %v10813_v7 = vld [vmem:[%s20642_s4 + $0xf8] sm:$0xf0] }
 0x879   : > { %13109 = vtanh.f32 %v17104_v41  ;;  %v4574_v46 = vpack.c.bf16 %v4570_v45, %v4570_v45  ;;  %v10804_v11 = vor.u32 %v12423_v61, %v10803_v6  ;;  %v10787_v0 = vld [vmem:[%s20642_s4 + $0xc0] sm:$0xf]  ;;  %v12419_v63 = vld [vmem:[%s20642_s4 + $0xcc] sm:$0xf0]  ;;  %v10812_v39 = vor.u32 %v12424_v17, %v10811_v43  ;;  %v10789_v59 = vld [vmem:[%s20642_s4 + $0xd0] sm:$0xf0] }
 0x87a   : > { %v10816_v24 = vor.u32 %v12422_v20, %v10813_v7  ;;  %v10788_v23 = vor.u32 %v12419_v63, %v10787_v0  ;;  %v12413_v17 = vld [vmem:[%s20642_s4 + $0xa4] sm:$0xf]  ;;  %v12414_v63 = vld [vmem:[%s20642_s4 + $0xac] sm:$0xf] }
 0x87b   : > { %4842 = vmatpush.bf16.msrb.mxu3 %v10582_v15  ;;  %4801 = vmatpush.bf16.msrb.mxu0 %v10554_v25  ;;  %v4630_v48 = vunpack.c.l.b16 %v4574_v46  ;;  %v10808_v25 = vor.u32 %v12421_v10, %v10805_v34 }
 0x87c   : > { %4815 = vmatpush.bf16.msrb.mxu1 %v10558_v12  ;;  %4829 = vmatpush.bf16.msrb.mxu2 %v10562_v29 }
 0x87f   : > { %v13110_v40 = vpop.eup %13109  ;;  %4843 = vmatpush.bf16.msrb.mxu3 %v10566_v51  ;;  %5206 = vmatpush.bf16.msra.mxu0 %v10804_v11  ;;  %v10795_v51 = vld [vmem:[%s20642_s4 + $0xc8] sm:$0xf] }
 0x880   : > { %v4571_v19 = vmul.f32 %v13110_v40, %v4558_v37  ;;  %5220 = vmatpush.bf16.msra.mxu1 %v10808_v25  ;;  %v12420_v37 = vld [vmem:[%s20642_s4 + $0xd4] sm:$0xf0]  ;;  %5234 = vmatpush.bf16.msra.mxu2 %v10812_v39  ;;  %v10731_v25 = vld [vmem:[%s20642_s4 + $0x48] sm:$0xf] }
 0x882   : > { %v4575_v1 = vpack.c.bf16 %v4571_v19, %v4571_v19  ;;  %v12761_v55 = vpack.c.bf16 %v4571_v19, %v4570_v45  ;;  %v12417_v45 = vld [vmem:[%s20642_s4 + $0xc4] sm:$0xf] }
 0x883   : > { %v10792_v40 = vor.u32 %v12417_v45, %v10789_v59  ;;  %5248 = vmatpush.bf16.msra.mxu3 %v10816_v24  ;;  %5207 = vmatpush.bf16.msra.mxu0 %v10788_v23  ;;  %v10781_v23 = vld [vmem:[%s20642_s4 + $0xb8] sm:$0xf0]  ;;  %v10755_v45 = vld [vmem:[%s20642_s4 + $0x80] sm:$0xf] }
 0x884   : > { %12762 = vst [vmem:[%s4579_s2] sm:$0xff] %v12761_v55   ;;  %v4631_v62 = vunpack.c.l.b16 %v4575_v1  ;;  %v10796_v55 = vor.u32 %v12420_v37, %v10795_v51  ;;  %v12411_v37 = vld [vmem:[%s20642_s4 + $0x8c] sm:$0xf0] }
 0x885   : > { %5221 = vmatpush.bf16.msra.mxu1 %v10792_v40 }
 0x886   : > { %v4632_v38 = vpack.c.b16 %v4631_v62, %v4630_v48  ;;  %5235 = vmatpush.bf16.msra.mxu2 %v10796_v55 }
 0x888   : > { %4802 = vmatmul.bf16.vlgmr.msrb.gmra.mxu0 %v4632_v38  ;;  %4816 = vmatmul.bf16.vlgmr.msrb.gmra.mxu1 %v4632_v38 }
 0x889   : > { %4830 = vmatmul.bf16.vlgmr.msrb.gmra.mxu2 %v4632_v38  ;;  %4844 = vmatmul.bf16.vlgmr.msrb.gmra.mxu3 %v4632_v38  ;;  %v4595_v38 = vld [vmem:[%s17166_s11 + $0x38] sm:$0xff]  ;;  %s12391_s11 = sadd.s32 112, %s14923_s13 }
 0x88a   : > { %s17528_s15 = sshra.s32 %s12391_s11, 3 }
 0x88b   : > { %s10686_s2 = sshll.u32 %s17528_s15, 2  ;;  %s12427_s15 = sshll.u32 %s5407_s12, 5 }
 0x88c   : > { %s4991_s23 = scalar_lea.vmem [#allocation3], %s10686_s2  ;;  %s17934_s17 = scalar_lea.vmem [#allocation2], %s12427_s15 }
 0x88d   : > { %s5818_s12 = sadd.s32 160, %s14606_s16 }
 0x88e   : > { %s5819_s15 = sshra.s32 %s5818_s12, 3 }
 0x905   : > { %v4803_v47 = vpop.f32.mrf.mxu0  ;;  %v4817_v58 = vpop.f32.mrf.mxu1 }
 0x906   : > { %v4850_v30 = vadd.f32 %v4803_v47, %v4588_v53  ;;  %v4851_v31 = vadd.f32 %v4817_v58, %v4589_v33  ;;  %v12418_v33 = vld [vmem:[%s20642_s4 + $0xcc] sm:$0xf]  ;;  %v10797_v47 = vld [vmem:[%s20642_s4 + $0xd8] sm:$0xf0] }
 0x908   : > { %v10679_v13 = vmul.f32 -1.442695, %v4850_v30  ;;  %v10680_v54 = vmul.f32 -1.442695, %v4851_v31 }
 0x90a   : > { %13111 = vpow2.f32 %v10679_v13 }
 0x90b   : > { %13113 = vpow2.f32 %v10680_v54 }
 0x90c   : > { %v4831_v56 = vpop.f32.mrf.mxu2  ;;  %v4845_v50 = vpop.f32.mrf.mxu3 }
 0x90d   : > { %v4852_v57 = vadd.f32 %v4831_v56, %v4590_v9  ;;  %v4805_v22 = vpop.f32.mrf.mxu0  ;;  %v4819_v2 = vpop.f32.mrf.mxu1  ;;  %v4853_v44 = vadd.f32 %v4845_v50, %v4591_v4 }
 0x90e   : > { %v4854_v27 = vadd.f32 %v4805_v22, %v4592_v35  ;;  %v4855_v26 = vadd.f32 %v4819_v2, %v4593_v52  ;;  %v10800_v22 = vor.u32 %v12418_v33, %v10797_v47  ;;  %v10771_v2 = vld [vmem:[%s20642_s4 + $0xa0] sm:$0xf] }
 0x90f   : > { %v10681_v60 = vmul.f32 -1.442695, %v4852_v57 }
 0x910   : > { %v13112_v8 = vpop.eup %13111  ;;  %v10682_v49 = vmul.f32 -1.442695, %v4854_v27  ;;  %v10683_v32 = vmul.f32 -1.442695, %v4855_v26  ;;  %v12415_v27 = vld [vmem:[%s20642_s4 + $0xac] sm:$0xf0]  ;;  %5249 = vmatpush.bf16.msra.mxu3 %v10800_v22 }
 0x911   : > { %v13114_v5 = vpop.eup %13113  ;;  %v17173_v42 = vadd.f32 1.0, %v13112_v8  ;;  %13115 = vpow2.f32 %v10681_v60  ;;  %v10772_v11 = vor.u32 %v12415_v27, %v10771_v2  ;;  %v12407_v22 = vld [vmem:[%s20642_s4 + $0x6c] sm:$0xf0] }
 0x912   : > { %v17182_v28 = vadd.f32 1.0, %v13114_v5  ;;  %13117 = vpow2.f32 %v10682_v49 }
 0x913   : > { %13119 = vrcp.f32 %v17173_v42  ;;  %v4891_v15 = vand.u32 2147483647, %v17173_v42  ;;  %v4893_v46 = vand.u32 2147483648, %v17173_v42  ;;  %vm4887_vm8 = vweird.f32 %v17173_v42  ;;  %5208 = vmatpush.bf16.msra.mxu0 %v10772_v11  ;;  %v12406_v11 = vld [vmem:[%s20642_s4 + $0x6c] sm:$0xf] }
 0x914   : > { %13121 = vrcp.f32 %v17182_v28  ;;  %v4833_v14 = vpop.f32.mrf.mxu2  ;;  %v4847_v53 = vpop.f32.mrf.mxu3  ;;  %vm4902_vm9 = vweird.f32 %v17182_v28  ;;  %v4908_v31 = vand.u32 2147483648, %v17182_v28  ;;  %v4906_v9 = vand.u32 2147483647, %v17182_v28 }
 0x915   : > { %13123 = vpow2.f32 %v10683_v32  ;;  %v4856_v18 = vadd.f32 %v4833_v14, %v4594_v36  ;;  %vm17249_vm10 = vcmp.eq.f32.partialorder %v4891_v15, 8.507059e+37  ;;  %v4894_v56 = vor.u32 1.1754944e-38, %v4893_v46 }
 0x916   : > { %13125 = vtanh.f32 %v4853_v44  ;;  %v4857_v57 = vadd.f32 %v4847_v53, %v4595_v38  ;;  %v4909_v32 = vor.u32 1.1754944e-38, %v4908_v31  ;;  %vm17287_vm14 = vcmp.eq.f32.partialorder %v4906_v9, 8.507059e+37  ;;  %v10763_v38 = vld [vmem:[%s20642_s4 + $0x88] sm:$0xf]  ;;  %v12412_v53 = vld [vmem:[%s20642_s4 + $0x94] sm:$0xf0] }
 0x917   : > { %v13116_v16 = vpop.eup %13115  ;;  %v10684_v21 = vmul.f32 -1.442695, %v4856_v18  ;;  %v10773_v18 = vld [vmem:[%s20642_s4 + $0xb0] sm:$0xf0]  ;;  %v10765_v31 = vld [vmem:[%s20642_s4 + $0x98] sm:$0xf0] }
 0x918   : > { %v13118_v12 = vpop.eup %13117  ;;  %v17218_v29 = vadd.f32 1.0, %v13116_v16  ;;  %v10776_v47 = vor.u32 %v12413_v17, %v10773_v18  ;;  %v10749_v17 = vld [vmem:[%s20642_s4 + $0x78] sm:$0xf0]  ;;  %v10723_v18 = vld [vmem:[%s20642_s4 + $0x40] sm:$0xf] }
 0x919   : > { %v17226_v19 = vpop.eup %13119  ;;  %v17229_v1 = vadd.f32 1.0, %v13118_v12  ;;  %13127 = vpow2.f32 %v10684_v21 }
 0x91a   : > { %v17231_v48 = vpop.eup %13121  ;;  %v4883_v62 = vmul.f32 %v17226_v19, %v17173_v42  ;;  %13129 = vrcp.f32 %v17218_v29  ;;  %vm4888_vm11 = vweird.f32 %v17226_v19  ;;  %v4923_v34 = vand.u32 2147483648, %v17218_v29  ;;  %v10779_v42 = vld [vmem:[%s20642_s4 + $0xa8] sm:$0xf]  ;;  %5222 = vmatpush.bf16.msra.mxu1 %v10776_v47 }
 0x91b   : > { %v13124_v58 = vpop.eup %13123  ;;  %v4898_v30 = vmul.f32 %v17231_v48, %v17182_v28  ;;  %13131 = vrcp.f32 %v17229_v1  ;;  %v4936_v8 = vand.u32 2147483647, %v17229_v1  ;;  %vm4903_vm12 = vweird.f32 %v17231_v48  ;;  %vm17282_vm13 = vmor %vm4887_vm8, %vm4888_vm11  ;;  %v12416_v28 = vld [vmem:[%s20642_s4 + $0xb4] sm:$0xf0] }
 0x91c   : > { %v4884_v13 = vsub.f32 1.0, %v4883_v62  ;;  %v17254_v35 = vadd.f32 1.0, %v13124_v58  ;;  %v13126_v26 = vpop.eup %13125  ;;  %v4938_v5 = vand.u32 2147483648, %v17229_v1  ;;  %vm17304_vm15 = vmor %vm4902_vm9, %vm4903_vm12  ;;  %vm4932_vm1 = vweird.f32 %v17229_v1  ;;  %v10757_v62 = vld [vmem:[%s20642_s4 + $0x90] sm:$0xf0] }
 0x91d   : > { %v4899_v52 = vsub.f32 1.0, %v4898_v30  ;;  %vm17314_vm0 = vcmp.eq.f32.partialorder %v4936_v8, 8.507059e+37  ;;  %v10780_v58 = vor.u32 %v12416_v28, %v10779_v42  ;;  %v12410_v30 = vld [vmem:[%s20642_s4 + $0x8c] sm:$0xf]  ;;  %v10764_v8 = vor.u32 %v12412_v53, %v10763_v38  ;;  %v12403_v42 = vld [vmem:[%s20642_s4 + $0x4c] sm:$0xf0] }
 0x91e   : > { %v4885_v60 = vmul.f32 %v17226_v19, %v4884_v13  ;;  %13133 = vrcp.f32 %v17254_v35  ;;  %v4953_v61 = vand.u32 2147483648, %v17254_v35  ;;  %v4951_v0 = vand.u32 2147483647, %v17254_v35 }
 0x91f   : > { %v13128_v50 = vpop.eup %13127  ;;  %v4900_v49 = vmul.f32 %v17231_v48, %v4899_v52  ;;  %13135 = vtanh.f32 %v4857_v57  ;;  %v4939_v24 = vor.u32 1.1754944e-38, %v4938_v5  ;;  %v10784_v52 = vor.u32 %v12414_v63, %v10781_v23  ;;  %v10739_v57 = vld [vmem:[%s20642_s4 + $0x60] sm:$0xf]  ;;  %5236 = vmatpush.bf16.msra.mxu2 %v10780_v58  ;;  %v10715_v58 = vld [vmem:[%s20642_s4 + $0x28] sm:$0xf] }
 0x920   : > { %v17269_v4 = vpop.eup %13129  ;;  %v4886_v6 = vadd.f32 %v17226_v19, %v4885_v60  ;;  %v17273_v36 = vadd.f32 1.0, %v13128_v50  ;;  %v17342_v51 = vor.u32 1.1754944e-38, %v4953_v61  ;;  %vm17365_vm3 = vcmp.eq.f32.partialorder %v4951_v0, 8.507059e+37  ;;  %v12405_v50 = vld [vmem:[%s20642_s4 + $0x64] sm:$0xf] }
 0x921   : > { %v17275_v10 = vpop.eup %13131  ;;  %v4901_v14 = vadd.f32 %v17231_v48, %v4900_v49  ;;  %v4913_v16 = vmul.f32 %v17269_v4, %v17218_v29  ;;  %v10741_v49 = vld [vmem:[%s20642_s4 + $0x70] sm:$0xf0]  ;;  %5250 = vmatpush.bf16.msra.mxu3 %v10784_v52  ;;  %v12408_v61 = vld [vmem:[%s20642_s4 + $0x74] sm:$0xf0]  ;;  %vm4947_vm6 = vweird.f32 %v17254_v35  ;;  %v10740_v43 = vor.u32 %v12407_v22, %v10739_v57 }
 0x922   : > { %v4890_v7 = vsel %vm17282_vm13, %v17226_v19, %v4886_v6  ;;  %v4928_v15 = vmul.f32 %v17275_v10, %v17229_v1  ;;  %13137 = vrcp.f32 %v17273_v36  ;;  %v12409_v19 = vld [vmem:[%s20642_s4 + $0x84] sm:$0xf]  ;;  %vm4933_vm2 = vweird.f32 %v17275_v10  ;;  %v10747_v6 = vld [vmem:[%s20642_s4 + $0x68] sm:$0xf] }
 0x923   : > { %v4895_v21 = vsel %vm17249_vm10, %v4894_v56, %v4890_v7  ;;  %v4905_v39 = vsel %vm17304_vm15, %v17231_v48, %v4901_v14  ;;  %v4914_v54 = vsub.f32 1.0, %v4913_v16  ;;  %v10756_v56 = vor.u32 %v12411_v37, %v10755_v45  ;;  %vm17389_vm5 = vmor %vm4932_vm1, %vm4933_vm2  ;;  %5237 = vmatpush.bf16.msra.mxu2 %v10764_v8  ;;  %v12401_v16 = vld [vmem:[%s20642_s4 + $0x44] sm:$0xf]  ;;  %v12404_v45 = vld [vmem:[%s20642_s4 + $0x54] sm:$0xf0] }
 0x924   : > { %v17338_v59 = vpop.eup %13133  ;;  %v4910_v12 = vsel %vm17287_vm14, %v4909_v32, %v4905_v39  ;;  %v4929_v40 = vsub.f32 1.0, %v4928_v15  ;;  %v4976_v55 = vmul.f32 %v13126_v26, %v4895_v21  ;;  %v10760_v60 = vor.u32 %v12409_v19, %v10757_v62  ;;  %v10725_v21 = vld [vmem:[%s20642_s4 + $0x50] sm:$0xf0]  ;;  %v10707_v19 = vld [vmem:[%s20642_s4 + $0x20] sm:$0xf] }
 0x925   : > { %v4974_v46 = vmul.f32 %v4910_v12, %v17015_v3  ;;  %v4943_v48 = vmul.f32 %v17338_v59, %v17254_v35  ;;  %v13136_v13 = vpop.eup %13135  ;;  %vm4948_vm4 = vweird.f32 %v17338_v59  ;;  %5209 = vmatpush.bf16.msra.mxu0 %v10756_v56  ;;  %v10768_v14 = vor.u32 %v12410_v30, %v10765_v31  ;;  %v12402_v12 = vld [vmem:[%s20642_s4 + $0x4c] sm:$0xf]  ;;  %v12400_v30 = vld [vmem:[%s20642_s4 + $0x34] sm:$0xf0]  ;;  %v12393_v8 = vld [vmem:[%s20642_s4 + $0x4] sm:$0xf] }
 0x926   : > { %v4930_v3 = vmul.f32 %v17275_v10, %v4929_v40  ;;  %v4915_v35 = vmul.f32 %v17269_v4, %v4914_v54  ;;  %vm17429_vm7 = vmor %vm4947_vm6, %vm4948_vm4  ;;  %vm4918_vm8 = vweird.f32 %v17269_v4  ;;  %5223 = vmatpush.bf16.msra.mxu1 %v10760_v60  ;;  %v10744_v28 = vor.u32 %v12405_v50, %v10741_v49  ;;  %v10733_v40 = vld [vmem:[%s20642_s4 + $0x58] sm:$0xf0]  ;;  %v12398_v31 = vld [vmem:[%s20642_s4 + $0x2c] sm:$0xf] }
 0x927   : > { %v4944_v9 = vsub.f32 1.0, %v4943_v48  ;;  %v17399_v32 = vadd.f32 %v4976_v55, %v4974_v46  ;;  %v10748_v63 = vor.u32 %v12408_v61, %v10747_v6  ;;  %5251 = vmatpush.bf16.msra.mxu3 %v10768_v14  ;;  %v10724_v23 = vor.u32 %v12403_v42, %v10723_v18  ;;  %v12399_v46 = vld [vmem:[%s20642_s4 + $0x2c] sm:$0xf0]  ;;  %v10691_v54 = vld [vmem:[%s20642_s4] sm:$0xf] }
 0x928   : > { %v17381_v2 = vpop.eup %13137  ;;  %v4931_v27 = vadd.f32 %v17275_v10, %v4930_v3  ;;  %vm4917_vm9 = vweird.f32 %v17218_v29  ;;  %v4924_v55 = vor.u32 1.1754944e-38, %v4923_v34  ;;  %v10728_v62 = vor.u32 %v12401_v16, %v10725_v21  ;;  %v12397_v3 = vld [vmem:[%s20642_s4 + $0x24] sm:$0xf]  ;;  %v12394_v61 = vld [vmem:[%s20642_s4 + $0xc] sm:$0xf] }
 0x929   : > { %v4945_v1 = vmul.f32 %v17338_v59, %v4944_v9  ;;  %v4958_v5 = vmul.f32 %v17381_v2, %v17273_v36  ;;  %13139 = vtanh.f32 %v17399_v32  ;;  %5210 = vmatpush.bf16.msra.mxu0 %v10740_v43  ;;  %vm17476_vm10 = vmor %vm4917_vm9, %vm4918_vm8  ;;  %5238 = vmatpush.bf16.msra.mxu2 %v10748_v63  ;;  %v10732_v38 = vor.u32 %v12404_v45, %v10731_v25  ;;  %v12395_v9 = vld [vmem:[%s20642_s4 + $0xc] sm:$0xf0]  ;;  %v5000_v16 = vld [vmem:[%s17550_s14] sm:$0xff] }
 0x92a   : > { %v4935_v44 = vsel %vm17389_vm5, %v17275_v10, %v4931_v27  ;;  %5224 = vmatpush.bf16.msra.mxu1 %v10744_v28  ;;  %v10736_v53 = vor.u32 %v12402_v12, %v10733_v40  ;;  %v4921_v34 = vand.u32 2147483647, %v17218_v29  ;;  %vm4963_vm11 = vweird.f32 %v17381_v2  ;;  %v5001_v21 = vld [vmem:[%s17550_s14 + $0x8] sm:$0xff]  ;;  %v5002_v40 = vld [vmem:[%s17550_s14 + $0x10] sm:$0xff] }
 0x92b   : > { %v4959_v20 = vsub.f32 1.0, %v4958_v5  ;;  %v4940_v7 = vsel %vm17314_vm0, %v4939_v24, %v4935_v44  ;;  %v4946_v15 = vadd.f32 %v17338_v59, %v4945_v1  ;;  %v10752_v24 = vor.u32 %v12406_v11, %v10749_v17  ;;  %v10693_v1 = vld [vmem:[%s20642_s4 + $0x10] sm:$0xf0]  ;;  %v10699_v5 = vld [vmem:[%s20642_s4 + $0x8] sm:$0xf] }
 0x92c   : > { %v4977_v0 = vmul.f32 %v13136_v13, %v4940_v7  ;;  %v10708_v47 = vor.u32 %v12399_v46, %v10707_v19  ;;  %v4916_v29 = vadd.f32 %v17269_v4, %v4915_v35  ;;  %v10717_v13 = vld [vmem:[%s20642_s4 + $0x38] sm:$0xf0]  ;;  %vm4962_vm12 = vweird.f32 %v17273_v36  ;;  %v10949_v27 = vld [vmem:[%s20642_s4 + $0xe8] sm:$0xf] }
 0x92d   : > { %v4950_v39 = vsel %vm17429_vm7, %v17338_v59, %v4946_v15  ;;  %v4960_v37 = vmul.f32 %v17381_v2, %v4959_v20  ;;  %5252 = vmatpush.bf16.msra.mxu3 %v10752_v24  ;;  %5211 = vmatpush.bf16.msra.mxu0 %v10724_v23  ;;  %v4968_v57 = vand.u32 2147483648, %v17273_v36  ;;  %vm17518_vm13 = vmor %vm4962_vm12, %vm4963_vm11  ;;  %v10716_v60 = vor.u32 %v12400_v30, %v10715_v58  ;;  %v10701_v11 = vld [vmem:[%s20642_s4 + $0x18] sm:$0xf0] }
 0x92e   : > { %v4955_v59 = vsel %vm17365_vm3, %v17342_v51, %v4950_v39  ;;  %v4920_v22 = vsel %vm17476_vm10, %v17269_v4, %v4916_v29  ;;  %5225 = vmatpush.bf16.msra.mxu1 %v10728_v62  ;;  %5239 = vmatpush.bf16.msra.mxu2 %v10732_v38  ;;  %vm4922_vm14 = vcmp.eq.f32.partialorder %v4921_v34, 8.507059e+37  ;;  %v4966_v50 = vand.u32 2147483647, %v17273_v36  ;;  %v12396_v36 = vld [vmem:[%s20642_s4 + $0x14] sm:$0xf0] }
 0x92f   : > { %v4975_v48 = vmul.f32 %v4955_v59, %v17104_v41  ;;  %v10709_v41 = vld [vmem:[%s20642_s4 + $0x30] sm:$0xf0]  ;;  %v4961_v52 = vadd.f32 %v17381_v2, %v4960_v37  ;;  %v13140_v56 = vpop.eup %13139  ;;  %v10720_v4 = vor.u32 %v12398_v31, %v10717_v13  ;;  %v10692_v49 = vor.u32 %v12395_v9, %v10691_v54  ;;  %v5004_v37 = vld [vmem:[%s17550_s14 + $0x20] sm:$0xff]  ;;  %v5005_v59 = vld [vmem:[%s17550_s14 + $0x28] sm:$0xff] }
 0x930   : > { %v10712_v26 = vor.u32 %v12397_v3, %v10709_v41  ;;  %v4925_v6 = vsel %vm4922_vm14, %v4924_v55, %v4920_v22  ;;  %v4969_v43 = vor.u32 1.1754944e-38, %v4968_v57  ;;  %v10696_v17 = vor.u32 %v12393_v8, %v10693_v1  ;;  %v5003_v30 = vld [vmem:[%s17550_s14 + $0x18] sm:$0xff]  ;;  %v10941_v31 = vld [vmem:[%s20642_s4 + $0xe0] sm:$0xf]  ;;  %v12458_v29 = vld [vmem:[%s20642_s4 + $0xec] sm:$0xf0] }
 0x931   : > { %v17488_v33 = vadd.f32 %v4977_v0, %v4975_v48  ;;  %5253 = vmatpush.bf16.msra.mxu3 %v10736_v53  ;;  %5212 = vmatpush.bf16.msra.mxu0 %v10708_v47  ;;  %v4965_v44 = vsel %vm17518_vm13, %v17381_v2, %v4961_v52  ;;  %v4982_v14 = vmul.f32 %v13140_v56, %v4925_v6  ;;  %vm4967_vm15 = vcmp.eq.f32.partialorder %v4966_v50, 8.507059e+37  ;;  %v5006_v54 = vld [vmem:[%s17550_s14 + $0x30] sm:$0xff]  ;;  %v12456_v52 = vld [vmem:[%s20642_s4 + $0xe4] sm:$0xf]  ;;  %v12457_v8 = vld [vmem:[%s20642_s4 + $0xec] sm:$0xf] }
 0x932   : > { %5226 = vmatpush.bf16.msra.mxu1 %v10712_v26  ;;  %5240 = vmatpush.bf16.msra.mxu2 %v10716_v60  ;;  %v10700_v18 = vor.u32 %v12396_v36, %v10699_v5  ;;  %v10704_v35 = vor.u32 %v12394_v61, %v10701_v11  ;;  %v4970_v10 = vsel %vm4967_vm15, %v4969_v43, %v4965_v44  ;;  %v10943_v56 = vld [vmem:[%s20642_s4 + $0xf0] sm:$0xf0]  ;;  %v12459_v26 = vld [vmem:[%s20642_s4 + $0xf4] sm:$0xf0]  ;;  %v10951_v50 = vld [vmem:[%s20642_s4 + $0xf8] sm:$0xf0] }
 0x933   : > { %13141 = vtanh.f32 %v17488_v33  ;;  %v4986_v7 = vpack.c.bf16 %v4982_v14, %v4982_v14  ;;  %v10942_v9 = vor.u32 %v12458_v29, %v10941_v31  ;;  %v10925_v1 = vld [vmem:[%s20642_s4 + $0xc0] sm:$0xf]  ;;  %v12454_v5 = vld [vmem:[%s20642_s4 + $0xcc] sm:$0xf0]  ;;  %v10950_v61 = vor.u32 %v12459_v26, %v10949_v27  ;;  %v10927_v43 = vld [vmem:[%s20642_s4 + $0xd0] sm:$0xf0] }
 0x934   : > { %v10954_v11 = vor.u32 %v12457_v8, %v10951_v50  ;;  %v10926_v44 = vor.u32 %v12454_v5, %v10925_v1  ;;  %v12448_v26 = vld [vmem:[%s20642_s4 + $0xa4] sm:$0xf]  ;;  %v12449_v5 = vld [vmem:[%s20642_s4 + $0xac] sm:$0xf] }
 0x935   : > { %5254 = vmatpush.bf16.msra.mxu3 %v10720_v4  ;;  %5213 = vmatpush.bf16.msra.mxu0 %v10692_v49  ;;  %v5042_v0 = vunpack.c.l.b16 %v4986_v7  ;;  %v10946_v49 = vor.u32 %v12456_v52, %v10943_v56 }
 0x936   : > { %5227 = vmatpush.bf16.msra.mxu1 %v10696_v17  ;;  %5241 = vmatpush.bf16.msra.mxu2 %v10700_v18 }
 0x939   : > { %v13142_v42 = vpop.eup %13141  ;;  %5255 = vmatpush.bf16.msra.mxu3 %v10704_v35  ;;  %5618 = vmatpush.bf16.msrb.mxu0 %v10942_v9  ;;  %v10933_v35 = vld [vmem:[%s20642_s4 + $0xc8] sm:$0xf] }
 0x93a   : > { %v4983_v20 = vmul.f32 %v13142_v42, %v4970_v10  ;;  %5632 = vmatpush.bf16.msrb.mxu1 %v10946_v49  ;;  %v12455_v10 = vld [vmem:[%s20642_s4 + $0xd4] sm:$0xf0]  ;;  %5646 = vmatpush.bf16.msrb.mxu2 %v10950_v61  ;;  %v10869_v49 = vld [vmem:[%s20642_s4 + $0x48] sm:$0xf] }
 0x93c   : > { %v4987_v15 = vpack.c.bf16 %v4983_v20, %v4983_v20  ;;  %v12766_v2 = vpack.c.bf16 %v4983_v20, %v4982_v14  ;;  %v12452_v14 = vld [vmem:[%s20642_s4 + $0xc4] sm:$0xf] }
 0x93d   : > { %v10930_v42 = vor.u32 %v12452_v14, %v10927_v43  ;;  %5660 = vmatpush.bf16.msrb.mxu3 %v10954_v11  ;;  %5619 = vmatpush.bf16.msrb.mxu0 %v10926_v44  ;;  %v10919_v44 = vld [vmem:[%s20642_s4 + $0xb8] sm:$0xf0]  ;;  %v10893_v14 = vld [vmem:[%s20642_s4 + $0x80] sm:$0xf] }
 0x93e   : > { %12767 = vst [vmem:[%s4991_s23] sm:$0xff] %v12766_v2   ;;  %v5043_v28 = vunpack.c.l.b16 %v4987_v15  ;;  %v10934_v2 = vor.u32 %v12455_v10, %v10933_v35  ;;  %v12446_v10 = vld [vmem:[%s20642_s4 + $0x8c] sm:$0xf0] }
 0x93f   : > { %5633 = vmatpush.bf16.msrb.mxu1 %v10930_v42 }
 0x940   : > { %v5044_v63 = vpack.c.b16 %v5043_v28, %v5042_v0  ;;  %5647 = vmatpush.bf16.msrb.mxu2 %v10934_v2 }
 0x942   : > { %5214 = vmatmul.bf16.vlgmr.msra.gmra.mxu0 %v5044_v63  ;;  %5228 = vmatmul.bf16.vlgmr.msra.gmra.mxu1 %v5044_v63 }
 0x943   : > { %5242 = vmatmul.bf16.vlgmr.msra.gmra.mxu2 %v5044_v63  ;;  %5256 = vmatmul.bf16.vlgmr.msra.gmra.mxu3 %v5044_v63  ;;  %v5007_v63 = vld [vmem:[%s17550_s14 + $0x38] sm:$0xff]  ;;  %s12426_s14 = sadd.s32 128, %s14923_s13 }
 0x944   : > { %s17912_s18 = sshra.s32 %s12426_s14, 3 }
 0x945   : > { %s10824_s23 = sshll.u32 %s17912_s18, 2  ;;  %s12462_s18 = sshll.u32 %s5819_s15, 5 }
 0x946   : > { %s5403_s26 = scalar_lea.vmem [#allocation3], %s10824_s23  ;;  %s18318_s25 = scalar_lea.vmem [#allocation2], %s12462_s18 }
 0x947   : > { %s6230_s15 = sadd.s32 176, %s14606_s16 }
 0x948   : > { %s6231_s18 = sshra.s32 %s6230_s15, 3 }
 0x9bf   : > { %v5215_v25 = vpop.f32.mrf.mxu0  ;;  %v5229_v39 = vpop.f32.mrf.mxu1 }
 0x9c0   : > { %v5262_v24 = vadd.f32 %v5215_v25, %v5000_v16  ;;  %v5263_v23 = vadd.f32 %v5229_v39, %v5001_v21  ;;  %v12453_v21 = vld [vmem:[%s20642_s4 + $0xcc] sm:$0xf]  ;;  %v10935_v25 = vld [vmem:[%s20642_s4 + $0xd8] sm:$0xf0] }
 0x9c2   : > { %v10817_v45 = vmul.f32 -1.442695, %v5262_v24  ;;  %v10818_v12 = vmul.f32 -1.442695, %v5263_v23 }
 0x9c4   : > { %13143 = vpow2.f32 %v10817_v45 }
 0x9c5   : > { %13145 = vpow2.f32 %v10818_v12 }
 0x9c6   : > { %v5243_v19 = vpop.f32.mrf.mxu2  ;;  %v5257_v3 = vpop.f32.mrf.mxu3 }
 0x9c7   : > { %v5264_v46 = vadd.f32 %v5243_v19, %v5002_v40  ;;  %v5217_v55 = vpop.f32.mrf.mxu0  ;;  %v5231_v48 = vpop.f32.mrf.mxu1  ;;  %v5265_v57 = vadd.f32 %v5257_v3, %v5003_v30 }
 0x9c8   : > { %v5266_v51 = vadd.f32 %v5217_v55, %v5004_v37  ;;  %v5267_v62 = vadd.f32 %v5231_v48, %v5005_v59  ;;  %v10938_v55 = vor.u32 %v12453_v21, %v10935_v25  ;;  %v10909_v48 = vld [vmem:[%s20642_s4 + $0xa0] sm:$0xf] }
 0x9c9   : > { %v10819_v38 = vmul.f32 -1.442695, %v5264_v46 }
 0x9ca   : > { %v13144_v53 = vpop.eup %13143  ;;  %v10820_v41 = vmul.f32 -1.442695, %v5266_v51  ;;  %v10821_v34 = vmul.f32 -1.442695, %v5267_v62  ;;  %v12450_v51 = vld [vmem:[%s20642_s4 + $0xac] sm:$0xf0]  ;;  %5661 = vmatpush.bf16.msrb.mxu3 %v10938_v55 }
 0x9cb   : > { %v13146_v47 = vpop.eup %13145  ;;  %v17557_v58 = vadd.f32 1.0, %v13144_v53  ;;  %13147 = vpow2.f32 %v10819_v38  ;;  %v10910_v9 = vor.u32 %v12450_v51, %v10909_v48  ;;  %v12442_v55 = vld [vmem:[%s20642_s4 + $0x6c] sm:$0xf0] }
 0x9cc   : > { %v17566_v13 = vadd.f32 1.0, %v13146_v47  ;;  %13149 = vpow2.f32 %v10820_v41 }
 0x9cd   : > { %13151 = vrcp.f32 %v17557_v58  ;;  %v5303_v4 = vand.u32 2147483647, %v17557_v58  ;;  %v5305_v7 = vand.u32 2147483648, %v17557_v58  ;;  %vm5299_vm0 = vweird.f32 %v17557_v58  ;;  %5620 = vmatpush.bf16.msrb.mxu0 %v10910_v9  ;;  %v12441_v9 = vld [vmem:[%s20642_s4 + $0x6c] sm:$0xf] }
 0x9ce   : > { %13153 = vrcp.f32 %v17566_v13  ;;  %v5245_v22 = vpop.f32.mrf.mxu2  ;;  %v5259_v16 = vpop.f32.mrf.mxu3  ;;  %vm5314_vm1 = vweird.f32 %v17566_v13  ;;  %v5320_v23 = vand.u32 2147483648, %v17566_v13  ;;  %v5318_v40 = vand.u32 2147483647, %v17566_v13 }
 0x9cf   : > { %13155 = vpow2.f32 %v10821_v34  ;;  %v5268_v60 = vadd.f32 %v5245_v22, %v5006_v54  ;;  %vm17633_vm2 = vcmp.eq.f32.partialorder %v5303_v4, 8.507059e+37  ;;  %v5306_v19 = vor.u32 1.1754944e-38, %v5305_v7 }
 0x9d0   : > { %13157 = vtanh.f32 %v5265_v57  ;;  %v5269_v46 = vadd.f32 %v5259_v16, %v5007_v63  ;;  %v5321_v34 = vor.u32 1.1754944e-38, %v5320_v23  ;;  %vm17671_vm6 = vcmp.eq.f32.partialorder %v5318_v40, 8.507059e+37  ;;  %v10901_v63 = vld [vmem:[%s20642_s4 + $0x88] sm:$0xf]  ;;  %v12447_v16 = vld [vmem:[%s20642_s4 + $0x94] sm:$0xf0] }
 0x9d1   : > { %v13148_v36 = vpop.eup %13147  ;;  %v10822_v6 = vmul.f32 -1.442695, %v5268_v60  ;;  %v10911_v60 = vld [vmem:[%s20642_s4 + $0xb0] sm:$0xf0]  ;;  %v10903_v23 = vld [vmem:[%s20642_s4 + $0x98] sm:$0xf0] }
 0x9d2   : > { %v13150_v17 = vpop.eup %13149  ;;  %v17602_v18 = vadd.f32 1.0, %v13148_v36  ;;  %v10914_v25 = vor.u32 %v12448_v26, %v10911_v60  ;;  %v10887_v26 = vld [vmem:[%s20642_s4 + $0x78] sm:$0xf0]  ;;  %v10861_v60 = vld [vmem:[%s20642_s4 + $0x40] sm:$0xf] }
 0x9d3   : > { %v17610_v20 = vpop.eup %13151  ;;  %v17613_v15 = vadd.f32 1.0, %v13150_v17  ;;  %13159 = vpow2.f32 %v10822_v6 }
 0x9d4   : > { %v17615_v0 = vpop.eup %13153  ;;  %v5295_v28 = vmul.f32 %v17610_v20, %v17557_v58  ;;  %13161 = vrcp.f32 %v17602_v18  ;;  %vm5300_vm3 = vweird.f32 %v17610_v20  ;;  %v5335_v56 = vand.u32 2147483648, %v17602_v18  ;;  %v10917_v58 = vld [vmem:[%s20642_s4 + $0xa8] sm:$0xf]  ;;  %5634 = vmatpush.bf16.msrb.mxu1 %v10914_v25 }
 0x9d5   : > { %v13156_v39 = vpop.eup %13155  ;;  %v5310_v24 = vmul.f32 %v17615_v0, %v17566_v13  ;;  %13163 = vrcp.f32 %v17613_v15  ;;  %v5348_v53 = vand.u32 2147483647, %v17613_v15  ;;  %vm5315_vm4 = vweird.f32 %v17615_v0  ;;  %vm17666_vm5 = vmor %vm5299_vm0, %vm5300_vm3  ;;  %v12451_v13 = vld [vmem:[%s20642_s4 + $0xb4] sm:$0xf0] }
 0x9d6   : > { %v5296_v45 = vsub.f32 1.0, %v5295_v28  ;;  %v17638_v37 = vadd.f32 1.0, %v13156_v39  ;;  %v13158_v62 = vpop.eup %13157  ;;  %v5350_v47 = vand.u32 2147483648, %v17613_v15  ;;  %vm17688_vm7 = vmor %vm5314_vm1, %vm5315_vm4  ;;  %vm5344_vm9 = vweird.f32 %v17613_v15  ;;  %v10895_v28 = vld [vmem:[%s20642_s4 + $0x90] sm:$0xf0] }
 0x9d7   : > { %v5311_v59 = vsub.f32 1.0, %v5310_v24  ;;  %vm17698_vm8 = vcmp.eq.f32.partialorder %v5348_v53, 8.507059e+37  ;;  %v10918_v39 = vor.u32 %v12451_v13, %v10917_v58  ;;  %v12445_v24 = vld [vmem:[%s20642_s4 + $0x8c] sm:$0xf]  ;;  %v10902_v53 = vor.u32 %v12447_v16, %v10901_v63  ;;  %v12438_v58 = vld [vmem:[%s20642_s4 + $0x4c] sm:$0xf0] }
 0x9d8   : > { %v5297_v38 = vmul.f32 %v17610_v20, %v5296_v45  ;;  %13165 = vrcp.f32 %v17638_v37  ;;  %v5365_v29 = vand.u32 2147483648, %v17638_v37  ;;  %v5363_v1 = vand.u32 2147483647, %v17638_v37 }
 0x9d9   : > { %v13160_v3 = vpop.eup %13159  ;;  %v5312_v41 = vmul.f32 %v17615_v0, %v5311_v59  ;;  %13167 = vtanh.f32 %v5269_v46  ;;  %v5351_v11 = vor.u32 1.1754944e-38, %v5350_v47  ;;  %v10922_v59 = vor.u32 %v12449_v5, %v10919_v44  ;;  %v10877_v46 = vld [vmem:[%s20642_s4 + $0x60] sm:$0xf]  ;;  %5648 = vmatpush.bf16.msrb.mxu2 %v10918_v39  ;;  %v10853_v39 = vld [vmem:[%s20642_s4 + $0x28] sm:$0xf] }
 0x9da   : > { %v17653_v30 = vpop.eup %13161  ;;  %v5298_v31 = vadd.f32 %v17610_v20, %v5297_v38  ;;  %v17657_v54 = vadd.f32 1.0, %v13160_v3  ;;  %v17726_v35 = vor.u32 1.1754944e-38, %v5365_v29  ;;  %vm17749_vm11 = vcmp.eq.f32.partialorder %v5363_v1, 8.507059e+37  ;;  %v12440_v3 = vld [vmem:[%s20642_s4 + $0x64] sm:$0xf] }
 0x9db   : > { %v17659_v52 = vpop.eup %13163  ;;  %v5313_v22 = vadd.f32 %v17615_v0, %v5312_v41  ;;  %v5325_v36 = vmul.f32 %v17653_v30, %v17602_v18  ;;  %v10879_v41 = vld [vmem:[%s20642_s4 + $0x70] sm:$0xf0]  ;;  %5662 = vmatpush.bf16.msrb.mxu3 %v10922_v59  ;;  %v12443_v29 = vld [vmem:[%s20642_s4 + $0x74] sm:$0xf0]  ;;  %vm5359_vm14 = vweird.f32 %v17638_v37  ;;  %v10878_v27 = vor.u32 %v12442_v55, %v10877_v46 }
 0x9dc   : > { %v5302_v50 = vsel %vm17666_vm5, %v17610_v20, %v5298_v31  ;;  %v5340_v4 = vmul.f32 %v17659_v52, %v17613_v15  ;;  %13169 = vrcp.f32 %v17657_v54  ;;  %v12444_v20 = vld [vmem:[%s20642_s4 + $0x84] sm:$0xf]  ;;  %vm5345_vm10 = vweird.f32 %v17659_v52  ;;  %v10885_v31 = vld [vmem:[%s20642_s4 + $0x68] sm:$0xf] }
 0x9dd   : > { %v5307_v6 = vsel %vm17633_vm2, %v5306_v19, %v5302_v50  ;;  %v5317_v61 = vsel %vm17688_vm7, %v17615_v0, %v5313_v22  ;;  %v5326_v12 = vsub.f32 1.0, %v5325_v36  ;;  %v10894_v19 = vor.u32 %v12446_v10, %v10893_v14  ;;  %vm17773_vm13 = vmor %vm5344_vm9, %vm5345_vm10  ;;  %5649 = vmatpush.bf16.msrb.mxu2 %v10902_v53  ;;  %v12436_v36 = vld [vmem:[%s20642_s4 + $0x44] sm:$0xf]  ;;  %v12439_v14 = vld [vmem:[%s20642_s4 + $0x54] sm:$0xf0] }
 0x9de   : > { %v17722_v43 = vpop.eup %13165  ;;  %v5322_v17 = vsel %vm17671_vm6, %v5321_v34, %v5317_v61  ;;  %v5341_v42 = vsub.f32 1.0, %v5340_v4  ;;  %v5388_v2 = vmul.f32 %v13158_v62, %v5307_v6  ;;  %v10898_v38 = vor.u32 %v12444_v20, %v10895_v28  ;;  %v10863_v6 = vld [vmem:[%s20642_s4 + $0x50] sm:$0xf0]  ;;  %v10845_v20 = vld [vmem:[%s20642_s4 + $0x20] sm:$0xf] }
 0x9df   : > { %v5386_v7 = vmul.f32 %v5322_v17, %v17399_v32  ;;  %v5355_v0 = vmul.f32 %v17722_v43, %v17638_v37  ;;  %v13168_v45 = vpop.eup %13167  ;;  %vm5360_vm12 = vweird.f32 %v17722_v43  ;;  %5621 = vmatpush.bf16.msrb.mxu0 %v10894_v19  ;;  %v10906_v22 = vor.u32 %v12445_v24, %v10903_v23  ;;  %v12437_v17 = vld [vmem:[%s20642_s4 + $0x4c] sm:$0xf]  ;;  %v12435_v24 = vld [vmem:[%s20642_s4 + $0x34] sm:$0xf0]  ;;  %v12428_v53 = vld [vmem:[%s20642_s4 + $0x4] sm:$0xf] }
 0x9e0   : > { %v5342_v32 = vmul.f32 %v17659_v52, %v5341_v42  ;;  %v5327_v37 = vmul.f32 %v17653_v30, %v5326_v12  ;;  %vm17813_vm15 = vmor %vm5359_vm14, %vm5360_vm12  ;;  %vm5330_vm0 = vweird.f32 %v17653_v30  ;;  %5635 = vmatpush.bf16.msrb.mxu1 %v10898_v38  ;;  %v10882_v13 = vor.u32 %v12440_v3, %v10879_v41  ;;  %v10871_v42 = vld [vmem:[%s20642_s4 + $0x58] sm:$0xf0]  ;;  %v12433_v23 = vld [vmem:[%s20642_s4 + $0x2c] sm:$0xf] }
 0x9e1   : > { %v5356_v40 = vsub.f32 1.0, %v5355_v0  ;;  %v17783_v34 = vadd.f32 %v5388_v2, %v5386_v7  ;;  %v10886_v5 = vor.u32 %v12443_v29, %v10885_v31  ;;  %5663 = vmatpush.bf16.msrb.mxu3 %v10906_v22  ;;  %v10862_v44 = vor.u32 %v12438_v58, %v10861_v60  ;;  %v12434_v7 = vld [vmem:[%s20642_s4 + $0x2c] sm:$0xf0]  ;;  %v10829_v12 = vld [vmem:[%s20642_s4] sm:$0xf] }
 0x9e2   : > { %v17765_v48 = vpop.eup %13169  ;;  %v5343_v51 = vadd.f32 %v17659_v52, %v5342_v32  ;;  %vm5329_vm1 = vweird.f32 %v17602_v18  ;;  %v5336_v2 = vor.u32 1.1754944e-38, %v5335_v56  ;;  %v10866_v28 = vor.u32 %v12436_v36, %v10863_v6  ;;  %v12432_v32 = vld [vmem:[%s20642_s4 + $0x24] sm:$0xf]  ;;  %v12429_v29 = vld [vmem:[%s20642_s4 + $0xc] sm:$0xf] }
 0x9e3   : > { %v5357_v15 = vmul.f32 %v17722_v43, %v5356_v40  ;;  %v5370_v47 = vmul.f32 %v17765_v48, %v17657_v54  ;;  %13171 = vtanh.f32 %v17783_v34  ;;  %5622 = vmatpush.bf16.msrb.mxu0 %v10878_v27  ;;  %vm17860_vm2 = vmor %vm5329_vm1, %vm5330_vm0  ;;  %5650 = vmatpush.bf16.msrb.mxu2 %v10886_v5  ;;  %v10870_v63 = vor.u32 %v12439_v14, %v10869_v49  ;;  %v12430_v40 = vld [vmem:[%s20642_s4 + $0xc] sm:$0xf0]  ;;  %v5412_v36 = vld [vmem:[%s17934_s17] sm:$0xff] }
 0x9e4   : > { %v5347_v57 = vsel %vm17773_vm13, %v17659_v52, %v5343_v51  ;;  %5636 = vmatpush.bf16.msrb.mxu1 %v10882_v13  ;;  %v10874_v16 = vor.u32 %v12437_v17, %v10871_v42  ;;  %v5333_v56 = vand.u32 2147483647, %v17602_v18  ;;  %vm5375_vm3 = vweird.f32 %v17765_v48  ;;  %v5413_v6 = vld [vmem:[%s17934_s17 + $0x8] sm:$0xff]  ;;  %v5414_v42 = vld [vmem:[%s17934_s17 + $0x10] sm:$0xff] }
 0x9e5   : > { %v5371_v8 = vsub.f32 1.0, %v5370_v47  ;;  %v5352_v50 = vsel %vm17698_vm8, %v5351_v11, %v5347_v57  ;;  %v5358_v4 = vadd.f32 %v17722_v43, %v5357_v15  ;;  %v10890_v11 = vor.u32 %v12441_v9, %v10887_v26  ;;  %v10831_v15 = vld [vmem:[%s20642_s4 + $0x10] sm:$0xf0]  ;;  %v10837_v47 = vld [vmem:[%s20642_s4 + $0x8] sm:$0xf] }
 0x9e6   : > { %v5389_v1 = vmul.f32 %v13168_v45, %v5352_v50  ;;  %v10846_v25 = vor.u32 %v12434_v7, %v10845_v20  ;;  %v5328_v18 = vadd.f32 %v17653_v30, %v5327_v37  ;;  %v10855_v45 = vld [vmem:[%s20642_s4 + $0x38] sm:$0xf0]  ;;  %vm5374_vm4 = vweird.f32 %v17657_v54  ;;  %v11087_v51 = vld [vmem:[%s20642_s4 + $0xe8] sm:$0xf] }
 0x9e7   : > { %v5362_v61 = vsel %vm17813_vm15, %v17722_v43, %v5358_v4  ;;  %v5372_v10 = vmul.f32 %v17765_v48, %v5371_v8  ;;  %5664 = vmatpush.bf16.msrb.mxu3 %v10890_v11  ;;  %5623 = vmatpush.bf16.msrb.mxu0 %v10862_v44  ;;  %v5380_v46 = vand.u32 2147483648, %v17657_v54  ;;  %vm17902_vm5 = vmor %vm5374_vm4, %vm5375_vm3  ;;  %v10854_v38 = vor.u32 %v12435_v24, %v10853_v39  ;;  %v10839_v9 = vld [vmem:[%s20642_s4 + $0x18] sm:$0xf0] }
 0x9e8   : > { %v5367_v43 = vsel %vm17749_vm11, %v17726_v35, %v5362_v61  ;;  %v5332_v55 = vsel %vm17860_vm2, %v17653_v30, %v5328_v18  ;;  %5637 = vmatpush.bf16.msrb.mxu1 %v10866_v28  ;;  %5651 = vmatpush.bf16.msrb.mxu2 %v10870_v63  ;;  %vm5334_vm6 = vcmp.eq.f32.partialorder %v5333_v56, 8.507059e+37  ;;  %v5378_v3 = vand.u32 2147483647, %v17657_v54  ;;  %v12431_v54 = vld [vmem:[%s20642_s4 + $0x14] sm:$0xf0] }
 0x9e9   : > { %v5387_v0 = vmul.f32 %v5367_v43, %v17488_v33  ;;  %v10847_v33 = vld [vmem:[%s20642_s4 + $0x30] sm:$0xf0]  ;;  %v5373_v59 = vadd.f32 %v17765_v48, %v5372_v10  ;;  %v13172_v19 = vpop.eup %13171  ;;  %v10858_v30 = vor.u32 %v12433_v23, %v10855_v45  ;;  %v10830_v41 = vor.u32 %v12430_v40, %v10829_v12  ;;  %v5416_v10 = vld [vmem:[%s17934_s17 + $0x20] sm:$0xff]  ;;  %v5417_v43 = vld [vmem:[%s17934_s17 + $0x28] sm:$0xff] }
 0x9ea   : > { %v10850_v62 = vor.u32 %v12432_v32, %v10847_v33  ;;  %v5337_v31 = vsel %vm5334_vm6, %v5336_v2, %v5332_v55  ;;  %v5381_v27 = vor.u32 1.1754944e-38, %v5380_v46  ;;  %v10834_v26 = vor.u32 %v12428_v53, %v10831_v15  ;;  %v5415_v24 = vld [vmem:[%s17934_s17 + $0x18] sm:$0xff]  ;;  %v11079_v23 = vld [vmem:[%s20642_s4 + $0xe0] sm:$0xf]  ;;  %v12493_v18 = vld [vmem:[%s20642_s4 + $0xec] sm:$0xf0] }
 0x9eb   : > { %v17872_v21 = vadd.f32 %v5389_v1, %v5387_v0  ;;  %5665 = vmatpush.bf16.msrb.mxu3 %v10874_v16  ;;  %5624 = vmatpush.bf16.msrb.mxu0 %v10846_v25  ;;  %v5377_v57 = vsel %vm17902_vm5, %v17765_v48, %v5373_v59  ;;  %v5394_v22 = vmul.f32 %v13172_v19, %v5337_v31  ;;  %vm5379_vm7 = vcmp.eq.f32.partialorder %v5378_v3, 8.507059e+37  ;;  %v5418_v12 = vld [vmem:[%s17934_s17 + $0x30] sm:$0xff]  ;;  %v12491_v59 = vld [vmem:[%s20642_s4 + $0xe4] sm:$0xf]  ;;  %v12492_v53 = vld [vmem:[%s20642_s4 + $0xec] sm:$0xf] }
 0x9ec   : > { %5638 = vmatpush.bf16.msrb.mxu1 %v10850_v62  ;;  %5652 = vmatpush.bf16.msrb.mxu2 %v10854_v38  ;;  %v10838_v60 = vor.u32 %v12431_v54, %v10837_v47  ;;  %v10842_v37 = vor.u32 %v12429_v29, %v10839_v9  ;;  %v5382_v52 = vsel %vm5379_vm7, %v5381_v27, %v5377_v57  ;;  %v11081_v19 = vld [vmem:[%s20642_s4 + $0xf0] sm:$0xf0]  ;;  %v12494_v62 = vld [vmem:[%s20642_s4 + $0xf4] sm:$0xf0]  ;;  %v11089_v3 = vld [vmem:[%s20642_s4 + $0xf8] sm:$0xf0] }
 0x9ed   : > { %13173 = vtanh.f32 %v17872_v21  ;;  %v5398_v50 = vpack.c.bf16 %v5394_v22, %v5394_v22  ;;  %v11080_v40 = vor.u32 %v12493_v18, %v11079_v23  ;;  %v11063_v15 = vld [vmem:[%s20642_s4 + $0xc0] sm:$0xf]  ;;  %v12489_v47 = vld [vmem:[%s20642_s4 + $0xcc] sm:$0xf0]  ;;  %v11088_v29 = vor.u32 %v12494_v62, %v11087_v51  ;;  %v11065_v27 = vld [vmem:[%s20642_s4 + $0xd0] sm:$0xf0] }
 0x9ee   : > { %v11092_v9 = vor.u32 %v12492_v53, %v11089_v3  ;;  %v11064_v57 = vor.u32 %v12489_v47, %v11063_v15  ;;  %v12483_v62 = vld [vmem:[%s20642_s4 + $0xa4] sm:$0xf]  ;;  %v12484_v47 = vld [vmem:[%s20642_s4 + $0xac] sm:$0xf] }
 0x9ef   : > { %5666 = vmatpush.bf16.msrb.mxu3 %v10858_v30  ;;  %5625 = vmatpush.bf16.msrb.mxu0 %v10830_v41  ;;  %v5454_v1 = vunpack.c.l.b16 %v5398_v50  ;;  %v11084_v41 = vor.u32 %v12491_v59, %v11081_v19 }
 0x9f0   : > { %5639 = vmatpush.bf16.msrb.mxu1 %v10834_v26  ;;  %5653 = vmatpush.bf16.msrb.mxu2 %v10838_v60 }
 0x9f3   : > { %v13174_v58 = vpop.eup %13173  ;;  %5667 = vmatpush.bf16.msrb.mxu3 %v10842_v37  ;;  %6030 = vmatpush.bf16.msra.mxu0 %v11080_v40  ;;  %v11071_v37 = vld [vmem:[%s20642_s4 + $0xc8] sm:$0xf] }
 0x9f4   : > { %v5395_v8 = vmul.f32 %v13174_v58, %v5382_v52  ;;  %6044 = vmatpush.bf16.msra.mxu1 %v11084_v41  ;;  %v12490_v52 = vld [vmem:[%s20642_s4 + $0xd4] sm:$0xf0]  ;;  %6058 = vmatpush.bf16.msra.mxu2 %v11088_v29  ;;  %v11007_v41 = vld [vmem:[%s20642_s4 + $0x48] sm:$0xf] }
 0x9f6   : > { %v5399_v4 = vpack.c.bf16 %v5395_v8, %v5395_v8  ;;  %v12771_v48 = vpack.c.bf16 %v5395_v8, %v5394_v22  ;;  %v12487_v22 = vld [vmem:[%s20642_s4 + $0xc4] sm:$0xf] }
 0x9f7   : > { %v11068_v58 = vor.u32 %v12487_v22, %v11065_v27  ;;  %6072 = vmatpush.bf16.msra.mxu3 %v11092_v9  ;;  %6031 = vmatpush.bf16.msra.mxu0 %v11064_v57  ;;  %v11057_v57 = vld [vmem:[%s20642_s4 + $0xb8] sm:$0xf0]  ;;  %v11031_v22 = vld [vmem:[%s20642_s4 + $0x80] sm:$0xf] }
 0x9f8   : > { %12772 = vst [vmem:[%s5403_s26] sm:$0xff] %v12771_v48   ;;  %v5455_v13 = vunpack.c.l.b16 %v5399_v4  ;;  %v11072_v48 = vor.u32 %v12490_v52, %v11071_v37  ;;  %v12481_v52 = vld [vmem:[%s20642_s4 + $0x8c] sm:$0xf0] }
 0x9f9   : > { %6045 = vmatpush.bf16.msra.mxu1 %v11068_v58 }
 0x9fa   : > { %v5456_v5 = vpack.c.b16 %v5455_v13, %v5454_v1  ;;  %6059 = vmatpush.bf16.msra.mxu2 %v11072_v48 }
 0x9fc   : > { %5626 = vmatmul.bf16.vlgmr.msrb.gmra.mxu0 %v5456_v5  ;;  %5640 = vmatmul.bf16.vlgmr.msrb.gmra.mxu1 %v5456_v5 }
 0x9fd   : > { %5654 = vmatmul.bf16.vlgmr.msrb.gmra.mxu2 %v5456_v5  ;;  %5668 = vmatmul.bf16.vlgmr.msrb.gmra.mxu3 %v5456_v5  ;;  %v5419_v5 = vld [vmem:[%s17934_s17 + $0x38] sm:$0xff]  ;;  %s12461_s17 = sadd.s32 144, %s14923_s13 }
 0x9fe   : > { %s18296_s19 = sshra.s32 %s12461_s17, 3 }
 0x9ff   : > { %s10962_s26 = sshll.u32 %s18296_s19, 2  ;;  %s12497_s19 = sshll.u32 %s6231_s18, 5 }
 0xa00   : > { %s5815_s30 = scalar_lea.vmem [#allocation3], %s10962_s26  ;;  %s18702_s27 = scalar_lea.vmem [#allocation2], %s12497_s19 }
 0xa01   : > { %s6642_s18 = sadd.s32 192, %s14606_s16 }
 0xa02   : > { %s6643_s19 = sshra.s32 %s6642_s18, 3 }
 0xa79   : > { %v5627_v49 = vpop.f32.mrf.mxu0  ;;  %v5641_v61 = vpop.f32.mrf.mxu1 }
 0xa7a   : > { %v5674_v11 = vadd.f32 %v5627_v49, %v5412_v36  ;;  %v5675_v44 = vadd.f32 %v5641_v61, %v5413_v6  ;;  %v12488_v6 = vld [vmem:[%s20642_s4 + $0xcc] sm:$0xf]  ;;  %v11073_v49 = vld [vmem:[%s20642_s4 + $0xd8] sm:$0xf0] }
 0xa7c   : > { %v10955_v14 = vmul.f32 -1.442695, %v5674_v11  ;;  %v10956_v17 = vmul.f32 -1.442695, %v5675_v44 }
 0xa7e   : > { %13175 = vpow2.f32 %v10955_v14 }
 0xa7f   : > { %13177 = vpow2.f32 %v10956_v17 }
 0xa80   : > { %v5655_v20 = vpop.f32.mrf.mxu2  ;;  %v5669_v32 = vpop.f32.mrf.mxu3 }
 0xa81   : > { %v5676_v7 = vadd.f32 %v5655_v20, %v5414_v42  ;;  %v5629_v2 = vpop.f32.mrf.mxu0  ;;  %v5643_v0 = vpop.f32.mrf.mxu1  ;;  %v5677_v46 = vadd.f32 %v5669_v32, %v5415_v24 }
 0xa82   : > { %v5678_v35 = vadd.f32 %v5629_v2, %v5416_v10  ;;  %v5679_v28 = vadd.f32 %v5643_v0, %v5417_v43  ;;  %v11076_v2 = vor.u32 %v12488_v6, %v11073_v49  ;;  %v11047_v0 = vld [vmem:[%s20642_s4 + $0xa0] sm:$0xf] }
 0xa83   : > { %v10957_v63 = vmul.f32 -1.442695, %v5676_v7 }
 0xa84   : > { %v13176_v16 = vpop.eup %13175  ;;  %v10958_v33 = vmul.f32 -1.442695, %v5678_v35  ;;  %v10959_v56 = vmul.f32 -1.442695, %v5679_v28  ;;  %v12485_v35 = vld [vmem:[%s20642_s4 + $0xac] sm:$0xf0]  ;;  %6073 = vmatpush.bf16.msra.mxu3 %v11076_v2 }
 0xa85   : > { %v13178_v25 = vpop.eup %13177  ;;  %v17941_v39 = vadd.f32 1.0, %v13176_v16  ;;  %13179 = vpow2.f32 %v10957_v63  ;;  %v11048_v40 = vor.u32 %v12485_v35, %v11047_v0  ;;  %v12477_v2 = vld [vmem:[%s20642_s4 + $0x6c] sm:$0xf0] }
 0xa86   : > { %v17950_v45 = vadd.f32 1.0, %v13178_v25  ;;  %13181 = vpow2.f32 %v10958_v33 }
 0xa87   : > { %13183 = vrcp.f32 %v17941_v39  ;;  %v5715_v30 = vand.u32 2147483647, %v17941_v39  ;;  %v5717_v50 = vand.u32 2147483648, %v17941_v39  ;;  %vm5711_vm8 = vweird.f32 %v17941_v39  ;;  %6032 = vmatpush.bf16.msra.mxu0 %v11048_v40  ;;  %v12476_v40 = vld [vmem:[%s20642_s4 + $0x6c] sm:$0xf] }
 0xa88   : > { %13185 = vrcp.f32 %v17950_v45  ;;  %v5657_v55 = vpop.f32.mrf.mxu2  ;;  %v5671_v36 = vpop.f32.mrf.mxu3  ;;  %vm5726_vm9 = vweird.f32 %v17950_v45  ;;  %v5732_v44 = vand.u32 2147483648, %v17950_v45  ;;  %v5730_v42 = vand.u32 2147483647, %v17950_v45 }
 0xa89   : > { %13187 = vpow2.f32 %v10959_v56  ;;  %v5680_v38 = vadd.f32 %v5657_v55, %v5418_v12  ;;  %vm18017_vm10 = vcmp.eq.f32.partialorder %v5715_v30, 8.507059e+37  ;;  %v5718_v20 = vor.u32 1.1754944e-38, %v5717_v50 }
 0xa8a   : > { %13189 = vtanh.f32 %v5677_v46  ;;  %v5681_v7 = vadd.f32 %v5671_v36, %v5419_v5  ;;  %v5733_v56 = vor.u32 1.1754944e-38, %v5732_v44  ;;  %vm18055_vm14 = vcmp.eq.f32.partialorder %v5730_v42, 8.507059e+37  ;;  %v11039_v5 = vld [vmem:[%s20642_s4 + $0x88] sm:$0xf]  ;;  %v12482_v36 = vld [vmem:[%s20642_s4 + $0x94] sm:$0xf0] }
 0xa8b   : > { %v13180_v54 = vpop.eup %13179  ;;  %v10960_v31 = vmul.f32 -1.442695, %v5680_v38  ;;  %v11049_v38 = vld [vmem:[%s20642_s4 + $0xb0] sm:$0xf0]  ;;  %v11041_v44 = vld [vmem:[%s20642_s4 + $0x98] sm:$0xf0] }
 0xa8c   : > { %v13182_v26 = vpop.eup %13181  ;;  %v17986_v60 = vadd.f32 1.0, %v13180_v54  ;;  %v11052_v49 = vor.u32 %v12483_v62, %v11049_v38  ;;  %v11025_v62 = vld [vmem:[%s20642_s4 + $0x78] sm:$0xf0]  ;;  %v10999_v38 = vld [vmem:[%s20642_s4 + $0x40] sm:$0xf] }
 0xa8d   : > { %v17994_v8 = vpop.eup %13183  ;;  %v17997_v4 = vadd.f32 1.0, %v13182_v26  ;;  %13191 = vpow2.f32 %v10960_v31 }
 0xa8e   : > { %v17999_v1 = vpop.eup %13185  ;;  %v5707_v13 = vmul.f32 %v17994_v8, %v17941_v39  ;;  %13193 = vrcp.f32 %v17986_v60  ;;  %vm5712_vm11 = vweird.f32 %v17994_v8  ;;  %v5747_v19 = vand.u32 2147483648, %v17986_v60  ;;  %v11055_v39 = vld [vmem:[%s20642_s4 + $0xa8] sm:$0xf]  ;;  %6046 = vmatpush.bf16.msra.mxu1 %v11052_v49 }
 0xa8f   : > { %v13188_v61 = vpop.eup %13187  ;;  %v5722_v11 = vmul.f32 %v17999_v1, %v17950_v45  ;;  %13195 = vrcp.f32 %v17997_v4  ;;  %v5760_v16 = vand.u32 2147483647, %v17997_v4  ;;  %vm5727_vm12 = vweird.f32 %v17999_v1  ;;  %vm18050_vm13 = vmor %vm5711_vm8, %vm5712_vm11  ;;  %v12486_v45 = vld [vmem:[%s20642_s4 + $0xb4] sm:$0xf0] }
 0xa90   : > { %v5708_v14 = vsub.f32 1.0, %v5707_v13  ;;  %v18022_v10 = vadd.f32 1.0, %v13188_v61  ;;  %v13190_v28 = vpop.eup %13189  ;;  %v5762_v25 = vand.u32 2147483648, %v17997_v4  ;;  %vm18072_vm15 = vmor %vm5726_vm9, %vm5727_vm12  ;;  %vm5756_vm1 = vweird.f32 %v17997_v4  ;;  %v11033_v13 = vld [vmem:[%s20642_s4 + $0x90] sm:$0xf0] }
 0xa91   : > { %v5723_v43 = vsub.f32 1.0, %v5722_v11  ;;  %vm18082_vm0 = vcmp.eq.f32.partialorder %v5760_v16, 8.507059e+37  ;;  %v11056_v61 = vor.u32 %v12486_v45, %v11055_v39  ;;  %v12480_v11 = vld [vmem:[%s20642_s4 + $0x8c] sm:$0xf]  ;;  %v11040_v16 = vor.u32 %v12482_v36, %v11039_v5  ;;  %v12473_v39 = vld [vmem:[%s20642_s4 + $0x4c] sm:$0xf0] }
 0xa92   : > { %v5709_v63 = vmul.f32 %v17994_v8, %v5708_v14  ;;  %13197 = vrcp.f32 %v18022_v10  ;;  %v5777_v18 = vand.u32 2147483648, %v18022_v10  ;;  %v5775_v15 = vand.u32 2147483647, %v18022_v10 }
 0xa93   : > { %v13192_v32 = vpop.eup %13191  ;;  %v5724_v33 = vmul.f32 %v17999_v1, %v5723_v43  ;;  %13199 = vtanh.f32 %v5681_v7  ;;  %v5763_v9 = vor.u32 1.1754944e-38, %v5762_v25  ;;  %v11060_v43 = vor.u32 %v12484_v47, %v11057_v57  ;;  %v11015_v7 = vld [vmem:[%s20642_s4 + $0x60] sm:$0xf]  ;;  %6060 = vmatpush.bf16.msra.mxu2 %v11056_v61  ;;  %v10991_v61 = vld [vmem:[%s20642_s4 + $0x28] sm:$0xf] }
 0xa94   : > { %v18037_v24 = vpop.eup %13193  ;;  %v5710_v23 = vadd.f32 %v17994_v8, %v5709_v63  ;;  %v18041_v12 = vadd.f32 1.0, %v13192_v32  ;;  %v18110_v37 = vor.u32 1.1754944e-38, %v5777_v18  ;;  %vm18133_vm3 = vcmp.eq.f32.partialorder %v5775_v15, 8.507059e+37  ;;  %v12475_v32 = vld [vmem:[%s20642_s4 + $0x64] sm:$0xf] }
 0xa95   : > { %v18043_v59 = vpop.eup %13195  ;;  %v5725_v55 = vadd.f32 %v17999_v1, %v5724_v33  ;;  %v5737_v54 = vmul.f32 %v18037_v24, %v17986_v60  ;;  %v11017_v33 = vld [vmem:[%s20642_s4 + $0x70] sm:$0xf0]  ;;  %6074 = vmatpush.bf16.msra.mxu3 %v11060_v43  ;;  %v12478_v18 = vld [vmem:[%s20642_s4 + $0x74] sm:$0xf0]  ;;  %vm5771_vm6 = vweird.f32 %v18022_v10  ;;  %v11016_v51 = vor.u32 %v12477_v2, %v11015_v7 }
 0xa96   : > { %v5714_v3 = vsel %vm18050_vm13, %v17994_v8, %v5710_v23  ;;  %v5752_v30 = vmul.f32 %v18043_v59, %v17997_v4  ;;  %13201 = vrcp.f32 %v18041_v12  ;;  %v12479_v8 = vld [vmem:[%s20642_s4 + $0x84] sm:$0xf]  ;;  %vm5757_vm2 = vweird.f32 %v18043_v59  ;;  %v11023_v23 = vld [vmem:[%s20642_s4 + $0x68] sm:$0xf] }
 0xa97   : > { %v5719_v31 = vsel %vm18017_vm10, %v5718_v20, %v5714_v3  ;;  %v5729_v29 = vsel %vm18072_vm15, %v17999_v1, %v5725_v55  ;;  %v5738_v17 = vsub.f32 1.0, %v5737_v54  ;;  %v11032_v20 = vor.u32 %v12481_v52, %v11031_v22  ;;  %vm18157_vm5 = vmor %vm5756_vm1, %vm5757_vm2  ;;  %6061 = vmatpush.bf16.msra.mxu2 %v11040_v16  ;;  %v12471_v54 = vld [vmem:[%s20642_s4 + $0x44] sm:$0xf]  ;;  %v12474_v22 = vld [vmem:[%s20642_s4 + $0x54] sm:$0xf0] }
 0xa98   : > { %v18106_v27 = vpop.eup %13197  ;;  %v5734_v26 = vsel %vm18055_vm14, %v5733_v56, %v5729_v29  ;;  %v5753_v58 = vsub.f32 1.0, %v5752_v30  ;;  %v5800_v48 = vmul.f32 %v13190_v28, %v5719_v31  ;;  %v11036_v63 = vor.u32 %v12479_v8, %v11033_v13  ;;  %v11001_v31 = vld [vmem:[%s20642_s4 + $0x50] sm:$0xf0]  ;;  %v10983_v8 = vld [vmem:[%s20642_s4 + $0x20] sm:$0xf] }
 0xa99   : > { %v5798_v50 = vmul.f32 %v5734_v26, %v17783_v34  ;;  %v5767_v1 = vmul.f32 %v18106_v27, %v18022_v10  ;;  %v13200_v14 = vpop.eup %13199  ;;  %vm5772_vm4 = vweird.f32 %v18106_v27  ;;  %6033 = vmatpush.bf16.msra.mxu0 %v11032_v20  ;;  %v11044_v55 = vor.u32 %v12480_v11, %v11041_v44  ;;  %v12472_v26 = vld [vmem:[%s20642_s4 + $0x4c] sm:$0xf]  ;;  %v12470_v11 = vld [vmem:[%s20642_s4 + $0x34] sm:$0xf0]  ;;  %v12463_v16 = vld [vmem:[%s20642_s4 + $0x4] sm:$0xf] }
 0xa9a   : > { %v5754_v34 = vmul.f32 %v18043_v59, %v5753_v58  ;;  %v5739_v10 = vmul.f32 %v18037_v24, %v5738_v17  ;;  %vm18197_vm7 = vmor %vm5771_vm6, %vm5772_vm4  ;;  %vm5742_vm8 = vweird.f32 %v18037_v24  ;;  %6047 = vmatpush.bf16.msra.mxu1 %v11036_v63  ;;  %v11020_v45 = vor.u32 %v12475_v32, %v11017_v33  ;;  %v11009_v58 = vld [vmem:[%s20642_s4 + $0x58] sm:$0xf0]  ;;  %v12468_v44 = vld [vmem:[%s20642_s4 + $0x2c] sm:$0xf] }
 0xa9b   : > { %v5768_v42 = vsub.f32 1.0, %v5767_v1  ;;  %v18167_v56 = vadd.f32 %v5800_v48, %v5798_v50  ;;  %v11024_v47 = vor.u32 %v12478_v18, %v11023_v23  ;;  %6075 = vmatpush.bf16.msra.mxu3 %v11044_v55  ;;  %v11000_v57 = vor.u32 %v12473_v39, %v10999_v38  ;;  %v12469_v50 = vld [vmem:[%s20642_s4 + $0x2c] sm:$0xf0]  ;;  %v10967_v17 = vld [vmem:[%s20642_s4] sm:$0xf] }
 0xa9c   : > { %v18149_v0 = vpop.eup %13201  ;;  %v5755_v35 = vadd.f32 %v18043_v59, %v5754_v34  ;;  %vm5741_vm9 = vweird.f32 %v17986_v60  ;;  %v5748_v48 = vor.u32 1.1754944e-38, %v5747_v19  ;;  %v11004_v13 = vor.u32 %v12471_v54, %v11001_v31  ;;  %v12467_v34 = vld [vmem:[%s20642_s4 + $0x24] sm:$0xf]  ;;  %v12464_v18 = vld [vmem:[%s20642_s4 + $0xc] sm:$0xf] }
 0xa9d   : > { %v5769_v4 = vmul.f32 %v18106_v27, %v5768_v42  ;;  %v5782_v25 = vmul.f32 %v18149_v0, %v18041_v12  ;;  %13203 = vtanh.f32 %v18167_v56  ;;  %6034 = vmatpush.bf16.msra.mxu0 %v11016_v51  ;;  %vm18244_vm10 = vmor %vm5741_vm9, %vm5742_vm8  ;;  %6062 = vmatpush.bf16.msra.mxu2 %v11024_v47  ;;  %v11008_v5 = vor.u32 %v12474_v22, %v11007_v41  ;;  %v12465_v42 = vld [vmem:[%s20642_s4 + $0xc] sm:$0xf0]  ;;  %v5824_v54 = vld [vmem:[%s18318_s25] sm:$0xff] }
 0xa9e   : > { %v5759_v46 = vsel %vm18157_vm5, %v18043_v59, %v5755_v35  ;;  %6048 = vmatpush.bf16.msra.mxu1 %v11020_v45  ;;  %v11012_v36 = vor.u32 %v12472_v26, %v11009_v58  ;;  %v5745_v19 = vand.u32 2147483647, %v17986_v60  ;;  %vm5787_vm11 = vweird.f32 %v18149_v0  ;;  %v5825_v31 = vld [vmem:[%s18318_s25 + $0x8] sm:$0xff]  ;;  %v5826_v58 = vld [vmem:[%s18318_s25 + $0x10] sm:$0xff] }
 0xa9f   : > { %v5783_v53 = vsub.f32 1.0, %v5782_v25  ;;  %v5764_v3 = vsel %vm18082_vm0, %v5763_v9, %v5759_v46  ;;  %v5770_v30 = vadd.f32 %v18106_v27, %v5769_v4  ;;  %v11028_v9 = vor.u32 %v12476_v40, %v11025_v62  ;;  %v10969_v4 = vld [vmem:[%s20642_s4 + $0x10] sm:$0xf0]  ;;  %v10975_v25 = vld [vmem:[%s20642_s4 + $0x8] sm:$0xf] }
 0xaa0   : > { %v5801_v15 = vmul.f32 %v13200_v14, %v5764_v3  ;;  %v10984_v49 = vor.u32 %v12469_v50, %v10983_v8  ;;  %v5740_v60 = vadd.f32 %v18037_v24, %v5739_v10  ;;  %v10993_v14 = vld [vmem:[%s20642_s4 + $0x38] sm:$0xf0]  ;;  %vm5786_vm12 = vweird.f32 %v18041_v12  ;;  %v11225_v35 = vld [vmem:[%s20642_s4 + $0xe8] sm:$0xf] }
 0xaa1   : > { %v5774_v29 = vsel %vm18197_vm7, %v18106_v27, %v5770_v30  ;;  %v5784_v52 = vmul.f32 %v18149_v0, %v5783_v53  ;;  %6076 = vmatpush.bf16.msra.mxu3 %v11028_v9  ;;  %6035 = vmatpush.bf16.msra.mxu0 %v11000_v57  ;;  %v5792_v7 = vand.u32 2147483648, %v18041_v12  ;;  %vm18286_vm13 = vmor %vm5786_vm12, %vm5787_vm11  ;;  %v10992_v63 = vor.u32 %v12470_v11, %v10991_v61  ;;  %v10977_v40 = vld [vmem:[%s20642_s4 + $0x18] sm:$0xf0] }
 0xaa2   : > { %v5779_v27 = vsel %vm18133_vm3, %v18110_v37, %v5774_v29  ;;  %v5744_v2 = vsel %vm18244_vm10, %v18037_v24, %v5740_v60  ;;  %6049 = vmatpush.bf16.msra.mxu1 %v11004_v13  ;;  %6063 = vmatpush.bf16.msra.mxu2 %v11008_v5  ;;  %vm5746_vm14 = vcmp.eq.f32.partialorder %v5745_v19, 8.507059e+37  ;;  %v5790_v32 = vand.u32 2147483647, %v18041_v12  ;;  %v12466_v12 = vld [vmem:[%s20642_s4 + $0x14] sm:$0xf0] }
 0xaa3   : > { %v5799_v1 = vmul.f32 %v5779_v27, %v17872_v21  ;;  %v10985_v21 = vld [vmem:[%s20642_s4 + $0x30] sm:$0xf0]  ;;  %v5785_v43 = vadd.f32 %v18149_v0, %v5784_v52  ;;  %v13204_v20 = vpop.eup %13203  ;;  %v10996_v24 = vor.u32 %v12468_v44, %v10993_v14  ;;  %v10968_v33 = vor.u32 %v12465_v42, %v10967_v17  ;;  %v5828_v52 = vld [vmem:[%s18318_s25 + $0x20] sm:$0xff]  ;;  %v5829_v27 = vld [vmem:[%s18318_s25 + $0x28] sm:$0xff] }
 0xaa4   : > { %v10988_v28 = vor.u32 %v12467_v34, %v10985_v21  ;;  %v5749_v23 = vsel %vm5746_vm14, %v5748_v48, %v5744_v2  ;;  %v5793_v51 = vor.u32 1.1754944e-38, %v5792_v7  ;;  %v10972_v62 = vor.u32 %v12463_v16, %v10969_v4  ;;  %v5827_v11 = vld [vmem:[%s18318_s25 + $0x18] sm:$0xff]  ;;  %v11217_v44 = vld [vmem:[%s20642_s4 + $0xe0] sm:$0xf]  ;;  %v12528_v60 = vld [vmem:[%s20642_s4 + $0xec] sm:$0xf0] }
 0xaa5   : > { %v18256_v6 = vadd.f32 %v5801_v15, %v5799_v1  ;;  %6077 = vmatpush.bf16.msra.mxu3 %v11012_v36  ;;  %6036 = vmatpush.bf16.msra.mxu0 %v10984_v49  ;;  %v5789_v46 = vsel %vm18286_vm13, %v18149_v0, %v5785_v43  ;;  %v5806_v55 = vmul.f32 %v13204_v20, %v5749_v23  ;;  %vm5791_vm15 = vcmp.eq.f32.partialorder %v5790_v32, 8.507059e+37  ;;  %v5830_v17 = vld [vmem:[%s18318_s25 + $0x30] sm:$0xff]  ;;  %v12526_v43 = vld [vmem:[%s20642_s4 + $0xe4] sm:$0xf]  ;;  %v12527_v16 = vld [vmem:[%s20642_s4 + $0xec] sm:$0xf] }
 0xaa6   : > { %6050 = vmatpush.bf16.msra.mxu1 %v10988_v28  ;;  %6064 = vmatpush.bf16.msra.mxu2 %v10992_v63  ;;  %v10976_v38 = vor.u32 %v12466_v12, %v10975_v25  ;;  %v10980_v10 = vor.u32 %v12464_v18, %v10977_v40  ;;  %v5794_v59 = vsel %vm5791_vm15, %v5793_v51, %v5789_v46  ;;  %v11219_v20 = vld [vmem:[%s20642_s4 + $0xf0] sm:$0xf0]  ;;  %v12529_v28 = vld [vmem:[%s20642_s4 + $0xf4] sm:$0xf0]  ;;  %v11227_v32 = vld [vmem:[%s20642_s4 + $0xf8] sm:$0xf0] }
 0xaa7   : > { %13205 = vtanh.f32 %v18256_v6  ;;  %v5810_v3 = vpack.c.bf16 %v5806_v55, %v5806_v55  ;;  %v11218_v42 = vor.u32 %v12528_v60, %v11217_v44  ;;  %v11201_v4 = vld [vmem:[%s20642_s4 + $0xc0] sm:$0xf]  ;;  %v12524_v25 = vld [vmem:[%s20642_s4 + $0xcc] sm:$0xf0]  ;;  %v11226_v18 = vor.u32 %v12529_v28, %v11225_v35  ;;  %v11203_v51 = vld [vmem:[%s20642_s4 + $0xd0] sm:$0xf0] }
 0xaa8   : > { %v11230_v40 = vor.u32 %v12527_v16, %v11227_v32  ;;  %v11202_v46 = vor.u32 %v12524_v25, %v11201_v4  ;;  %v12518_v28 = vld [vmem:[%s20642_s4 + $0xa4] sm:$0xf]  ;;  %v12519_v25 = vld [vmem:[%s20642_s4 + $0xac] sm:$0xf] }
 0xaa9   : > { %6078 = vmatpush.bf16.msra.mxu3 %v10996_v24  ;;  %6037 = vmatpush.bf16.msra.mxu0 %v10968_v33  ;;  %v5866_v15 = vunpack.c.l.b16 %v5810_v3  ;;  %v11222_v33 = vor.u32 %v12526_v43, %v11219_v20 }
 0xaaa   : > { %6051 = vmatpush.bf16.msra.mxu1 %v10972_v62  ;;  %6065 = vmatpush.bf16.msra.mxu2 %v10976_v38 }
 0xaad   : > { %v13206_v39 = vpop.eup %13205  ;;  %6079 = vmatpush.bf16.msra.mxu3 %v10980_v10  ;;  %6442 = vmatpush.bf16.msrb.mxu0 %v11218_v42  ;;  %v11209_v10 = vld [vmem:[%s20642_s4 + $0xc8] sm:$0xf] }
 0xaae   : > { %v5807_v53 = vmul.f32 %v13206_v39, %v5794_v59  ;;  %6456 = vmatpush.bf16.msrb.mxu1 %v11222_v33  ;;  %v12525_v59 = vld [vmem:[%s20642_s4 + $0xd4] sm:$0xf0]  ;;  %6470 = vmatpush.bf16.msrb.mxu2 %v11226_v18  ;;  %v11145_v33 = vld [vmem:[%s20642_s4 + $0x48] sm:$0xf] }
 0xab0   : > { %v5811_v30 = vpack.c.bf16 %v5807_v53, %v5807_v53  ;;  %v12776_v0 = vpack.c.bf16 %v5807_v53, %v5806_v55  ;;  %v12522_v55 = vld [vmem:[%s20642_s4 + $0xc4] sm:$0xf] }
 0xab1   : > { %v11206_v39 = vor.u32 %v12522_v55, %v11203_v51  ;;  %6484 = vmatpush.bf16.msrb.mxu3 %v11230_v40  ;;  %6443 = vmatpush.bf16.msrb.mxu0 %v11202_v46  ;;  %v11195_v46 = vld [vmem:[%s20642_s4 + $0xb8] sm:$0xf0]  ;;  %v11169_v55 = vld [vmem:[%s20642_s4 + $0x80] sm:$0xf] }
 0xab2   : > { %12777 = vst [vmem:[%s5815_s30] sm:$0xff] %v12776_v0   ;;  %v5867_v45 = vunpack.c.l.b16 %v5811_v30  ;;  %v11210_v0 = vor.u32 %v12525_v59, %v11209_v10  ;;  %v12516_v59 = vld [vmem:[%s20642_s4 + $0x8c] sm:$0xf0] }
 0xab3   : > { %6457 = vmatpush.bf16.msrb.mxu1 %v11206_v39 }
 0xab4   : > { %v5868_v47 = vpack.c.b16 %v5867_v45, %v5866_v15  ;;  %6471 = vmatpush.bf16.msrb.mxu2 %v11210_v0 }
 0xab6   : > { %6038 = vmatmul.bf16.vlgmr.msra.gmra.mxu0 %v5868_v47  ;;  %6052 = vmatmul.bf16.vlgmr.msra.gmra.mxu1 %v5868_v47 }
 0xab7   : > { %6066 = vmatmul.bf16.vlgmr.msra.gmra.mxu2 %v5868_v47  ;;  %6080 = vmatmul.bf16.vlgmr.msra.gmra.mxu3 %v5868_v47  ;;  %v5831_v47 = vld [vmem:[%s18318_s25 + $0x38] sm:$0xff]  ;;  %s12496_s25 = sadd.s32 160, %s14923_s13 }
 0xab8   : > { %s18680_s20 = sshra.s32 %s12496_s25, 3 }
 0xab9   : > { %s11100_s30 = sshll.u32 %s18680_s20, 2  ;;  %s12532_s20 = sshll.u32 %s6643_s19, 5 }
 0xaba   : > { %s6227_s12 = scalar_lea.vmem [#allocation3], %s11100_s30  ;;  %s19073_s14 = scalar_lea.vmem [#allocation2], %s12532_s20 }
 0xabb   : > { %s7054_s19 = sadd.s32 208, %s14606_s16 }
 0xabc   : > { %s7055_s20 = sshra.s32 %s7054_s19, 3 }
 0xb33   : > { %v6039_v41 = vpop.f32.mrf.mxu0  ;;  %v6053_v29 = vpop.f32.mrf.mxu1 }
 0xb34   : > { %v6086_v9 = vadd.f32 %v6039_v41, %v5824_v54  ;;  %v6087_v57 = vadd.f32 %v6053_v29, %v5825_v31  ;;  %v12523_v31 = vld [vmem:[%s20642_s4 + $0xcc] sm:$0xf]  ;;  %v11211_v41 = vld [vmem:[%s20642_s4 + $0xd8] sm:$0xf0] }
 0xb36   : > { %v11093_v22 = vmul.f32 -1.442695, %v6086_v9  ;;  %v11094_v26 = vmul.f32 -1.442695, %v6087_v57 }
 0xb38   : > { %13207 = vpow2.f32 %v11093_v22 }
 0xb39   : > { %13209 = vpow2.f32 %v11094_v26 }
 0xb3a   : > { %v6067_v8 = vpop.f32.mrf.mxu2  ;;  %v6081_v34 = vpop.f32.mrf.mxu3 }
 0xb3b   : > { %v6088_v50 = vadd.f32 %v6067_v8, %v5826_v58  ;;  %v6041_v48 = vpop.f32.mrf.mxu0  ;;  %v6055_v1 = vpop.f32.mrf.mxu1  ;;  %v6089_v7 = vadd.f32 %v6081_v34, %v5827_v11 }
 0xb3c   : > { %v6090_v37 = vadd.f32 %v6041_v48, %v5828_v52  ;;  %v6091_v13 = vadd.f32 %v6055_v1, %v5829_v27  ;;  %v11214_v48 = vor.u32 %v12523_v31, %v11211_v41  ;;  %v11185_v1 = vld [vmem:[%s20642_s4 + $0xa0] sm:$0xf] }
 0xb3d   : > { %v11095_v5 = vmul.f32 -1.442695, %v6088_v50 }
 0xb3e   : > { %v13208_v36 = vpop.eup %13207  ;;  %v11096_v21 = vmul.f32 -1.442695, %v6090_v37  ;;  %v11097_v19 = vmul.f32 -1.442695, %v6091_v13  ;;  %v12520_v37 = vld [vmem:[%s20642_s4 + $0xac] sm:$0xf0]  ;;  %6485 = vmatpush.bf16.msrb.mxu3 %v11214_v48 }
 0xb3f   : > { %v13210_v49 = vpop.eup %13209  ;;  %v18325_v61 = vadd.f32 1.0, %v13208_v36  ;;  %13211 = vpow2.f32 %v11095_v5  ;;  %v11186_v42 = vor.u32 %v12520_v37, %v11185_v1  ;;  %v12512_v48 = vld [vmem:[%s20642_s4 + $0x6c] sm:$0xf0] }
 0xb40   : > { %v18334_v14 = vadd.f32 1.0, %v13210_v49  ;;  %13213 = vpow2.f32 %v11096_v21 }
 0xb41   : > { %13215 = vrcp.f32 %v18325_v61  ;;  %v6127_v24 = vand.u32 2147483647, %v18325_v61  ;;  %v6129_v3 = vand.u32 2147483648, %v18325_v61  ;;  %vm6123_vm0 = vweird.f32 %v18325_v61  ;;  %6444 = vmatpush.bf16.msrb.mxu0 %v11186_v42  ;;  %v12511_v42 = vld [vmem:[%s20642_s4 + $0x6c] sm:$0xf] }
 0xb42   : > { %13217 = vrcp.f32 %v18334_v14  ;;  %v6069_v2 = vpop.f32.mrf.mxu2  ;;  %v6083_v54 = vpop.f32.mrf.mxu3  ;;  %vm6138_vm1 = vweird.f32 %v18334_v14  ;;  %v6144_v57 = vand.u32 2147483648, %v18334_v14  ;;  %v6142_v58 = vand.u32 2147483647, %v18334_v14 }
 0xb43   : > { %13219 = vpow2.f32 %v11097_v19  ;;  %v6092_v63 = vadd.f32 %v6069_v2, %v5830_v17  ;;  %vm18401_vm2 = vcmp.eq.f32.partialorder %v6127_v24, 8.507059e+37  ;;  %v6130_v8 = vor.u32 1.1754944e-38, %v6129_v3 }
 0xb44   : > { %13221 = vtanh.f32 %v6089_v7  ;;  %v6093_v50 = vadd.f32 %v6083_v54, %v5831_v47  ;;  %v6145_v19 = vor.u32 1.1754944e-38, %v6144_v57  ;;  %vm18439_vm6 = vcmp.eq.f32.partialorder %v6142_v58, 8.507059e+37  ;;  %v11177_v47 = vld [vmem:[%s20642_s4 + $0x88] sm:$0xf]  ;;  %v12517_v54 = vld [vmem:[%s20642_s4 + $0x94] sm:$0xf0] }
 0xb45   : > { %v13212_v12 = vpop.eup %13211  ;;  %v11098_v23 = vmul.f32 -1.442695, %v6092_v63  ;;  %v11187_v63 = vld [vmem:[%s20642_s4 + $0xb0] sm:$0xf0]  ;;  %v11179_v57 = vld [vmem:[%s20642_s4 + $0x98] sm:$0xf0] }
 0xb46   : > { %v13214_v62 = vpop.eup %13213  ;;  %v18370_v38 = vadd.f32 1.0, %v13212_v12  ;;  %v11190_v41 = vor.u32 %v12518_v28, %v11187_v63  ;;  %v11163_v28 = vld [vmem:[%s20642_s4 + $0x78] sm:$0xf0]  ;;  %v11137_v63 = vld [vmem:[%s20642_s4 + $0x40] sm:$0xf] }
 0xb47   : > { %v18378_v53 = vpop.eup %13215  ;;  %v18381_v30 = vadd.f32 1.0, %v13214_v62  ;;  %13223 = vpow2.f32 %v11098_v23 }
 0xb48   : > { %v18383_v15 = vpop.eup %13217  ;;  %v6119_v45 = vmul.f32 %v18378_v53, %v18325_v61  ;;  %13225 = vrcp.f32 %v18370_v38  ;;  %vm6124_vm3 = vweird.f32 %v18378_v53  ;;  %v6159_v20 = vand.u32 2147483648, %v18370_v38  ;;  %v11193_v61 = vld [vmem:[%s20642_s4 + $0xa8] sm:$0xf]  ;;  %6458 = vmatpush.bf16.msrb.mxu1 %v11190_v41 }
 0xb49   : > { %v13220_v29 = vpop.eup %13219  ;;  %v6134_v9 = vmul.f32 %v18383_v15, %v18334_v14  ;;  %13227 = vrcp.f32 %v18381_v30  ;;  %v6172_v36 = vand.u32 2147483647, %v18381_v30  ;;  %vm6139_vm4 = vweird.f32 %v18383_v15  ;;  %vm18434_vm5 = vmor %vm6123_vm0, %vm6124_vm3  ;;  %v12521_v14 = vld [vmem:[%s20642_s4 + $0xb4] sm:$0xf0] }
 0xb4a   : > { %v6120_v22 = vsub.f32 1.0, %v6119_v45  ;;  %v18406_v52 = vadd.f32 1.0, %v13220_v29  ;;  %v13222_v13 = vpop.eup %13221  ;;  %v6174_v49 = vand.u32 2147483648, %v18381_v30  ;;  %vm18456_vm7 = vmor %vm6138_vm1, %vm6139_vm4  ;;  %vm6168_vm9 = vweird.f32 %v18381_v30  ;;  %v11171_v45 = vld [vmem:[%s20642_s4 + $0x90] sm:$0xf0] }
 0xb4b   : > { %v6135_v27 = vsub.f32 1.0, %v6134_v9  ;;  %vm18466_vm8 = vcmp.eq.f32.partialorder %v6172_v36, 8.507059e+37  ;;  %v11194_v29 = vor.u32 %v12521_v14, %v11193_v61  ;;  %v12515_v9 = vld [vmem:[%s20642_s4 + $0x8c] sm:$0xf]  ;;  %v11178_v36 = vor.u32 %v12517_v54, %v11177_v47  ;;  %v12508_v61 = vld [vmem:[%s20642_s4 + $0x4c] sm:$0xf0] }
 0xb4c   : > { %v6121_v5 = vmul.f32 %v18378_v53, %v6120_v22  ;;  %13229 = vrcp.f32 %v18406_v52  ;;  %v6189_v60 = vand.u32 2147483648, %v18406_v52  ;;  %v6187_v4 = vand.u32 2147483647, %v18406_v52 }
 0xb4d   : > { %v13224_v34 = vpop.eup %13223  ;;  %v6136_v21 = vmul.f32 %v18383_v15, %v6135_v27  ;;  %13231 = vtanh.f32 %v6093_v50  ;;  %v6175_v40 = vor.u32 1.1754944e-38, %v6174_v49  ;;  %v11198_v27 = vor.u32 %v12519_v25, %v11195_v46  ;;  %v11153_v50 = vld [vmem:[%s20642_s4 + $0x60] sm:$0xf]  ;;  %6472 = vmatpush.bf16.msrb.mxu2 %v11194_v29  ;;  %v11129_v29 = vld [vmem:[%s20642_s4 + $0x28] sm:$0xf] }
 0xb4e   : > { %v18421_v11 = vpop.eup %13225  ;;  %v6122_v44 = vadd.f32 %v18378_v53, %v6121_v5  ;;  %v18425_v17 = vadd.f32 1.0, %v13224_v34  ;;  %v18494_v10 = vor.u32 1.1754944e-38, %v6189_v60  ;;  %vm18517_vm11 = vcmp.eq.f32.partialorder %v6187_v4, 8.507059e+37  ;;  %v12510_v34 = vld [vmem:[%s20642_s4 + $0x64] sm:$0xf] }
 0xb4f   : > { %v18427_v43 = vpop.eup %13227  ;;  %v6137_v2 = vadd.f32 %v18383_v15, %v6136_v21  ;;  %v6149_v12 = vmul.f32 %v18421_v11, %v18370_v38  ;;  %v11155_v21 = vld [vmem:[%s20642_s4 + $0x70] sm:$0xf0]  ;;  %6486 = vmatpush.bf16.msrb.mxu3 %v11198_v27  ;;  %v12513_v60 = vld [vmem:[%s20642_s4 + $0x74] sm:$0xf0]  ;;  %vm6183_vm14 = vweird.f32 %v18406_v52  ;;  %v11154_v35 = vor.u32 %v12512_v48, %v11153_v50 }
 0xb50   : > { %v6126_v32 = vsel %vm18434_vm5, %v18378_v53, %v6122_v44  ;;  %v6164_v24 = vmul.f32 %v18427_v43, %v18381_v30  ;;  %13233 = vrcp.f32 %v18425_v17  ;;  %v12514_v53 = vld [vmem:[%s20642_s4 + $0x84] sm:$0xf]  ;;  %vm6169_vm10 = vweird.f32 %v18427_v43  ;;  %v11161_v44 = vld [vmem:[%s20642_s4 + $0x68] sm:$0xf] }
 0xb51   : > { %v6131_v23 = vsel %vm18401_vm2, %v6130_v8, %v6126_v32  ;;  %v6141_v18 = vsel %vm18456_vm7, %v18383_v15, %v6137_v2  ;;  %v6150_v26 = vsub.f32 1.0, %v6149_v12  ;;  %v11170_v8 = vor.u32 %v12516_v59, %v11169_v55  ;;  %vm18541_vm13 = vmor %vm6168_vm9, %vm6169_vm10  ;;  %6473 = vmatpush.bf16.msrb.mxu2 %v11178_v36  ;;  %v12506_v12 = vld [vmem:[%s20642_s4 + $0x44] sm:$0xf]  ;;  %v12509_v55 = vld [vmem:[%s20642_s4 + $0x54] sm:$0xf0] }
 0xb52   : > { %v18490_v51 = vpop.eup %13229  ;;  %v6146_v62 = vsel %vm18439_vm6, %v6145_v19, %v6141_v18  ;;  %v6165_v39 = vsub.f32 1.0, %v6164_v24  ;;  %v6212_v0 = vmul.f32 %v13222_v13, %v6131_v23  ;;  %v11174_v5 = vor.u32 %v12514_v53, %v11171_v45  ;;  %v11139_v23 = vld [vmem:[%s20642_s4 + $0x50] sm:$0xf0]  ;;  %v11121_v53 = vld [vmem:[%s20642_s4 + $0x20] sm:$0xf] }
 0xb53   : > { %v6210_v3 = vmul.f32 %v6146_v62, %v18167_v56  ;;  %v6179_v15 = vmul.f32 %v18490_v51, %v18406_v52  ;;  %v13232_v22 = vpop.eup %13231  ;;  %vm6184_vm12 = vweird.f32 %v18490_v51  ;;  %6445 = vmatpush.bf16.msrb.mxu0 %v11170_v8  ;;  %v11182_v2 = vor.u32 %v12515_v9, %v11179_v57  ;;  %v12507_v62 = vld [vmem:[%s20642_s4 + $0x4c] sm:$0xf]  ;;  %v12505_v9 = vld [vmem:[%s20642_s4 + $0x34] sm:$0xf0]  ;;  %v12498_v36 = vld [vmem:[%s20642_s4 + $0x4] sm:$0xf] }
 0xb54   : > { %v6166_v56 = vmul.f32 %v18427_v43, %v6165_v39  ;;  %v6151_v52 = vmul.f32 %v18421_v11, %v6150_v26  ;;  %vm18581_vm15 = vmor %vm6183_vm14, %vm6184_vm12  ;;  %vm6154_vm0 = vweird.f32 %v18421_v11  ;;  %6459 = vmatpush.bf16.msrb.mxu1 %v11174_v5  ;;  %v11158_v14 = vor.u32 %v12510_v34, %v11155_v21  ;;  %v11147_v39 = vld [vmem:[%s20642_s4 + $0x58] sm:$0xf0]  ;;  %v12503_v57 = vld [vmem:[%s20642_s4 + $0x2c] sm:$0xf] }
 0xb55   : > { %v6180_v58 = vsub.f32 1.0, %v6179_v15  ;;  %v18551_v19 = vadd.f32 %v6212_v0, %v6210_v3  ;;  %v11162_v25 = vor.u32 %v12513_v60, %v11161_v44  ;;  %6487 = vmatpush.bf16.msrb.mxu3 %v11182_v2  ;;  %v11138_v46 = vor.u32 %v12508_v61, %v11137_v63  ;;  %v12504_v3 = vld [vmem:[%s20642_s4 + $0x2c] sm:$0xf0]  ;;  %v11105_v26 = vld [vmem:[%s20642_s4] sm:$0xf] }
 0xb56   : > { %v18533_v1 = vpop.eup %13233  ;;  %v6167_v37 = vadd.f32 %v18427_v43, %v6166_v56  ;;  %vm6153_vm1 = vweird.f32 %v18370_v38  ;;  %v6160_v0 = vor.u32 1.1754944e-38, %v6159_v20  ;;  %v11142_v45 = vor.u32 %v12506_v12, %v11139_v23  ;;  %v12502_v56 = vld [vmem:[%s20642_s4 + $0x24] sm:$0xf]  ;;  %v12499_v60 = vld [vmem:[%s20642_s4 + $0xc] sm:$0xf] }
 0xb57   : > { %v6181_v30 = vmul.f32 %v18490_v51, %v6180_v58  ;;  %v6194_v49 = vmul.f32 %v18533_v1, %v18425_v17  ;;  %13235 = vtanh.f32 %v18551_v19  ;;  %6446 = vmatpush.bf16.msrb.mxu0 %v11154_v35  ;;  %vm18628_vm2 = vmor %vm6153_vm1, %vm6154_vm0  ;;  %6474 = vmatpush.bf16.msrb.mxu2 %v11162_v25  ;;  %v11146_v47 = vor.u32 %v12509_v55, %v11145_v33  ;;  %v12500_v58 = vld [vmem:[%s20642_s4 + $0xc] sm:$0xf0]  ;;  %v6236_v12 = vld [vmem:[%s18702_s27] sm:$0xff] }
 0xb58   : > { %v6171_v7 = vsel %vm18541_vm13, %v18427_v43, %v6167_v37  ;;  %6460 = vmatpush.bf16.msrb.mxu1 %v11158_v14  ;;  %v11150_v54 = vor.u32 %v12507_v62, %v11147_v39  ;;  %v6157_v20 = vand.u32 2147483647, %v18370_v38  ;;  %vm6199_vm3 = vweird.f32 %v18533_v1  ;;  %v6237_v23 = vld [vmem:[%s18702_s27 + $0x8] sm:$0xff]  ;;  %v6238_v39 = vld [vmem:[%s18702_s27 + $0x10] sm:$0xff]  ;;  %v12564_v37 = vld [vmem:[%s20642_s4 + $0xf4] sm:$0xf0] }
 0xb59   : > { %v6195_v16 = vsub.f32 1.0, %v6194_v49  ;;  %v6176_v32 = vsel %vm18466_vm8, %v6175_v40, %v6171_v7  ;;  %v6182_v24 = vadd.f32 %v18490_v51, %v6181_v30  ;;  %v11166_v40 = vor.u32 %v12511_v42, %v11163_v28  ;;  %v11107_v30 = vld [vmem:[%s20642_s4 + $0x10] sm:$0xf0]  ;;  %v11113_v49 = vld [vmem:[%s20642_s4 + $0x8] sm:$0xf] }
 0xb5a   : > { %v6213_v4 = vmul.f32 %v13232_v22, %v6176_v32  ;;  %v11122_v41 = vor.u32 %v12504_v3, %v11121_v53  ;;  %v6152_v38 = vadd.f32 %v18421_v11, %v6151_v52  ;;  %v11131_v22 = vld [vmem:[%s20642_s4 + $0x38] sm:$0xf0]  ;;  %vm6198_vm4 = vweird.f32 %v18425_v17 }
 0xb5b   : > { %v6186_v18 = vsel %vm18581_vm15, %v18490_v51, %v6182_v24  ;;  %v6196_v59 = vmul.f32 %v18533_v1, %v6195_v16  ;;  %6488 = vmatpush.bf16.msrb.mxu3 %v11166_v40  ;;  %6447 = vmatpush.bf16.msrb.mxu0 %v11138_v46  ;;  %v6204_v50 = vand.u32 2147483648, %v18425_v17  ;;  %vm18670_vm5 = vmor %vm6198_vm4, %vm6199_vm3  ;;  %v11130_v5 = vor.u32 %v12505_v9, %v11129_v29  ;;  %v11115_v42 = vld [vmem:[%s20642_s4 + $0x18] sm:$0xf0]  ;;  %v11355_v9 = vld [vmem:[%s20642_s4 + $0xe0] sm:$0xf] }
 0xb5c   : > { %v6191_v51 = vsel %vm18517_vm11, %v18494_v10, %v6186_v18  ;;  %v6156_v48 = vsel %vm18628_vm2, %v18421_v11, %v6152_v38  ;;  %6461 = vmatpush.bf16.msrb.mxu1 %v11142_v45  ;;  %6475 = vmatpush.bf16.msrb.mxu2 %v11146_v47  ;;  %vm6158_vm6 = vcmp.eq.f32.partialorder %v6157_v20, 8.507059e+37  ;;  %v6202_v34 = vand.u32 2147483647, %v18425_v17  ;;  %v12501_v17 = vld [vmem:[%s20642_s4 + $0x14] sm:$0xf0] }
 0xb5d   : > { %v6211_v15 = vmul.f32 %v6191_v51, %v18256_v6  ;;  %v11123_v6 = vld [vmem:[%s20642_s4 + $0x30] sm:$0xf0]  ;;  %v6197_v27 = vadd.f32 %v18533_v1, %v6196_v59  ;;  %v13236_v8 = vpop.eup %13235  ;;  %v11134_v11 = vor.u32 %v12503_v57, %v11131_v22  ;;  %v11106_v21 = vor.u32 %v12500_v58, %v11105_v26  ;;  %v6240_v59 = vld [vmem:[%s18702_s27 + $0x20] sm:$0xff]  ;;  %v6241_v51 = vld [vmem:[%s18702_s27 + $0x28] sm:$0xff] }
 0xb5e   : > { %v11126_v13 = vor.u32 %v12502_v56, %v11123_v6  ;;  %v6161_v44 = vsel %vm6158_vm6, %v6160_v0, %v6156_v48  ;;  %v6205_v35 = vor.u32 1.1754944e-38, %v6204_v50  ;;  %v11110_v28 = vor.u32 %v12498_v36, %v11107_v30  ;;  %v12563_v57 = vld [vmem:[%s20642_s4 + $0xec] sm:$0xf0]  ;;  %v6239_v58 = vld [vmem:[%s18702_s27 + $0x18] sm:$0xff]  ;;  %v11363_v48 = vld [vmem:[%s20642_s4 + $0xe8] sm:$0xf] }
 0xb5f   : > { %v18640_v31 = vadd.f32 %v6213_v4, %v6211_v15  ;;  %6489 = vmatpush.bf16.msrb.mxu3 %v11150_v54  ;;  %6448 = vmatpush.bf16.msrb.mxu0 %v11122_v41  ;;  %v6201_v7 = vsel %vm18670_vm5, %v18533_v1, %v6197_v27  ;;  %v6218_v2 = vmul.f32 %v13236_v8, %v6161_v44  ;;  %vm6203_vm7 = vcmp.eq.f32.partialorder %v6202_v34, 8.507059e+37  ;;  %v6242_v22 = vld [vmem:[%s18702_s27 + $0x30] sm:$0xff]  ;;  %v12561_v27 = vld [vmem:[%s20642_s4 + $0xe4] sm:$0xf]  ;;  %v11365_v36 = vld [vmem:[%s20642_s4 + $0xf8] sm:$0xf0] }
 0xb60   : > { %6462 = vmatpush.bf16.msrb.mxu1 %v11126_v13  ;;  %6476 = vmatpush.bf16.msrb.mxu2 %v11130_v5  ;;  %v11114_v63 = vor.u32 %v12501_v17, %v11113_v49  ;;  %v11118_v52 = vor.u32 %v12499_v60, %v11115_v42  ;;  %v6206_v43 = vsel %vm6203_vm7, %v6205_v35, %v6201_v7  ;;  %v11357_v8 = vld [vmem:[%s20642_s4 + $0xf0] sm:$0xf0]  ;;  %v12562_v5 = vld [vmem:[%s20642_s4 + $0xec] sm:$0xf]  ;;  %v12559_v30 = vld [vmem:[%s20642_s4 + $0xcc] sm:$0xf0] }
 0xb61   : > { %13237 = vtanh.f32 %v18640_v31  ;;  %v6222_v32 = vpack.c.bf16 %v6218_v2, %v6218_v2  ;;  %v11356_v26 = vor.u32 %v12563_v57, %v11355_v9  ;;  %v11364_v44 = vor.u32 %v12564_v37, %v11363_v48  ;;  %v12557_v7 = vld [vmem:[%s20642_s4 + $0xc4] sm:$0xf] }
 0xb62   : > { %v11368_v60 = vor.u32 %v12562_v5, %v11365_v36  ;;  %v11323_v5 = vld [vmem:[%s20642_s4 + $0xa0] sm:$0xf]  ;;  %v12555_v36 = vld [vmem:[%s20642_s4 + $0xac] sm:$0xf0] }
 0xb63   : > { %6490 = vmatpush.bf16.msrb.mxu3 %v11134_v11  ;;  %6449 = vmatpush.bf16.msrb.mxu0 %v11106_v21  ;;  %v6278_v4 = vunpack.c.l.b16 %v6222_v32  ;;  %v11360_v11 = vor.u32 %v12561_v27, %v11357_v8  ;;  %v11339_v21 = vld [vmem:[%s20642_s4 + $0xc0] sm:$0xf]  ;;  %v11251_v27 = vld [vmem:[%s20642_s4 + $0x8] sm:$0xf] }
 0xb64   : > { %6463 = vmatpush.bf16.msrb.mxu1 %v11110_v28  ;;  %6477 = vmatpush.bf16.msrb.mxu2 %v11114_v63  ;;  %v11340_v42 = vor.u32 %v12559_v30, %v11339_v21  ;;  %v11331_v21 = vld [vmem:[%s20642_s4 + $0xa8] sm:$0xf]  ;;  %v12556_v30 = vld [vmem:[%s20642_s4 + $0xb4] sm:$0xf0] }
 0xb67   : > { %v13238_v61 = vpop.eup %13237  ;;  %6491 = vmatpush.bf16.msrb.mxu3 %v11118_v52  ;;  %6854 = vmatpush.bf16.msra.mxu0 %v11356_v26  ;;  %v12560_v52 = vld [vmem:[%s20642_s4 + $0xd4] sm:$0xf0] }
 0xb68   : > { %v6219_v16 = vmul.f32 %v13238_v61, %v6206_v43  ;;  %6868 = vmatpush.bf16.msra.mxu1 %v11360_v11  ;;  %v11347_v61 = vld [vmem:[%s20642_s4 + $0xc8] sm:$0xf]  ;;  %6882 = vmatpush.bf16.msra.mxu2 %v11364_v44  ;;  %v11325_v11 = vld [vmem:[%s20642_s4 + $0xb0] sm:$0xf0] }
 0xb6a   : > { %v6223_v24 = vpack.c.bf16 %v6219_v16, %v6219_v16  ;;  %v12781_v1 = vpack.c.bf16 %v6219_v16, %v6218_v2  ;;  %v11341_v2 = vld [vmem:[%s20642_s4 + $0xd0] sm:$0xf0] }
 0xb6b   : > { %v11344_v63 = vor.u32 %v12557_v7, %v11341_v2  ;;  %6896 = vmatpush.bf16.msra.mxu3 %v11368_v60  ;;  %6855 = vmatpush.bf16.msra.mxu0 %v11340_v42  ;;  %v12554_v42 = vld [vmem:[%s20642_s4 + $0xac] sm:$0xf]  ;;  %v11333_v7 = vld [vmem:[%s20642_s4 + $0xb8] sm:$0xf0] }
 0xb6c   : > { %12782 = vst [vmem:[%s6227_s12] sm:$0xff] %v12781_v1   ;;  %v6279_v14 = vunpack.c.l.b16 %v6223_v24  ;;  %v6243_v24 = vld [vmem:[%s18702_s27 + $0x38] sm:$0xff]  ;;  %s12531_s12 = sadd.s32 176, %s14923_s13 }
 0xb6d   : > { %6869 = vmatpush.bf16.msra.mxu1 %v11344_v63  ;;  %s19008_s11 = sshra.s32 %s12531_s12, 3 }
 0xb6e   : > { %v6280_v25 = vpack.c.b16 %v6279_v14, %v6278_v4  ;;  %v11348_v4 = vor.u32 %v12560_v52, %v11347_v61  ;;  %v18858_v52 = vld [vmem:[%s20642_s4 + $0x80] sm:$0xf]  ;;  %s11238_s28 = sshll.u32 %s19008_s11, 2 }
 0xb6f   : > { %s6639_s15 = scalar_lea.vmem [#allocation3], %s11238_s28  ;;  %s12567_s28 = sshll.u32 %s7055_s20, 5 }
 0xb70   : > { %6450 = vmatmul.bf16.vlgmr.msrb.gmra.mxu0 %v6280_v25  ;;  %6464 = vmatmul.bf16.vlgmr.msrb.gmra.mxu1 %v6280_v25  ;;  %s19433_s22 = scalar_lea.vmem [#allocation2], %s12567_s28  ;;  %s7466_s28 = sadd.s32 224, %s14606_s16 }
 0xb71   : > { %6478 = vmatmul.bf16.vlgmr.msrb.gmra.mxu2 %v6280_v25  ;;  %6492 = vmatmul.bf16.vlgmr.msrb.gmra.mxu3 %v6280_v25 }
 0xb72   : > { %6883 = vmatpush.bf16.msra.mxu2 %v11348_v4  ;;  %v12549_v4 = vld [vmem:[%s20642_s4 + $0x84] sm:$0xf] }
 0xbed   : > { %v6451_v33 = vpop.f32.mrf.mxu0  ;;  %v6465_v18 = vpop.f32.mrf.mxu1 }
 0xbee   : > { %v6498_v40 = vadd.f32 %v6451_v33, %v6236_v12  ;;  %v6499_v46 = vadd.f32 %v6465_v18, %v6237_v23 }
 0xbf0   : > { %v11231_v55 = vmul.f32 -1.442695, %v6498_v40  ;;  %v11232_v62 = vmul.f32 -1.442695, %v6499_v46 }
 0xbf2   : > { %13239 = vpow2.f32 %v11231_v55 }
 0xbf3   : > { %13241 = vpow2.f32 %v11232_v62 }
 0xbf4   : > { %v6479_v53 = vpop.f32.mrf.mxu2  ;;  %v6493_v54 = vpop.f32.mrf.mxu3 }
 0xbf5   : > { %v6500_v3 = vadd.f32 %v6479_v53, %v6238_v39  ;;  %v6453_v0 = vpop.f32.mrf.mxu0  ;;  %v6467_v15 = vpop.f32.mrf.mxu1  ;;  %v6501_v34 = vadd.f32 %v6493_v54, %v6239_v58  ;;  %v11349_v53 = vld [vmem:[%s20642_s4 + $0xd8] sm:$0xf0] }
 0xbf6   : > { %v6502_v10 = vadd.f32 %v6453_v0, %v6240_v59  ;;  %v6503_v45 = vadd.f32 %v6467_v15, %v6241_v51  ;;  %v12558_v51 = vld [vmem:[%s20642_s4 + $0xcc] sm:$0xf]  ;;  %v12552_v59 = vld [vmem:[%s20642_s4 + $0x94] sm:$0xf0] }
 0xbf7   : > { %v11233_v47 = vmul.f32 -1.442695, %v6500_v3 }
 0xbf8   : > { %v13240_v56 = vpop.eup %13239  ;;  %v11234_v6 = vmul.f32 -1.442695, %v6502_v10  ;;  %v11235_v20 = vmul.f32 -1.442695, %v6503_v45 }
 0xbf9   : > { %v13242_v41 = vpop.eup %13241  ;;  %v18709_v29 = vadd.f32 1.0, %v13240_v56  ;;  %13243 = vpow2.f32 %v11233_v47 }
 0xbfa   : > { %v18717_v38 = vadd.f32 1.0, %v13242_v41  ;;  %13245 = vpow2.f32 %v11234_v6 }
 0xbfb   : > { %13247 = vrcp.f32 %v18709_v29  ;;  %v6539_v16 = vand.u32 2147483647, %v18709_v29  ;;  %v6541_v12 = vand.u32 2147483648, %v18709_v29  ;;  %vm6535_vm9 = vweird.f32 %v18709_v29 }
 0xbfc   : > { %13249 = vrcp.f32 %v18717_v38  ;;  %v6481_v50 = vpop.f32.mrf.mxu2  ;;  %v6495_v1 = vpop.f32.mrf.mxu3  ;;  %v6556_v18 = vand.u32 2147483648, %v18717_v38  ;;  %v6554_v40 = vand.u32 2147483647, %v18717_v38  ;;  %vm6550_vm8 = vweird.f32 %v18717_v38 }
 0xbfd   : > { %13251 = vpow2.f32 %v11235_v20  ;;  %v6504_v13 = vadd.f32 %v6481_v50, %v6242_v22  ;;  %v6505_v62 = vadd.f32 %v6495_v1, %v6243_v24  ;;  %vm18776_vm10 = vcmp.eq.f32.partialorder %v6539_v16, 8.507059e+37 }
 0xbfe   : > { %v6542_v0 = vor.u32 1.1754944e-38, %v6541_v12  ;;  %v6557_v45 = vor.u32 1.1754944e-38, %v6556_v18  ;;  %vm18787_vm13 = vcmp.eq.f32.partialorder %v6554_v40, 8.507059e+37  ;;  %v11352_v20 = vor.u32 %v12558_v51, %v11349_v53  ;;  %v12550_v51 = vld [vmem:[%s20642_s4 + $0x8c] sm:$0xf] }
 0xbff   : > { %v13244_v49 = vpop.eup %13243  ;;  %v11236_v17 = vmul.f32 -1.442695, %v6504_v13  ;;  %v11324_v40 = vor.u32 %v12555_v36, %v11323_v5  ;;  %v11317_v53 = vld [vmem:[%s20642_s4 + $0x98] sm:$0xf0]  ;;  %v12546_v5 = vld [vmem:[%s20642_s4 + $0x6c] sm:$0xf] }
 0xc00   : > { %v13246_v35 = vpop.eup %13245  ;;  %v18753_v28 = vadd.f32 1.0, %v13244_v49  ;;  %6897 = vmatpush.bf16.msra.mxu3 %v11352_v20  ;;  %v12547_v20 = vld [vmem:[%s20642_s4 + $0x6c] sm:$0xf0] }
 0xc01   : > { %v13248_v43 = vpop.eup %13247  ;;  %v18762_v32 = vadd.f32 1.0, %v13246_v35  ;;  %13253 = vpow2.f32 %v11236_v17  ;;  %6856 = vmatpush.bf16.msra.mxu0 %v11324_v40  ;;  %v12537_v40 = vld [vmem:[%s20642_s4 + $0x24] sm:$0xf] }
 0xc02   : > { %v13250_v14 = vpop.eup %13249  ;;  %v6531_v25 = vmul.f32 %v13248_v43, %v18709_v29  ;;  %13255 = vrcp.f32 %v18753_v28  ;;  %vm6536_vm11 = vweird.f32 %v13248_v43  ;;  %v6569_v57 = vand.u32 2147483647, %v18753_v28 }
 0xc03   : > { %v13252_v23 = vpop.eup %13251  ;;  %v6546_v33 = vmul.f32 %v13250_v14, %v18717_v38  ;;  %13257 = vtanh.f32 %v6501_v34  ;;  %vm6551_vm12 = vweird.f32 %v13250_v14  ;;  %v6571_v22 = vand.u32 2147483648, %v18753_v28  ;;  %vm6537_vm14 = vmor %vm6535_vm9, %vm6536_vm11  ;;  %v12553_v34 = vld [vmem:[%s20642_s4 + $0xa4] sm:$0xf] }
 0xc04   : > { %v6532_v46 = vsub.f32 1.0, %v6531_v25  ;;  %13259 = vrcp.f32 %v18762_v32  ;;  %v18772_v55 = vadd.f32 1.0, %v13252_v23  ;;  %vm18807_vm15 = vmor %vm6550_vm8, %vm6551_vm12  ;;  %v6584_v48 = vand.u32 2147483647, %v18762_v32  ;;  %v11309_v23 = vld [vmem:[%s20642_s4 + $0x90] sm:$0xf0] }
 0xc05   : > { %v6547_v39 = vsub.f32 1.0, %v6546_v33  ;;  %vm6580_vm0 = vweird.f32 %v18762_v32  ;;  %v6586_v60 = vand.u32 2147483648, %v18762_v32  ;;  %vm6565_vm1 = vweird.f32 %v18753_v28  ;;  %v11315_v33 = vld [vmem:[%s20642_s4 + $0x88] sm:$0xf] }
 0xc06   : > { %v6533_v3 = vmul.f32 %v13248_v43, %v6532_v46  ;;  %13261 = vrcp.f32 %v18772_v55  ;;  %v6601_v50 = vand.u32 2147483648, %v18772_v55  ;;  %v6599_v61 = vand.u32 2147483647, %v18772_v55 }
 0xc07   : > { %v13254_v15 = vpop.eup %13253  ;;  %v6548_v10 = vmul.f32 %v13250_v14, %v6547_v39  ;;  %13263 = vtanh.f32 %v6505_v62  ;;  %vm6595_vm2 = vweird.f32 %v18772_v55  ;;  %vm18862_vm3 = vcmp.eq.f32.partialorder %v6584_v48, 8.507059e+37 }
 0xc08   : > { %v18791_v54 = vpop.eup %13255  ;;  %v6534_v56 = vadd.f32 %v13248_v43, %v6533_v3  ;;  %v18793_v6 = vadd.f32 1.0, %v13254_v15  ;;  %v6602_v24 = vor.u32 1.1754944e-38, %v6601_v50  ;;  %v11328_v46 = vor.u32 %v12553_v34, %v11325_v11 }
 0xc09   : > { %v13258_v41 = vpop.eup %13257  ;;  %v6561_v9 = vmul.f32 %v18791_v54, %v18753_v28  ;;  %v6549_v26 = vadd.f32 %v13250_v14, %v6548_v10  ;;  %v11332_v62 = vor.u32 %v12556_v30, %v11331_v21  ;;  %v11336_v39 = vor.u32 %v12554_v42, %v11333_v7  ;;  %v11291_v10 = vld [vmem:[%s20642_s4 + $0x60] sm:$0xf]  ;;  %v12541_v7 = vld [vmem:[%s20642_s4 + $0x44] sm:$0xf] }
 0xc0a   : > { %v18802_v58 = vpop.eup %13259  ;;  %v6538_v8 = vsel %vm6537_vm14, %v13248_v43, %v6534_v56  ;;  %13265 = vrcp.f32 %v18793_v6  ;;  %v6587_v15 = vor.u32 1.1754944e-38, %v6586_v60  ;;  %vm6566_vm6 = vweird.f32 %v18791_v54  ;;  %6870 = vmatpush.bf16.msra.mxu1 %v11328_v46  ;;  %v12543_v60 = vld [vmem:[%s20642_s4 + $0x4c] sm:$0xf0]  ;;  %v11261_v46 = vld [vmem:[%s20642_s4 + $0x30] sm:$0xf0] }
 0xc0b   : > { %v6562_v29 = vsub.f32 1.0, %v6561_v9  ;;  %v6543_v37 = vsel %vm18776_vm10, %v6542_v0, %v6538_v8  ;;  %v6553_v13 = vsel %vm18807_vm15, %v13250_v14, %v6549_v26  ;;  %v6576_v38 = vmul.f32 %v18802_v58, %v18762_v32  ;;  %v11293_v9 = vld [vmem:[%s20642_s4 + $0x70] sm:$0xf0]  ;;  %6884 = vmatpush.bf16.msra.mxu2 %v11332_v62  ;;  %6898 = vmatpush.bf16.msra.mxu3 %v11336_v39  ;;  %vm18958_vm11 = vmor %vm6565_vm1, %vm6566_vm6  ;;  %v11267_v62 = vld [vmem:[%s20642_s4 + $0x28] sm:$0xf] }
 0xc0c   : > { %v18838_v49 = vpop.eup %13261  ;;  %v6558_v17 = vsel %vm18787_vm13, %v6557_v45, %v6553_v13  ;;  %v6624_v44 = vmul.f32 %v13258_v41, %v6543_v37  ;;  %vm6581_vm4 = vweird.f32 %v18802_v58  ;;  %v11312_v56 = vor.u32 %v12549_v4, %v11309_v23  ;;  %v12545_v41 = vld [vmem:[%s20642_s4 + $0x64] sm:$0xf]  ;;  %v12548_v37 = vld [vmem:[%s20642_s4 + $0x74] sm:$0xf0] }
 0xc0d   : > { %v6622_v2 = vmul.f32 %v6558_v17, %v18551_v19  ;;  %v6577_v35 = vsub.f32 1.0, %v6576_v38  ;;  %v6591_v63 = vmul.f32 %v18838_v49, %v18772_v55  ;;  %v13264_v43 = vpop.eup %13263  ;;  %v6563_v16 = vmul.f32 %v18791_v54, %v6562_v29  ;;  %v12551_v19 = vld [vmem:[%s20642_s4 + $0x8c] sm:$0xf0]  ;;  %vm18916_vm7 = vmor %vm6580_vm0, %vm6581_vm4  ;;  %v11299_v29 = vld [vmem:[%s20642_s4 + $0x68] sm:$0xf] }
 0xc0e   : > { %vm6596_vm5 = vweird.f32 %v18838_v49  ;;  %v11308_v47 = vor.u32 %v12551_v19, %v18858_v52  ;;  %v11316_v50 = vor.u32 %v12552_v59, %v11315_v33  ;;  %v11320_v48 = vor.u32 %v12550_v51, %v11317_v53  ;;  %6871 = vmatpush.bf16.msra.mxu1 %v11312_v56  ;;  %v12540_v39 = vld [vmem:[%s20642_s4 + $0x34] sm:$0xf0]  ;;  %v12538_v59 = vld [vmem:[%s20642_s4 + $0x2c] sm:$0xf]  ;;  %v11269_v51 = vld [vmem:[%s20642_s4 + $0x38] sm:$0xf0] }
 0xc0f   : > { %v18872_v14 = vadd.f32 %v6624_v44, %v6622_v2  ;;  %v6592_v25 = vsub.f32 1.0, %v6591_v63  ;;  %v6578_v12 = vmul.f32 %v18802_v58, %v6577_v35  ;;  %v18928_v32 = vadd.f32 %v18791_v54, %v6563_v16  ;;  %vm6597_vm9 = vmor %vm6595_vm2, %vm6596_vm5  ;;  %v11277_v2 = vld [vmem:[%s20642_s4 + $0x50] sm:$0xf0]  ;;  %v11283_v35 = vld [vmem:[%s20642_s4 + $0x48] sm:$0xf] }
 0xc10   : > { %v18882_v18 = vpop.eup %13265  ;;  %vm18932_vm8 = vcmp.eq.f32.partialorder %v6569_v57, 8.507059e+37  ;;  %vm6600_vm10 = vcmp.eq.f32.partialorder %v6599_v61, 8.507059e+37  ;;  %v11301_v57 = vld [vmem:[%s20642_s4 + $0x78] sm:$0xf0]  ;;  %v11292_v55 = vor.u32 %v12547_v20, %v11291_v10  ;;  %v11296_v11 = vor.u32 %v12545_v41, %v11293_v9  ;;  %6857 = vmatpush.bf16.msra.mxu0 %v11308_v47  ;;  %6885 = vmatpush.bf16.msra.mxu2 %v11316_v50  ;;  %v12542_v63 = vld [vmem:[%s20642_s4 + $0x4c] sm:$0xf] }
 0xc11   : > { %v6593_v3 = vmul.f32 %v18838_v49, %v6592_v25  ;;  %v6606_v0 = vmul.f32 %v18882_v18, %v18793_v6  ;;  %v6579_v45 = vadd.f32 %v18802_v58, %v6578_v12  ;;  %13267 = vtanh.f32 %v18872_v14  ;;  %6899 = vmatpush.bf16.msra.mxu3 %v11320_v48  ;;  %v11285_v61 = vld [vmem:[%s20642_s4 + $0x58] sm:$0xf0]  ;;  %v11259_v12 = vld [vmem:[%s20642_s4 + $0x20] sm:$0xf]  ;;  %v12535_v56 = vld [vmem:[%s20642_s4 + $0xc] sm:$0xf0] }
 0xc12   : > { %v6572_v21 = vor.u32 1.1754944e-38, %v6571_v22  ;;  %v11300_v28 = vor.u32 %v12548_v37, %v11299_v29  ;;  %v11304_v22 = vor.u32 %v12546_v5, %v11301_v57  ;;  %v6568_v52 = vsel %vm18958_vm11, %v18791_v54, %v18928_v32  ;;  %6872 = vmatpush.bf16.msra.mxu1 %v11296_v11  ;;  %v12539_v54 = vld [vmem:[%s20642_s4 + $0x2c] sm:$0xf0]  ;;  %v11243_v47 = vld [vmem:[%s20642_s4] sm:$0xf] }
 0xc13   : > { %v6607_v26 = vsub.f32 1.0, %v6606_v0  ;;  %v6594_v8 = vadd.f32 %v18838_v49, %v6593_v3  ;;  %v6583_v38 = vsel %vm18916_vm7, %v18802_v58, %v6579_v45  ;;  %v6616_v16 = vand.u32 2147483648, %v18793_v6  ;;  %v12534_v50 = vld [vmem:[%s20642_s4 + $0xc] sm:$0xf]  ;;  %v11253_v48 = vld [vmem:[%s20642_s4 + $0x18] sm:$0xf0] }
 0xc14   : > { %v6588_v36 = vsel %vm18862_vm3, %v6587_v15, %v6583_v38  ;;  %vm6611_vm12 = vweird.f32 %v18882_v18  ;;  %6858 = vmatpush.bf16.msra.mxu0 %v11292_v55  ;;  %v11280_v25 = vor.u32 %v12541_v7, %v11277_v2  ;;  %6886 = vmatpush.bf16.msra.mxu2 %v11300_v28  ;;  %v11288_v33 = vor.u32 %v12542_v63, %v11285_v61  ;;  %v6650_v7 = vld [vmem:[%s19073_s14 + $0x10] sm:$0xff]  ;;  %v6652_v2 = vld [vmem:[%s19073_s14 + $0x20] sm:$0xff] }
 0xc15   : > { %v6598_v34 = vsel %vm6597_vm9, %v18838_v49, %v6594_v8  ;;  %v6608_v30 = vmul.f32 %v18882_v18, %v6607_v26  ;;  %v6625_v44 = vmul.f32 %v13264_v43, %v6588_v36  ;;  %v11275_v49 = vld [vmem:[%s20642_s4 + $0x40] sm:$0xf]  ;;  %v6614_v43 = vand.u32 2147483647, %v18793_v6  ;;  %6900 = vmatpush.bf16.msra.mxu3 %v11304_v22  ;;  %v11245_v26 = vld [vmem:[%s20642_s4 + $0x10] sm:$0xf0] }
 0xc16   : > { %v6603_v17 = vsel %vm6600_vm10, %v6602_v24, %v6598_v34  ;;  %v11276_v4 = vor.u32 %v12543_v60, %v11275_v49  ;;  %vm6610_vm13 = vweird.f32 %v18793_v6  ;;  %v11260_v3 = vor.u32 %v12539_v54, %v11259_v12  ;;  %6873 = vmatpush.bf16.msra.mxu1 %v11280_v25  ;;  %v12536_v8 = vld [vmem:[%s20642_s4 + $0x14] sm:$0xf0] }
 0xc17   : > { %v6623_v42 = vmul.f32 %v6603_v17, %v18640_v31  ;;  %v12544_v31 = vld [vmem:[%s20642_s4 + $0x54] sm:$0xf0]  ;;  %v13268_v1 = vpop.eup %13267  ;;  %v6609_v19 = vadd.f32 %v18882_v18, %v6608_v30  ;;  %vm19032_vm14 = vmor %vm6610_vm13, %vm6611_vm12  ;;  %vm19036_vm15 = vcmp.eq.f32.partialorder %v6614_v43, 8.507059e+37  ;;  %v6573_v0 = vsel %vm18932_vm8, %v6572_v21, %v6568_v52  ;;  %v6648_v30 = vld [vmem:[%s19073_s14] sm:$0xff] }
 0xc18   : > { %v11284_v23 = vor.u32 %v12544_v31, %v11283_v35  ;;  %v6617_v10 = vor.u32 1.1754944e-38, %v6616_v16  ;;  %6859 = vmatpush.bf16.msra.mxu0 %v11276_v4  ;;  %v11264_v45 = vor.u32 %v12537_v40, %v11261_v46  ;;  %v6630_v20 = vmul.f32 %v13268_v1, %v6573_v0  ;;  %v6649_v17 = vld [vmem:[%s19073_s14 + $0x8] sm:$0xff]  ;;  %v11493_v1 = vld [vmem:[%s20642_s4 + $0xe0] sm:$0xf]  ;;  %v12596_v4 = vld [vmem:[%s20642_s4 + $0xe4] sm:$0xf] }
 0xc19   : > { %v18996_v24 = vadd.f32 %v6625_v44, %v6623_v42  ;;  %v6613_v15 = vsel %vm19032_vm14, %v18882_v18, %v6609_v19  ;;  %6901 = vmatpush.bf16.msra.mxu3 %v11288_v33  ;;  %v11268_v41 = vor.u32 %v12540_v39, %v11267_v62  ;;  %v11272_v9 = vor.u32 %v12538_v59, %v11269_v51  ;;  %v12533_v18 = vld [vmem:[%s20642_s4 + $0x4] sm:$0xf]  ;;  %v6653_v35 = vld [vmem:[%s19073_s14 + $0x28] sm:$0xff]  ;;  %v12598_v19 = vld [vmem:[%s20642_s4 + $0xec] sm:$0xf0] }
 0xc1a   : > { %6887 = vmatpush.bf16.msra.mxu2 %v11284_v23  ;;  %v11244_v37 = vor.u32 %v12535_v56, %v11243_v47  ;;  %v6618_v32 = vsel %vm19036_vm15, %v6617_v10, %v6613_v15  ;;  %6874 = vmatpush.bf16.msra.mxu1 %v11264_v45  ;;  %v11248_v13 = vor.u32 %v12533_v18, %v11245_v26  ;;  %v11495_v23 = vld [vmem:[%s20642_s4 + $0xf0] sm:$0xf0]  ;;  %v11501_v33 = vld [vmem:[%s20642_s4 + $0xe8] sm:$0xf]  ;;  %v12599_v59 = vld [vmem:[%s20642_s4 + $0xf4] sm:$0xf0] }
 0xc1b   : > { %13269 = vtanh.f32 %v18996_v24  ;;  %v6634_v5 = vpack.c.bf16 %v6630_v20, %v6630_v20  ;;  %v11252_v57 = vor.u32 %v12536_v8, %v11251_v27  ;;  %v11256_v36 = vor.u32 %v12534_v50, %v11253_v48  ;;  %v11503_v0 = vld [vmem:[%s20642_s4 + $0xf8] sm:$0xf0]  ;;  %v6654_v10 = vld [vmem:[%s19073_s14 + $0x30] sm:$0xff]  ;;  %v11477_v56 = vld [vmem:[%s20642_s4 + $0xc0] sm:$0xf] }
 0xc1c   : > { %6860 = vmatpush.bf16.msra.mxu0 %v11260_v3  ;;  %v11494_v54 = vor.u32 %v12598_v19, %v11493_v1  ;;  %v11498_v39 = vor.u32 %v12596_v4, %v11495_v23  ;;  %v11502_v6 = vor.u32 %v12599_v59, %v11501_v33  ;;  %v12597_v3 = vld [vmem:[%s20642_s4 + $0xec] sm:$0xf]  ;;  %v6651_v47 = vld [vmem:[%s19073_s14 + $0x18] sm:$0xff]  ;;  %v11479_v18 = vld [vmem:[%s20642_s4 + $0xd0] sm:$0xf0] }
 0xc1d   : > { %6902 = vmatpush.bf16.msra.mxu3 %v11272_v9  ;;  %v6690_v11 = vunpack.c.l.b16 %v6634_v5  ;;  %v11506_v45 = vor.u32 %v12597_v3, %v11503_v0  ;;  %v12592_v9 = vld [vmem:[%s20642_s4 + $0xc4] sm:$0xf]  ;;  %v11485_v27 = vld [vmem:[%s20642_s4 + $0xc8] sm:$0xf]  ;;  %v12595_v8 = vld [vmem:[%s20642_s4 + $0xd4] sm:$0xf0] }
 0xc1e   : > { %6888 = vmatpush.bf16.msra.mxu2 %v11268_v41  ;;  %6875 = vmatpush.bf16.msra.mxu1 %v11248_v13  ;;  %v11486_v5 = vor.u32 %v12595_v8, %v11485_v27  ;;  %v11469_v4 = vld [vmem:[%s20642_s4 + $0xa8] sm:$0xf]  ;;  %v12589_v27 = vld [vmem:[%s20642_s4 + $0xac] sm:$0xf]  ;;  %v11471_v8 = vld [vmem:[%s20642_s4 + $0xb8] sm:$0xf0] }
 0xc1f   : > { %v11431_v19 = vld [vmem:[%s20642_s4 + $0x70] sm:$0xf0] }
 0xc20   : > { %6861 = vmatpush.bf16.msra.mxu0 %v11244_v37  ;;  %v11487_v37 = vld [vmem:[%s20642_s4 + $0xd8] sm:$0xf0] }
 0xc21   : > { %v13270_v29 = vpop.eup %13269  ;;  %6903 = vmatpush.bf16.msra.mxu3 %v11256_v36  ;;  %v11461_v36 = vld [vmem:[%s20642_s4 + $0xa0] sm:$0xf] }
 0xc22   : > { %v6631_v38 = vmul.f32 %v13270_v29, %v6618_v32  ;;  %6889 = vmatpush.bf16.msra.mxu2 %v11252_v57  ;;  %7280 = vmatpush.bf16.msrb.mxu1 %v11498_v39  ;;  %v12593_v29 = vld [vmem:[%s20642_s4 + $0xcc] sm:$0xf] }
 0xc23   : > { %v11490_v57 = vor.u32 %v12593_v29, %v11487_v37  ;;  %v12584_v29 = vld [vmem:[%s20642_s4 + $0x84] sm:$0xf]  ;;  %v11447_v37 = vld [vmem:[%s20642_s4 + $0x90] sm:$0xf0] }
 0xc24   : > { %v6635_v34 = vpack.c.bf16 %v6631_v38, %v6631_v38  ;;  %v12786_v55 = vpack.c.bf16 %v6631_v38, %v6630_v20  ;;  %7266 = vmatpush.bf16.msrb.mxu0 %v11494_v54  ;;  %v12594_v20 = vld [vmem:[%s20642_s4 + $0xcc] sm:$0xf0]  ;;  %v11482_v38 = vor.u32 %v12592_v9, %v11479_v18 }
 0xc25   : > { %7308 = vmatpush.bf16.msrb.mxu3 %v11506_v45  ;;  %v11478_v48 = vor.u32 %v12594_v20, %v11477_v56 }
 0xc26   : > { %12787 = vst [vmem:[%s6639_s15] sm:$0xff] %v12786_v55   ;;  %v6691_v58 = vunpack.c.l.b16 %v6635_v34  ;;  %7294 = vmatpush.bf16.msrb.mxu2 %v11502_v6  ;;  %v12590_v34 = vld [vmem:[%s20642_s4 + $0xac] sm:$0xf0]  ;;  %7281 = vmatpush.bf16.msrb.mxu1 %v11482_v38 }
 0xc28   : > { %v6692_v21 = vpack.c.b16 %v6691_v58, %v6690_v11  ;;  %7267 = vmatpush.bf16.msrb.mxu0 %v11478_v48  ;;  %v11462_v58 = vor.u32 %v12590_v34, %v11461_v36  ;;  %v12586_v48 = vld [vmem:[%s20642_s4 + $0x8c] sm:$0xf0]  ;;  %v12587_v36 = vld [vmem:[%s20642_s4 + $0x94] sm:$0xf0] }
 0xc29   : > { %7309 = vmatpush.bf16.msrb.mxu3 %v11490_v57  ;;  %v11453_v57 = vld [vmem:[%s20642_s4 + $0x88] sm:$0xf] }
 0xc2a   : > { %6862 = vmatmul.bf16.vlgmr.msra.gmra.mxu0 %v6692_v21  ;;  %6876 = vmatmul.bf16.vlgmr.msra.gmra.mxu1 %v6692_v21 }
 0xc2b   : > { %6890 = vmatmul.bf16.vlgmr.msra.gmra.mxu2 %v6692_v21  ;;  %6904 = vmatmul.bf16.vlgmr.msra.gmra.mxu3 %v6692_v21  ;;  %v12588_v21 = vld [vmem:[%s20642_s4 + $0xa4] sm:$0xf] }
 0xc2c   : > { %7295 = vmatpush.bf16.msrb.mxu2 %v11486_v5  ;;  %7268 = vmatpush.bf16.msrb.mxu0 %v11462_v58 }
 0xca7   : > { %v6863_v44 = vpop.f32.mrf.mxu0  ;;  %v6877_v49 = vpop.f32.mrf.mxu1 }
 0xca8   : > { %v6910_v60 = vadd.f32 %v6863_v44, %v6648_v30  ;;  %v6911_v42 = vadd.f32 %v6877_v49, %v6649_v17  ;;  %v11463_v30 = vld [vmem:[%s20642_s4 + $0xb0] sm:$0xf0] }
 0xcaa   : > { %v11369_v28 = vmul.f32 -1.442695, %v6910_v60  ;;  %v11370_v22 = vmul.f32 -1.442695, %v6911_v42  ;;  %v6655_v60 = vld [vmem:[%s19073_s14 + $0x38] sm:$0xff]  ;;  %s12566_s14 = sadd.s32 192, %s14923_s13 }
 0xcab   : > { %s19412_s11 = sshra.s32 %s12566_s14, 3 }
 0xcac   : > { %13271 = vpow2.f32 %v11369_v28  ;;  %v11466_v28 = vor.u32 %v12588_v21, %v11463_v30  ;;  %v12585_v30 = vld [vmem:[%s20642_s4 + $0x8c] sm:$0xf]  ;;  %s11376_s15 = sshll.u32 %s19412_s11, 2 }
 0xcad   : > { %13273 = vpow2.f32 %v11370_v22  ;;  %s7051_s18 = scalar_lea.vmem [#allocation3], %s11376_s15 }
 0xcae   : > { %v6891_v31 = vpop.f32.mrf.mxu2  ;;  %v6905_v12 = vpop.f32.mrf.mxu3  ;;  %7282 = vmatpush.bf16.msrb.mxu1 %v11466_v28  ;;  %v11429_v28 = vld [vmem:[%s20642_s4 + $0x60] sm:$0xf] }
 0xcaf   : > { %v6912_v63 = vadd.f32 %v6891_v31, %v6650_v7  ;;  %v6865_v61 = vpop.f32.mrf.mxu0  ;;  %v6879_v52 = vpop.f32.mrf.mxu1  ;;  %v6913_v50 = vadd.f32 %v6905_v12, %v6651_v47 }
 0xcb0   : > { %v6914_v43 = vadd.f32 %v6865_v61, %v6652_v2  ;;  %v6915_v16 = vadd.f32 %v6879_v52, %v6653_v35 }
 0xcb1   : > { %v11371_v25 = vmul.f32 -1.442695, %v6912_v63 }
 0xcb2   : > { %v13272_v40 = vpop.eup %13271  ;;  %v11372_v46 = vmul.f32 -1.442695, %v6914_v43  ;;  %v11373_v62 = vmul.f32 -1.442695, %v6915_v16 }
 0xcb3   : > { %v13274_v51 = vpop.eup %13273  ;;  %v19098_v53 = vadd.f32 1.0, %v13272_v40  ;;  %13275 = vpow2.f32 %v11371_v25  ;;  %v12591_v25 = vld [vmem:[%s20642_s4 + $0xb4] sm:$0xf0] }
 0xcb4   : > { %v19106_v15 = vadd.f32 1.0, %v13274_v51  ;;  %13277 = vpow2.f32 %v11372_v46  ;;  %v11470_v51 = vor.u32 %v12591_v25, %v11469_v4  ;;  %v11437_v4 = vld [vmem:[%s20642_s4 + $0x68] sm:$0xf]  ;;  %v12583_v25 = vld [vmem:[%s20642_s4 + $0x74] sm:$0xf0] }
 0xcb5   : > { %13279 = vrcp.f32 %v19098_v53  ;;  %v6951_v44 = vand.u32 2147483647, %v19098_v53  ;;  %v6953_v2 = vand.u32 2147483648, %v19098_v53  ;;  %vm6947_vm1 = vweird.f32 %v19098_v53 }
 0xcb6   : > { %13281 = vrcp.f32 %v19106_v15  ;;  %v6893_v41 = vpop.f32.mrf.mxu2  ;;  %v6907_v42 = vpop.f32.mrf.mxu3  ;;  %v6968_v63 = vand.u32 2147483648, %v19106_v15  ;;  %v6966_v61 = vand.u32 2147483647, %v19106_v15  ;;  %vm6962_vm0 = vweird.f32 %v19106_v15  ;;  %7296 = vmatpush.bf16.msrb.mxu2 %v11470_v51  ;;  %v11439_v51 = vld [vmem:[%s20642_s4 + $0x78] sm:$0xf0] }
 0xcb7   : > { %13283 = vpow2.f32 %v11373_v62  ;;  %v6916_v26 = vadd.f32 %v6893_v41, %v6654_v10  ;;  %v6917_v16 = vadd.f32 %v6907_v42, %v6655_v60  ;;  %vm19165_vm2 = vcmp.eq.f32.partialorder %v6951_v44, 8.507059e+37 }
 0xcb8   : > { %v6954_v54 = vor.u32 1.1754944e-38, %v6953_v2  ;;  %v6969_v40 = vor.u32 1.1754944e-38, %v6968_v63  ;;  %vm19176_vm5 = vcmp.eq.f32.partialorder %v6966_v61, 8.507059e+37  ;;  %v11474_v61 = vor.u32 %v12589_v27, %v11471_v8  ;;  %v11421_v27 = vld [vmem:[%s20642_s4 + $0x48] sm:$0xf] }
 0xcb9   : > { %v13276_v32 = vpop.eup %13275  ;;  %v11374_v13 = vmul.f32 -1.442695, %v6916_v26 }
 0xcba   : > { %v13278_v55 = vpop.eup %13277  ;;  %v19142_v11 = vadd.f32 1.0, %v13276_v32  ;;  %7310 = vmatpush.bf16.msrb.mxu3 %v11474_v61  ;;  %v11381_v61 = vld [vmem:[%s20642_s4] sm:$0xf] }
 0xcbb   : > { %v13280_v17 = vpop.eup %13279  ;;  %v19151_v49 = vadd.f32 1.0, %v13278_v55  ;;  %13285 = vpow2.f32 %v11374_v13 }
 0xcbc   : > { %v13282_v22 = vpop.eup %13281  ;;  %v6943_v7 = vmul.f32 %v13280_v17, %v19098_v53  ;;  %13287 = vrcp.f32 %v19142_v11  ;;  %vm6948_vm3 = vweird.f32 %v13280_v17  ;;  %v6981_v0 = vand.u32 2147483647, %v19142_v11 }
 0xcbd   : > { %v13284_v35 = vpop.eup %13283  ;;  %v6958_v31 = vmul.f32 %v13282_v22, %v19106_v15  ;;  %13289 = vtanh.f32 %v6913_v50  ;;  %vm6963_vm4 = vweird.f32 %v13282_v22  ;;  %v6983_v10 = vand.u32 2147483648, %v19142_v11  ;;  %vm6949_vm6 = vmor %vm6947_vm1, %vm6948_vm3  ;;  %v11445_v50 = vld [vmem:[%s20642_s4 + $0x80] sm:$0xf] }
 0xcbe   : > { %v6944_v52 = vsub.f32 1.0, %v6943_v7  ;;  %13291 = vrcp.f32 %v19151_v49  ;;  %v19161_v43 = vadd.f32 1.0, %v13284_v35  ;;  %vm19196_vm7 = vmor %vm6962_vm0, %vm6963_vm4  ;;  %v6996_v9 = vand.u32 2147483647, %v19151_v49  ;;  %v12582_v35 = vld [vmem:[%s20642_s4 + $0x6c] sm:$0xf0] }
 0xcbf   : > { %v6959_v1 = vsub.f32 1.0, %v6958_v31  ;;  %vm6992_vm8 = vweird.f32 %v19151_v49  ;;  %v6998_v5 = vand.u32 2147483648, %v19151_v49  ;;  %vm6977_vm9 = vweird.f32 %v19142_v11  ;;  %v12580_v31 = vld [vmem:[%s20642_s4 + $0x64] sm:$0xf] }
 0xcc0   : > { %v6945_v12 = vmul.f32 %v13280_v17, %v6944_v52  ;;  %13293 = vrcp.f32 %v19161_v43  ;;  %v7013_v41 = vand.u32 2147483648, %v19161_v43  ;;  %v7011_v21 = vand.u32 2147483647, %v19161_v43 }
 0xcc1   : > { %v13286_v23 = vpop.eup %13285  ;;  %v6960_v33 = vmul.f32 %v13282_v22, %v6959_v1  ;;  %13295 = vtanh.f32 %v6917_v16  ;;  %vm7007_vm10 = vweird.f32 %v19161_v43  ;;  %vm19249_vm11 = vcmp.eq.f32.partialorder %v6996_v9, 8.507059e+37 }
 0xcc2   : > { %v19180_v62 = vpop.eup %13287  ;;  %v6946_v39 = vadd.f32 %v13280_v17, %v6945_v12  ;;  %v19182_v59 = vadd.f32 1.0, %v13286_v23  ;;  %v7014_v60 = vor.u32 1.1754944e-38, %v7013_v41  ;;  %v11446_v52 = vor.u32 %v12586_v48, %v11445_v50 }
 0xcc3   : > { %v13290_v6 = vpop.eup %13289  ;;  %v6973_v3 = vmul.f32 %v19180_v62, %v19142_v11  ;;  %v6961_v45 = vadd.f32 %v13282_v22, %v6960_v33  ;;  %v11450_v16 = vor.u32 %v12584_v29, %v11447_v37  ;;  %v11454_v1 = vor.u32 %v12587_v36, %v11453_v57  ;;  %v12581_v33 = vld [vmem:[%s20642_s4 + $0x6c] sm:$0xf]  ;;  %v11397_v36 = vld [vmem:[%s20642_s4 + $0x20] sm:$0xf] }
 0xcc4   : > { %v19191_v47 = vpop.eup %13291  ;;  %v6950_v20 = vsel %vm6949_vm6, %v13280_v17, %v6946_v39  ;;  %13297 = vrcp.f32 %v19182_v59  ;;  %v6999_v23 = vor.u32 1.1754944e-38, %v6998_v5  ;;  %vm6978_vm14 = vweird.f32 %v19180_v62  ;;  %7269 = vmatpush.bf16.msrb.mxu0 %v11446_v52  ;;  %v11423_v5 = vld [vmem:[%s20642_s4 + $0x58] sm:$0xf0]  ;;  %v12570_v52 = vld [vmem:[%s20642_s4 + $0xc] sm:$0xf0] }
 0xcc5   : > { %v6974_v53 = vsub.f32 1.0, %v6973_v3  ;;  %v6955_v18 = vsel %vm19165_vm2, %v6954_v54, %v6950_v20  ;;  %v6965_v26 = vsel %vm19196_vm7, %v13282_v22, %v6961_v45  ;;  %v6988_v15 = vmul.f32 %v19191_v47, %v19151_v49  ;;  %v12578_v3 = vld [vmem:[%s20642_s4 + $0x4c] sm:$0xf0]  ;;  %7283 = vmatpush.bf16.msrb.mxu1 %v11450_v16  ;;  %7297 = vmatpush.bf16.msrb.mxu2 %v11454_v1  ;;  %vm19343_vm3 = vmor %vm6977_vm9, %vm6978_vm14  ;;  %v12568_v16 = vld [vmem:[%s20642_s4 + $0x4] sm:$0xf] }
 0xcc6   : > { %v19227_v32 = vpop.eup %13293  ;;  %v6970_v13 = vsel %vm19176_vm5, %v6969_v40, %v6965_v26  ;;  %v7036_v38 = vmul.f32 %v13290_v6, %v6955_v18  ;;  %vm6993_vm12 = vweird.f32 %v19191_v47  ;;  %v11430_v39 = vor.u32 %v12582_v35, %v11429_v28  ;;  %v11413_v6 = vld [vmem:[%s20642_s4 + $0x40] sm:$0xf]  ;;  %v11415_v18 = vld [vmem:[%s20642_s4 + $0x50] sm:$0xf0] }
 0xcc7   : > { %v7034_v34 = vmul.f32 %v6970_v13, %v18872_v14  ;;  %v6989_v55 = vsub.f32 1.0, %v6988_v15  ;;  %v7003_v58 = vmul.f32 %v19227_v32, %v19161_v43  ;;  %v13296_v17 = vpop.eup %13295  ;;  %v6975_v44 = vmul.f32 %v19180_v62, %v6974_v53  ;;  %v11455_v14 = vld [vmem:[%s20642_s4 + $0x98] sm:$0xf0]  ;;  %vm19302_vm15 = vmor %vm6992_vm8, %vm6993_vm12  ;;  %v12576_v53 = vld [vmem:[%s20642_s4 + $0x44] sm:$0xf] }
 0xcc8   : > { %vm7008_vm13 = vweird.f32 %v19227_v32  ;;  %v11458_v46 = vor.u32 %v12585_v30, %v11455_v14  ;;  %v11434_v41 = vor.u32 %v12580_v31, %v11431_v19  ;;  %v11438_v9 = vor.u32 %v12583_v25, %v11437_v4  ;;  %7270 = vmatpush.bf16.msrb.mxu0 %v11430_v39  ;;  %v11383_v1 = vld [vmem:[%s20642_s4 + $0x10] sm:$0xf0]  ;;  %v11389_v19 = vld [vmem:[%s20642_s4 + $0x8] sm:$0xf]  ;;  %v12571_v4 = vld [vmem:[%s20642_s4 + $0x14] sm:$0xf0] }
 0xcc9   : > { %v19259_v22 = vadd.f32 %v7036_v38, %v7034_v34  ;;  %v7004_v7 = vsub.f32 1.0, %v7003_v58  ;;  %v6990_v2 = vmul.f32 %v19191_v47, %v6989_v55  ;;  %v19314_v49 = vadd.f32 %v19180_v62, %v6975_v44  ;;  %vm7009_vm1 = vmor %vm7007_vm10, %vm7008_vm13  ;;  %v12574_v34 = vld [vmem:[%s20642_s4 + $0x2c] sm:$0xf0]  ;;  %v12572_v55 = vld [vmem:[%s20642_s4 + $0x24] sm:$0xf] }
 0xcca   : > { %v19269_v63 = vpop.eup %13297  ;;  %vm19318_vm0 = vcmp.eq.f32.partialorder %v6981_v0, 8.507059e+37  ;;  %vm7012_vm2 = vcmp.eq.f32.partialorder %v7011_v21, 8.507059e+37  ;;  %v12579_v0 = vld [vmem:[%s20642_s4 + $0x54] sm:$0xf0]  ;;  %v11442_v43 = vor.u32 %v12581_v33, %v11439_v51  ;;  %v11414_v48 = vor.u32 %v12578_v3, %v11413_v6  ;;  %7311 = vmatpush.bf16.msrb.mxu3 %v11458_v46  ;;  %7284 = vmatpush.bf16.msrb.mxu1 %v11434_v41  ;;  %v11405_v58 = vld [vmem:[%s20642_s4 + $0x28] sm:$0xf] }
 0xccb   : > { %v7005_v12 = vmul.f32 %v19227_v32, %v7004_v7  ;;  %v7018_v54 = vmul.f32 %v19269_v63, %v19182_v59  ;;  %v6991_v40 = vadd.f32 %v19191_v47, %v6990_v2  ;;  %13299 = vtanh.f32 %v19259_v22  ;;  %7298 = vmatpush.bf16.msrb.mxu2 %v11438_v9  ;;  %v12575_v21 = vld [vmem:[%s20642_s4 + $0x34] sm:$0xf0]  ;;  %v11407_v2 = vld [vmem:[%s20642_s4 + $0x38] sm:$0xf0]  ;;  %v12569_v51 = vld [vmem:[%s20642_s4 + $0xc] sm:$0xf] }
 0xccc   : > { %v6984_v29 = vor.u32 1.1754944e-38, %v6983_v10  ;;  %v11418_v11 = vor.u32 %v12576_v53, %v11415_v18  ;;  %v11422_v10 = vor.u32 %v12579_v0, %v11421_v27  ;;  %v6980_v30 = vsel %vm19343_vm3, %v19180_v62, %v19314_v49  ;;  %7271 = vmatpush.bf16.msrb.mxu0 %v11414_v48  ;;  %v12573_v62 = vld [vmem:[%s20642_s4 + $0x2c] sm:$0xf]  ;;  %v11391_v6 = vld [vmem:[%s20642_s4 + $0x18] sm:$0xf0]  ;;  %v7060_v26 = vld [vmem:[%s19433_s22] sm:$0xff] }
 0xccd   : > { %v7019_v45 = vsub.f32 1.0, %v7018_v54  ;;  %v7006_v20 = vadd.f32 %v19227_v32, %v7005_v12  ;;  %v6995_v15 = vsel %vm19302_vm15, %v19191_v47, %v6991_v40  ;;  %v7028_v44 = vand.u32 2147483648, %v19182_v59  ;;  %v7062_v47 = vld [vmem:[%s19433_s22 + $0x10] sm:$0xff] }
 0xcce   : > { %v7000_v8 = vsel %vm19249_vm11, %v6999_v23, %v6995_v15  ;;  %vm7023_vm4 = vweird.f32 %v19269_v63  ;;  %7312 = vmatpush.bf16.msrb.mxu3 %v11442_v43  ;;  %v11398_v7 = vor.u32 %v12574_v34, %v11397_v36  ;;  %7285 = vmatpush.bf16.msrb.mxu1 %v11418_v11  ;;  %v11406_v31 = vor.u32 %v12575_v21, %v11405_v58  ;;  %v7061_v15 = vld [vmem:[%s19433_s22 + $0x8] sm:$0xff]  ;;  %v11633_v11 = vld [vmem:[%s20642_s4 + $0xf0] sm:$0xf0]  ;;  %v12634_v36 = vld [vmem:[%s20642_s4 + $0xf4] sm:$0xf0] }
 0xccf   : > { %v7010_v50 = vsel %vm7009_vm1, %v19227_v32, %v7006_v20  ;;  %v7020_v37 = vmul.f32 %v19269_v63, %v7019_v45  ;;  %v7037_v38 = vmul.f32 %v13296_v17, %v7000_v8  ;;  %v12577_v32 = vld [vmem:[%s20642_s4 + $0x4c] sm:$0xf]  ;;  %v7026_v17 = vand.u32 2147483647, %v19182_v59  ;;  %7299 = vmatpush.bf16.msrb.mxu2 %v11422_v10  ;;  %v11639_v10 = vld [vmem:[%s20642_s4 + $0xe8] sm:$0xf] }
 0xcd0   : > { %v7015_v13 = vsel %vm7012_vm2, %v7014_v60, %v7010_v50  ;;  %v11426_v28 = vor.u32 %v12577_v32, %v11423_v5  ;;  %vm7022_vm5 = vweird.f32 %v19182_v59  ;;  %v11410_v59 = vor.u32 %v12573_v62, %v11407_v2  ;;  %7272 = vmatpush.bf16.msrb.mxu0 %v11398_v7  ;;  %v12631_v32 = vld [vmem:[%s20642_s4 + $0xe4] sm:$0xf]  ;;  %v11615_v62 = vld [vmem:[%s20642_s4 + $0xc0] sm:$0xf]  ;;  %v12629_v2 = vld [vmem:[%s20642_s4 + $0xcc] sm:$0xf0] }
 0xcd1   : > { %v7035_v57 = vmul.f32 %v7015_v13, %v18996_v24  ;;  %v11399_v24 = vld [vmem:[%s20642_s4 + $0x30] sm:$0xf0]  ;;  %v13300_v42 = vpop.eup %13299  ;;  %v7021_v14 = vadd.f32 %v19269_v63, %v7020_v37  ;;  %vm19416_vm6 = vmor %vm7022_vm5, %vm7023_vm4  ;;  %v6985_v12 = vsel %vm19318_vm0, %v6984_v29, %v6980_v30  ;;  %v11382_v23 = vor.u32 %v12570_v52, %v11381_v61  ;;  %v7064_v29 = vld [vmem:[%s19433_s22 + $0x20] sm:$0xff] }
 0xcd2   : > { %v11402_v35 = vor.u32 %v12572_v55, %v11399_v24  ;;  %7313 = vmatpush.bf16.msrb.mxu3 %v11426_v28  ;;  %v7042_v33 = vmul.f32 %v13300_v42, %v6985_v12  ;;  %v7029_v40 = vor.u32 1.1754944e-38, %v7028_v44  ;;  %v11386_v46 = vor.u32 %v12568_v16, %v11383_v1  ;;  %v7065_v37 = vld [vmem:[%s19433_s22 + $0x28] sm:$0xff]  ;;  %v11631_v13 = vld [vmem:[%s20642_s4 + $0xe0] sm:$0xf]  ;;  %v12627_v52 = vld [vmem:[%s20642_s4 + $0xc4] sm:$0xf] }
 0xcd3   : > { %v19381_v60 = vadd.f32 %v7037_v38, %v7035_v57  ;;  %v7025_v54 = vsel %vm19416_vm6, %v19269_v63, %v7021_v14  ;;  %7300 = vmatpush.bf16.msrb.mxu2 %v11406_v31  ;;  %v11390_v39 = vor.u32 %v12571_v4, %v11389_v19  ;;  %vm7027_vm7 = vcmp.eq.f32.partialorder %v7026_v17, 8.507059e+37  ;;  %v12633_v38 = vld [vmem:[%s20642_s4 + $0xec] sm:$0xf0]  ;;  %v12632_v30 = vld [vmem:[%s20642_s4 + $0xec] sm:$0xf] }
 0xcd4   : > { %7286 = vmatpush.bf16.msrb.mxu1 %v11402_v35  ;;  %v7030_v3 = vsel %vm7027_vm7, %v7029_v40, %v7025_v54  ;;  %7273 = vmatpush.bf16.msrb.mxu0 %v11382_v23  ;;  %v11394_v45 = vor.u32 %v12569_v51, %v11391_v6  ;;  %v7046_v20 = vpack.c.bf16 %v7042_v33, %v7042_v33  ;;  %v11641_v17 = vld [vmem:[%s20642_s4 + $0xf8] sm:$0xf0]  ;;  %v11617_v4 = vld [vmem:[%s20642_s4 + $0xd0] sm:$0xf0]  ;;  %v11623_v23 = vld [vmem:[%s20642_s4 + $0xc8] sm:$0xf] }
 0xcd5   : > { %13301 = vtanh.f32 %v19381_v60  ;;  %v11632_v57 = vor.u32 %v12633_v38, %v11631_v13  ;;  %v11636_v58 = vor.u32 %v12631_v32, %v11633_v11  ;;  %v11640_v21 = vor.u32 %v12634_v36, %v11639_v10  ;;  %v7063_v54 = vld [vmem:[%s19433_s22 + $0x18] sm:$0xff]  ;;  %v11599_v51 = vld [vmem:[%s20642_s4 + $0xa0] sm:$0xf] }
 0xcd6   : > { %7314 = vmatpush.bf16.msrb.mxu3 %v11410_v59  ;;  %v7102_v53 = vunpack.c.l.b16 %v7046_v20  ;;  %v11644_v14 = vor.u32 %v12632_v30, %v11641_v17  ;;  %v11616_v61 = vor.u32 %v12629_v2, %v11615_v62  ;;  %v7066_v59 = vld [vmem:[%s19433_s22 + $0x30] sm:$0xff]  ;;  %v11620_v12 = vor.u32 %v12627_v52, %v11617_v4  ;;  %v11583_v17 = vld [vmem:[%s20642_s4 + $0x80] sm:$0xf]  ;;  %v11577_v30 = vld [vmem:[%s20642_s4 + $0x78] sm:$0xf0] }
 0xcd7   : > { %7301 = vmatpush.bf16.msrb.mxu2 %v11390_v39  ;;  %v11625_v39 = vld [vmem:[%s20642_s4 + $0xd8] sm:$0xf0]  ;;  %v11601_v20 = vld [vmem:[%s20642_s4 + $0xb0] sm:$0xf0] }
 0xcd8   : > { %7287 = vmatpush.bf16.msrb.mxu1 %v11386_v46  ;;  %7678 = vmatpush.bf16.msra.mxu0 %v11632_v57  ;;  %v12628_v46 = vld [vmem:[%s20642_s4 + $0xcc] sm:$0xf] }
 0xcda   : > { %7315 = vmatpush.bf16.msrb.mxu3 %v11394_v45 }
 0xcdb   : > { %v13302_v63 = vpop.eup %13301  ;;  %7706 = vmatpush.bf16.msra.mxu2 %v11640_v21 }
 0xcdc   : > { %v7043_v56 = vmul.f32 %v13302_v63, %v7030_v3  ;;  %7692 = vmatpush.bf16.msra.mxu1 %v11636_v58  ;;  %7679 = vmatpush.bf16.msra.mxu0 %v11616_v61  ;;  %v12625_v63 = vld [vmem:[%s20642_s4 + $0xac] sm:$0xf0]  ;;  %v12623_v3 = vld [vmem:[%s20642_s4 + $0xa4] sm:$0xf] }
 0xcde   : > { %v7047_v41 = vpack.c.bf16 %v7043_v56, %v7043_v56  ;;  %v12791_v9 = vpack.c.bf16 %v7043_v56, %v7042_v33  ;;  %7720 = vmatpush.bf16.msra.mxu3 %v11644_v14  ;;  %v12630_v33 = vld [vmem:[%s20642_s4 + $0xd4] sm:$0xf0] }
 0xcdf   : > { %v11624_v56 = vor.u32 %v12630_v33, %v11623_v23 }
 0xce0   : > { %12792 = vst [vmem:[%s7051_s18] sm:$0xff] %v12791_v9   ;;  %v7103_v18 = vunpack.c.l.b16 %v7047_v41  ;;  %7693 = vmatpush.bf16.msra.mxu1 %v11620_v12  ;;  %v11607_v41 = vld [vmem:[%s20642_s4 + $0xa8] sm:$0xf] }
 0xce1   : > { %7707 = vmatpush.bf16.msra.mxu2 %v11624_v56  ;;  %v12620_v56 = vld [vmem:[%s20642_s4 + $0x8c] sm:$0xf] }
 0xce2   : > { %v7104_v49 = vpack.c.b16 %v7103_v18, %v7102_v53  ;;  %v11628_v18 = vor.u32 %v12628_v46, %v11625_v39 }
 0xce4   : > { %7274 = vmatmul.bf16.vlgmr.msrb.gmra.mxu0 %v7104_v49  ;;  %7288 = vmatmul.bf16.vlgmr.msrb.gmra.mxu1 %v7104_v49 }
 0xce5   : > { %7302 = vmatmul.bf16.vlgmr.msrb.gmra.mxu2 %v7104_v49  ;;  %7316 = vmatmul.bf16.vlgmr.msrb.gmra.mxu3 %v7104_v49  ;;  %v11600_v49 = vor.u32 %v12625_v63, %v11599_v51  ;;  %v11585_v63 = vld [vmem:[%s20642_s4 + $0x90] sm:$0xf0] }
 0xce6   : > { %7721 = vmatpush.bf16.msra.mxu3 %v11628_v18 }
 0xce7   : > { %7680 = vmatpush.bf16.msra.mxu0 %v11600_v49  ;;  %v11567_v49 = vld [vmem:[%s20642_s4 + $0x60] sm:$0xf] }
 0xd61   : > { %v7275_v27 = vpop.f32.mrf.mxu0  ;;  %v7289_v0 = vpop.f32.mrf.mxu1 }
 0xd62   : > { %v7322_v8 = vadd.f32 %v7275_v27, %v7060_v26  ;;  %v7323_v50 = vadd.f32 %v7289_v0, %v7061_v15  ;;  %v11604_v26 = vor.u32 %v12623_v3, %v11601_v20  ;;  %v12626_v15 = vld [vmem:[%s20642_s4 + $0xb4] sm:$0xf0]  ;;  %v12624_v27 = vld [vmem:[%s20642_s4 + $0xac] sm:$0xf]  ;;  %v11591_v3 = vld [vmem:[%s20642_s4 + $0x88] sm:$0xf] }
 0xd63   : > { %v11593_v20 = vld [vmem:[%s20642_s4 + $0x98] sm:$0xf0] }
 0xd64   : > { %v11507_v43 = vmul.f32 -1.442695, %v7322_v8  ;;  %v11508_v48 = vmul.f32 -1.442695, %v7323_v50  ;;  %v11608_v50 = vor.u32 %v12626_v15, %v11607_v41  ;;  %7694 = vmatpush.bf16.msra.mxu1 %v11604_v26  ;;  %v12617_v26 = vld [vmem:[%s20642_s4 + $0x6c] sm:$0xf0] }
 0xd66   : > { %13303 = vpow2.f32 %v11507_v43  ;;  %v11609_v43 = vld [vmem:[%s20642_s4 + $0xb8] sm:$0xf0]  ;;  %7708 = vmatpush.bf16.msra.mxu2 %v11608_v50 }
 0xd67   : > { %13305 = vpow2.f32 %v11508_v48  ;;  %v11612_v38 = vor.u32 %v12624_v27, %v11609_v43  ;;  %v12615_v43 = vld [vmem:[%s20642_s4 + $0x64] sm:$0xf] }
 0xd68   : > { %v7303_v5 = vpop.f32.mrf.mxu2  ;;  %v7317_v7 = vpop.f32.mrf.mxu3 }
 0xd69   : > { %v7324_v34 = vadd.f32 %v7303_v5, %v7062_v47  ;;  %v7277_v55 = vpop.f32.mrf.mxu0  ;;  %v7291_v24 = vpop.f32.mrf.mxu1  ;;  %v7325_v45 = vadd.f32 %v7317_v7, %v7063_v54  ;;  %7722 = vmatpush.bf16.msra.mxu3 %v11612_v38  ;;  %v11575_v38 = vld [vmem:[%s20642_s4 + $0x68] sm:$0xf] }
 0xd6a   : > { %v7326_v44 = vadd.f32 %v7277_v55, %v7064_v29  ;;  %v7327_v42 = vadd.f32 %v7291_v24, %v7065_v37  ;;  %v7067_v37 = vld [vmem:[%s19433_s22 + $0x38] sm:$0xff]  ;;  %s12601_s22 = sadd.s32 208, %s14923_s13 }
 0xd6b   : > { %v11509_v28 = vmul.f32 -1.442695, %v7324_v34  ;;  %s7460_s18 = sshra.s32 %s12601_s22, 3  ;;  %s7467_s22 = sshra.s32 %s7466_s28, 3 }
 0xd6c   : > { %v13304_v35 = vpop.eup %13303  ;;  %v11510_v31 = vmul.f32 -1.442695, %v7326_v44  ;;  %v11511_v19 = vmul.f32 -1.442695, %v7327_v42  ;;  %v12621_v44 = vld [vmem:[%s20642_s4 + $0x8c] sm:$0xf0] }
 0xd6d   : > { %v13306_v16 = vpop.eup %13305  ;;  %v19473_v1 = vadd.f32 1.0, %v13304_v35  ;;  %13307 = vpow2.f32 %v11509_v28  ;;  %v11584_v52 = vor.u32 %v12621_v44, %v11583_v17  ;;  %v11551_v17 = vld [vmem:[%s20642_s4 + $0x40] sm:$0xf]  ;;  %v12613_v44 = vld [vmem:[%s20642_s4 + $0x4c] sm:$0xf0]  ;;  %s11514_s19 = sshll.u32 %s7460_s18, 2 }
 0xd6e   : > { %v19478_v25 = vadd.f32 1.0, %v13306_v16  ;;  %13309 = vpow2.f32 %v11510_v31  ;;  %s7463_s20 = scalar_lea.vmem [#allocation3], %s11514_s19  ;;  %s12602_s17 = sshll.u32 %s7467_s22, 5 }
 0xd6f   : > { %13311 = vrcp.f32 %v19473_v1  ;;  %v7363_v47 = vand.u32 2147483647, %v19473_v1  ;;  %v7365_v57 = vand.u32 2147483648, %v19473_v1  ;;  %vm7359_vm9 = vweird.f32 %v19473_v1  ;;  %7681 = vmatpush.bf16.msra.mxu0 %v11584_v52  ;;  %v11553_v52 = vld [vmem:[%s20642_s4 + $0x50] sm:$0xf0]  ;;  %s19787_s21 = scalar_lea.vmem [#allocation2], %s12602_s17 }
 0xd70   : > { %13313 = vrcp.f32 %v19478_v25  ;;  %v7305_v40 = vpop.f32.mrf.mxu2  ;;  %v7319_v13 = vpop.f32.mrf.mxu3  ;;  %v7380_v36 = vand.u32 2147483648, %v19478_v25  ;;  %v7378_v34 = vand.u32 2147483647, %v19478_v25  ;;  %vm7374_vm8 = vweird.f32 %v19478_v25  ;;  %s7878_s17 = sadd.s32 240, %s14606_s16  ;;  %s12671_s16 = sadd.s32 240, %s14923_s13 }
 0xd71   : > { %13315 = vpow2.f32 %v11511_v19  ;;  %v7328_v6 = vadd.f32 %v7305_v40, %v7066_v59  ;;  %v7329_v58 = vadd.f32 %v7319_v13, %v7067_v37  ;;  %vm19537_vm10 = vcmp.eq.f32.partialorder %v7363_v47, 8.507059e+37  ;;  %s7879_s25 = sshra.s32 %s7878_s17, 3 }
 0xd72   : > { %v7366_v14 = vor.u32 1.1754944e-38, %v7365_v57  ;;  %v7381_v62 = vor.u32 1.1754944e-38, %v7380_v36  ;;  %vm19548_vm13 = vcmp.eq.f32.partialorder %v7378_v34, 8.507059e+37  ;;  %s12637_s12 = sshll.u32 %s7879_s25, 5 }
 0xd73   : > { %v13308_v9 = vpop.eup %13307  ;;  %v11512_v53 = vmul.f32 -1.442695, %v7328_v6  ;;  %v12619_v6 = vld [vmem:[%s20642_s4 + $0x84] sm:$0xf]  ;;  %s20135_s2 = scalar_lea.vmem [#allocation2], %s12637_s12 }
 0xd74   : > { %v13310_v0 = vpop.eup %13309  ;;  %v19517_v8 = vadd.f32 1.0, %v13308_v9  ;;  %v11588_v34 = vor.u32 %v12619_v6, %v11585_v63  ;;  %v12609_v6 = vld [vmem:[%s20642_s4 + $0x2c] sm:$0xf0] }
 0xd75   : > { %v13312_v48 = vpop.eup %13311  ;;  %v19523_v29 = vadd.f32 1.0, %v13310_v0  ;;  %13317 = vpow2.f32 %v11512_v53 }
 0xd76   : > { %v13314_v32 = vpop.eup %13313  ;;  %v7355_v5 = vmul.f32 %v13312_v48, %v19473_v1  ;;  %13319 = vrcp.f32 %v19517_v8  ;;  %vm7360_vm11 = vweird.f32 %v13312_v48  ;;  %v7393_v4 = vand.u32 2147483647, %v19517_v8  ;;  %7695 = vmatpush.bf16.msra.mxu1 %v11588_v34  ;;  %v12606_v34 = vld [vmem:[%s20642_s4 + $0x14] sm:$0xf0] }
 0xd77   : > { %v13316_v11 = vpop.eup %13315  ;;  %v7370_v10 = vmul.f32 %v13314_v32, %v19478_v25  ;;  %13321 = vtanh.f32 %v7325_v45  ;;  %vm7375_vm12 = vweird.f32 %v13314_v32  ;;  %v7395_v59 = vand.u32 2147483648, %v19517_v8  ;;  %vm7361_vm14 = vmor %vm7359_vm9, %vm7360_vm11  ;;  %v12622_v45 = vld [vmem:[%s20642_s4 + $0x94] sm:$0xf0] }
 0xd78   : > { %v7356_v55 = vsub.f32 1.0, %v7355_v5  ;;  %13323 = vrcp.f32 %v19523_v29  ;;  %v19533_v24 = vadd.f32 1.0, %v13316_v11  ;;  %vm19568_vm15 = vmor %vm7374_vm8, %vm7375_vm12  ;;  %v7408_v46 = vand.u32 2147483647, %v19523_v29  ;;  %v12618_v11 = vld [vmem:[%s20642_s4 + $0x74] sm:$0xf0] }
 0xd79   : > { %v7371_v21 = vsub.f32 1.0, %v7370_v10  ;;  %vm7404_vm0 = vweird.f32 %v19523_v29  ;;  %v7410_v18 = vand.u32 2147483648, %v19523_v29  ;;  %vm7389_vm1 = vweird.f32 %v19517_v8  ;;  %v12616_v10 = vld [vmem:[%s20642_s4 + $0x6c] sm:$0xf] }
 0xd7a   : > { %v7357_v42 = vmul.f32 %v13312_v48, %v7356_v55  ;;  %13325 = vrcp.f32 %v19533_v24  ;;  %v7425_v40 = vand.u32 2147483648, %v19533_v24  ;;  %v7423_v50 = vand.u32 2147483647, %v19533_v24 }
 0xd7b   : > { %v13318_v28 = vpop.eup %13317  ;;  %v7372_v7 = vmul.f32 %v13314_v32, %v7371_v21  ;;  %13327 = vtanh.f32 %v7329_v58  ;;  %vm7419_vm2 = vweird.f32 %v19533_v24  ;;  %vm19621_vm3 = vcmp.eq.f32.partialorder %v7408_v46, 8.507059e+37 }
 0xd7c   : > { %v19552_v35 = vpop.eup %13319  ;;  %v7358_v31 = vadd.f32 %v13312_v48, %v7357_v42  ;;  %v19554_v61 = vadd.f32 1.0, %v13318_v28  ;;  %v7426_v37 = vor.u32 1.1754944e-38, %v7425_v40  ;;  %v11592_v55 = vor.u32 %v12622_v45, %v11591_v3 }
 0xd7d   : > { %v13322_v16 = vpop.eup %13321  ;;  %v7385_v19 = vmul.f32 %v19552_v35, %v19517_v8  ;;  %v7373_v12 = vadd.f32 %v13314_v32, %v7372_v7  ;;  %v11596_v58 = vor.u32 %v12620_v56, %v11593_v20  ;;  %v11568_v21 = vor.u32 %v12617_v26, %v11567_v49  ;;  %v12611_v7 = vld [vmem:[%s20642_s4 + $0x44] sm:$0xf]  ;;  %v11521_v8 = vld [vmem:[%s20642_s4 + $0x10] sm:$0xf0] }
 0xd7e   : > { %v19563_v54 = vpop.eup %13323  ;;  %v7362_v33 = vsel %vm7361_vm14, %v13312_v48, %v7358_v31  ;;  %13329 = vrcp.f32 %v19554_v61  ;;  %v7411_v28 = vor.u32 1.1754944e-38, %v7410_v18  ;;  %vm7390_vm6 = vweird.f32 %v19552_v35  ;;  %7709 = vmatpush.bf16.msra.mxu2 %v11592_v55 }
 0xd7f   : > { %v7386_v1 = vsub.f32 1.0, %v7385_v19  ;;  %v7367_v39 = vsel %vm19537_vm10, %v7366_v14, %v7362_v33  ;;  %v7377_v51 = vsel %vm19568_vm15, %v13314_v32, %v7373_v12  ;;  %v7400_v25 = vmul.f32 %v19563_v54, %v19523_v29  ;;  %v12614_v19 = vld [vmem:[%s20642_s4 + $0x54] sm:$0xf0]  ;;  %7723 = vmatpush.bf16.msra.mxu3 %v11596_v58  ;;  %7682 = vmatpush.bf16.msra.mxu0 %v11568_v21  ;;  %vm19707_vm10 = vmor %vm7389_vm1, %vm7390_vm6  ;;  %v12604_v58 = vld [vmem:[%s20642_s4 + $0xc] sm:$0xf] }
 0xd80   : > { %v19599_v41 = vpop.eup %13325  ;;  %v7382_v9 = vsel %vm19548_vm13, %v7381_v62, %v7377_v51  ;;  %v7448_v53 = vmul.f32 %v13322_v16, %v7367_v39  ;;  %vm7405_vm4 = vweird.f32 %v19563_v54  ;;  %v11576_v31 = vor.u32 %v12618_v11, %v11575_v38  ;;  %v11559_v16 = vld [vmem:[%s20642_s4 + $0x48] sm:$0xf]  ;;  %v11561_v39 = vld [vmem:[%s20642_s4 + $0x58] sm:$0xf0] }
 0xd81   : > { %v7446_v15 = vmul.f32 %v7382_v9, %v19259_v22  ;;  %v7401_v27 = vsub.f32 1.0, %v7400_v25  ;;  %v7415_v0 = vmul.f32 %v19599_v41, %v19533_v24  ;;  %v13328_v48 = vpop.eup %13327  ;;  %v7387_v47 = vmul.f32 %v19552_v35, %v7386_v1  ;;  %v11569_v22 = vld [vmem:[%s20642_s4 + $0x70] sm:$0xf0]  ;;  %vm19674_vm7 = vmor %vm7404_vm0, %vm7405_vm4  ;;  %v12612_v1 = vld [vmem:[%s20642_s4 + $0x4c] sm:$0xf] }
 0xd82   : > { %vm7420_vm5 = vweird.f32 %v19599_v41  ;;  %v11572_v2 = vor.u32 %v12615_v43, %v11569_v22  ;;  %v11580_v40 = vor.u32 %v12616_v10, %v11577_v30  ;;  %v11552_v46 = vor.u32 %v12613_v44, %v11551_v17  ;;  %v11535_v25 = vld [vmem:[%s20642_s4 + $0x20] sm:$0xf]  ;;  %7710 = vmatpush.bf16.msra.mxu2 %v11576_v31  ;;  %v12605_v43 = vld [vmem:[%s20642_s4 + $0xc] sm:$0xf0]  ;;  %v11527_v10 = vld [vmem:[%s20642_s4 + $0x8] sm:$0xf] }
 0xd83   : > { %v19631_v32 = vadd.f32 %v7448_v53, %v7446_v15  ;;  %v7416_v5 = vsub.f32 1.0, %v7415_v0  ;;  %v7402_v57 = vmul.f32 %v19563_v54, %v7401_v27  ;;  %v7388_v29 = vadd.f32 %v19552_v35, %v7387_v47  ;;  %vm7421_vm8 = vmor %vm7419_vm2, %vm7420_vm5  ;;  %v11537_v53 = vld [vmem:[%s20642_s4 + $0x30] sm:$0xf0]  ;;  %v11543_v15 = vld [vmem:[%s20642_s4 + $0x28] sm:$0xf] }
 0xd84   : > { %v19641_v36 = vpop.eup %13329  ;;  %vm7424_vm9 = vcmp.eq.f32.partialorder %v7423_v50, 8.507059e+37  ;;  %v11556_v24 = vor.u32 %v12611_v7, %v11553_v52  ;;  %v11560_v45 = vor.u32 %v12614_v19, %v11559_v16  ;;  %7696 = vmatpush.bf16.msra.mxu1 %v11572_v2  ;;  %7724 = vmatpush.bf16.msra.mxu3 %v11580_v40  ;;  %v11564_v49 = vor.u32 %v12612_v1, %v11561_v39  ;;  %v12610_v27 = vld [vmem:[%s20642_s4 + $0x34] sm:$0xf0]  ;;  %v12608_v0 = vld [vmem:[%s20642_s4 + $0x2c] sm:$0xf] }
 0xd85   : > { %v7417_v42 = vmul.f32 %v19599_v41, %v7416_v5  ;;  %v7430_v14 = vmul.f32 %v19641_v36, %v19554_v61  ;;  %v7403_v62 = vadd.f32 %v19563_v54, %v7402_v57  ;;  %13331 = vtanh.f32 %v19631_v32  ;;  %7683 = vmatpush.bf16.msra.mxu0 %v11552_v46  ;;  %v11519_v50 = vld [vmem:[%s20642_s4] sm:$0xf]  ;;  %v11529_v21 = vld [vmem:[%s20642_s4 + $0x18] sm:$0xf0]  ;;  %v7473_v40 = vld [vmem:[%s19787_s21 + $0x8] sm:$0xff] }
 0xd86   : > { %v11536_v26 = vor.u32 %v12609_v6, %v11535_v25  ;;  %vm19742_vm11 = vcmp.eq.f32.partialorder %v7393_v4, 8.507059e+37  ;;  %vm7435_vm12 = vweird.f32 %v19641_v36  ;;  %7711 = vmatpush.bf16.msra.mxu2 %v11560_v45  ;;  %v11544_v5 = vor.u32 %v12610_v27, %v11543_v15  ;;  %v12603_v4 = vld [vmem:[%s20642_s4 + $0x4] sm:$0xf]  ;;  %v7474_v6 = vld [vmem:[%s19787_s21 + $0x10] sm:$0xff]  ;;  %v11737_v30 = vld [vmem:[%s20642_s4 + $0xa0] sm:$0xf] }
 0xd87   : > { %v7431_v12 = vsub.f32 1.0, %v7430_v14  ;;  %v7418_v33 = vadd.f32 %v19599_v41, %v7417_v42  ;;  %v7407_v51 = vsel %vm19674_vm7, %v19563_v54, %v7403_v62  ;;  %v11520_v11 = vor.u32 %v12605_v43, %v11519_v50  ;;  %v11771_v45 = vld [vmem:[%s20642_s4 + $0xf0] sm:$0xf0]  ;;  %v12662_v50 = vld [vmem:[%s20642_s4 + $0xc4] sm:$0xf] }
 0xd88   : > { %v7412_v63 = vsel %vm19621_vm3, %v7411_v28, %v7407_v51  ;;  %7697 = vmatpush.bf16.msra.mxu1 %v11556_v24  ;;  %7725 = vmatpush.bf16.msra.mxu3 %v11564_v49  ;;  %vm7434_vm13 = vweird.f32 %v19554_v61  ;;  %v7438_v55 = vand.u32 2147483647, %v19554_v61  ;;  %v11524_v17 = vor.u32 %v12603_v4, %v11521_v8  ;;  %v12666_v24 = vld [vmem:[%s20642_s4 + $0xe4] sm:$0xf] }
 0xd89   : > { %v7422_v3 = vsel %vm7421_vm8, %v19599_v41, %v7418_v33  ;;  %v7432_v56 = vmul.f32 %v19641_v36, %v7431_v12  ;;  %v7449_v9 = vmul.f32 %v13328_v48, %v7412_v63  ;;  %v12607_v41 = vld [vmem:[%s20642_s4 + $0x24] sm:$0xf]  ;;  %v7392_v48 = vsel %vm19707_vm10, %v19552_v35, %v7388_v29  ;;  %7684 = vmatpush.bf16.msra.mxu0 %v11536_v26  ;;  %vm19777_vm14 = vmor %vm7434_vm13, %vm7435_vm12  ;;  %v11769_v63 = vld [vmem:[%s20642_s4 + $0xe0] sm:$0xf] }
 0xd8a   : > { %v7427_v20 = vsel %vm7424_vm9, %v7426_v37, %v7422_v3  ;;  %v7396_v37 = vor.u32 1.1754944e-38, %v7395_v59  ;;  %v11540_v35 = vor.u32 %v12607_v41, %v11537_v53  ;;  %v7440_v59 = vand.u32 2147483648, %v19554_v61  ;;  %7712 = vmatpush.bf16.msra.mxu2 %v11544_v5  ;;  %v7472_v33 = vld [vmem:[%s19787_s21] sm:$0xff]  ;;  %v12668_v3 = vld [vmem:[%s20642_s4 + $0xec] sm:$0xf0] }
 0xd8b   : > { %v7447_v18 = vmul.f32 %v7427_v20, %v19381_v60  ;;  %v11545_v60 = vld [vmem:[%s20642_s4 + $0x38] sm:$0xf0]  ;;  %v13332_v22 = vpop.eup %13331  ;;  %v7433_v38 = vadd.f32 %v19641_v36, %v7432_v56  ;;  %v11528_v42 = vor.u32 %v12606_v34, %v11527_v10  ;;  %v11532_v7 = vor.u32 %v12604_v58, %v11529_v21  ;;  %v11777_v20 = vld [vmem:[%s20642_s4 + $0xe8] sm:$0xf]  ;;  %v12667_v41 = vld [vmem:[%s20642_s4 + $0xec] sm:$0xf] }
 0xd8c   : > { %v11548_v57 = vor.u32 %v12608_v0, %v11545_v60  ;;  %v7397_v44 = vsel %vm19742_vm11, %v7396_v37, %v7392_v48  ;;  %7698 = vmatpush.bf16.msra.mxu1 %v11540_v35  ;;  %v7441_v28 = vor.u32 1.1754944e-38, %v7440_v59  ;;  %vm7439_vm15 = vcmp.eq.f32.partialorder %v7438_v55, 8.507059e+37  ;;  %v7476_v53 = vld [vmem:[%s19787_s21 + $0x20] sm:$0xff]  ;;  %v11779_v26 = vld [vmem:[%s20642_s4 + $0xf8] sm:$0xf0] }
 0xd8d   : > { %v19748_v13 = vadd.f32 %v7449_v9, %v7447_v18  ;;  %v7437_v61 = vsel %vm19777_vm14, %v19641_v36, %v7433_v38  ;;  %v7454_v14 = vmul.f32 %v13332_v22, %v7397_v44  ;;  %7685 = vmatpush.bf16.msra.mxu0 %v11520_v11  ;;  %v11770_v54 = vor.u32 %v12668_v3, %v11769_v63  ;;  %v12669_v9 = vld [vmem:[%s20642_s4 + $0xf4] sm:$0xf0]  ;;  %v7477_v18 = vld [vmem:[%s19787_s21 + $0x28] sm:$0xff]  ;;  %v11753_v0 = vld [vmem:[%s20642_s4 + $0xc0] sm:$0xf] }
 0xd8e   : > { %7726 = vmatpush.bf16.msra.mxu3 %v11548_v57  ;;  %v7442_v2 = vsel %vm7439_vm15, %v7441_v28, %v7437_v61  ;;  %7713 = vmatpush.bf16.msra.mxu2 %v11528_v42  ;;  %v11774_v56 = vor.u32 %v12666_v24, %v11771_v45  ;;  %v11778_v49 = vor.u32 %v12669_v9, %v11777_v20  ;;  %v12664_v60 = vld [vmem:[%s20642_s4 + $0xcc] sm:$0xf0]  ;;  %v11755_v22 = vld [vmem:[%s20642_s4 + $0xd0] sm:$0xf0]  ;;  %v11761_v38 = vld [vmem:[%s20642_s4 + $0xc8] sm:$0xf] }
 0xd8f   : > { %13333 = vtanh.f32 %v19748_v13  ;;  %v7458_v52 = vpack.c.bf16 %v7454_v14, %v7454_v14  ;;  %v11782_v27 = vor.u32 %v12667_v41, %v11779_v26  ;;  %v11754_v37 = vor.u32 %v12664_v60, %v11753_v0  ;;  %v12665_v35 = vld [vmem:[%s20642_s4 + $0xd4] sm:$0xf0]  ;;  %v12663_v57 = vld [vmem:[%s20642_s4 + $0xcc] sm:$0xf]  ;;  %v11763_v11 = vld [vmem:[%s20642_s4 + $0xd8] sm:$0xf0] }
 0xd90   : > { %7699 = vmatpush.bf16.msra.mxu1 %v11524_v17  ;;  %v11758_v8 = vor.u32 %v12662_v50, %v11755_v22  ;;  %v11762_v59 = vor.u32 %v12665_v35, %v11761_v38  ;;  %v11766_v34 = vor.u32 %v12663_v57, %v11763_v11  ;;  %v12660_v42 = vld [vmem:[%s20642_s4 + $0xac] sm:$0xf0]  ;;  %v11723_v3 = vld [vmem:[%s20642_s4 + $0x90] sm:$0xf0]  ;;  %v11729_v24 = vld [vmem:[%s20642_s4 + $0x88] sm:$0xf] }
 0xd91   : > { %v7514_v19 = vunpack.c.l.b16 %v7458_v52  ;;  %8090 = vmatpush.bf16.msrb.mxu0 %v11770_v54  ;;  %v7478_v28 = vld [vmem:[%s19787_s21 + $0x30] sm:$0xff]  ;;  %v12657_v20 = vld [vmem:[%s20642_s4 + $0x94] sm:$0xf0]  ;;  %v12655_v35 = vld [vmem:[%s20642_s4 + $0x8c] sm:$0xf] }
 0xd92   : > { %7727 = vmatpush.bf16.msra.mxu3 %v11532_v7  ;;  %8118 = vmatpush.bf16.msrb.mxu2 %v11778_v49  ;;  %v11738_v7 = vor.u32 %v12660_v42, %v11737_v30 }
 0xd94   : > { %8104 = vmatpush.bf16.msrb.mxu1 %v11774_v56 }
 0xd95   : > { %v13334_v62 = vpop.eup %13333  ;;  %8091 = vmatpush.bf16.msrb.mxu0 %v11754_v37 }
 0xd96   : > { %v7455_v31 = vmul.f32 %v13334_v62, %v7442_v2  ;;  %8132 = vmatpush.bf16.msrb.mxu3 %v11782_v27  ;;  %8119 = vmatpush.bf16.msrb.mxu2 %v11762_v59  ;;  %v7475_v62 = vld [vmem:[%s19787_s21 + $0x18] sm:$0xff]  ;;  %v12658_v2 = vld [vmem:[%s20642_s4 + $0xa4] sm:$0xf] }
 0xd98   : > { %v7459_v16 = vpack.c.bf16 %v7455_v31, %v7455_v31  ;;  %v12796_v36 = vpack.c.bf16 %v7455_v31, %v7454_v14  ;;  %8105 = vmatpush.bf16.msrb.mxu1 %v11758_v8  ;;  %v11739_v31 = vld [vmem:[%s20642_s4 + $0xb0] sm:$0xf0] }
 0xd99   : > { %8092 = vmatpush.bf16.msrb.mxu0 %v11738_v7 }
 0xd9a   : > { %12797 = vst [vmem:[%s7463_s20] sm:$0xff] %v12796_v36   ;;  %v7515_v12 = vunpack.c.l.b16 %v7459_v16  ;;  %8133 = vmatpush.bf16.msrb.mxu3 %v11766_v34  ;;  %v11745_v16 = vld [vmem:[%s20642_s4 + $0xa8] sm:$0xf]  ;;  %v12661_v36 = vld [vmem:[%s20642_s4 + $0xb4] sm:$0xf0] }
 0xd9c   : > { %v7516_v23 = vpack.c.b16 %v7515_v12, %v7514_v19  ;;  %v12659_v19 = vld [vmem:[%s20642_s4 + $0xac] sm:$0xf] }
 0xd9e   : > { %7686 = vmatmul.bf16.vlgmr.msra.gmra.mxu0 %v7516_v23  ;;  %7700 = vmatmul.bf16.vlgmr.msra.gmra.mxu1 %v7516_v23 }
 0xd9f   : > { %7714 = vmatmul.bf16.vlgmr.msra.gmra.mxu2 %v7516_v23  ;;  %7728 = vmatmul.bf16.vlgmr.msra.gmra.mxu3 %v7516_v23  ;;  %v11747_v23 = vld [vmem:[%s20642_s4 + $0xb8] sm:$0xf0] }
 0xe1b   : > { %v7687_v46 = vpop.f32.mrf.mxu0  ;;  %v7701_v1 = vpop.f32.mrf.mxu1 }
 0xe1c   : > { %v7734_v39 = vadd.f32 %v7687_v46, %v7472_v33  ;;  %v7735_v29 = vadd.f32 %v7701_v1, %v7473_v40  ;;  %v11721_v33 = vld [vmem:[%s20642_s4 + $0x80] sm:$0xf]  ;;  %v11742_v46 = vor.u32 %v12658_v2, %v11739_v31  ;;  %v12656_v1 = vld [vmem:[%s20642_s4 + $0x8c] sm:$0xf0] }
 0xe1d   : > { %v11722_v63 = vor.u32 %v12656_v1, %v11721_v33  ;;  %v11707_v33 = vld [vmem:[%s20642_s4 + $0x70] sm:$0xf0] }
 0xe1e   : > { %v11645_v51 = vmul.f32 -1.442695, %v7734_v39  ;;  %v11646_v25 = vmul.f32 -1.442695, %v7735_v29  ;;  %v12654_v39 = vld [vmem:[%s20642_s4 + $0x84] sm:$0xf]  ;;  %8106 = vmatpush.bf16.msrb.mxu1 %v11742_v46 }
 0xe1f   : > { %v11726_v56 = vor.u32 %v12654_v39, %v11723_v3  ;;  %8093 = vmatpush.bf16.msrb.mxu0 %v11722_v63  ;;  %v12653_v46 = vld [vmem:[%s20642_s4 + $0x74] sm:$0xf0] }
 0xe20   : > { %13335 = vpow2.f32 %v11645_v51 }
 0xe21   : > { %13337 = vpow2.f32 %v11646_v25  ;;  %v11746_v25 = vor.u32 %v12661_v36, %v11745_v16 }
 0xe22   : > { %v7715_v15 = vpop.f32.mrf.mxu2  ;;  %v7729_v58 = vpop.f32.mrf.mxu3  ;;  %8107 = vmatpush.bf16.msrb.mxu1 %v11726_v56  ;;  %v11689_v56 = vld [vmem:[%s20642_s4 + $0x40] sm:$0xf] }
 0xe23   : > { %v7736_v43 = vadd.f32 %v7715_v15, %v7474_v6  ;;  %v7689_v48 = vpop.f32.mrf.mxu0  ;;  %v7703_v47 = vpop.f32.mrf.mxu1  ;;  %v7737_v40 = vadd.f32 %v7729_v58, %v7475_v62  ;;  %v11750_v6 = vor.u32 %v12659_v19, %v11747_v23  ;;  %8120 = vmatpush.bf16.msrb.mxu2 %v11746_v25  ;;  %v7479_v15 = vld [vmem:[%s19787_s21 + $0x38] sm:$0xff]  ;;  %v11705_v19 = vld [vmem:[%s20642_s4 + $0x60] sm:$0xf]  ;;  %v12650_v23 = vld [vmem:[%s20642_s4 + $0x64] sm:$0xf]  ;;  %s12636_s21 = sadd.s32 224, %s14923_s13 }
 0xe24   : > { %v7738_v5 = vadd.f32 %v7689_v48, %v7476_v53  ;;  %v7739_v4 = vadd.f32 %v7703_v47, %v7477_v18  ;;  %v11730_v53 = vor.u32 %v12657_v20, %v11729_v24  ;;  %v12651_v25 = vld [vmem:[%s20642_s4 + $0x6c] sm:$0xf]  ;;  %v12644_v58 = vld [vmem:[%s20642_s4 + $0x2c] sm:$0xf0]  ;;  %s7872_s20 = sshra.s32 %s12636_s21, 3  ;;  %s8284_s13 = sshra.s32 %s12671_s16, 3 }
 0xe25   : > { %v11647_v10 = vmul.f32 -1.442695, %v7736_v43  ;;  %8134 = vmatpush.bf16.msrb.mxu3 %v11750_v6  ;;  %v11715_v6 = vld [vmem:[%s20642_s4 + $0x78] sm:$0xf0]  ;;  %s11652_s28 = sshll.u32 %s7872_s20, 2  ;;  %s11790_s23 = sshll.u32 %s8284_s13, 2 }
 0xe26   : > { %v13336_v55 = vpop.eup %13335  ;;  %v11648_v21 = vmul.f32 -1.442695, %v7738_v5  ;;  %v11649_v61 = vmul.f32 -1.442695, %v7739_v4  ;;  %v11731_v5 = vld [vmem:[%s20642_s4 + $0x98] sm:$0xf0] }
 0xe27   : > { %v13338_v17 = vpop.eup %13337  ;;  %v19845_v44 = vadd.f32 1.0, %v13336_v55  ;;  %13339 = vpow2.f32 %v11647_v10  ;;  %8121 = vmatpush.bf16.msrb.mxu2 %v11730_v53  ;;  %v11734_v30 = vor.u32 %v12655_v35, %v11731_v5  ;;  %v12647_v35 = vld [vmem:[%s20642_s4 + $0x4c] sm:$0xf]  ;;  %v11699_v5 = vld [vmem:[%s20642_s4 + $0x58] sm:$0xf0]  ;;  %s7875_s22 = scalar_lea.vmem [#allocation3], %s11652_s28 }
 0xe28   : > { %v19850_v14 = vadd.f32 1.0, %v13338_v17  ;;  %13341 = vpow2.f32 %v11648_v21  ;;  %s8287_s11 = scalar_lea.vmem [#allocation3], %s11790_s23 }
 0xe29   : > { %13343 = vrcp.f32 %v19845_v44  ;;  %v7775_v26 = vand.u32 2147483647, %v19845_v44  ;;  %v7777_v43 = vand.u32 2147483648, %v19845_v44  ;;  %vm7771_vm1 = vweird.f32 %v19845_v44  ;;  %8135 = vmatpush.bf16.msrb.mxu3 %v11734_v30  ;;  %v12642_v30 = vld [vmem:[%s20642_s4 + $0x24] sm:$0xf] }
 0xe2a   : > { %13345 = vrcp.f32 %v19850_v14  ;;  %v7717_v52 = vpop.f32.mrf.mxu2  ;;  %v7731_v27 = vpop.f32.mrf.mxu3  ;;  %v7792_v50 = vand.u32 2147483648, %v19850_v14  ;;  %v7790_v47 = vand.u32 2147483647, %v19850_v14  ;;  %vm7786_vm0 = vweird.f32 %v19850_v14 }
 0xe2b   : > { %13347 = vpow2.f32 %v11649_v61  ;;  %v7740_v12 = vadd.f32 %v7717_v52, %v7478_v28  ;;  %v7741_v38 = vadd.f32 %v7731_v27, %v7479_v15  ;;  %vm19918_vm3 = vcmp.eq.f32.partialorder %v7775_v26, 8.507059e+37 }
 0xe2c   : > { %v7793_v11 = vor.u32 1.1754944e-38, %v7792_v50  ;;  %v7778_v10 = vor.u32 1.1754944e-38, %v7777_v43  ;;  %vm19927_vm5 = vcmp.eq.f32.partialorder %v7790_v47, 8.507059e+37 }
 0xe2d   : > { %v13340_v29 = vpop.eup %13339  ;;  %v11650_v51 = vmul.f32 -1.442695, %v7740_v12  ;;  %v12652_v12 = vld [vmem:[%s20642_s4 + $0x6c] sm:$0xf0] }
 0xe2e   : > { %v13342_v45 = vpop.eup %13341  ;;  %v19889_v54 = vadd.f32 1.0, %v13340_v29  ;;  %v11706_v43 = vor.u32 %v12652_v12, %v11705_v19 }
 0xe2f   : > { %v13344_v9 = vpop.eup %13343  ;;  %v19894_v41 = vadd.f32 1.0, %v13342_v45  ;;  %13349 = vpow2.f32 %v11650_v51 }
 0xe30   : > { %v19896_v18 = vpop.eup %13345  ;;  %v7767_v49 = vmul.f32 %v13344_v9, %v19845_v44  ;;  %13351 = vrcp.f32 %v19889_v54  ;;  %vm7772_vm2 = vweird.f32 %v13344_v9  ;;  %v7807_v42 = vand.u32 2147483648, %v19889_v54  ;;  %8094 = vmatpush.bf16.msrb.mxu0 %v11706_v43 }
 0xe31   : > { %v13348_v0 = vpop.eup %13347  ;;  %v7782_v60 = vmul.f32 %v19896_v18, %v19850_v14  ;;  %13353 = vtanh.f32 %v7737_v40  ;;  %vm7787_vm4 = vweird.f32 %v19896_v18  ;;  %vm7773_vm6 = vmor %vm7771_vm1, %vm7772_vm2  ;;  %v7820_v44 = vand.u32 2147483647, %v19894_v41  ;;  %v11713_v40 = vld [vmem:[%s20642_s4 + $0x68] sm:$0xf] }
 0xe32   : > { %v7768_v48 = vsub.f32 1.0, %v7767_v49  ;;  %13355 = vrcp.f32 %v19894_v41  ;;  %v19908_v37 = vadd.f32 1.0, %v13348_v0  ;;  %vm19946_vm7 = vmor %vm7786_vm0, %vm7787_vm4  ;;  %vm7816_vm8 = vweird.f32 %v19894_v41  ;;  %v11691_v0 = vld [vmem:[%s20642_s4 + $0x50] sm:$0xf0] }
 0xe33   : > { %v7783_v22 = vsub.f32 1.0, %v7782_v60  ;;  %v7822_v51 = vand.u32 2147483648, %v19894_v41  ;;  %vm7801_vm9 = vweird.f32 %v19889_v54  ;;  %vm20000_vm11 = vcmp.eq.f32.partialorder %v7820_v44, 8.507059e+37  ;;  %v11697_v60 = vld [vmem:[%s20642_s4 + $0x48] sm:$0xf] }
 0xe34   : > { %v7769_v4 = vmul.f32 %v13344_v9, %v7768_v48  ;;  %13357 = vrcp.f32 %v19908_v37  ;;  %v7837_v31 = vand.u32 2147483648, %v19908_v37  ;;  %v7835_v45 = vand.u32 2147483647, %v19908_v37  ;;  %v11681_v44 = vld [vmem:[%s20642_s4 + $0x28] sm:$0xf] }
 0xe35   : > { %v13350_v59 = vpop.eup %13349  ;;  %v7784_v57 = vmul.f32 %v19896_v18, %v7783_v22  ;;  %13359 = vtanh.f32 %v7741_v38  ;;  %vm7831_vm10 = vweird.f32 %v19908_v37  ;;  %v11710_v48 = vor.u32 %v12650_v23, %v11707_v33  ;;  %v12649_v38 = vld [vmem:[%s20642_s4 + $0x54] sm:$0xf0] }
 0xe36   : > { %v19925_v34 = vpop.eup %13351  ;;  %v7770_v55 = vadd.f32 %v13344_v9, %v7769_v4  ;;  %v19931_v21 = vadd.f32 1.0, %v13350_v59  ;;  %v11714_v47 = vor.u32 %v12653_v46, %v11713_v40  ;;  %v11718_v22 = vor.u32 %v12651_v25, %v11715_v6 }
 0xe37   : > { %v13354_v17 = vpop.eup %13353  ;;  %v7797_v61 = vmul.f32 %v19925_v34, %v19889_v54  ;;  %v7785_v28 = vadd.f32 %v19896_v18, %v7784_v57  ;;  %v7823_v59 = vor.u32 1.1754944e-38, %v7822_v51  ;;  %v11673_v57 = vld [vmem:[%s20642_s4 + $0x20] sm:$0xf]  ;;  %vm7802_vm14 = vweird.f32 %v19925_v34  ;;  %8108 = vmatpush.bf16.msrb.mxu1 %v11710_v48 }
 0xe38   : > { %v19940_v7 = vpop.eup %13355  ;;  %v7774_v2 = vsel %vm7773_vm6, %v13344_v9, %v7770_v55  ;;  %13361 = vrcp.f32 %v19931_v21  ;;  %v7838_v9 = vor.u32 1.1754944e-38, %v7837_v31  ;;  %8122 = vmatpush.bf16.msrb.mxu2 %v11714_v47  ;;  %8136 = vmatpush.bf16.msrb.mxu3 %v11718_v22  ;;  %v11702_v31 = vor.u32 %v12647_v35, %v11699_v5  ;;  %vm20086_vm2 = vmor %vm7801_vm9, %vm7802_vm14 }
 0xe39   : > { %v7798_v52 = vsub.f32 1.0, %v7797_v61  ;;  %v7779_v16 = vsel %vm19918_vm3, %v7778_v10, %v7774_v2  ;;  %v7789_v14 = vsel %vm19946_vm7, %v19896_v18, %v7785_v28  ;;  %v7812_v36 = vmul.f32 %v19940_v7, %v19894_v41  ;;  %v12646_v18 = vld [vmem:[%s20642_s4 + $0x44] sm:$0xf] }
 0xe3a   : > { %v19978_v1 = vpop.eup %13357  ;;  %v7794_v39 = vsel %vm19927_vm5, %v7793_v11, %v7789_v14  ;;  %v7860_v29 = vmul.f32 %v13354_v17, %v7779_v16  ;;  %vm7817_vm12 = vweird.f32 %v19940_v7  ;;  %v11694_v55 = vor.u32 %v12646_v18, %v11691_v0  ;;  %v11675_v17 = vld [vmem:[%s20642_s4 + $0x30] sm:$0xf0]  ;;  %v12643_v14 = vld [vmem:[%s20642_s4 + $0x2c] sm:$0xf]  ;;  %v7888_v28 = vld [vmem:[%s20135_s2 + $0x20] sm:$0xff] }
 0xe3b   : > { %v7858_v63 = vmul.f32 %v7794_v39, %v19631_v32  ;;  %v7813_v3 = vsub.f32 1.0, %v7812_v36  ;;  %v7827_v24 = vmul.f32 %v19978_v1, %v19908_v37  ;;  %v7799_v20 = vmul.f32 %v19925_v34, %v7798_v52  ;;  %v12648_v32 = vld [vmem:[%s20642_s4 + $0x4c] sm:$0xf0]  ;;  %v13360_v49 = vpop.eup %13359  ;;  %vm20053_vm15 = vmor %vm7816_vm8, %vm7817_vm12  ;;  %v12645_v52 = vld [vmem:[%s20642_s4 + $0x34] sm:$0xf0] }
 0xe3c   : > { %vm7832_vm13 = vweird.f32 %v19978_v1  ;;  %v11690_v10 = vor.u32 %v12648_v32, %v11689_v56  ;;  %v11698_v2 = vor.u32 %v12649_v38, %v11697_v60  ;;  %vm7836_vm1 = vcmp.eq.f32.partialorder %v7835_v45, 8.507059e+37  ;;  %v11683_v36 = vld [vmem:[%s20642_s4 + $0x38] sm:$0xf0]  ;;  %8109 = vmatpush.bf16.msrb.mxu1 %v11694_v55  ;;  %8137 = vmatpush.bf16.msrb.mxu3 %v11702_v31  ;;  %v12639_v45 = vld [vmem:[%s20642_s4 + $0xc] sm:$0xf] }
 0xe3d   : > { %v20010_v26 = vadd.f32 %v7860_v29, %v7858_v63  ;;  %v7828_v15 = vsub.f32 1.0, %v7827_v24  ;;  %v7814_v27 = vmul.f32 %v19940_v7, %v7813_v3  ;;  %v7800_v41 = vadd.f32 %v19925_v34, %v7799_v20  ;;  %vm7833_vm0 = vmor %vm7831_vm10, %vm7832_vm13  ;;  %v12640_v29 = vld [vmem:[%s20642_s4 + $0xc] sm:$0xf0]  ;;  %v12638_v63 = vld [vmem:[%s20642_s4 + $0x4] sm:$0xf] }
 0xe3e   : > { %v20020_v50 = vpop.eup %13361  ;;  %v11674_v37 = vor.u32 %v12644_v58, %v11673_v57  ;;  %v11678_v23 = vor.u32 %v12642_v30, %v11675_v17  ;;  %v7805_v33 = vand.u32 2147483647, %v19889_v54  ;;  %8095 = vmatpush.bf16.msrb.mxu0 %v11690_v10  ;;  %8123 = vmatpush.bf16.msrb.mxu2 %v11698_v2  ;;  %v11682_v25 = vor.u32 %v12645_v52, %v11681_v44  ;;  %v11659_v3 = vld [vmem:[%s20642_s4 + $0x10] sm:$0xf0]  ;;  %v11665_v24 = vld [vmem:[%s20642_s4 + $0x8] sm:$0xf] }
 0xe3f   : > { %v7829_v4 = vmul.f32 %v19978_v1, %v7828_v15  ;;  %v7842_v8 = vmul.f32 %v20020_v50, %v19931_v21  ;;  %v7815_v11 = vadd.f32 %v19940_v7, %v7814_v27  ;;  %13363 = vtanh.f32 %v20010_v26  ;;  %v11667_v56 = vld [vmem:[%s20642_s4 + $0x18] sm:$0xf0]  ;;  %v7885_v57 = vld [vmem:[%s20135_s2 + $0x8] sm:$0xff] }
 0xe40   : > { %v11686_v6 = vor.u32 %v12643_v14, %v11683_v36  ;;  %v7804_v20 = vsel %vm20086_vm2, %v19925_v34, %v7800_v41  ;;  %vm7847_vm3 = vweird.f32 %v20020_v50  ;;  %8110 = vmatpush.bf16.msrb.mxu1 %v11678_v23  ;;  %v11662_v15 = vor.u32 %v12638_v63, %v11659_v3 }
 0xe41   : > { %v7843_v61 = vsub.f32 1.0, %v7842_v8  ;;  %v7830_v62 = vadd.f32 %v19978_v1, %v7829_v4  ;;  %v7819_v16 = vsel %vm20053_vm15, %v19940_v7, %v7815_v11  ;;  %v7852_v27 = vand.u32 2147483648, %v19931_v21 }
 0xe42   : > { %v7824_v19 = vsel %vm20000_vm11, %v7823_v59, %v7819_v16  ;;  %8096 = vmatpush.bf16.msrb.mxu0 %v11674_v37  ;;  %8124 = vmatpush.bf16.msrb.mxu2 %v11682_v25  ;;  %v11670_v34 = vor.u32 %v12639_v45, %v11667_v56  ;;  %vm7806_vm4 = vcmp.eq.f32.partialorder %v7805_v33, 8.507059e+37  ;;  %vm7846_vm5 = vweird.f32 %v19931_v21  ;;  %v7884_v59 = vld [vmem:[%s20135_s2] sm:$0xff]  ;;  %v7890_v33 = vld [vmem:[%s20135_s2 + $0x30] sm:$0xff] }
 0xe43   : > { %v7834_v12 = vsel %vm7833_vm0, %v19978_v1, %v7830_v62  ;;  %v7844_v40 = vmul.f32 %v20020_v50, %v7843_v61  ;;  %v7861_v39 = vmul.f32 %v13360_v49, %v7824_v19  ;;  %v11657_v1 = vld [vmem:[%s20642_s4] sm:$0xf]  ;;  %8138 = vmatpush.bf16.msrb.mxu3 %v11686_v6  ;;  %vm7848_vm6 = vmor %vm7846_vm5, %vm7847_vm3  ;;  %v7853_v48 = vor.u32 1.1754944e-38, %v7852_v27  ;;  %v7886_v61 = vld [vmem:[%s20135_s2 + $0x10] sm:$0xff] }
 0xe44   : > { %v7839_v46 = vsel %vm7836_vm1, %v7838_v9, %v7834_v12  ;;  %v7808_v9 = vor.u32 1.1754944e-38, %v7807_v42  ;;  %v11658_v49 = vor.u32 %v12640_v29, %v11657_v1  ;;  %v7850_v42 = vand.u32 2147483647, %v19931_v21  ;;  %8111 = vmatpush.bf16.msrb.mxu1 %v11662_v15  ;;  %v7889_v62 = vld [vmem:[%s20135_s2 + $0x28] sm:$0xff] }
 0xe45   : > { %v7859_v51 = vmul.f32 %v7839_v46, %v19748_v13  ;;  %v12641_v13 = vld [vmem:[%s20642_s4 + $0x14] sm:$0xf0]  ;;  %v13364_v32 = vpop.eup %13363  ;;  %v7845_v18 = vadd.f32 %v20020_v50, %v7844_v40 }
 0xe46   : > { %v11666_v54 = vor.u32 %v12641_v13, %v11665_v24  ;;  %v7809_v0 = vsel %vm7806_vm4, %v7808_v9, %v7804_v20  ;;  %8097 = vmatpush.bf16.msrb.mxu0 %v11658_v49  ;;  %vm7851_vm7 = vcmp.eq.f32.partialorder %v7850_v42, 8.507059e+37  ;;  %v7887_v13 = vld [vmem:[%s20135_s2 + $0x18] sm:$0xff] }
 0xe47   : > { %v20122_v53 = vadd.f32 %v7861_v39, %v7859_v51  ;;  %v7849_v60 = vsel %vm7848_vm6, %v20020_v50, %v7845_v18  ;;  %v7866_v43 = vmul.f32 %v13364_v32, %v7809_v0  ;;  %8139 = vmatpush.bf16.msrb.mxu3 %v11670_v34  ;;  %v7891_v34 = vld [vmem:[%s20135_s2 + $0x38] sm:$0xff] }
 0xe48   : > { %8125 = vmatpush.bf16.msrb.mxu2 %v11666_v54  ;;  %v7854_v22 = vsel %vm7851_vm7, %v7853_v48, %v7849_v60 }
 0xe49   : > { %13365 = vtanh.f32 %v20122_v53  ;;  %v7870_v21 = vpack.c.bf16 %v7866_v43, %v7866_v43 }
 0xe4b   : > { %v7926_v4 = vunpack.c.l.b16 %v7870_v21 }
 0xe4f   : > { %v13366_v47 = vpop.eup %13365 }
 0xe50   : > { %v7867_v38 = vmul.f32 %v13366_v47, %v7854_v22 }
 0xe52   : > { %v7871_v35 = vpack.c.bf16 %v7867_v38, %v7867_v38  ;;  %v12801_v5 = vpack.c.bf16 %v7867_v38, %v7866_v43 }
 0xe54   : > { %12802 = vst [vmem:[%s7875_s22] sm:$0xff] %v12801_v5   ;;  %v7927_v8 = vunpack.c.l.b16 %v7871_v35  ;;  %v12724_v35 = vld [vmem:[%s20643_s6 + $0x20] sm:$0xff] (%p13920_p2) }
 0xe56   : > { %v7928_v50 = vpack.c.b16 %v7927_v8, %v7926_v4 }
 0xe58   : > { %8098 = vmatmul.bf16.vlgmr.msrb.gmra.mxu0 %v7928_v50  ;;  %8112 = vmatmul.bf16.vlgmr.msrb.gmra.mxu1 %v7928_v50 }
 0xe59   : > { %8126 = vmatmul.bf16.vlgmr.msrb.gmra.mxu2 %v7928_v50  ;;  %8140 = vmatmul.bf16.vlgmr.msrb.gmra.mxu3 %v7928_v50 }
 0xed5   : > { %v8099_v11 = vpop.f32.mrf.mxu0  ;;  %v8113_v10 = vpop.f32.mrf.mxu1 }
 0xed6   : > { %v8146_v55 = vadd.f32 %v8099_v11, %v7884_v59  ;;  %v8147_v58 = vadd.f32 %v8113_v10, %v7885_v57 }
 0xed8   : > { %v11783_v30 = vmul.f32 -1.442695, %v8146_v55  ;;  %v11784_v17 = vmul.f32 -1.442695, %v8147_v58 }
 0xeda   : > { %13367 = vpow2.f32 %v11783_v30 }
 0xedb   : > { %13369 = vpow2.f32 %v11784_v17 }
 0xedc   : > { %v8127_v2 = vpop.f32.mrf.mxu2  ;;  %v8141_v46 = vpop.f32.mrf.mxu3 }
 0xedd   : > { %v8148_v31 = vadd.f32 %v8127_v2, %v7886_v61  ;;  %v8101_v44 = vpop.f32.mrf.mxu0  ;;  %v8115_v52 = vpop.f32.mrf.mxu1  ;;  %v8149_v18 = vadd.f32 %v8141_v46, %v7887_v13 }
 0xede   : > { %v8150_v41 = vadd.f32 %v8101_v44, %v7888_v28  ;;  %v8151_v16 = vadd.f32 %v8115_v52, %v7889_v62 }
 0xedf   : > { %v11785_v14 = vmul.f32 -1.442695, %v8148_v31 }
 0xee0   : > { %v13368_v36 = vpop.eup %13367  ;;  %v11786_v19 = vmul.f32 -1.442695, %v8150_v41  ;;  %v11787_v23 = vmul.f32 -1.442695, %v8151_v16 }
 0xee1   : > { %v13370_v12 = vpop.eup %13369  ;;  %v8172_v37 = vadd.f32 1.0, %v13368_v36  ;;  %13371 = vpow2.f32 %v11785_v14 }
 0xee2   : > { %v8173_v7 = vadd.f32 1.0, %v13370_v12  ;;  %13373 = vpow2.f32 %v11786_v19 }
 0xee3   : > { %13375 = vrcp.f32 %v8172_v37  ;;  %vm8183_vm10 = vweird.f32 %v8172_v37  ;;  %v8189_v54 = vand.u32 2147483648, %v8172_v37  ;;  %v8187_v43 = vand.u32 2147483647, %v8172_v37 }
 0xee4   : > { %13377 = vrcp.f32 %v8173_v7  ;;  %v8129_v40 = vpop.f32.mrf.mxu2  ;;  %v8143_v42 = vpop.f32.mrf.mxu3  ;;  %v8204_v0 = vand.u32 2147483648, %v8173_v7  ;;  %vm8198_vm11 = vweird.f32 %v8173_v7  ;;  %v8202_v38 = vand.u32 2147483647, %v8173_v7 }
 0xee5   : > { %13379 = vpow2.f32 %v11787_v23  ;;  %v8152_v39 = vadd.f32 %v8129_v40, %v7890_v33  ;;  %v8153_v4 = vadd.f32 %v8143_v42, %v7891_v34  ;;  %v8190_v50 = vor.u32 1.1754944e-38, %v8189_v54 }
 0xee6   : > { %v8205_v10 = vor.u32 1.1754944e-38, %v8204_v0  ;;  %vm8188_vm14 = vcmp.eq.f32.partialorder %v8187_v43, 8.507059e+37  ;;  %vm8203_vm15 = vcmp.eq.f32.partialorder %v8202_v38, 8.507059e+37 }
 0xee7   : > { %v13372_v1 = vpop.eup %13371  ;;  %v11788_v29 = vmul.f32 -1.442695, %v8152_v39 }
 0xee8   : > { %v13374_v51 = vpop.eup %13373  ;;  %v20143_v6 = vadd.f32 1.0, %v13372_v1 }
 0xee9   : > { %v13376_v25 = vpop.eup %13375  ;;  %v20145_v63 = vadd.f32 1.0, %v13374_v51  ;;  %13381 = vpow2.f32 %v11788_v29 }
 0xeea   : > { %v13378_v3 = vpop.eup %13377  ;;  %v8179_v24 = vmul.f32 %v13376_v25, %v8172_v37  ;;  %vm8184_vm8 = vweird.f32 %v13376_v25 }
 0xeeb   : > { %v13380_v45 = vpop.eup %13379  ;;  %v8194_v56 = vmul.f32 %v13378_v3, %v8173_v7  ;;  %13383 = vrcp.f32 %v20145_v63  ;;  %vm8199_vm9 = vweird.f32 %v13378_v3  ;;  %vm20156_vm12 = vmor %vm8183_vm10, %vm8184_vm8  ;;  %v8232_v31 = vand.u32 2147483647, %v20145_v63 }
 0xeec   : > { %v8180_v20 = vsub.f32 1.0, %v8179_v24  ;;  %v20149_v9 = vadd.f32 1.0, %v13380_v45  ;;  %13385 = vrcp.f32 %v20143_v6  ;;  %vm20161_vm13 = vmor %vm8198_vm11, %vm8199_vm9  ;;  %v8234_v44 = vand.u32 2147483648, %v20145_v63 }
 0xeed   : > { %v8195_v32 = vsub.f32 1.0, %v8194_v56  ;;  %vm8228_vm2 = vweird.f32 %v20145_v63  ;;  %vm8233_vm6 = vcmp.eq.f32.partialorder %v8232_v31, 8.507059e+37  ;;  %vm8213_vm10 = vweird.f32 %v20143_v6 }
 0xeee   : > { %v8181_v49 = vmul.f32 %v13376_v25, %v8180_v20  ;;  %13387 = vrcp.f32 %v20149_v9  ;;  %v8249_v16 = vand.u32 2147483648, %v20149_v9  ;;  %v8247_v14 = vand.u32 2147483647, %v20149_v9 }
 0xeef   : > { %v13382_v15 = vpop.eup %13381  ;;  %v8196_v27 = vmul.f32 %v13378_v3, %v8195_v32  ;;  %13389 = vtanh.f32 %v8149_v18  ;;  %vm8243_vm3 = vweird.f32 %v20149_v9  ;;  %v8235_v33 = vor.u32 1.1754944e-38, %v8234_v44 }
 0xef0   : > { %v8182_v60 = vadd.f32 %v13376_v25, %v8181_v49  ;;  %v20154_v48 = vadd.f32 1.0, %v13382_v15  ;;  %v8250_v39 = vor.u32 1.1754944e-38, %v8249_v16  ;;  %vm8248_vm7 = vcmp.eq.f32.partialorder %v8247_v14, 8.507059e+37 }
 0xef1   : > { %v8197_v22 = vadd.f32 %v13378_v3, %v8196_v27  ;;  %v13384_v21 = vpop.eup %13383 }
 0xef2   : > { %v8186_v5 = vsel %vm20156_vm12, %v13376_v25, %v8182_v60  ;;  %13391 = vrcp.f32 %v20154_v48  ;;  %v20168_v8 = vpop.eup %13385  ;;  %v8224_v57 = vmul.f32 %v13384_v21, %v20145_v63  ;;  %vm8229_vm0 = vweird.f32 %v13384_v21 }
 0xef3   : > { %v8201_v59 = vsel %vm20161_vm13, %v13378_v3, %v8197_v22  ;;  %v8191_v55 = vsel %vm8188_vm14, %v8190_v50, %v8186_v5  ;;  %v8209_v17 = vmul.f32 %v20168_v8, %v20143_v6  ;;  %13393 = vtanh.f32 %v8153_v4  ;;  %vm8230_vm4 = vmor %vm8228_vm2, %vm8229_vm0  ;;  %v12723_v5 = vld [vmem:[%s20643_s6 + $0x18] sm:$0xff] (%p13920_p2)  ;;  %v12722_v4 = vld [vmem:[%s20643_s6 + $0x10] sm:$0xff] (%p13920_p2) }
 0xef4   : > { %v13388_v11 = vpop.eup %13387  ;;  %v8225_v58 = vsub.f32 1.0, %v8224_v57  ;;  %v8206_v61 = vsel %vm8203_vm15, %v8205_v10, %v8201_v59  ;;  %vm8214_vm8 = vweird.f32 %v20168_v8  ;;  %v8264_v32 = vand.u32 2147483648, %v20154_v48  ;;  %v12720_v50 = vld [vmem:[%s20643_s6] sm:$0xff] (%p13920_p2) }
 0xef5   : > { %v8239_v30 = vmul.f32 %v13388_v11, %v20149_v9  ;;  %v13390_v28 = vpop.eup %13389  ;;  %v8270_v36 = vmul.f32 %v8206_v61, %v20010_v26  ;;  %vm8244_vm1 = vweird.f32 %v13388_v11  ;;  %v8210_v37 = vsub.f32 1.0, %v8209_v17  ;;  %vm20192_vm11 = vmor %vm8213_vm10, %vm8214_vm8 }
 0xef6   : > { %v8226_v2 = vmul.f32 %v13384_v21, %v8225_v58  ;;  %v8272_v41 = vmul.f32 %v13390_v28, %v8191_v55  ;;  %vm8245_vm5 = vmor %vm8243_vm3, %vm8244_vm1  ;;  %v8219_v9 = vand.u32 2147483648, %v20143_v6  ;;  %vm8258_vm12 = vweird.f32 %v20154_v48 }
 0xef7   : > { %v8240_v62 = vsub.f32 1.0, %v8239_v30  ;;  %v8211_v25 = vmul.f32 %v20168_v8, %v8210_v37  ;;  %v8262_v49 = vand.u32 2147483647, %v20154_v48  ;;  %v8265_v42 = vor.u32 1.1754944e-38, %v8264_v32 }
 0xef8   : > { %v13392_v52 = vpop.eup %13391  ;;  %v8227_v23 = vadd.f32 %v13384_v21, %v8226_v2  ;;  %v8274_v26 = vadd.f32 %v8272_v41, %v8270_v36   ;;  %v8220_v34 = vor.u32 1.1754944e-38, %v8219_v9 }
 0xef9   : > { %v8241_v19 = vmul.f32 %v13388_v11, %v8240_v62  ;;  %v8254_v12 = vmul.f32 %v13392_v52, %v20154_v48  ;;  %v13394_v46 = vpop.eup %13393  ;;  %v8212_v56 = vadd.f32 %v20168_v8, %v8211_v25  ;;  %vm8259_vm9 = vweird.f32 %v13392_v52  ;;  %v12727_v48 = vld [vmem:[%s20643_s6 + $0x38] sm:$0xff] (%p13920_p2)  ;;  %v20255_v25 = vld [vmem:[%s20644_s7] ss:$0 sm:$0xff] (%p13920_p2) }
 0xefa   : > { %v8231_v1 = vsel %vm8230_vm4, %v13384_v21, %v8227_v23  ;;  %13395 = vtanh.f32 %v8274_v26  ;;  %vm8260_vm13 = vmor %vm8258_vm12, %vm8259_vm9  ;;  %vm8263_vm15 = vcmp.eq.f32.partialorder %v8262_v49, 8.507059e+37  ;;  %8742 = vmatpush.bf16.msra.mxu0 (%p13920_p2), %v12727_v48  ;;  %12823 = vmatpush.bf16.msra.mxu1 (%p13920_p2), %v12727_v48  ;;  %v12726_v21 = vld [vmem:[%s20643_s6 + $0x30] sm:$0xff] (%p13920_p2)  ;;  %9089 = vst [vmem:[%s20647_s10] sm:$0xff] (%p13920_p2), %v8274_v26 }
 0xefb   : > { %v8255_v7 = vsub.f32 1.0, %v8254_v12  ;;  %v8242_v40 = vadd.f32 %v13388_v11, %v8241_v19  ;;  %v8236_v29 = vsel %vm8233_vm6, %v8235_v33, %v8231_v1  ;;  %v8216_v15 = vsel %vm20192_vm11, %v20168_v8, %v8212_v56  ;;  %12824 = vmatpush.bf16.msra.mxu2 (%p13920_p2), %v12727_v48  ;;  %12825 = vmatpush.bf16.msra.mxu3 (%p13920_p2), %v12727_v48  ;;  %v12721_v8 = vld [vmem:[%s20643_s6 + $0x8] sm:$0xff] (%p13920_p2) }
 0xefc   : > { %v8273_v24 = vmul.f32 %v13394_v46, %v8236_v29 }
 0xefd   : > { %v8246_v51 = vsel %vm8245_vm5, %v13388_v11, %v8242_v40  ;;  %v8256_v3 = vmul.f32 %v13392_v52, %v8255_v7 }
 0xefe   : > { %v8251_v63 = vsel %vm8248_vm7, %v8250_v39, %v8246_v51  ;;  %v20910_v39 = vmov %v8274_v26  ;;  %8743 = vmatpush.bf16.msra.mxu0 (%p13920_p2), %v12726_v21  ;;  %12826 = vmatpush.bf16.msra.mxu1 (%p13920_p2), %v12726_v21 }
 0xeff   : > { %v8271_v13 = vmul.f32 %v8251_v63, %v20122_v53  ;;  %v8257_v20 = vadd.f32 %v13392_v52, %v8256_v3  ;;  %v8217_v53 = vand.u32 2147483647, %v20143_v6  ;;  %12827 = vmatpush.bf16.msra.mxu2 (%p13920_p2), %v12726_v21  ;;  %12828 = vmatpush.bf16.msra.mxu3 (%p13920_p2), %v12726_v21 }
 0xf00   : > { %v13396_v54 = vpop.eup %13395 }
 0xf01   : > { %v8275_v45 = vadd.f32 %v8273_v24, %v8271_v13   ;;  %v8261_v27 = vsel %vm8260_vm13, %v13392_v52, %v8257_v20  ;;  %vm8218_vm14 = vcmp.eq.f32.partialorder %v8217_v53, 8.507059e+37 }
 0xf02   : > { %v8221_v60 = vsel %vm8218_vm14, %v8220_v34, %v8216_v15  ;;  %v8266_v6 = vsel %vm8263_vm15, %v8265_v42, %v8261_v27 }
 0xf03   : > { %13397 = vtanh.f32 %v8275_v45  ;;  %v8278_v43 = vmul.f32 %v13396_v54, %v8221_v60   ;;  %v20909_v40 = vmov %v8275_v45  ;;  %9090 = vst [vmem:[%s20647_s10 + $0x8] sm:$0xff] (%p13920_p2), %v8275_v45 }
 0xf05   : > { %v20912_v37 = vmov %v8278_v43  ;;  %9087 = vst [vmem:[%s20646_s9] sm:$0xff] (%p13920_p2), %v8278_v43 }
 0xf09   : > { %v13398_v0 = vpop.eup %13397 }
 0xf0a   : > { %v8279_v47 = vmul.f32 %v13398_v0, %v8266_v6   ;;  %854 = sbr.rel (!%p13920_p2) target bundleno = 420 (0x1a4), region = 113 }
 0xf0c   : > { %v12806_v22 = vpack.c.bf16 %v8279_v47, %v8278_v43  ;;  %v20911_v38 = vmov %v8279_v47  ;;  %9088 = vst [vmem:[%s20646_s9 + $0x8] sm:$0xff] (%p13920_p2), %v8279_v47 }
 0xf0d   :  { %v12725_v38 = vld [vmem:[%s20643_s6 + $0x28] sm:$0xff] (%p13920_p2) }
 0xf0e   : > { %12807 = vst [vmem:[%s8287_s11] sm:$0xff] %v12806_v22   ;;  %8744 = vmatpush.bf16.msra.mxu0 (%p13920_p2), %v12725_v38  ;;  %12829 = vmatpush.bf16.msra.mxu1 (%p13920_p2), %v12725_v38 }
 0xf0f   :  { %12830 = vmatpush.bf16.msra.mxu2 %v12725_v38  ;;  %12831 = vmatpush.bf16.msra.mxu3 %v12725_v38 }
 0xf12   :  { %8745 = vmatpush.bf16.msra.mxu0 %v12724_v35  ;;  %12832 = vmatpush.bf16.msra.mxu1 %v12724_v35 }
 0xf13   :  { %12833 = vmatpush.bf16.msra.mxu2 %v12724_v35  ;;  %12834 = vmatpush.bf16.msra.mxu3 %v12724_v35 }
 0xf15   :  { %v12672_v59 = vld [vmem:[#allocation3] sm:$0xff]  ;;  %v12673_v55 = vld [vmem:[#allocation3 + $0x8] sm:$0xff]  ;;  %v12674_v61 = vld [vmem:[#allocation3 + $0x10] sm:$0xff] }
 0xf16   :  { %8746 = vmatpush.bf16.msra.mxu0 %v12723_v5  ;;  %12835 = vmatpush.bf16.msra.mxu1 %v12723_v5  ;;  %v12684_v57 = vld [vmem:[#allocation3 + $0x60] sm:$0xff]  ;;  %v12685_v58 = vld [vmem:[#allocation3 + $0x68] sm:$0xff]  ;;  %v12686_v28 = vld [vmem:[#allocation3 + $0x70] sm:$0xff] }
 0xf17   :  { %12836 = vmatpush.bf16.msra.mxu2 %v12723_v5  ;;  %12837 = vmatpush.bf16.msra.mxu3 %v12723_v5  ;;  %v12696_v11 = vld [vmem:[#allocation3 + $0xc0] sm:$0xff]  ;;  %v12697_v30 = vld [vmem:[#allocation3 + $0xc8] sm:$0xff]  ;;  %v12698_v62 = vld [vmem:[#allocation3 + $0xd0] sm:$0xff] }
 0xf18   :  { %v12708_v10 = vld [vmem:[#allocation3 + $0x120] sm:$0xff]  ;;  %v12709_v17 = vld [vmem:[#allocation3 + $0x128] sm:$0xff]  ;;  %v12710_v2 = vld [vmem:[#allocation3 + $0x130] sm:$0xff] }
 0xf19   :  { %v12675_v31 = vld [vmem:[#allocation3 + $0x18] sm:$0xff]  ;;  %v12676_v16 = vld [vmem:[#allocation3 + $0x20] sm:$0xff]  ;;  %v12677_v12 = vld [vmem:[#allocation3 + $0x28] sm:$0xff] }
 0xf1a   :  { %8747 = vmatpush.bf16.msra.mxu0 %v12722_v4  ;;  %12838 = vmatpush.bf16.msra.mxu1 %v12722_v4  ;;  %v12687_v44 = vld [vmem:[#allocation3 + $0x78] sm:$0xff]  ;;  %v12688_v14 = vld [vmem:[#allocation3 + $0x80] sm:$0xff]  ;;  %v12689_v37 = vld [vmem:[#allocation3 + $0x88] sm:$0xff] }
 0xf1b   :  { %12839 = vmatpush.bf16.msra.mxu2 %v12722_v4  ;;  %12840 = vmatpush.bf16.msra.mxu3 %v12722_v4  ;;  %v12699_v52 = vld [vmem:[#allocation3 + $0xd8] sm:$0xff]  ;;  %v12700_v36 = vld [vmem:[#allocation3 + $0xe0] sm:$0xff]  ;;  %v12701_v23 = vld [vmem:[#allocation3 + $0xe8] sm:$0xff] }
 0xf1c   :  { %v12711_v41 = vld [vmem:[#allocation3 + $0x138] sm:$0xff]  ;;  %v12712_v19 = vld [vmem:[#allocation3 + $0x140] sm:$0xff]  ;;  %v12713_v7 = vld [vmem:[#allocation3 + $0x148] sm:$0xff] }
 0xf1d   :  { %v12678_v33 = vld [vmem:[#allocation3 + $0x30] sm:$0xff]  ;;  %v12679_v1 = vld [vmem:[#allocation3 + $0x38] sm:$0xff]  ;;  %v12680_v3 = vld [vmem:[#allocation3 + $0x40] sm:$0xff] }
 0xf1e   :  { %8748 = vmatpush.bf16.msra.mxu0 %v12721_v8  ;;  %12841 = vmatpush.bf16.msra.mxu1 %v12721_v8  ;;  %v12690_v40 = vld [vmem:[#allocation3 + $0x90] sm:$0xff]  ;;  %v12691_v26 = vld [vmem:[#allocation3 + $0x98] sm:$0xff]  ;;  %v12692_v63 = vld [vmem:[#allocation3 + $0xa0] sm:$0xff] }
 0xf1f   :  { %12842 = vmatpush.bf16.msra.mxu2 %v12721_v8  ;;  %12843 = vmatpush.bf16.msra.mxu3 %v12721_v8  ;;  %v12702_v46 = vld [vmem:[#allocation3 + $0xf0] sm:$0xff]  ;;  %v12703_v29 = vld [vmem:[#allocation3 + $0xf8] sm:$0xff]  ;;  %v12704_v45 = vld [vmem:[#allocation3 + $0x100] sm:$0xff] }
 0xf20   :  { %v12714_v39 = vld [vmem:[#allocation3 + $0x150] sm:$0xff]  ;;  %v12715_v51 = vld [vmem:[#allocation3 + $0x158] sm:$0xff]  ;;  %v12716_v56 = vld [vmem:[#allocation3 + $0x160] sm:$0xff] }
 0xf21   :  { %v12681_v60 = vld [vmem:[#allocation3 + $0x48] sm:$0xff] }
 0xf22   :  { %8749 = vmatpush.bf16.msra.mxu0 %v12720_v50  ;;  %12844 = vmatpush.bf16.msra.mxu1 %v12720_v50  ;;  %v12693_v6 = vld [vmem:[#allocation3 + $0xa8] sm:$0xff] }
 0xf23   :  { %12845 = vmatpush.bf16.msra.mxu2 %v12720_v50  ;;  %12846 = vmatpush.bf16.msra.mxu3 %v12720_v50  ;;  %v12705_v21 = vld [vmem:[#allocation3 + $0x108] sm:$0xff] }
 0xf24   :  { %v12717_v38 = vld [vmem:[#allocation3 + $0x168] sm:$0xff] }
 0xf25   :  { %8750 = vmatmul.bf16.vlgmr.msra.gmra.mxu0 %v12672_v59  ;;  %8810 = vmatmul.bf16.vlgmr.msra.gmra.mxu1 %v12684_v57 }
 0xf26   :  { %8870 = vmatmul.bf16.vlgmr.msra.gmra.mxu2 %v12696_v11  ;;  %8930 = vmatmul.bf16.vlgmr.msra.gmra.mxu3 %v12708_v10 }
 0xf35   :  { %8755 = vmatmul.bf16.gmra.mxu0 %v12673_v55  ;;  %8815 = vmatmul.bf16.gmra.mxu1 %v12685_v58 }
 0xf36   :  { %8875 = vmatmul.bf16.gmra.mxu2 %v12697_v30  ;;  %8935 = vmatmul.bf16.gmra.mxu3 %v12709_v17  ;;  %v12682_v17 = vld [vmem:[#allocation3 + $0x50] sm:$0xff] }
 0xf45   :  { %8760 = vmatmul.bf16.gmra.mxu0 %v12674_v61  ;;  %8820 = vmatmul.bf16.gmra.mxu1 %v12686_v28  ;;  %v12694_v61 = vld [vmem:[#allocation3 + $0xb0] sm:$0xff] }
 0xf46   :  { %8880 = vmatmul.bf16.gmra.mxu2 %v12698_v62  ;;  %8940 = vmatmul.bf16.gmra.mxu3 %v12710_v2 }
 0xf55   :  { %8765 = vmatmul.bf16.gmra.mxu0 %v12675_v31  ;;  %8825 = vmatmul.bf16.gmra.mxu1 %v12687_v44  ;;  %v12706_v44 = vld [vmem:[#allocation3 + $0x110] sm:$0xff] }
 0xf56   :  { %8885 = vmatmul.bf16.gmra.mxu2 %v12699_v52  ;;  %8945 = vmatmul.bf16.gmra.mxu3 %v12711_v41  ;;  %v12718_v52 = vld [vmem:[#allocation3 + $0x170] sm:$0xff] }
 0xf65   :  { %8770 = vmatmul.bf16.gmra.mxu0 %v12676_v16  ;;  %8830 = vmatmul.bf16.gmra.mxu1 %v12688_v14 }
 0xf66   :  { %8890 = vmatmul.bf16.gmra.mxu2 %v12700_v36  ;;  %8950 = vmatmul.bf16.gmra.mxu3 %v12712_v19 }
 0xf75   :  { %8775 = vmatmul.bf16.gmra.mxu0 %v12677_v12  ;;  %8835 = vmatmul.bf16.gmra.mxu1 %v12689_v37 }
 0xf76   :  { %8895 = vmatmul.bf16.gmra.mxu2 %v12701_v23  ;;  %8955 = vmatmul.bf16.gmra.mxu3 %v12713_v7 }
 0xf85   :  { %8780 = vmatmul.bf16.gmra.mxu0 %v12678_v33  ;;  %8840 = vmatmul.bf16.gmra.mxu1 %v12690_v40 }
 0xf86   :  { %8900 = vmatmul.bf16.gmra.mxu2 %v12702_v46  ;;  %8960 = vmatmul.bf16.gmra.mxu3 %v12714_v39  ;;  %v12683_v39 = vld [vmem:[#allocation3 + $0x58] sm:$0xff] }
 0xf95   :  { %8785 = vmatmul.bf16.gmra.mxu0 %v12679_v1  ;;  %8845 = vmatmul.bf16.gmra.mxu1 %v12691_v26  ;;  %v12695_v1 = vld [vmem:[#allocation3 + $0xb8] sm:$0xff] }
 0xf96   :  { %8905 = vmatmul.bf16.gmra.mxu2 %v12703_v29  ;;  %8965 = vmatmul.bf16.gmra.mxu3 %v12715_v51 }
 0xfa2   :  { %v8751_v24 = vpop.f32.mrf.mxu0  ;;  %v8811_v13 = vpop.f32.mrf.mxu1 }
 0xfa3   :  { %v8752_v20 = vadd.f32 %v20255_v25, %v8751_v24  ;;  %v8812_v9 = vadd.f32 %v20255_v25, %v8811_v13  ;;  %v12719_v24 = vld [vmem:[#allocation3 + $0x178] sm:$0xff] }
 0xfa5   :  { %8991 = vst [vmem:[%s20645_s8] sm:$0xff] %v8752_v20  ;;  %8790 = vmatmul.bf16.gmra.mxu0 %v12680_v3  ;;  %8850 = vmatmul.bf16.gmra.mxu1 %v12692_v63  ;;  %v12707_v63 = vld [vmem:[#allocation3 + $0x118] sm:$0xff] }
 0xfa6   :  { %9015 = vst [vmem:[%s20645_s8 + $0xc0] sm:$0xff] %v8812_v9  ;;  %8910 = vmatmul.bf16.gmra.mxu2 %v12704_v45  ;;  %8970 = vmatmul.bf16.gmra.mxu3 %v12716_v56 }
 0xfa9   :  { %v8871_v32 = vpop.f32.mrf.mxu2  ;;  %v8931_v18 = vpop.f32.mrf.mxu3 }
 0xfaa   :  { %v8872_v53 = vadd.f32 %v20255_v25, %v8871_v32  ;;  %v8932_v49 = vadd.f32 %v20255_v25, %v8931_v18  ;;  %v8753_v15 = vpop.f32.mrf.mxu0  ;;  %v8813_v27 = vpop.f32.mrf.mxu1 }
 0xfab   :  { %v8754_v54 = vadd.f32 %v20255_v25, %v8753_v15  ;;  %v8814_v34 = vadd.f32 %v20255_v25, %v8813_v27 }
 0xfac   :  { %9039 = vst [vmem:[%s20645_s8 + $0x180] sm:$0xff] %v8872_v53 }
 0xfad   :  { %9063 = vst [vmem:[%s20645_s8 + $0x240] sm:$0xff] %v8932_v49 }
 0xfae   :  { %8992 = vst [vmem:[%s20645_s8 + $0x8] sm:$0xff] %v8754_v54 }
 0xfaf   :  { %9016 = vst [vmem:[%s20645_s8 + $0xc8] sm:$0xff] %v8814_v34 }
 0xfb1   :  { %v8873_v42 = vpop.f32.mrf.mxu2  ;;  %v8933_v0 = vpop.f32.mrf.mxu3 }
 0xfb2   :  { %v8874_v43 = vadd.f32 %v20255_v25, %v8873_v42  ;;  %v8934_v47 = vadd.f32 %v20255_v25, %v8933_v0  ;;  %v8756_v22 = vpop.f32.mrf.mxu0  ;;  %v8816_v48 = vpop.f32.mrf.mxu1 }
 0xfb3   :  { %v8757_v35 = vadd.f32 %v20255_v25, %v8756_v22  ;;  %v8817_v5 = vadd.f32 %v20255_v25, %v8816_v48 }
 0xfb4   :  { %9040 = vst [vmem:[%s20645_s8 + $0x188] sm:$0xff] %v8874_v43 }
 0xfb5   :  { %9064 = vst [vmem:[%s20645_s8 + $0x248] sm:$0xff] %v8934_v47  ;;  %8795 = vmatmul.bf16.gmra.mxu0 %v12681_v60  ;;  %8855 = vmatmul.bf16.gmra.mxu1 %v12693_v6 }
 0xfb6   :  { %8993 = vst [vmem:[%s20645_s8 + $0x10] sm:$0xff] %v8757_v35  ;;  %8915 = vmatmul.bf16.gmra.mxu2 %v12705_v21  ;;  %8975 = vmatmul.bf16.gmra.mxu3 %v12717_v38 }
 0xfb7   :  { %9017 = vst [vmem:[%s20645_s8 + $0xd0] sm:$0xff] %v8817_v5 }
 0xfb9   :  { %v8876_v4 = vpop.f32.mrf.mxu2  ;;  %v8936_v8 = vpop.f32.mrf.mxu3 }
 0xfba   :  { %v8877_v50 = vadd.f32 %v20255_v25, %v8876_v4  ;;  %v8937_v59 = vadd.f32 %v20255_v25, %v8936_v8  ;;  %v8758_v57 = vpop.f32.mrf.mxu0  ;;  %v8818_v11 = vpop.f32.mrf.mxu1 }
 0xfbb   :  { %v8759_v10 = vadd.f32 %v20255_v25, %v8758_v57  ;;  %v8819_v55 = vadd.f32 %v20255_v25, %v8818_v11 }
 0xfbc   :  { %9041 = vst [vmem:[%s20645_s8 + $0x190] sm:$0xff] %v8877_v50 }
 0xfbd   :  { %9065 = vst [vmem:[%s20645_s8 + $0x250] sm:$0xff] %v8937_v59 }
 0xfbe   :  { %8994 = vst [vmem:[%s20645_s8 + $0x18] sm:$0xff] %v8759_v10 }
 0xfbf   :  { %9018 = vst [vmem:[%s20645_s8 + $0xd8] sm:$0xff] %v8819_v55 }
 0xfc1   :  { %v8878_v58 = vpop.f32.mrf.mxu2  ;;  %v8938_v30 = vpop.f32.mrf.mxu3 }
 0xfc2   :  { %v8879_v28 = vadd.f32 %v20255_v25, %v8878_v58  ;;  %v8939_v62 = vadd.f32 %v20255_v25, %v8938_v30  ;;  %v8761_v2 = vpop.f32.mrf.mxu0  ;;  %v8821_v31 = vpop.f32.mrf.mxu1 }
 0xfc3   :  { %v8762_v41 = vadd.f32 %v20255_v25, %v8761_v2  ;;  %v8822_v16 = vadd.f32 %v20255_v25, %v8821_v31 }
 0xfc4   :  { %9042 = vst [vmem:[%s20645_s8 + $0x198] sm:$0xff] %v8879_v28 }
 0xfc5   :  { %9066 = vst [vmem:[%s20645_s8 + $0x258] sm:$0xff] %v8939_v62  ;;  %8800 = vmatmul.bf16.gmra.mxu0 %v12682_v17  ;;  %8860 = vmatmul.bf16.gmra.mxu1 %v12694_v61 }
 0xfc6   :  { %8995 = vst [vmem:[%s20645_s8 + $0x20] sm:$0xff] %v8762_v41  ;;  %8920 = vmatmul.bf16.gmra.mxu2 %v12706_v44  ;;  %8980 = vmatmul.bf16.gmra.mxu3 %v12718_v52 }
 0xfc7   :  { %9019 = vst [vmem:[%s20645_s8 + $0xe0] sm:$0xff] %v8822_v16 }
 0xfc9   :  { %v8881_v14 = vpop.f32.mrf.mxu2  ;;  %v8941_v36 = vpop.f32.mrf.mxu3 }
 0xfca   :  { %v8882_v19 = vadd.f32 %v20255_v25, %v8881_v14  ;;  %v8942_v12 = vadd.f32 %v20255_v25, %v8941_v36  ;;  %v8763_v37 = vpop.f32.mrf.mxu0  ;;  %v8823_v23 = vpop.f32.mrf.mxu1 }
 0xfcb   :  { %v8764_v7 = vadd.f32 %v20255_v25, %v8763_v37  ;;  %v8824_v33 = vadd.f32 %v20255_v25, %v8823_v23 }
 0xfcc   :  { %9043 = vst [vmem:[%s20645_s8 + $0x1a0] sm:$0xff] %v8882_v19 }
 0xfcd   :  { %9067 = vst [vmem:[%s20645_s8 + $0x260] sm:$0xff] %v8942_v12 }
 0xfce   :  { %8996 = vst [vmem:[%s20645_s8 + $0x28] sm:$0xff] %v8764_v7 }
 0xfcf   :  { %9020 = vst [vmem:[%s20645_s8 + $0xe8] sm:$0xff] %v8824_v33 }
 0xfd1   :  { %v8883_v40 = vpop.f32.mrf.mxu2  ;;  %v8943_v46 = vpop.f32.mrf.mxu3 }
 0xfd2   :  { %v8884_v26 = vadd.f32 %v20255_v25, %v8883_v40  ;;  %v8944_v29 = vadd.f32 %v20255_v25, %v8943_v46  ;;  %v8766_v51 = vpop.f32.mrf.mxu0  ;;  %v8826_v3 = vpop.f32.mrf.mxu1 }
 0xfd3   :  { %v8767_v13 = vadd.f32 %v20255_v25, %v8766_v51  ;;  %v8827_v45 = vadd.f32 %v20255_v25, %v8826_v3 }
 0xfd4   :  { %9044 = vst [vmem:[%s20645_s8 + $0x1a8] sm:$0xff] %v8884_v26 }
 0xfd5   :  { %9068 = vst [vmem:[%s20645_s8 + $0x268] sm:$0xff] %v8944_v29  ;;  %8805 = vmatmul.bf16.gmra.mxu0 %v12683_v39  ;;  %8865 = vmatmul.bf16.gmra.mxu1 %v12695_v1 }
 0xfd6   :  { %8997 = vst [vmem:[%s20645_s8 + $0x30] sm:$0xff] %v8767_v13  ;;  %8925 = vmatmul.bf16.gmra.mxu2 %v12707_v63  ;;  %8985 = vmatmul.bf16.gmra.mxu3 %v12719_v24 }
 0xfd7   :  { %9021 = vst [vmem:[%s20645_s8 + $0xf0] sm:$0xff] %v8827_v45 }
 0xfd9   :  { %v8886_v56 = vpop.f32.mrf.mxu2  ;;  %v8946_v20 = vpop.f32.mrf.mxu3 }
 0xfda   :  { %v8887_v9 = vadd.f32 %v20255_v25, %v8886_v56  ;;  %v8947_v32 = vadd.f32 %v20255_v25, %v8946_v20  ;;  %v8768_v18 = vpop.f32.mrf.mxu0  ;;  %v8828_v53 = vpop.f32.mrf.mxu1 }
 0xfdb   :  { %v8769_v49 = vadd.f32 %v20255_v25, %v8768_v18  ;;  %v8829_v15 = vadd.f32 %v20255_v25, %v8828_v53 }
 0xfdc   :  { %9045 = vst [vmem:[%s20645_s8 + $0x1b0] sm:$0xff] %v8887_v9 }
 0xfdd   :  { %9069 = vst [vmem:[%s20645_s8 + $0x270] sm:$0xff] %v8947_v32 }
 0xfde   :  { %8998 = vst [vmem:[%s20645_s8 + $0x38] sm:$0xff] %v8769_v49 }
 0xfdf   :  { %9022 = vst [vmem:[%s20645_s8 + $0xf8] sm:$0xff] %v8829_v15 }
 0xfe1   :  { %v8888_v27 = vpop.f32.mrf.mxu2  ;;  %v8948_v54 = vpop.f32.mrf.mxu3 }
 0xfe2   :  { %v8889_v34 = vadd.f32 %v20255_v25, %v8888_v27  ;;  %v8949_v42 = vadd.f32 %v20255_v25, %v8948_v54  ;;  %v8771_v0 = vpop.f32.mrf.mxu0  ;;  %v8831_v60 = vpop.f32.mrf.mxu1 }
 0xfe3   :  { %v8772_v6 = vadd.f32 %v20255_v25, %v8771_v0  ;;  %v8832_v43 = vadd.f32 %v20255_v25, %v8831_v60 }
 0xfe4   :  { %9046 = vst [vmem:[%s20645_s8 + $0x1b8] sm:$0xff] %v8889_v34 }
 0xfe5   :  { %9070 = vst [vmem:[%s20645_s8 + $0x278] sm:$0xff] %v8949_v42 }
 0xfe6   :  { %8999 = vst [vmem:[%s20645_s8 + $0x40] sm:$0xff] %v8772_v6 }
 0xfe7   :  { %9023 = vst [vmem:[%s20645_s8 + $0x100] sm:$0xff] %v8832_v43 }
 0xfe9   :  { %v8891_v47 = vpop.f32.mrf.mxu2  ;;  %v8951_v22 = vpop.f32.mrf.mxu3 }
 0xfea   :  { %v8892_v48 = vadd.f32 %v20255_v25, %v8891_v47  ;;  %v8952_v21 = vadd.f32 %v20255_v25, %v8951_v22  ;;  %v8773_v38 = vpop.f32.mrf.mxu0  ;;  %v8833_v35 = vpop.f32.mrf.mxu1 }
 0xfeb   :  { %v8774_v5 = vadd.f32 %v20255_v25, %v8773_v38  ;;  %v8834_v4 = vadd.f32 %v20255_v25, %v8833_v35 }
 0xfec   :  { %9047 = vst [vmem:[%s20645_s8 + $0x1c0] sm:$0xff] %v8892_v48 }
 0xfed   :  { %9071 = vst [vmem:[%s20645_s8 + $0x280] sm:$0xff] %v8952_v21 }
 0xfee   :  { %9000 = vst [vmem:[%s20645_s8 + $0x48] sm:$0xff] %v8774_v5 }
 0xfef   :  { %9024 = vst [vmem:[%s20645_s8 + $0x108] sm:$0xff] %v8834_v4 }
 0xff1   :  { %v8893_v8 = vpop.f32.mrf.mxu2  ;;  %v8953_v50 = vpop.f32.mrf.mxu3 }
 0xff2   :  { %v8894_v59 = vadd.f32 %v20255_v25, %v8893_v8  ;;  %v8954_v57 = vadd.f32 %v20255_v25, %v8953_v50  ;;  %v8776_v11 = vpop.f32.mrf.mxu0  ;;  %v8836_v10 = vpop.f32.mrf.mxu1 }
 0xff3   :  { %v8777_v55 = vadd.f32 %v20255_v25, %v8776_v11  ;;  %v8837_v58 = vadd.f32 %v20255_v25, %v8836_v10 }
 0xff4   :  { %9048 = vst [vmem:[%s20645_s8 + $0x1c8] sm:$0xff] %v8894_v59 }
 0xff5   :  { %9072 = vst [vmem:[%s20645_s8 + $0x288] sm:$0xff] %v8954_v57 }
 0xff6   :  { %9001 = vst [vmem:[%s20645_s8 + $0x50] sm:$0xff] %v8777_v55 }
 0xff7   :  { %9025 = vst [vmem:[%s20645_s8 + $0x110] sm:$0xff] %v8837_v58 }
 0xff9   :  { %v8896_v30 = vpop.f32.mrf.mxu2  ;;  %v8956_v17 = vpop.f32.mrf.mxu3 }
 0xffa   :  { %v8897_v61 = vadd.f32 %v20255_v25, %v8896_v30  ;;  %v8957_v28 = vadd.f32 %v20255_v25, %v8956_v17  ;;  %v8778_v62 = vpop.f32.mrf.mxu0  ;;  %v8838_v2 = vpop.f32.mrf.mxu1 }
 0xffb   :  { %v8779_v31 = vadd.f32 %v20255_v25, %v8778_v62  ;;  %v8839_v44 = vadd.f32 %v20255_v25, %v8838_v2 }
 0xffc   :  { %9049 = vst [vmem:[%s20645_s8 + $0x1d0] sm:$0xff] %v8897_v61 }
 0xffd   :  { %9073 = vst [vmem:[%s20645_s8 + $0x290] sm:$0xff] %v8957_v28 }
 0xffe   :  { %9002 = vst [vmem:[%s20645_s8 + $0x58] sm:$0xff] %v8779_v31 }
 0xfff   :  { %9026 = vst [vmem:[%s20645_s8 + $0x118] sm:$0xff] %v8839_v44 }
0x1001   :  { %v8898_v52 = vpop.f32.mrf.mxu2  ;;  %v8958_v41 = vpop.f32.mrf.mxu3 }
0x1002   :  { %v8899_v16 = vadd.f32 %v20255_v25, %v8898_v52  ;;  %v8959_v14 = vadd.f32 %v20255_v25, %v8958_v41  ;;  %v8781_v36 = vpop.f32.mrf.mxu0  ;;  %v8841_v19 = vpop.f32.mrf.mxu1 }
0x1003   :  { %v8782_v12 = vadd.f32 %v20255_v25, %v8781_v36  ;;  %v8842_v37 = vadd.f32 %v20255_v25, %v8841_v19 }
0x1004   :  { %9050 = vst [vmem:[%s20645_s8 + $0x1d8] sm:$0xff] %v8899_v16 }
0x1005   :  { %9074 = vst [vmem:[%s20645_s8 + $0x298] sm:$0xff] %v8959_v14 }
0x1006   :  { %9003 = vst [vmem:[%s20645_s8 + $0x60] sm:$0xff] %v8782_v12 }
0x1007   :  { %9027 = vst [vmem:[%s20645_s8 + $0x120] sm:$0xff] %v8842_v37 }
0x1009   :  { %v8901_v23 = vpop.f32.mrf.mxu2  ;;  %v8961_v7 = vpop.f32.mrf.mxu3 }
0x100a   :  { %v8902_v33 = vadd.f32 %v20255_v25, %v8901_v23  ;;  %v8962_v40 = vadd.f32 %v20255_v25, %v8961_v7  ;;  %v8783_v46 = vpop.f32.mrf.mxu0  ;;  %v8843_v39 = vpop.f32.mrf.mxu1 }
0x100b   :  { %v8784_v1 = vadd.f32 %v20255_v25, %v8783_v46  ;;  %v8844_v26 = vadd.f32 %v20255_v25, %v8843_v39 }
0x100c   :  { %9051 = vst [vmem:[%s20645_s8 + $0x1e0] sm:$0xff] %v8902_v33 }
0x100d   :  { %9075 = vst [vmem:[%s20645_s8 + $0x2a0] sm:$0xff] %v8962_v40 }
0x100e   :  { %9004 = vst [vmem:[%s20645_s8 + $0x68] sm:$0xff] %v8784_v1 }
0x100f   :  { %9028 = vst [vmem:[%s20645_s8 + $0x128] sm:$0xff] %v8844_v26 }
0x1011   :  { %v8903_v29 = vpop.f32.mrf.mxu2  ;;  %v8963_v51 = vpop.f32.mrf.mxu3 }
0x1012   :  { %v8904_v3 = vadd.f32 %v20255_v25, %v8903_v29  ;;  %v8964_v63 = vadd.f32 %v20255_v25, %v8963_v51  ;;  %v8786_v24 = vpop.f32.mrf.mxu0  ;;  %v8846_v13 = vpop.f32.mrf.mxu1 }
0x1013   :  { %v8787_v45 = vadd.f32 %v20255_v25, %v8786_v24  ;;  %v8847_v56 = vadd.f32 %v20255_v25, %v8846_v13 }
0x1014   :  { %9052 = vst [vmem:[%s20645_s8 + $0x1e8] sm:$0xff] %v8904_v3 }
0x1015   :  { %9076 = vst [vmem:[%s20645_s8 + $0x2a8] sm:$0xff] %v8964_v63 }
0x1016   :  { %9005 = vst [vmem:[%s20645_s8 + $0x70] sm:$0xff] %v8787_v45 }
0x1017   :  { %9029 = vst [vmem:[%s20645_s8 + $0x130] sm:$0xff] %v8847_v56 }
0x1019   :  { %v8906_v20 = vpop.f32.mrf.mxu2  ;;  %v8966_v9 = vpop.f32.mrf.mxu3 }
0x101a   :  { %v8907_v32 = vadd.f32 %v20255_v25, %v8906_v20  ;;  %v8967_v18 = vadd.f32 %v20255_v25, %v8966_v9  ;;  %v8788_v53 = vpop.f32.mrf.mxu0  ;;  %v8848_v49 = vpop.f32.mrf.mxu1 }
0x101b   :  { %v8789_v15 = vadd.f32 %v20255_v25, %v8788_v53  ;;  %v8849_v27 = vadd.f32 %v20255_v25, %v8848_v49 }
0x101c   :  { %9053 = vst [vmem:[%s20645_s8 + $0x1f0] sm:$0xff] %v8907_v32 }
0x101d   :  { %9077 = vst [vmem:[%s20645_s8 + $0x2b0] sm:$0xff] %v8967_v18 }
0x101e   :  { %9006 = vst [vmem:[%s20645_s8 + $0x78] sm:$0xff] %v8789_v15 }
0x101f   :  { %9030 = vst [vmem:[%s20645_s8 + $0x138] sm:$0xff] %v8849_v27 }
0x1021   :  { %v8908_v54 = vpop.f32.mrf.mxu2  ;;  %v8968_v34 = vpop.f32.mrf.mxu3 }
0x1022   :  { %v8909_v42 = vadd.f32 %v20255_v25, %v8908_v54  ;;  %v8969_v0 = vadd.f32 %v20255_v25, %v8968_v34  ;;  %v8791_v60 = vpop.f32.mrf.mxu0  ;;  %v8851_v6 = vpop.f32.mrf.mxu1 }
0x1023   :  { %v8792_v43 = vadd.f32 %v20255_v25, %v8791_v60  ;;  %v8852_v47 = vadd.f32 %v20255_v25, %v8851_v6 }
0x1024   :  { %9054 = vst [vmem:[%s20645_s8 + $0x1f8] sm:$0xff] %v8909_v42 }
0x1025   :  { %9078 = vst [vmem:[%s20645_s8 + $0x2b8] sm:$0xff] %v8969_v0 }
0x1026   :  { %9007 = vst [vmem:[%s20645_s8 + $0x80] sm:$0xff] %v8792_v43 }
0x1027   :  { %9031 = vst [vmem:[%s20645_s8 + $0x140] sm:$0xff] %v8852_v47 }
0x1029   :  { %v8911_v22 = vpop.f32.mrf.mxu2  ;;  %v8971_v48 = vpop.f32.mrf.mxu3 }
0x102a   :  { %v8912_v21 = vadd.f32 %v20255_v25, %v8911_v22  ;;  %v8972_v38 = vadd.f32 %v20255_v25, %v8971_v48  ;;  %v8793_v35 = vpop.f32.mrf.mxu0  ;;  %v8853_v5 = vpop.f32.mrf.mxu1 }
0x102b   :  { %v8794_v4 = vadd.f32 %v20255_v25, %v8793_v35  ;;  %v8854_v8 = vadd.f32 %v20255_v25, %v8853_v5 }
0x102c   :  { %9055 = vst [vmem:[%s20645_s8 + $0x200] sm:$0xff] %v8912_v21 }
0x102d   :  { %9079 = vst [vmem:[%s20645_s8 + $0x2c0] sm:$0xff] %v8972_v38 }
0x102e   :  { %9008 = vst [vmem:[%s20645_s8 + $0x88] sm:$0xff] %v8794_v4 }
0x102f   :  { %9032 = vst [vmem:[%s20645_s8 + $0x148] sm:$0xff] %v8854_v8 }
0x1031   :  { %v8913_v50 = vpop.f32.mrf.mxu2  ;;  %v8973_v59 = vpop.f32.mrf.mxu3 }
0x1032   :  { %v8914_v57 = vadd.f32 %v20255_v25, %v8913_v50  ;;  %v8974_v11 = vadd.f32 %v20255_v25, %v8973_v59  ;;  %v8796_v10 = vpop.f32.mrf.mxu0  ;;  %v8856_v55 = vpop.f32.mrf.mxu1 }
0x1033   :  { %v8797_v58 = vadd.f32 %v20255_v25, %v8796_v10  ;;  %v8857_v30 = vadd.f32 %v20255_v25, %v8856_v55 }
0x1034   :  { %9056 = vst [vmem:[%s20645_s8 + $0x208] sm:$0xff] %v8914_v57 }
0x1035   :  { %9080 = vst [vmem:[%s20645_s8 + $0x2c8] sm:$0xff] %v8974_v11 }
0x1036   :  { %9009 = vst [vmem:[%s20645_s8 + $0x90] sm:$0xff] %v8797_v58 }
0x1037   :  { %9033 = vst [vmem:[%s20645_s8 + $0x150] sm:$0xff] %v8857_v30 }
0x1039   :  { %v8916_v17 = vpop.f32.mrf.mxu2  ;;  %v8976_v61 = vpop.f32.mrf.mxu3 }
0x103a   :  { %v8917_v28 = vadd.f32 %v20255_v25, %v8916_v17  ;;  %v8977_v62 = vadd.f32 %v20255_v25, %v8976_v61  ;;  %v8798_v2 = vpop.f32.mrf.mxu0  ;;  %v8858_v31 = vpop.f32.mrf.mxu1 }
0x103b   :  { %v8799_v44 = vadd.f32 %v20255_v25, %v8798_v2  ;;  %v8859_v52 = vadd.f32 %v20255_v25, %v8858_v31 }
0x103c   :  { %9057 = vst [vmem:[%s20645_s8 + $0x210] sm:$0xff] %v8917_v28 }
0x103d   :  { %9081 = vst [vmem:[%s20645_s8 + $0x2d0] sm:$0xff] %v8977_v62 }
0x103e   :  { %9010 = vst [vmem:[%s20645_s8 + $0x98] sm:$0xff] %v8799_v44 }
0x103f   :  { %9034 = vst [vmem:[%s20645_s8 + $0x158] sm:$0xff] %v8859_v52 }
0x1041   :  { %v8918_v41 = vpop.f32.mrf.mxu2  ;;  %v8978_v16 = vpop.f32.mrf.mxu3 }
0x1042   :  { %v8919_v14 = vadd.f32 %v20255_v25, %v8918_v41  ;;  %v8979_v36 = vadd.f32 %v20255_v25, %v8978_v16  ;;  %v8801_v19 = vpop.f32.mrf.mxu0  ;;  %v8861_v12 = vpop.f32.mrf.mxu1 }
0x1043   :  { %v8802_v37 = vadd.f32 %v20255_v25, %v8801_v19  ;;  %v8862_v23 = vadd.f32 %v20255_v25, %v8861_v12 }
0x1044   :  { %9058 = vst [vmem:[%s20645_s8 + $0x218] sm:$0xff] %v8919_v14 }
0x1045   :  { %9082 = vst [vmem:[%s20645_s8 + $0x2d8] sm:$0xff] %v8979_v36 }
0x1046   :  { %9011 = vst [vmem:[%s20645_s8 + $0xa0] sm:$0xff] %v8802_v37 }
0x1047   :  { %9035 = vst [vmem:[%s20645_s8 + $0x160] sm:$0xff] %v8862_v23 }
0x1049   :  { %v8921_v7 = vpop.f32.mrf.mxu2  ;;  %v8981_v33 = vpop.f32.mrf.mxu3 }
0x104a   :  { %v8922_v40 = vadd.f32 %v20255_v25, %v8921_v7  ;;  %v8982_v46 = vadd.f32 %v20255_v25, %v8981_v33  ;;  %v8803_v39 = vpop.f32.mrf.mxu0  ;;  %v8863_v1 = vpop.f32.mrf.mxu1 }
0x104b   :  { %v8804_v26 = vadd.f32 %v20255_v25, %v8803_v39  ;;  %v8864_v29 = vadd.f32 %v20255_v25, %v8863_v1 }
0x104c   :  { %9059 = vst [vmem:[%s20645_s8 + $0x220] sm:$0xff] %v8922_v40 }
0x104d   :  { %9083 = vst [vmem:[%s20645_s8 + $0x2e0] sm:$0xff] %v8982_v46 }
0x104e   :  { %9012 = vst [vmem:[%s20645_s8 + $0xa8] sm:$0xff] %v8804_v26 }
0x104f   :  { %9036 = vst [vmem:[%s20645_s8 + $0x168] sm:$0xff] %v8864_v29 }
0x1051   :  { %v8923_v51 = vpop.f32.mrf.mxu2  ;;  %v8983_v3 = vpop.f32.mrf.mxu3 }
0x1052   :  { %v8924_v63 = vadd.f32 %v20255_v25, %v8923_v51  ;;  %v8984_v24 = vadd.f32 %v20255_v25, %v8983_v3  ;;  %v8806_v13 = vpop.f32.mrf.mxu0  ;;  %v8866_v45 = vpop.f32.mrf.mxu1 }
0x1053   :  { %v8807_v56 = vadd.f32 %v20255_v25, %v8806_v13  ;;  %v8867_v20 = vadd.f32 %v20255_v25, %v8866_v45 }
0x1054   :  { %9060 = vst [vmem:[%s20645_s8 + $0x228] sm:$0xff] %v8924_v63 }
0x1055   :  { %9084 = vst [vmem:[%s20645_s8 + $0x2e8] sm:$0xff] %v8984_v24 }
0x1056   :  { %9013 = vst [vmem:[%s20645_s8 + $0xb0] sm:$0xff] %v8807_v56 }
0x1057   :  { %9037 = vst [vmem:[%s20645_s8 + $0x170] sm:$0xff] %v8867_v20 }
0x1059   :  { %v8926_v9 = vpop.f32.mrf.mxu2  ;;  %v8986_v32 = vpop.f32.mrf.mxu3 }
0x105a   :  { %v8927_v18 = vadd.f32 %v20255_v25, %v8926_v9  ;;  %v8987_v53 = vadd.f32 %v20255_v25, %v8986_v32  ;;  %v8808_v49 = vpop.f32.mrf.mxu0  ;;  %v8868_v15 = vpop.f32.mrf.mxu1 }
0x105b   :  { %v8809_v27 = vadd.f32 %v20255_v25, %v8808_v49  ;;  %v8869_v54 = vadd.f32 %v20255_v25, %v8868_v15 }
0x105c   :  { %9061 = vst [vmem:[%s20645_s8 + $0x230] sm:$0xff] %v8927_v18 }
0x105d   :  { %9085 = vst [vmem:[%s20645_s8 + $0x2f0] sm:$0xff] %v8987_v53 }
0x105e   :  { %9014 = vst [vmem:[%s20645_s8 + $0xb8] sm:$0xff] %v8809_v27 }
0x105f   :  { %9038 = vst [vmem:[%s20645_s8 + $0x178] sm:$0xff] %v8869_v54 }
0x1061   :  { %v8928_v34 = vpop.f32.mrf.mxu2  ;;  %v8988_v42 = vpop.f32.mrf.mxu3 }
0x1062   :  { %v8929_v0 = vadd.f32 %v20255_v25, %v8928_v34  ;;  %v8989_v60 = vadd.f32 %v20255_v25, %v8988_v42 }
0x1064   :  { %9062 = vst [vmem:[%s20645_s8 + $0x238] sm:$0xff] %v8929_v0 }
0x1065   :  { %9086 = vst [vmem:[%s20645_s8 + $0x2f8] sm:$0xff] %v8989_v60 }

</bundles_post_ra>
